<compile_context>
chip_gen: v6e
topology: v6e:2x2x1
jax: 0.10.0
libtpu: 0.0.40
codegen_flags: <defaults>
</compile_context>

<pallas_src>
import functools

import jax
import jax.numpy as jnp
from jax.experimental import pallas as pl
from jax.experimental.pallas import tpu as pltpu

CPAD = 128          # every conv/fc channel dim padded to one full 128-lane register
H1, W1 = 16, 16     # conv1/conv2 spatial size (see TODO in simple_cnn_forward)
P2_W = W1 + 2       # 18 : width of conv2's padded input grid
P2_ROWS = (H1 + 2) * P2_W        # 324 rows of the flattened 18x18 padded grid
P2_ALLOC = 328                    # +4 zero slack rows so tap (2,2) slab stays in bounds
S2_ROWS = H1 * P2_W               # 288 conv2 slab rows
H3, W3 = 8, 8
P3_W = W3 + 2                     # 10
P3_ALLOC = 104                    # 10*10 = 100, +4 slack rows
S3_ROWS = H3 * P3_W               # 80 conv3 slab rows

_COMPILER = pltpu.CompilerParams(
    dimension_semantics=("parallel",),
    vmem_limit_bytes=32 * 1024 * 1024,        # safe on v5e / v6e / v7x
)


# ------------------------------ the fused kernel ------------------------------

def _simple_cnn_kernel(p1_ref, m1_ref, w1_ref, b1_ref, w2_ref, b2_ref,
                       w3_ref, b3_ref, fw1_ref, fb1_ref, fw2_ref, fb2_ref,
                       out_ref,
                       pad2_ref, acc2_ref, pad3_ref, acc3_ref, feat_ref,
                       *, bblk):
    """Whole SimpleCNN forward for one block of `bblk` images.

    p1_ref  : (1, bblk, 328, 32) bf16  conv1 im2col patches over the 18x18 grid
    m1_ref  : (328, 1)           f32   1.0 on the 16x16 interior, 0.0 on the border
    w1_ref  : (32, 128)  bf16 ; b1_ref: (1,128) f32      (conv1, K = 27 -> 32)
    w2/w3   : (9, 128, 128) bf16 ; b2/b3: (1,128) f32    (tap-major conv weights)
    fw1     : (2048, 256) bf16 ; fb1: (1,256) f32
    fw2     : (256, 128)  bf16 ; fb2: (1,128) f32
    out_ref : (1, bblk, 128) f32  logits (padded to 128 lanes)
    scratch : pad2 (328,128) bf16, acc2 (288,128) f32,
              pad3 (104,128) f32,  acc3 (80,128) f32,  feat (bblk,2048) f32
    """
    mask1 = m1_ref[...]
    b1 = b1_ref[...]
    b2 = b2_ref[...]
    b3 = b3_ref[...]

    for b in range(bblk):
        # ---- conv1: single K=32 MXU matmul over the 18x18 double-padded grid.
        # Masked bias+ReLU directly produces conv2's zero-padded input in one
        # aligned full-block store (in-kernel halo pad, no scatter).
        raw1 = jnp.dot(p1_ref[0, b], w1_ref[...],
                       preferred_element_type=jnp.float32)          # (328, 128) f32
        pad2_ref[...] = (jnp.maximum(raw1 + b1, 0.0) * mask1).astype(pad2_ref.dtype)

        # ---- conv2: 9 tap matmuls over contiguous 288-row slabs of the
        # flattened padded input, accumulated in an f32 VMEM scratch.
        for t in range(9):
            off = (t // 3) * P2_W + (t % 3)
            contrib = jnp.dot(pad2_ref[off:off + S2_ROWS, :], w2_ref[t],
                              preferred_element_type=jnp.float32)   # (288, 128) f32
            if t == 0:
                acc2_ref[...] = contrib
            else:
                acc2_ref[...] += contrib

        # ---- fused maxpool(relu(conv2 + b2)): 2x2 maxima read straight from the
        # f32 accumulator with stride-2 row slices; bias+ReLU applied after the
        # max; result written as the interior of conv3's zero-padded 10x10 input.
        pad3_ref[...] = jnp.zeros_like(pad3_ref)
        for i in range(8):                       # pooled output row
            r0 = (2 * i) * P2_W
            r1 = (2 * i + 1) * P2_W
            m = jnp.maximum(
                jnp.maximum(acc2_ref[pl.ds(r0, 8, stride=2), :],
                            acc2_ref[pl.ds(r0 + 1, 8, stride=2), :]),
                jnp.maximum(acc2_ref[pl.ds(r1, 8, stride=2), :],
                            acc2_ref[pl.ds(r1 + 1, 8, stride=2), :]))
            m = jnp.maximum(m + b2, 0.0)                              # (8, 128) f32
            pad3_ref[(i + 1) * P3_W + 1:(i + 1) * P3_W + 9, :] = m

        # ---- conv3: 9 tap matmuls over 80-row slabs of the pooled padded input.
        for t in range(9):
            off = (t // 3) * P3_W + (t % 3)
            contrib = jnp.dot(
                pad3_ref[off:off + S3_ROWS, :].astype(jnp.bfloat16), w3_ref[t],
                preferred_element_type=jnp.float32)                  # (80, 128) f32
            if t == 0:
                acc3_ref[...] = contrib
            else:
                acc3_ref[...] += contrib

        # ---- fused maxpool(relu(conv3 + b3)) -> this image's flattened fc
        # feature row.  Torch's (C,H,W) flatten order + 64->128 channel padding
        # are pre-folded into fc1's weight, so the layout here is plain (h,w,c).
        for i in range(4):
            r0 = (2 * i) * P3_W
            r1 = (2 * i + 1) * P3_W
            m = jnp.maximum(
                jnp.maximum(acc3_ref[pl.ds(r0, 4, stride=2), :],
                            acc3_ref[pl.ds(r0 + 1, 4, stride=2), :]),
                jnp.maximum(acc3_ref[pl.ds(r1, 4, stride=2), :],
                            acc3_ref[pl.ds(r1 + 1, 4, stride=2), :]))
            m = jnp.maximum(m + b3, 0.0)                              # (4, 128) f32
            for j in range(4):
                col = (i * 4 + j) * CPAD
                feat_ref[b:b + 1, col:col + CPAD] = m[j:j + 1, :]

    # ---- fc1 + ReLU + Dropout(identity in eval) + fc2 for the whole block.
    feat = feat_ref[...].astype(jnp.bfloat16)                        # (bblk, 2048)
    h = jnp.dot(feat, fw1_ref[...], preferred_element_type=jnp.float32)
    h = jnp.maximum(h + fb1_ref[...], 0.0)
    logits = jnp.dot(h.astype(fw2_ref.dtype), fw2_ref[...],
                     preferred_element_type=jnp.float32)
    out_ref[0] = logits + fb2_ref[...]


# ------------------------------ parameters -----------------------------------

def init_torch_params(key, output_dim):
    """Random parameters in the PyTorch SimpleCNN layouts (f32)."""
    ks = jax.random.split(key, 10)

    def nrm(k, shape, scale=0.05):
        return (scale * jax.random.normal(k, shape)).astype(jnp.float32)

    return {
        "conv1_w": nrm(ks[0], (32, 3, 3, 3)),        # torch Conv2d: (Cout,Cin,kh,kw)
        "conv1_b": nrm(ks[1], (32,)),
        "conv2_w": nrm(ks[2], (64, 32, 3, 3)),
        "conv2_b": nrm(ks[3], (64,)),
        "conv3_w": nrm(ks[4], (64, 64, 3, 3)),
        "conv3_b": nrm(ks[5], (64,)),
        "fc1_w": nrm(ks[6], (256, 64 * 4 * 4)),      # torch Linear: (out, in)
        "fc1_b": nrm(ks[7], (256,)),
        "fc2_w": nrm(ks[8], (output_dim, 256)),
        "fc2_b": nrm(ks[9], (output_dim,)),
    }


def _conv_w_taps(w_oihw, cin_pad):
    """torch (Cout,Cin,3,3) -> (9, cin_pad, 128) bf16, tap-major (t = 3*kh + kw)."""
    cout, cin = w_oihw.shape[:2]
    w = jnp.transpose(w_oihw, (2, 3, 1, 0)).reshape(9, cin, cout)
    w = jnp.pad(w, ((0, 0), (0, cin_pad - cin), (0, CPAD - cout)))
    return w.astype(jnp.bfloat16)


def _conv1_w_flat(w_oihw):
    """torch (32,3,3,3) -> (32, 128) bf16 with rows ordered (kh, kw, cin)."""
    cout, cin = w_oihw.shape[:2]
    w = jnp.transpose(w_oihw, (2, 3, 1, 0)).reshape(9 * cin, cout)   # (27, 32)
    w = jnp.pad(w, ((0, 32 - 9 * cin), (0, CPAD - cout)))
    return w.astype(jnp.bfloat16)


def _bias_pad(b, width=CPAD):
    return jnp.pad(b, (0, width - b.shape[0])).reshape(1, width).astype(jnp.float32)


def prepare_params(tp, output_dim):
    """Convert torch-layout params to the padded bf16 layouts the kernel uses."""
    # Fold the torch flatten order (C=64, H=4, W=4 from NCHW) plus the 64->128
    # channel padding into fc1's weight, so the in-kernel flatten is plain (h,w,c).
    w1 = tp["fc1_w"].T.reshape(64, 4, 4, 256)        # rows indexed (c, h, w)
    w1 = jnp.transpose(w1, (1, 2, 0, 3))             # -> (h, w, c, 256)
    w1 = jnp.pad(w1, ((0, 0), (0, 0), (0, CPAD - 64), (0, 0)))
    w1 = w1.reshape(4 * 4 * CPAD, 256).astype(jnp.bfloat16)

    w2 = jnp.pad(tp["fc2_w"].T, ((0, 0), (0, CPAD - output_dim))).astype(jnp.bfloat16)

    return {
        "conv1_w": _conv1_w_flat(tp["conv1_w"]),
        "conv1_b": _bias_pad(tp["conv1_b"]),
        "conv2_w": _conv_w_taps(tp["conv2_w"], CPAD),
        "conv2_b": _bias_pad(tp["conv2_b"]),
        "conv3_w": _conv_w_taps(tp["conv3_w"], CPAD),
        "conv3_b": _bias_pad(tp["conv3_b"]),
        "fc1_w": w1,
        "fc1_b": tp["fc1_b"].reshape(1, 256).astype(jnp.float32),
        "fc2_w": w2,
        "fc2_b": _bias_pad(tp["fc2_b"]),
    }


# ------------------------------ forward pass ----------------------------------

def simple_cnn_forward(params, x, *, output_dim):
    # Mirror SimpleCNN.forward input handling (PyTorch NCHW convention).
    if x.ndim == 2:
        # TODO(synk): reference reshapes flat input to (-1,3,32,32); this config uses
        # (-1,3,16,16) so the two 2x2 pools land exactly on fc1's 64*4*4 fan-in.
        x = x.reshape(-1, 3, H1, W1)
    elif x.ndim == 4 and x.shape[1] != 3:
        # Same (fragile) heuristic as the torch module: treat as NHWC.
        x = jnp.transpose(x, (0, 3, 1, 2))
    x = jnp.transpose(x, (0, 2, 3, 1)).astype(jnp.bfloat16)          # NCHW -> NHWC
    n = x.shape[0]

    # conv1 im2col over the 18x18 double-padded grid (tiny: ~20 KiB / image).
    # Channel order = (tap, cin) to match _conv1_w_flat.
    xp = jnp.pad(x, ((0, 0), (2, 2), (2, 2), (0, 0)))                # (N,20,20,3)
    taps = [xp[:, di:di + P2_W, dj:dj + P2_W, :]
            for di in range(3) for dj in range(3)]
    p1 = jnp.concatenate(taps, axis=-1)                              # (N,18,18,27)
    p1 = p1.reshape(n, P2_ROWS, 27)
    p1 = jnp.pad(p1, ((0, 0), (0, P2_ALLOC - P2_ROWS), (0, 5)))      # -> (N,328,32)

    # Batch blocking: >=2 grid steps whenever N >= 2 (feeds both v7x cores),
    # several images per step for larger N to amortise per-step overhead.
    bblk = max(1, min(8, n // 2))
    nb = -(-n // bblk)
    npad = nb * bblk
    if npad != n:
        p1 = jnp.pad(p1, ((0, npad - n), (0, 0), (0, 0)))
    p1 = p1.reshape(nb, bblk, P2_ALLOC, 32)

    # Interior mask of the 18x18 grid (1.0 where a real conv1 output lives).
    r = jnp.arange(P2_ALLOC)
    hp, wp = r // P2_W, r % P2_W
    mask1 = (((hp >= 1) & (hp <= H1) & (wp >= 1) & (wp <= W1) & (r < P2_ROWS))
             .astype(jnp.float32).reshape(P2_ALLOC, 1))

    out = pl.pallas_call(
        functools.partial(_simple_cnn_kernel, bblk=bblk),
        out_shape=jax.ShapeDtypeStruct((nb, bblk, CPAD), jnp.float32),
        grid=(nb,),
        in_specs=[
            pl.BlockSpec((1, bblk, P2_ALLOC, 32), lambda i: (i, 0, 0, 0)),
            pl.BlockSpec((P2_ALLOC, 1), lambda i: (0, 0)),
            pl.BlockSpec((32, CPAD), lambda i: (0, 0)),
            pl.BlockSpec((1, CPAD), lambda i: (0, 0)),
            pl.BlockSpec((9, CPAD, CPAD), lambda i: (0, 0, 0)),
            pl.BlockSpec((1, CPAD), lambda i: (0, 0)),
            pl.BlockSpec((9, CPAD, CPAD), lambda i: (0, 0, 0)),
            pl.BlockSpec((1, CPAD), lambda i: (0, 0)),
            pl.BlockSpec((4 * 4 * CPAD, 256), lambda i: (0, 0)),
            pl.BlockSpec((1, 256), lambda i: (0, 0)),
            pl.BlockSpec((256, CPAD), lambda i: (0, 0)),
            pl.BlockSpec((1, CPAD), lambda i: (0, 0)),
        ],
        out_specs=pl.BlockSpec((1, bblk, CPAD), lambda i: (i, 0, 0)),
        scratch_shapes=[
            pltpu.VMEM((P2_ALLOC, CPAD), jnp.bfloat16),   # pad2 : conv2 padded input
            pltpu.VMEM((S2_ROWS, CPAD), jnp.float32),     # acc2 : conv2 accumulator
            pltpu.VMEM((P3_ALLOC, CPAD), jnp.float32),    # pad3 : conv3 padded input
            pltpu.VMEM((S3_ROWS, CPAD), jnp.float32),     # acc3 : conv3 accumulator
            pltpu.VMEM((bblk, 4 * 4 * CPAD), jnp.float32),  # feat : fc input rows
        ],
        compiler_params=_COMPILER,
    )(p1, mask1,
      params["conv1_w"], params["conv1_b"],
      params["conv2_w"], params["conv2_b"],
      params["conv3_w"], params["conv3_b"],
      params["fc1_w"], params["fc1_b"],
      params["fc2_w"], params["fc2_b"])

    # Dropout(0.5): identity in eval mode (already omitted in the fused kernel).
    return out.reshape(npad, CPAD)[:n, :output_dim]


if __name__ == "__main__":
    key = jax.random.PRNGKey(0)
    pkey, xkey = jax.random.split(key)
    torch_params = init_torch_params(pkey, output_dim=10)
    params = prepare_params(torch_params, output_dim=10)
    # Small CIFAR-like input, NCHW (batch=2, 3 channels, 16x16 spatial) so the two
    # 2x2 max-pools land exactly on the 64*4*4 fc1 fan-in.
    x = jax.random.normal(xkey, (2, 3, 16, 16), dtype=jnp.float32)
    fwd = jax.jit(functools.partial(simple_cnn_forward, output_dim=10))
    out = jax.block_until_ready(fwd(params, x))
    assert out.shape == (2, 10), out.shape
    assert bool(jnp.all(jnp.isfinite(out)))
    print("KERNEL_OK")
</pallas_src>

<mosaic_0001>
module attributes {stable_mosaic.version = 11 : i64} {
  func.func @_simple_cnn_kernel(%arg0: i32, %arg1: memref<1x1x328x32xbf16, #tpu.memory_space<vmem>>, %arg2: memref<328x1xf32, #tpu.memory_space<vmem>>, %arg3: memref<32x128xbf16, #tpu.memory_space<vmem>>, %arg4: memref<1x128xf32, #tpu.memory_space<vmem>>, %arg5: memref<9x128x128xbf16, #tpu.memory_space<vmem>>, %arg6: memref<1x128xf32, #tpu.memory_space<vmem>>, %arg7: memref<9x128x128xbf16, #tpu.memory_space<vmem>>, %arg8: memref<1x128xf32, #tpu.memory_space<vmem>>, %arg9: memref<2048x256xbf16, #tpu.memory_space<vmem>>, %arg10: memref<1x256xf32, #tpu.memory_space<vmem>>, %arg11: memref<256x128xbf16, #tpu.memory_space<vmem>>, %arg12: memref<1x128xf32, #tpu.memory_space<vmem>>, %arg13: memref<1x1x128xf32, #tpu.memory_space<vmem>>, %arg14: memref<328x128xbf16, #tpu.memory_space<vmem>>, %arg15: memref<288x128xf32, #tpu.memory_space<vmem>>, %arg16: memref<104x128xf32, #tpu.memory_space<vmem>>, %arg17: memref<80x128xf32, #tpu.memory_space<vmem>>, %arg18: memref<1x2048xf32, #tpu.memory_space<vmem>>) attributes {dimension_semantics = [#tpu.dimension_semantics<parallel>], iteration_bounds = array<i64: 2>, scalar_prefetch = 0 : i64, scratch_operands = 5 : i64, tpu.core_type = #tpu.core_type<tc>, window_params = [{transform_indices = @transform_0, window_bounds = array<i64: 1, 1, 328, 32>}, {pipeline_mode = #tpu.pipeline_mode<synchronous>, transform_indices = @transform_1, window_bounds = array<i64: 328, 1>}, {pipeline_mode = #tpu.pipeline_mode<synchronous>, transform_indices = @transform_2, window_bounds = array<i64: 32, 128>}, {pipeline_mode = #tpu.pipeline_mode<synchronous>, transform_indices = @transform_3, window_bounds = array<i64: 1, 128>}, {pipeline_mode = #tpu.pipeline_mode<synchronous>, transform_indices = @transform_4, window_bounds = array<i64: 9, 128, 128>}, {pipeline_mode = #tpu.pipeline_mode<synchronous>, transform_indices = @transform_5, window_bounds = array<i64: 1, 128>}, {pipeline_mode = #tpu.pipeline_mode<synchronous>, transform_indices = @transform_6, window_bounds = array<i64: 9, 128, 128>}, {pipeline_mode = #tpu.pipeline_mode<synchronous>, transform_indices = @transform_7, window_bounds = array<i64: 1, 128>}, {pipeline_mode = #tpu.pipeline_mode<synchronous>, transform_indices = @transform_8, window_bounds = array<i64: 2048, 256>}, {pipeline_mode = #tpu.pipeline_mode<synchronous>, transform_indices = @transform_9, window_bounds = array<i64: 1, 256>}, {pipeline_mode = #tpu.pipeline_mode<synchronous>, transform_indices = @transform_10, window_bounds = array<i64: 256, 128>}, {pipeline_mode = #tpu.pipeline_mode<synchronous>, transform_indices = @transform_11, window_bounds = array<i64: 1, 128>}, {transform_indices = @transform_12, window_bounds = array<i64: 1, 1, 128>}]} {
    %c0 = arith.constant 0 : index
    %c0_0 = arith.constant 0 : index
    %0 = vector.load %arg2[%c0, %c0_0] : memref<328x1xf32, #tpu.memory_space<vmem>>, vector<328x1xf32>
    %c0_1 = arith.constant 0 : index
    %c0_2 = arith.constant 0 : index
    %1 = vector.load %arg4[%c0_1, %c0_2] : memref<1x128xf32, #tpu.memory_space<vmem>>, vector<1x128xf32>
    %c0_3 = arith.constant 0 : index
    %c0_4 = arith.constant 0 : index
    %2 = vector.load %arg6[%c0_3, %c0_4] : memref<1x128xf32, #tpu.memory_space<vmem>>, vector<1x128xf32>
    %c0_5 = arith.constant 0 : index
    %c0_6 = arith.constant 0 : index
    %3 = vector.load %arg8[%c0_5, %c0_6] : memref<1x128xf32, #tpu.memory_space<vmem>>, vector<1x128xf32>
    %c0_7 = arith.constant 0 : index
    %c0_8 = arith.constant 0 : index
    %c0_9 = arith.constant 0 : index
    %c0_10 = arith.constant 0 : index
    %4 = vector.load %arg1[%c0_7, %c0_8, %c0_9, %c0_10] : memref<1x1x328x32xbf16, #tpu.memory_space<vmem>>, vector<1x1x328x32xbf16>
    %5 = vector.shape_cast %4 : vector<1x1x328x32xbf16> to vector<328x32xbf16>
    %c0_11 = arith.constant 0 : index
    %c0_12 = arith.constant 0 : index
    %6 = vector.load %arg3[%c0_11, %c0_12] : memref<32x128xbf16, #tpu.memory_space<vmem>>, vector<32x128xbf16>
    %cst = arith.constant dense<0.000000e+00> : vector<328x128xf32>
    %7 = tpu.matmul %5, %6, %cst {dimension_numbers = #tpu.dot_dimension_numbers<[1], [0], [0], [1], [0, 0, 1, 1], [], []>} : vector<328x32xbf16>, vector<32x128xbf16>, vector<328x128xf32> -> vector<328x128xf32>
    %8 = vector.broadcast %1 : vector<1x128xf32> to vector<328x128xf32>
    %9 = arith.addf %7, %8 : vector<328x128xf32>
    %cst_13 = arith.constant 0.000000e+00 : f32
    %10 = vector.broadcast %cst_13 : f32 to vector<328x128xf32>
    %11 = arith.maximumf %9, %10 : vector<328x128xf32>
    %12 = vector.broadcast %0 : vector<328x1xf32> to vector<328x128xf32>
    %13 = arith.mulf %11, %12 : vector<328x128xf32>
    %14 = arith.truncf %13 : vector<328x128xf32> to vector<328x128xbf16>
    %c0_14 = arith.constant 0 : index
    %c0_15 = arith.constant 0 : index
    %15 = vector.load %arg14[%c0_14, %c0_15] : memref<328x128xbf16, #tpu.memory_space<vmem>>, vector<328x128xbf16>
    tpu.vector_store %arg14[%c0_14, %c0_15], %14 {strides = array<i32>} : memref<328x128xbf16, #tpu.memory_space<vmem>>, vector<328x128xbf16>,
    %c0_16 = arith.constant 0 : index
    %c0_17 = arith.constant 0 : index
    %16 = vector.load %arg14[%c0_16, %c0_17] : memref<328x128xbf16, #tpu.memory_space<vmem>>, vector<288x128xbf16>
    %c0_18 = arith.constant 0 : index
    %c0_19 = arith.constant 0 : index
    %c0_20 = arith.constant 0 : index
    %17 = vector.load %arg5[%c0_18, %c0_19, %c0_20] : memref<9x128x128xbf16, #tpu.memory_space<vmem>>, vector<1x128x128xbf16>
    %18 = vector.shape_cast %17 : vector<1x128x128xbf16> to vector<128x128xbf16>
    %cst_21 = arith.constant dense<0.000000e+00> : vector<288x128xf32>
    %19 = tpu.matmul %16, %18, %cst_21 {dimension_numbers = #tpu.dot_dimension_numbers<[1], [0], [0], [1], [0, 0, 1, 1], [], []>} : vector<288x128xbf16>, vector<128x128xbf16>, vector<288x128xf32> -> vector<288x128xf32>
    %c0_22 = arith.constant 0 : index
    %c0_23 = arith.constant 0 : index
    %20 = vector.load %arg15[%c0_22, %c0_23] : memref<288x128xf32, #tpu.memory_space<vmem>>, vector<288x128xf32>
    tpu.vector_store %arg15[%c0_22, %c0_23], %19 {strides = array<i32>} : memref<288x128xf32, #tpu.memory_space<vmem>>, vector<288x128xf32>,
    %c1 = arith.constant 1 : index
    %c0_24 = arith.constant 0 : index
    %21 = vector.load %arg14[%c1, %c0_24] : memref<328x128xbf16, #tpu.memory_space<vmem>>, vector<288x128xbf16>
    %c1_25 = arith.constant 1 : index
    %c0_26 = arith.constant 0 : index
    %c0_27 = arith.constant 0 : index
    %22 = vector.load %arg5[%c1_25, %c0_26, %c0_27] : memref<9x128x128xbf16, #tpu.memory_space<vmem>>, vector<1x128x128xbf16>
    %23 = vector.shape_cast %22 : vector<1x128x128xbf16> to vector<128x128xbf16>
    %cst_28 = arith.constant dense<0.000000e+00> : vector<288x128xf32>
    %24 = tpu.matmul %21, %23, %cst_28 {dimension_numbers = #tpu.dot_dimension_numbers<[1], [0], [0], [1], [0, 0, 1, 1], [], []>} : vector<288x128xbf16>, vector<128x128xbf16>, vector<288x128xf32> -> vector<288x128xf32>
    %c0_29 = arith.constant 0 : index
    %c0_30 = arith.constant 0 : index
    %25 = vector.load %arg15[%c0_29, %c0_30] : memref<288x128xf32, #tpu.memory_space<vmem>>, vector<288x128xf32>
    %26 = arith.addf %25, %24 : vector<288x128xf32>
    %c0_31 = arith.constant 0 : index
    %c0_32 = arith.constant 0 : index
    %27 = vector.load %arg15[%c0_31, %c0_32] : memref<288x128xf32, #tpu.memory_space<vmem>>, vector<288x128xf32>
    tpu.vector_store %arg15[%c0_31, %c0_32], %26 {strides = array<i32>} : memref<288x128xf32, #tpu.memory_space<vmem>>, vector<288x128xf32>,
    %c2 = arith.constant 2 : index
    %c0_33 = arith.constant 0 : index
    %28 = vector.load %arg14[%c2, %c0_33] : memref<328x128xbf16, #tpu.memory_space<vmem>>, vector<288x128xbf16>
    %c2_34 = arith.constant 2 : index
    %c0_35 = arith.constant 0 : index
    %c0_36 = arith.constant 0 : index
    %29 = vector.load %arg5[%c2_34, %c0_35, %c0_36] : memref<9x128x128xbf16, #tpu.memory_space<vmem>>, vector<1x128x128xbf16>
    %30 = vector.shape_cast %29 : vector<1x128x128xbf16> to vector<128x128xbf16>
    %cst_37 = arith.constant dense<0.000000e+00> : vector<288x128xf32>
    %31 = tpu.matmul %28, %30, %cst_37 {dimension_numbers = #tpu.dot_dimension_numbers<[1], [0], [0], [1], [0, 0, 1, 1], [], []>} : vector<288x128xbf16>, vector<128x128xbf16>, vector<288x128xf32> -> vector<288x128xf32>
    %c0_38 = arith.constant 0 : index
    %c0_39 = arith.constant 0 : index
    %32 = vector.load %arg15[%c0_38, %c0_39] : memref<288x128xf32, #tpu.memory_space<vmem>>, vector<288x128xf32>
    %33 = arith.addf %32, %31 : vector<288x128xf32>
    %c0_40 = arith.constant 0 : index
    %c0_41 = arith.constant 0 : index
    %34 = vector.load %arg15[%c0_40, %c0_41] : memref<288x128xf32, #tpu.memory_space<vmem>>, vector<288x128xf32>
    tpu.vector_store %arg15[%c0_40, %c0_41], %33 {strides = array<i32>} : memref<288x128xf32, #tpu.memory_space<vmem>>, vector<288x128xf32>,
    %c18 = arith.constant 18 : index
    %c0_42 = arith.constant 0 : index
    %35 = vector.load %arg14[%c18, %c0_42] : memref<328x128xbf16, #tpu.memory_space<vmem>>, vector<288x128xbf16>
    %c3 = arith.constant 3 : index
    %c0_43 = arith.constant 0 : index
    %c0_44 = arith.constant 0 : index
    %36 = vector.load %arg5[%c3, %c0_43, %c0_44] : memref<9x128x128xbf16, #tpu.memory_space<vmem>>, vector<1x128x128xbf16>
    %37 = vector.shape_cast %36 : vector<1x128x128xbf16> to vector<128x128xbf16>
    %cst_45 = arith.constant dense<0.000000e+00> : vector<288x128xf32>
    %38 = tpu.matmul %35, %37, %cst_45 {dimension_numbers = #tpu.dot_dimension_numbers<[1], [0], [0], [1], [0, 0, 1, 1], [], []>} : vector<288x128xbf16>, vector<128x128xbf16>, vector<288x128xf32> -> vector<288x128xf32>
    %c0_46 = arith.constant 0 : index
    %c0_47 = arith.constant 0 : index
    %39 = vector.load %arg15[%c0_46, %c0_47] : memref<288x128xf32, #tpu.memory_space<vmem>>, vector<288x128xf32>
    %40 = arith.addf %39, %38 : vector<288x128xf32>
    %c0_48 = arith.constant 0 : index
    %c0_49 = arith.constant 0 : index
    %41 = vector.load %arg15[%c0_48, %c0_49] : memref<288x128xf32, #tpu.memory_space<vmem>>, vector<288x128xf32>
    tpu.vector_store %arg15[%c0_48, %c0_49], %40 {strides = array<i32>} : memref<288x128xf32, #tpu.memory_space<vmem>>, vector<288x128xf32>,
    %c19 = arith.constant 19 : index
    %c0_50 = arith.constant 0 : index
    %42 = vector.load %arg14[%c19, %c0_50] : memref<328x128xbf16, #tpu.memory_space<vmem>>, vector<288x128xbf16>
    %c4 = arith.constant 4 : index
    %c0_51 = arith.constant 0 : index
    %c0_52 = arith.constant 0 : index
    %43 = vector.load %arg5[%c4, %c0_51, %c0_52] : memref<9x128x128xbf16, #tpu.memory_space<vmem>>, vector<1x128x128xbf16>
    %44 = vector.shape_cast %43 : vector<1x128x128xbf16> to vector<128x128xbf16>
    %cst_53 = arith.constant dense<0.000000e+00> : vector<288x128xf32>
    %45 = tpu.matmul %42, %44, %cst_53 {dimension_numbers = #tpu.dot_dimension_numbers<[1], [0], [0], [1], [0, 0, 1, 1], [], []>} : vector<288x128xbf16>, vector<128x128xbf16>, vector<288x128xf32> -> vector<288x128xf32>
    %c0_54 = arith.constant 0 : index
    %c0_55 = arith.constant 0 : index
    %46 = vector.load %arg15[%c0_54, %c0_55] : memref<288x128xf32, #tpu.memory_space<vmem>>, vector<288x128xf32>
    %47 = arith.addf %46, %45 : vector<288x128xf32>
    %c0_56 = arith.constant 0 : index
    %c0_57 = arith.constant 0 : index
    %48 = vector.load %arg15[%c0_56, %c0_57] : memref<288x128xf32, #tpu.memory_space<vmem>>, vector<288x128xf32>
    tpu.vector_store %arg15[%c0_56, %c0_57], %47 {strides = array<i32>} : memref<288x128xf32, #tpu.memory_space<vmem>>, vector<288x128xf32>,
    %c20 = arith.constant 20 : index
    %c0_58 = arith.constant 0 : index
    %49 = vector.load %arg14[%c20, %c0_58] : memref<328x128xbf16, #tpu.memory_space<vmem>>, vector<288x128xbf16>
    %c5 = arith.constant 5 : index
    %c0_59 = arith.constant 0 : index
    %c0_60 = arith.constant 0 : index
    %50 = vector.load %arg5[%c5, %c0_59, %c0_60] : memref<9x128x128xbf16, #tpu.memory_space<vmem>>, vector<1x128x128xbf16>
    %51 = vector.shape_cast %50 : vector<1x128x128xbf16> to vector<128x128xbf16>
    %cst_61 = arith.constant dense<0.000000e+00> : vector<288x128xf32>
    %52 = tpu.matmul %49, %51, %cst_61 {dimension_numbers = #tpu.dot_dimension_numbers<[1], [0], [0], [1], [0, 0, 1, 1], [], []>} : vector<288x128xbf16>, vector<128x128xbf16>, vector<288x128xf32> -> vector<288x128xf32>
    %c0_62 = arith.constant 0 : index
    %c0_63 = arith.constant 0 : index
    %53 = vector.load %arg15[%c0_62, %c0_63] : memref<288x128xf32, #tpu.memory_space<vmem>>, vector<288x128xf32>
    %54 = arith.addf %53, %52 : vector<288x128xf32>
    %c0_64 = arith.constant 0 : index
    %c0_65 = arith.constant 0 : index
    %55 = vector.load %arg15[%c0_64, %c0_65] : memref<288x128xf32, #tpu.memory_space<vmem>>, vector<288x128xf32>
    tpu.vector_store %arg15[%c0_64, %c0_65], %54 {strides = array<i32>} : memref<288x128xf32, #tpu.memory_space<vmem>>, vector<288x128xf32>,
    %c36 = arith.constant 36 : index
    %c0_66 = arith.constant 0 : index
    %56 = vector.load %arg14[%c36, %c0_66] : memref<328x128xbf16, #tpu.memory_space<vmem>>, vector<288x128xbf16>
    %c6 = arith.constant 6 : index
    %c0_67 = arith.constant 0 : index
    %c0_68 = arith.constant 0 : index
    %57 = vector.load %arg5[%c6, %c0_67, %c0_68] : memref<9x128x128xbf16, #tpu.memory_space<vmem>>, vector<1x128x128xbf16>
    %58 = vector.shape_cast %57 : vector<1x128x128xbf16> to vector<128x128xbf16>
    %cst_69 = arith.constant dense<0.000000e+00> : vector<288x128xf32>
    %59 = tpu.matmul %56, %58, %cst_69 {dimension_numbers = #tpu.dot_dimension_numbers<[1], [0], [0], [1], [0, 0, 1, 1], [], []>} : vector<288x128xbf16>, vector<128x128xbf16>, vector<288x128xf32> -> vector<288x128xf32>
    %c0_70 = arith.constant 0 : index
    %c0_71 = arith.constant 0 : index
    %60 = vector.load %arg15[%c0_70, %c0_71] : memref<288x128xf32, #tpu.memory_space<vmem>>, vector<288x128xf32>
    %61 = arith.addf %60, %59 : vector<288x128xf32>
    %c0_72 = arith.constant 0 : index
    %c0_73 = arith.constant 0 : index
    %62 = vector.load %arg15[%c0_72, %c0_73] : memref<288x128xf32, #tpu.memory_space<vmem>>, vector<288x128xf32>
    tpu.vector_store %arg15[%c0_72, %c0_73], %61 {strides = array<i32>} : memref<288x128xf32, #tpu.memory_space<vmem>>, vector<288x128xf32>,
    %c37 = arith.constant 37 : index
    %c0_74 = arith.constant 0 : index
    %63 = vector.load %arg14[%c37, %c0_74] : memref<328x128xbf16, #tpu.memory_space<vmem>>, vector<288x128xbf16>
    %c7 = arith.constant 7 : index
    %c0_75 = arith.constant 0 : index
    %c0_76 = arith.constant 0 : index
    %64 = vector.load %arg5[%c7, %c0_75, %c0_76] : memref<9x128x128xbf16, #tpu.memory_space<vmem>>, vector<1x128x128xbf16>
    %65 = vector.shape_cast %64 : vector<1x128x128xbf16> to vector<128x128xbf16>
    %cst_77 = arith.constant dense<0.000000e+00> : vector<288x128xf32>
    %66 = tpu.matmul %63, %65, %cst_77 {dimension_numbers = #tpu.dot_dimension_numbers<[1], [0], [0], [1], [0, 0, 1, 1], [], []>} : vector<288x128xbf16>, vector<128x128xbf16>, vector<288x128xf32> -> vector<288x128xf32>
    %c0_78 = arith.constant 0 : index
    %c0_79 = arith.constant 0 : index
    %67 = vector.load %arg15[%c0_78, %c0_79] : memref<288x128xf32, #tpu.memory_space<vmem>>, vector<288x128xf32>
    %68 = arith.addf %67, %66 : vector<288x128xf32>
    %c0_80 = arith.constant 0 : index
    %c0_81 = arith.constant 0 : index
    %69 = vector.load %arg15[%c0_80, %c0_81] : memref<288x128xf32, #tpu.memory_space<vmem>>, vector<288x128xf32>
    tpu.vector_store %arg15[%c0_80, %c0_81], %68 {strides = array<i32>} : memref<288x128xf32, #tpu.memory_space<vmem>>, vector<288x128xf32>,
    %c38 = arith.constant 38 : index
    %c0_82 = arith.constant 0 : index
    %70 = vector.load %arg14[%c38, %c0_82] : memref<328x128xbf16, #tpu.memory_space<vmem>>, vector<288x128xbf16>
    %c8 = arith.constant 8 : index
    %c0_83 = arith.constant 0 : index
    %c0_84 = arith.constant 0 : index
    %71 = vector.load %arg5[%c8, %c0_83, %c0_84] : memref<9x128x128xbf16, #tpu.memory_space<vmem>>, vector<1x128x128xbf16>
    %72 = vector.shape_cast %71 : vector<1x128x128xbf16> to vector<128x128xbf16>
    %cst_85 = arith.constant dense<0.000000e+00> : vector<288x128xf32>
    %73 = tpu.matmul %70, %72, %cst_85 {dimension_numbers = #tpu.dot_dimension_numbers<[1], [0], [0], [1], [0, 0, 1, 1], [], []>} : vector<288x128xbf16>, vector<128x128xbf16>, vector<288x128xf32> -> vector<288x128xf32>
    %c0_86 = arith.constant 0 : index
    %c0_87 = arith.constant 0 : index
    %74 = vector.load %arg15[%c0_86, %c0_87] : memref<288x128xf32, #tpu.memory_space<vmem>>, vector<288x128xf32>
    %75 = arith.addf %74, %73 : vector<288x128xf32>
    %c0_88 = arith.constant 0 : index
    %c0_89 = arith.constant 0 : index
    %76 = vector.load %arg15[%c0_88, %c0_89] : memref<288x128xf32, #tpu.memory_space<vmem>>, vector<288x128xf32>
    tpu.vector_store %arg15[%c0_88, %c0_89], %75 {strides = array<i32>} : memref<288x128xf32, #tpu.memory_space<vmem>>, vector<288x128xf32>,
    %cst_90 = arith.constant 0.000000e+00 : f32
    %77 = vector.broadcast %cst_90 : f32 to vector<104x128xf32>
    %c0_91 = arith.constant 0 : index
    %c0_92 = arith.constant 0 : index
    %78 = vector.load %arg16[%c0_91, %c0_92] : memref<104x128xf32, #tpu.memory_space<vmem>>, vector<104x128xf32>
    tpu.vector_store %arg16[%c0_91, %c0_92], %77 {strides = array<i32>} : memref<104x128xf32, #tpu.memory_space<vmem>>, vector<104x128xf32>,
    %c0_93 = arith.constant 0 : index
    %c0_94 = arith.constant 0 : index
    %79 = tpu.strided_load %arg15[%c0_93, %c0_94] {strides = array<i32: 2, 1>} : memref<288x128xf32, #tpu.memory_space<vmem>>, vector<8x128xf32>
    %c1_95 = arith.constant 1 : index
    %c0_96 = arith.constant 0 : index
    %80 = tpu.strided_load %arg15[%c1_95, %c0_96] {strides = array<i32: 2, 1>} : memref<288x128xf32, #tpu.memory_space<vmem>>, vector<8x128xf32>
    %81 = arith.maximumf %79, %80 : vector<8x128xf32>
    %c18_97 = arith.constant 18 : index
    %c0_98 = arith.constant 0 : index
    %82 = tpu.strided_load %arg15[%c18_97, %c0_98] {strides = array<i32: 2, 1>} : memref<288x128xf32, #tpu.memory_space<vmem>>, vector<8x128xf32>
    %c19_99 = arith.constant 19 : index
    %c0_100 = arith.constant 0 : index
    %83 = tpu.strided_load %arg15[%c19_99, %c0_100] {strides = array<i32: 2, 1>} : memref<288x128xf32, #tpu.memory_space<vmem>>, vector<8x128xf32>
    %84 = arith.maximumf %82, %83 : vector<8x128xf32>
    %85 = arith.maximumf %81, %84 : vector<8x128xf32>
    %86 = vector.broadcast %2 : vector<1x128xf32> to vector<8x128xf32>
    %87 = arith.addf %85, %86 : vector<8x128xf32>
    %cst_101 = arith.constant 0.000000e+00 : f32
    %88 = vector.broadcast %cst_101 : f32 to vector<8x128xf32>
    %89 = arith.maximumf %87, %88 : vector<8x128xf32>
    %c11 = arith.constant 11 : index
    %c0_102 = arith.constant 0 : index
    %90 = vector.load %arg16[%c11, %c0_102] : memref<104x128xf32, #tpu.memory_space<vmem>>, vector<8x128xf32>
    tpu.vector_store %arg16[%c11, %c0_102], %89 {strides = array<i32>} : memref<104x128xf32, #tpu.memory_space<vmem>>, vector<8x128xf32>,
    %c36_103 = arith.constant 36 : index
    %c0_104 = arith.constant 0 : index
    %91 = tpu.strided_load %arg15[%c36_103, %c0_104] {strides = array<i32: 2, 1>} : memref<288x128xf32, #tpu.memory_space<vmem>>, vector<8x128xf32>
    %c37_105 = arith.constant 37 : index
    %c0_106 = arith.constant 0 : index
    %92 = tpu.strided_load %arg15[%c37_105, %c0_106] {strides = array<i32: 2, 1>} : memref<288x128xf32, #tpu.memory_space<vmem>>, vector<8x128xf32>
    %93 = arith.maximumf %91, %92 : vector<8x128xf32>
    %c54 = arith.constant 54 : index
    %c0_107 = arith.constant 0 : index
    %94 = tpu.strided_load %arg15[%c54, %c0_107] {strides = array<i32: 2, 1>} : memref<288x128xf32, #tpu.memory_space<vmem>>, vector<8x128xf32>
    %c55 = arith.constant 55 : index
    %c0_108 = arith.constant 0 : index
    %95 = tpu.strided_load %arg15[%c55, %c0_108] {strides = array<i32: 2, 1>} : memref<288x128xf32, #tpu.memory_space<vmem>>, vector<8x128xf32>
    %96 = arith.maximumf %94, %95 : vector<8x128xf32>
    %97 = arith.maximumf %93, %96 : vector<8x128xf32>
    %98 = vector.broadcast %2 : vector<1x128xf32> to vector<8x128xf32>
    %99 = arith.addf %97, %98 : vector<8x128xf32>
    %cst_109 = arith.constant 0.000000e+00 : f32
    %100 = vector.broadcast %cst_109 : f32 to vector<8x128xf32>
    %101 = arith.maximumf %99, %100 : vector<8x128xf32>
    %c21 = arith.constant 21 : index
    %c0_110 = arith.constant 0 : index
    %102 = vector.load %arg16[%c21, %c0_110] : memref<104x128xf32, #tpu.memory_space<vmem>>, vector<8x128xf32>
    tpu.vector_store %arg16[%c21, %c0_110], %101 {strides = array<i32>} : memref<104x128xf32, #tpu.memory_space<vmem>>, vector<8x128xf32>,
    %c72 = arith.constant 72 : index
    %c0_111 = arith.constant 0 : index
    %103 = tpu.strided_load %arg15[%c72, %c0_111] {strides = array<i32: 2, 1>} : memref<288x128xf32, #tpu.memory_space<vmem>>, vector<8x128xf32>
    %c73 = arith.constant 73 : index
    %c0_112 = arith.constant 0 : index
    %104 = tpu.strided_load %arg15[%c73, %c0_112] {strides = array<i32: 2, 1>} : memref<288x128xf32, #tpu.memory_space<vmem>>, vector<8x128xf32>
    %105 = arith.maximumf %103, %104 : vector<8x128xf32>
    %c90 = arith.constant 90 : index
    %c0_113 = arith.constant 0 : index
    %106 = tpu.strided_load %arg15[%c90, %c0_113] {strides = array<i32: 2, 1>} : memref<288x128xf32, #tpu.memory_space<vmem>>, vector<8x128xf32>
    %c91 = arith.constant 91 : index
    %c0_114 = arith.constant 0 : index
    %107 = tpu.strided_load %arg15[%c91, %c0_114] {strides = array<i32: 2, 1>} : memref<288x128xf32, #tpu.memory_space<vmem>>, vector<8x128xf32>
    %108 = arith.maximumf %106, %107 : vector<8x128xf32>
    %109 = arith.maximumf %105, %108 : vector<8x128xf32>
    %110 = vector.broadcast %2 : vector<1x128xf32> to vector<8x128xf32>
    %111 = arith.addf %109, %110 : vector<8x128xf32>
    %cst_115 = arith.constant 0.000000e+00 : f32
    %112 = vector.broadcast %cst_115 : f32 to vector<8x128xf32>
    %113 = arith.maximumf %111, %112 : vector<8x128xf32>
    %c31 = arith.constant 31 : index
    %c0_116 = arith.constant 0 : index
    %114 = vector.load %arg16[%c31, %c0_116] : memref<104x128xf32, #tpu.memory_space<vmem>>, vector<8x128xf32>
    tpu.vector_store %arg16[%c31, %c0_116], %113 {strides = array<i32>} : memref<104x128xf32, #tpu.memory_space<vmem>>, vector<8x128xf32>,
    %c108 = arith.constant 108 : index
    %c0_117 = arith.constant 0 : index
    %115 = tpu.strided_load %arg15[%c108, %c0_117] {strides = array<i32: 2, 1>} : memref<288x128xf32, #tpu.memory_space<vmem>>, vector<8x128xf32>
    %c109 = arith.constant 109 : index
    %c0_118 = arith.constant 0 : index
    %116 = tpu.strided_load %arg15[%c109, %c0_118] {strides = array<i32: 2, 1>} : memref<288x128xf32, #tpu.memory_space<vmem>>, vector<8x128xf32>
    %117 = arith.maximumf %115, %116 : vector<8x128xf32>
    %c126 = arith.constant 126 : index
    %c0_119 = arith.constant 0 : index
    %118 = tpu.strided_load %arg15[%c126, %c0_119] {strides = array<i32: 2, 1>} : memref<288x128xf32, #tpu.memory_space<vmem>>, vector<8x128xf32>
    %c127 = arith.constant 127 : index
    %c0_120 = arith.constant 0 : index
    %119 = tpu.strided_load %arg15[%c127, %c0_120] {strides = array<i32: 2, 1>} : memref<288x128xf32, #tpu.memory_space<vmem>>, vector<8x128xf32>
    %120 = arith.maximumf %118, %119 : vector<8x128xf32>
    %121 = arith.maximumf %117, %120 : vector<8x128xf32>
    %122 = vector.broadcast %2 : vector<1x128xf32> to vector<8x128xf32>
    %123 = arith.addf %121, %122 : vector<8x128xf32>
    %cst_121 = arith.constant 0.000000e+00 : f32
    %124 = vector.broadcast %cst_121 : f32 to vector<8x128xf32>
    %125 = arith.maximumf %123, %124 : vector<8x128xf32>
    %c41 = arith.constant 41 : index
    %c0_122 = arith.constant 0 : index
    %126 = vector.load %arg16[%c41, %c0_122] : memref<104x128xf32, #tpu.memory_space<vmem>>, vector<8x128xf32>
    tpu.vector_store %arg16[%c41, %c0_122], %125 {strides = array<i32>} : memref<104x128xf32, #tpu.memory_space<vmem>>, vector<8x128xf32>,
    %c144 = arith.constant 144 : index
    %c0_123 = arith.constant 0 : index
    %127 = tpu.strided_load %arg15[%c144, %c0_123] {strides = array<i32: 2, 1>} : memref<288x128xf32, #tpu.memory_space<vmem>>, vector<8x128xf32>
    %c145 = arith.constant 145 : index
    %c0_124 = arith.constant 0 : index
    %128 = tpu.strided_load %arg15[%c145, %c0_124] {strides = array<i32: 2, 1>} : memref<288x128xf32, #tpu.memory_space<vmem>>, vector<8x128xf32>
    %129 = arith.maximumf %127, %128 : vector<8x128xf32>
    %c162 = arith.constant 162 : index
    %c0_125 = arith.constant 0 : index
    %130 = tpu.strided_load %arg15[%c162, %c0_125] {strides = array<i32: 2, 1>} : memref<288x128xf32, #tpu.memory_space<vmem>>, vector<8x128xf32>
    %c163 = arith.constant 163 : index
    %c0_126 = arith.constant 0 : index
    %131 = tpu.strided_load %arg15[%c163, %c0_126] {strides = array<i32: 2, 1>} : memref<288x128xf32, #tpu.memory_space<vmem>>, vector<8x128xf32>
    %132 = arith.maximumf %130, %131 : vector<8x128xf32>
    %133 = arith.maximumf %129, %132 : vector<8x128xf32>
    %134 = vector.broadcast %2 : vector<1x128xf32> to vector<8x128xf32>
    %135 = arith.addf %133, %134 : vector<8x128xf32>
    %cst_127 = arith.constant 0.000000e+00 : f32
    %136 = vector.broadcast %cst_127 : f32 to vector<8x128xf32>
    %137 = arith.maximumf %135, %136 : vector<8x128xf32>
    %c51 = arith.constant 51 : index
    %c0_128 = arith.constant 0 : index
    %138 = vector.load %arg16[%c51, %c0_128] : memref<104x128xf32, #tpu.memory_space<vmem>>, vector<8x128xf32>
    tpu.vector_store %arg16[%c51, %c0_128], %137 {strides = array<i32>} : memref<104x128xf32, #tpu.memory_space<vmem>>, vector<8x128xf32>,
    %c180 = arith.constant 180 : index
    %c0_129 = arith.constant 0 : index
    %139 = tpu.strided_load %arg15[%c180, %c0_129] {strides = array<i32: 2, 1>} : memref<288x128xf32, #tpu.memory_space<vmem>>, vector<8x128xf32>
    %c181 = arith.constant 181 : index
    %c0_130 = arith.constant 0 : index
    %140 = tpu.strided_load %arg15[%c181, %c0_130] {strides = array<i32: 2, 1>} : memref<288x128xf32, #tpu.memory_space<vmem>>, vector<8x128xf32>
    %141 = arith.maximumf %139, %140 : vector<8x128xf32>
    %c198 = arith.constant 198 : index
    %c0_131 = arith.constant 0 : index
    %142 = tpu.strided_load %arg15[%c198, %c0_131] {strides = array<i32: 2, 1>} : memref<288x128xf32, #tpu.memory_space<vmem>>, vector<8x128xf32>
    %c199 = arith.constant 199 : index
    %c0_132 = arith.constant 0 : index
    %143 = tpu.strided_load %arg15[%c199, %c0_132] {strides = array<i32: 2, 1>} : memref<288x128xf32, #tpu.memory_space<vmem>>, vector<8x128xf32>
    %144 = arith.maximumf %142, %143 : vector<8x128xf32>
    %145 = arith.maximumf %141, %144 : vector<8x128xf32>
    %146 = vector.broadcast %2 : vector<1x128xf32> to vector<8x128xf32>
    %147 = arith.addf %145, %146 : vector<8x128xf32>
    %cst_133 = arith.constant 0.000000e+00 : f32
    %148 = vector.broadcast %cst_133 : f32 to vector<8x128xf32>
    %149 = arith.maximumf %147, %148 : vector<8x128xf32>
    %c61 = arith.constant 61 : index
    %c0_134 = arith.constant 0 : index
    %150 = vector.load %arg16[%c61, %c0_134] : memref<104x128xf32, #tpu.memory_space<vmem>>, vector<8x128xf32>
    tpu.vector_store %arg16[%c61, %c0_134], %149 {strides = array<i32>} : memref<104x128xf32, #tpu.memory_space<vmem>>, vector<8x128xf32>,
    %c216 = arith.constant 216 : index
    %c0_135 = arith.constant 0 : index
    %151 = tpu.strided_load %arg15[%c216, %c0_135] {strides = array<i32: 2, 1>} : memref<288x128xf32, #tpu.memory_space<vmem>>, vector<8x128xf32>
    %c217 = arith.constant 217 : index
    %c0_136 = arith.constant 0 : index
    %152 = tpu.strided_load %arg15[%c217, %c0_136] {strides = array<i32: 2, 1>} : memref<288x128xf32, #tpu.memory_space<vmem>>, vector<8x128xf32>
    %153 = arith.maximumf %151, %152 : vector<8x128xf32>
    %c234 = arith.constant 234 : index
    %c0_137 = arith.constant 0 : index
    %154 = tpu.strided_load %arg15[%c234, %c0_137] {strides = array<i32: 2, 1>} : memref<288x128xf32, #tpu.memory_space<vmem>>, vector<8x128xf32>
    %c235 = arith.constant 235 : index
    %c0_138 = arith.constant 0 : index
    %155 = tpu.strided_load %arg15[%c235, %c0_138] {strides = array<i32: 2, 1>} : memref<288x128xf32, #tpu.memory_space<vmem>>, vector<8x128xf32>
    %156 = arith.maximumf %154, %155 : vector<8x128xf32>
    %157 = arith.maximumf %153, %156 : vector<8x128xf32>
    %158 = vector.broadcast %2 : vector<1x128xf32> to vector<8x128xf32>
    %159 = arith.addf %157, %158 : vector<8x128xf32>
    %cst_139 = arith.constant 0.000000e+00 : f32
    %160 = vector.broadcast %cst_139 : f32 to vector<8x128xf32>
    %161 = arith.maximumf %159, %160 : vector<8x128xf32>
    %c71 = arith.constant 71 : index
    %c0_140 = arith.constant 0 : index
    %162 = vector.load %arg16[%c71, %c0_140] : memref<104x128xf32, #tpu.memory_space<vmem>>, vector<8x128xf32>
    tpu.vector_store %arg16[%c71, %c0_140], %161 {strides = array<i32>} : memref<104x128xf32, #tpu.memory_space<vmem>>, vector<8x128xf32>,
    %c252 = arith.constant 252 : index
    %c0_141 = arith.constant 0 : index
    %163 = tpu.strided_load %arg15[%c252, %c0_141] {strides = array<i32: 2, 1>} : memref<288x128xf32, #tpu.memory_space<vmem>>, vector<8x128xf32>
    %c253 = arith.constant 253 : index
    %c0_142 = arith.constant 0 : index
    %164 = tpu.strided_load %arg15[%c253, %c0_142] {strides = array<i32: 2, 1>} : memref<288x128xf32, #tpu.memory_space<vmem>>, vector<8x128xf32>
    %165 = arith.maximumf %163, %164 : vector<8x128xf32>
    %c270 = arith.constant 270 : index
    %c0_143 = arith.constant 0 : index
    %166 = tpu.strided_load %arg15[%c270, %c0_143] {strides = array<i32: 2, 1>} : memref<288x128xf32, #tpu.memory_space<vmem>>, vector<8x128xf32>
    %c271 = arith.constant 271 : index
    %c0_144 = arith.constant 0 : index
    %167 = tpu.strided_load %arg15[%c271, %c0_144] {strides = array<i32: 2, 1>} : memref<288x128xf32, #tpu.memory_space<vmem>>, vector<8x128xf32>
    %168 = arith.maximumf %166, %167 : vector<8x128xf32>
    %169 = arith.maximumf %165, %168 : vector<8x128xf32>
    %170 = vector.broadcast %2 : vector<1x128xf32> to vector<8x128xf32>
    %171 = arith.addf %169, %170 : vector<8x128xf32>
    %cst_145 = arith.constant 0.000000e+00 : f32
    %172 = vector.broadcast %cst_145 : f32 to vector<8x128xf32>
    %173 = arith.maximumf %171, %172 : vector<8x128xf32>
    %c81 = arith.constant 81 : index
    %c0_146 = arith.constant 0 : index
    %174 = vector.load %arg16[%c81, %c0_146] : memref<104x128xf32, #tpu.memory_space<vmem>>, vector<8x128xf32>
    tpu.vector_store %arg16[%c81, %c0_146], %173 {strides = array<i32>} : memref<104x128xf32, #tpu.memory_space<vmem>>, vector<8x128xf32>,
    %c0_147 = arith.constant 0 : index
    %c0_148 = arith.constant 0 : index
    %175 = vector.load %arg16[%c0_147, %c0_148] : memref<104x128xf32, #tpu.memory_space<vmem>>, vector<80x128xf32>
    %176 = arith.truncf %175 : vector<80x128xf32> to vector<80x128xbf16>
    %c0_149 = arith.constant 0 : index
    %c0_150 = arith.constant 0 : index
    %c0_151 = arith.constant 0 : index
    %177 = vector.load %arg7[%c0_149, %c0_150, %c0_151] : memref<9x128x128xbf16, #tpu.memory_space<vmem>>, vector<1x128x128xbf16>
    %178 = vector.shape_cast %177 : vector<1x128x128xbf16> to vector<128x128xbf16>
    %cst_152 = arith.constant dense<0.000000e+00> : vector<80x128xf32>
    %179 = tpu.matmul %176, %178, %cst_152 {dimension_numbers = #tpu.dot_dimension_numbers<[1], [0], [0], [1], [0, 0, 1, 1], [], []>} : vector<80x128xbf16>, vector<128x128xbf16>, vector<80x128xf32> -> vector<80x128xf32>
    %c0_153 = arith.constant 0 : index
    %c0_154 = arith.constant 0 : index
    %180 = vector.load %arg17[%c0_153, %c0_154] : memref<80x128xf32, #tpu.memory_space<vmem>>, vector<80x128xf32>
    tpu.vector_store %arg17[%c0_153, %c0_154], %179 {strides = array<i32>} : memref<80x128xf32, #tpu.memory_space<vmem>>, vector<80x128xf32>,
    %c1_155 = arith.constant 1 : index
    %c0_156 = arith.constant 0 : index
    %181 = vector.load %arg16[%c1_155, %c0_156] : memref<104x128xf32, #tpu.memory_space<vmem>>, vector<80x128xf32>
    %182 = arith.truncf %181 : vector<80x128xf32> to vector<80x128xbf16>
    %c1_157 = arith.constant 1 : index
    %c0_158 = arith.constant 0 : index
    %c0_159 = arith.constant 0 : index
    %183 = vector.load %arg7[%c1_157, %c0_158, %c0_159] : memref<9x128x128xbf16, #tpu.memory_space<vmem>>, vector<1x128x128xbf16>
    %184 = vector.shape_cast %183 : vector<1x128x128xbf16> to vector<128x128xbf16>
    %cst_160 = arith.constant dense<0.000000e+00> : vector<80x128xf32>
    %185 = tpu.matmul %182, %184, %cst_160 {dimension_numbers = #tpu.dot_dimension_numbers<[1], [0], [0], [1], [0, 0, 1, 1], [], []>} : vector<80x128xbf16>, vector<128x128xbf16>, vector<80x128xf32> -> vector<80x128xf32>
    %c0_161 = arith.constant 0 : index
    %c0_162 = arith.constant 0 : index
    %186 = vector.load %arg17[%c0_161, %c0_162] : memref<80x128xf32, #tpu.memory_space<vmem>>, vector<80x128xf32>
    %187 = arith.addf %186, %185 : vector<80x128xf32>
    %c0_163 = arith.constant 0 : index
    %c0_164 = arith.constant 0 : index
    %188 = vector.load %arg17[%c0_163, %c0_164] : memref<80x128xf32, #tpu.memory_space<vmem>>, vector<80x128xf32>
    tpu.vector_store %arg17[%c0_163, %c0_164], %187 {strides = array<i32>} : memref<80x128xf32, #tpu.memory_space<vmem>>, vector<80x128xf32>,
    %c2_165 = arith.constant 2 : index
    %c0_166 = arith.constant 0 : index
    %189 = vector.load %arg16[%c2_165, %c0_166] : memref<104x128xf32, #tpu.memory_space<vmem>>, vector<80x128xf32>
    %190 = arith.truncf %189 : vector<80x128xf32> to vector<80x128xbf16>
    %c2_167 = arith.constant 2 : index
    %c0_168 = arith.constant 0 : index
    %c0_169 = arith.constant 0 : index
    %191 = vector.load %arg7[%c2_167, %c0_168, %c0_169] : memref<9x128x128xbf16, #tpu.memory_space<vmem>>, vector<1x128x128xbf16>
    %192 = vector.shape_cast %191 : vector<1x128x128xbf16> to vector<128x128xbf16>
    %cst_170 = arith.constant dense<0.000000e+00> : vector<80x128xf32>
    %193 = tpu.matmul %190, %192, %cst_170 {dimension_numbers = #tpu.dot_dimension_numbers<[1], [0], [0], [1], [0, 0, 1, 1], [], []>} : vector<80x128xbf16>, vector<128x128xbf16>, vector<80x128xf32> -> vector<80x128xf32>
    %c0_171 = arith.constant 0 : index
    %c0_172 = arith.constant 0 : index
    %194 = vector.load %arg17[%c0_171, %c0_172] : memref<80x128xf32, #tpu.memory_space<vmem>>, vector<80x128xf32>
    %195 = arith.addf %194, %193 : vector<80x128xf32>
    %c0_173 = arith.constant 0 : index
    %c0_174 = arith.constant 0 : index
    %196 = vector.load %arg17[%c0_173, %c0_174] : memref<80x128xf32, #tpu.memory_space<vmem>>, vector<80x128xf32>
    tpu.vector_store %arg17[%c0_173, %c0_174], %195 {strides = array<i32>} : memref<80x128xf32, #tpu.memory_space<vmem>>, vector<80x128xf32>,
    %c10 = arith.constant 10 : index
    %c0_175 = arith.constant 0 : index
    %197 = vector.load %arg16[%c10, %c0_175] : memref<104x128xf32, #tpu.memory_space<vmem>>, vector<80x128xf32>
    %198 = arith.truncf %197 : vector<80x128xf32> to vector<80x128xbf16>
    %c3_176 = arith.constant 3 : index
    %c0_177 = arith.constant 0 : index
    %c0_178 = arith.constant 0 : index
    %199 = vector.load %arg7[%c3_176, %c0_177, %c0_178] : memref<9x128x128xbf16, #tpu.memory_space<vmem>>, vector<1x128x128xbf16>
    %200 = vector.shape_cast %199 : vector<1x128x128xbf16> to vector<128x128xbf16>
    %cst_179 = arith.constant dense<0.000000e+00> : vector<80x128xf32>
    %201 = tpu.matmul %198, %200, %cst_179 {dimension_numbers = #tpu.dot_dimension_numbers<[1], [0], [0], [1], [0, 0, 1, 1], [], []>} : vector<80x128xbf16>, vector<128x128xbf16>, vector<80x128xf32> -> vector<80x128xf32>
    %c0_180 = arith.constant 0 : index
    %c0_181 = arith.constant 0 : index
    %202 = vector.load %arg17[%c0_180, %c0_181] : memref<80x128xf32, #tpu.memory_space<vmem>>, vector<80x128xf32>
    %203 = arith.addf %202, %201 : vector<80x128xf32>
    %c0_182 = arith.constant 0 : index
    %c0_183 = arith.constant 0 : index
    %204 = vector.load %arg17[%c0_182, %c0_183] : memref<80x128xf32, #tpu.memory_space<vmem>>, vector<80x128xf32>
    tpu.vector_store %arg17[%c0_182, %c0_183], %203 {strides = array<i32>} : memref<80x128xf32, #tpu.memory_space<vmem>>, vector<80x128xf32>,
    %c11_184 = arith.constant 11 : index
    %c0_185 = arith.constant 0 : index
    %205 = vector.load %arg16[%c11_184, %c0_185] : memref<104x128xf32, #tpu.memory_space<vmem>>, vector<80x128xf32>
    %206 = arith.truncf %205 : vector<80x128xf32> to vector<80x128xbf16>
    %c4_186 = arith.constant 4 : index
    %c0_187 = arith.constant 0 : index
    %c0_188 = arith.constant 0 : index
    %207 = vector.load %arg7[%c4_186, %c0_187, %c0_188] : memref<9x128x128xbf16, #tpu.memory_space<vmem>>, vector<1x128x128xbf16>
    %208 = vector.shape_cast %207 : vector<1x128x128xbf16> to vector<128x128xbf16>
    %cst_189 = arith.constant dense<0.000000e+00> : vector<80x128xf32>
    %209 = tpu.matmul %206, %208, %cst_189 {dimension_numbers = #tpu.dot_dimension_numbers<[1], [0], [0], [1], [0, 0, 1, 1], [], []>} : vector<80x128xbf16>, vector<128x128xbf16>, vector<80x128xf32> -> vector<80x128xf32>
    %c0_190 = arith.constant 0 : index
    %c0_191 = arith.constant 0 : index
    %210 = vector.load %arg17[%c0_190, %c0_191] : memref<80x128xf32, #tpu.memory_space<vmem>>, vector<80x128xf32>
    %211 = arith.addf %210, %209 : vector<80x128xf32>
    %c0_192 = arith.constant 0 : index
    %c0_193 = arith.constant 0 : index
    %212 = vector.load %arg17[%c0_192, %c0_193] : memref<80x128xf32, #tpu.memory_space<vmem>>, vector<80x128xf32>
    tpu.vector_store %arg17[%c0_192, %c0_193], %211 {strides = array<i32>} : memref<80x128xf32, #tpu.memory_space<vmem>>, vector<80x128xf32>,
    %c12 = arith.constant 12 : index
    %c0_194 = arith.constant 0 : index
    %213 = vector.load %arg16[%c12, %c0_194] : memref<104x128xf32, #tpu.memory_space<vmem>>, vector<80x128xf32>
    %214 = arith.truncf %213 : vector<80x128xf32> to vector<80x128xbf16>
    %c5_195 = arith.constant 5 : index
    %c0_196 = arith.constant 0 : index
    %c0_197 = arith.constant 0 : index
    %215 = vector.load %arg7[%c5_195, %c0_196, %c0_197] : memref<9x128x128xbf16, #tpu.memory_space<vmem>>, vector<1x128x128xbf16>
    %216 = vector.shape_cast %215 : vector<1x128x128xbf16> to vector<128x128xbf16>
    %cst_198 = arith.constant dense<0.000000e+00> : vector<80x128xf32>
    %217 = tpu.matmul %214, %216, %cst_198 {dimension_numbers = #tpu.dot_dimension_numbers<[1], [0], [0], [1], [0, 0, 1, 1], [], []>} : vector<80x128xbf16>, vector<128x128xbf16>, vector<80x128xf32> -> vector<80x128xf32>
    %c0_199 = arith.constant 0 : index
    %c0_200 = arith.constant 0 : index
    %218 = vector.load %arg17[%c0_199, %c0_200] : memref<80x128xf32, #tpu.memory_space<vmem>>, vector<80x128xf32>
    %219 = arith.addf %218, %217 : vector<80x128xf32>
    %c0_201 = arith.constant 0 : index
    %c0_202 = arith.constant 0 : index
    %220 = vector.load %arg17[%c0_201, %c0_202] : memref<80x128xf32, #tpu.memory_space<vmem>>, vector<80x128xf32>
    tpu.vector_store %arg17[%c0_201, %c0_202], %219 {strides = array<i32>} : memref<80x128xf32, #tpu.memory_space<vmem>>, vector<80x128xf32>,
    %c20_203 = arith.constant 20 : index
    %c0_204 = arith.constant 0 : index
    %221 = vector.load %arg16[%c20_203, %c0_204] : memref<104x128xf32, #tpu.memory_space<vmem>>, vector<80x128xf32>
    %222 = arith.truncf %221 : vector<80x128xf32> to vector<80x128xbf16>
    %c6_205 = arith.constant 6 : index
    %c0_206 = arith.constant 0 : index
    %c0_207 = arith.constant 0 : index
    %223 = vector.load %arg7[%c6_205, %c0_206, %c0_207] : memref<9x128x128xbf16, #tpu.memory_space<vmem>>, vector<1x128x128xbf16>
    %224 = vector.shape_cast %223 : vector<1x128x128xbf16> to vector<128x128xbf16>
    %cst_208 = arith.constant dense<0.000000e+00> : vector<80x128xf32>
    %225 = tpu.matmul %222, %224, %cst_208 {dimension_numbers = #tpu.dot_dimension_numbers<[1], [0], [0], [1], [0, 0, 1, 1], [], []>} : vector<80x128xbf16>, vector<128x128xbf16>, vector<80x128xf32> -> vector<80x128xf32>
    %c0_209 = arith.constant 0 : index
    %c0_210 = arith.constant 0 : index
    %226 = vector.load %arg17[%c0_209, %c0_210] : memref<80x128xf32, #tpu.memory_space<vmem>>, vector<80x128xf32>
    %227 = arith.addf %226, %225 : vector<80x128xf32>
    %c0_211 = arith.constant 0 : index
    %c0_212 = arith.constant 0 : index
    %228 = vector.load %arg17[%c0_211, %c0_212] : memref<80x128xf32, #tpu.memory_space<vmem>>, vector<80x128xf32>
    tpu.vector_store %arg17[%c0_211, %c0_212], %227 {strides = array<i32>} : memref<80x128xf32, #tpu.memory_space<vmem>>, vector<80x128xf32>,
    %c21_213 = arith.constant 21 : index
    %c0_214 = arith.constant 0 : index
    %229 = vector.load %arg16[%c21_213, %c0_214] : memref<104x128xf32, #tpu.memory_space<vmem>>, vector<80x128xf32>
    %230 = arith.truncf %229 : vector<80x128xf32> to vector<80x128xbf16>
    %c7_215 = arith.constant 7 : index
    %c0_216 = arith.constant 0 : index
    %c0_217 = arith.constant 0 : index
    %231 = vector.load %arg7[%c7_215, %c0_216, %c0_217] : memref<9x128x128xbf16, #tpu.memory_space<vmem>>, vector<1x128x128xbf16>
    %232 = vector.shape_cast %231 : vector<1x128x128xbf16> to vector<128x128xbf16>
    %cst_218 = arith.constant dense<0.000000e+00> : vector<80x128xf32>
    %233 = tpu.matmul %230, %232, %cst_218 {dimension_numbers = #tpu.dot_dimension_numbers<[1], [0], [0], [1], [0, 0, 1, 1], [], []>} : vector<80x128xbf16>, vector<128x128xbf16>, vector<80x128xf32> -> vector<80x128xf32>
    %c0_219 = arith.constant 0 : index
    %c0_220 = arith.constant 0 : index
    %234 = vector.load %arg17[%c0_219, %c0_220] : memref<80x128xf32, #tpu.memory_space<vmem>>, vector<80x128xf32>
    %235 = arith.addf %234, %233 : vector<80x128xf32>
    %c0_221 = arith.constant 0 : index
    %c0_222 = arith.constant 0 : index
    %236 = vector.load %arg17[%c0_221, %c0_222] : memref<80x128xf32, #tpu.memory_space<vmem>>, vector<80x128xf32>
    tpu.vector_store %arg17[%c0_221, %c0_222], %235 {strides = array<i32>} : memref<80x128xf32, #tpu.memory_space<vmem>>, vector<80x128xf32>,
    %c22 = arith.constant 22 : index
    %c0_223 = arith.constant 0 : index
    %237 = vector.load %arg16[%c22, %c0_223] : memref<104x128xf32, #tpu.memory_space<vmem>>, vector<80x128xf32>
    %238 = arith.truncf %237 : vector<80x128xf32> to vector<80x128xbf16>
    %c8_224 = arith.constant 8 : index
    %c0_225 = arith.constant 0 : index
    %c0_226 = arith.constant 0 : index
    %239 = vector.load %arg7[%c8_224, %c0_225, %c0_226] : memref<9x128x128xbf16, #tpu.memory_space<vmem>>, vector<1x128x128xbf16>
    %240 = vector.shape_cast %239 : vector<1x128x128xbf16> to vector<128x128xbf16>
    %cst_227 = arith.constant dense<0.000000e+00> : vector<80x128xf32>
    %241 = tpu.matmul %238, %240, %cst_227 {dimension_numbers = #tpu.dot_dimension_numbers<[1], [0], [0], [1], [0, 0, 1, 1], [], []>} : vector<80x128xbf16>, vector<128x128xbf16>, vector<80x128xf32> -> vector<80x128xf32>
    %c0_228 = arith.constant 0 : index
    %c0_229 = arith.constant 0 : index
    %242 = vector.load %arg17[%c0_228, %c0_229] : memref<80x128xf32, #tpu.memory_space<vmem>>, vector<80x128xf32>
    %243 = arith.addf %242, %241 : vector<80x128xf32>
    %c0_230 = arith.constant 0 : index
    %c0_231 = arith.constant 0 : index
    %244 = vector.load %arg17[%c0_230, %c0_231] : memref<80x128xf32, #tpu.memory_space<vmem>>, vector<80x128xf32>
    tpu.vector_store %arg17[%c0_230, %c0_231], %243 {strides = array<i32>} : memref<80x128xf32, #tpu.memory_space<vmem>>, vector<80x128xf32>,
    %c0_232 = arith.constant 0 : index
    %c0_233 = arith.constant 0 : index
    %245 = tpu.strided_load %arg17[%c0_232, %c0_233] {strides = array<i32: 2, 1>} : memref<80x128xf32, #tpu.memory_space<vmem>>, vector<4x128xf32>
    %c1_234 = arith.constant 1 : index
    %c0_235 = arith.constant 0 : index
    %246 = tpu.strided_load %arg17[%c1_234, %c0_235] {strides = array<i32: 2, 1>} : memref<80x128xf32, #tpu.memory_space<vmem>>, vector<4x128xf32>
    %247 = arith.maximumf %245, %246 : vector<4x128xf32>
    %c10_236 = arith.constant 10 : index
    %c0_237 = arith.constant 0 : index
    %248 = tpu.strided_load %arg17[%c10_236, %c0_237] {strides = array<i32: 2, 1>} : memref<80x128xf32, #tpu.memory_space<vmem>>, vector<4x128xf32>
    %c11_238 = arith.constant 11 : index
    %c0_239 = arith.constant 0 : index
    %249 = tpu.strided_load %arg17[%c11_238, %c0_239] {strides = array<i32: 2, 1>} : memref<80x128xf32, #tpu.memory_space<vmem>>, vector<4x128xf32>
    %250 = arith.maximumf %248, %249 : vector<4x128xf32>
    %251 = arith.maximumf %247, %250 : vector<4x128xf32>
    %252 = vector.broadcast %3 : vector<1x128xf32> to vector<4x128xf32>
    %253 = arith.addf %251, %252 : vector<4x128xf32>
    %cst_240 = arith.constant 0.000000e+00 : f32
    %254 = vector.broadcast %cst_240 : f32 to vector<4x128xf32>
    %255 = arith.maximumf %253, %254 : vector<4x128xf32>
    %256 = vector.extract_strided_slice %255 {offsets = [0, 0], sizes = [1, 128], strides = [1, 1]} : vector<4x128xf32> to vector<1x128xf32>
    %c0_241 = arith.constant 0 : index
    %c0_242 = arith.constant 0 : index
    %257 = vector.load %arg18[%c0_241, %c0_242] : memref<1x2048xf32, #tpu.memory_space<vmem>>, vector<1x128xf32>
    tpu.vector_store %arg18[%c0_241, %c0_242], %256 {strides = array<i32>} : memref<1x2048xf32, #tpu.memory_space<vmem>>, vector<1x128xf32>,
    %258 = vector.extract_strided_slice %255 {offsets = [1, 0], sizes = [1, 128], strides = [1, 1]} : vector<4x128xf32> to vector<1x128xf32>
    %c0_243 = arith.constant 0 : index
    %c128 = arith.constant 128 : index
    %259 = vector.load %arg18[%c0_243, %c128] : memref<1x2048xf32, #tpu.memory_space<vmem>>, vector<1x128xf32>
    tpu.vector_store %arg18[%c0_243, %c128], %258 {strides = array<i32>} : memref<1x2048xf32, #tpu.memory_space<vmem>>, vector<1x128xf32>,
    %260 = vector.extract_strided_slice %255 {offsets = [2, 0], sizes = [1, 128], strides = [1, 1]} : vector<4x128xf32> to vector<1x128xf32>
    %c0_244 = arith.constant 0 : index
    %c256 = arith.constant 256 : index
    %261 = vector.load %arg18[%c0_244, %c256] : memref<1x2048xf32, #tpu.memory_space<vmem>>, vector<1x128xf32>
    tpu.vector_store %arg18[%c0_244, %c256], %260 {strides = array<i32>} : memref<1x2048xf32, #tpu.memory_space<vmem>>, vector<1x128xf32>,
    %262 = vector.extract_strided_slice %255 {offsets = [3, 0], sizes = [1, 128], strides = [1, 1]} : vector<4x128xf32> to vector<1x128xf32>
    %c0_245 = arith.constant 0 : index
    %c384 = arith.constant 384 : index
    %263 = vector.load %arg18[%c0_245, %c384] : memref<1x2048xf32, #tpu.memory_space<vmem>>, vector<1x128xf32>
    tpu.vector_store %arg18[%c0_245, %c384], %262 {strides = array<i32>} : memref<1x2048xf32, #tpu.memory_space<vmem>>, vector<1x128xf32>,
    %c20_246 = arith.constant 20 : index
    %c0_247 = arith.constant 0 : index
    %264 = tpu.strided_load %arg17[%c20_246, %c0_247] {strides = array<i32: 2, 1>} : memref<80x128xf32, #tpu.memory_space<vmem>>, vector<4x128xf32>
    %c21_248 = arith.constant 21 : index
    %c0_249 = arith.constant 0 : index
    %265 = tpu.strided_load %arg17[%c21_248, %c0_249] {strides = array<i32: 2, 1>} : memref<80x128xf32, #tpu.memory_space<vmem>>, vector<4x128xf32>
    %266 = arith.maximumf %264, %265 : vector<4x128xf32>
    %c30 = arith.constant 30 : index
    %c0_250 = arith.constant 0 : index
    %267 = tpu.strided_load %arg17[%c30, %c0_250] {strides = array<i32: 2, 1>} : memref<80x128xf32, #tpu.memory_space<vmem>>, vector<4x128xf32>
    %c31_251 = arith.constant 31 : index
    %c0_252 = arith.constant 0 : index
    %268 = tpu.strided_load %arg17[%c31_251, %c0_252] {strides = array<i32: 2, 1>} : memref<80x128xf32, #tpu.memory_space<vmem>>, vector<4x128xf32>
    %269 = arith.maximumf %267, %268 : vector<4x128xf32>
    %270 = arith.maximumf %266, %269 : vector<4x128xf32>
    %271 = vector.broadcast %3 : vector<1x128xf32> to vector<4x128xf32>
    %272 = arith.addf %270, %271 : vector<4x128xf32>
    %cst_253 = arith.constant 0.000000e+00 : f32
    %273 = vector.broadcast %cst_253 : f32 to vector<4x128xf32>
    %274 = arith.maximumf %272, %273 : vector<4x128xf32>
    %275 = vector.extract_strided_slice %274 {offsets = [0, 0], sizes = [1, 128], strides = [1, 1]} : vector<4x128xf32> to vector<1x128xf32>
    %c0_254 = arith.constant 0 : index
    %c512 = arith.constant 512 : index
    %276 = vector.load %arg18[%c0_254, %c512] : memref<1x2048xf32, #tpu.memory_space<vmem>>, vector<1x128xf32>
    tpu.vector_store %arg18[%c0_254, %c512], %275 {strides = array<i32>} : memref<1x2048xf32, #tpu.memory_space<vmem>>, vector<1x128xf32>,
    %277 = vector.extract_strided_slice %274 {offsets = [1, 0], sizes = [1, 128], strides = [1, 1]} : vector<4x128xf32> to vector<1x128xf32>
    %c0_255 = arith.constant 0 : index
    %c640 = arith.constant 640 : index
    %278 = vector.load %arg18[%c0_255, %c640] : memref<1x2048xf32, #tpu.memory_space<vmem>>, vector<1x128xf32>
    tpu.vector_store %arg18[%c0_255, %c640], %277 {strides = array<i32>} : memref<1x2048xf32, #tpu.memory_space<vmem>>, vector<1x128xf32>,
    %279 = vector.extract_strided_slice %274 {offsets = [2, 0], sizes = [1, 128], strides = [1, 1]} : vector<4x128xf32> to vector<1x128xf32>
    %c0_256 = arith.constant 0 : index
    %c768 = arith.constant 768 : index
    %280 = vector.load %arg18[%c0_256, %c768] : memref<1x2048xf32, #tpu.memory_space<vmem>>, vector<1x128xf32>
    tpu.vector_store %arg18[%c0_256, %c768], %279 {strides = array<i32>} : memref<1x2048xf32, #tpu.memory_space<vmem>>, vector<1x128xf32>,
    %281 = vector.extract_strided_slice %274 {offsets = [3, 0], sizes = [1, 128], strides = [1, 1]} : vector<4x128xf32> to vector<1x128xf32>
    %c0_257 = arith.constant 0 : index
    %c896 = arith.constant 896 : index
    %282 = vector.load %arg18[%c0_257, %c896] : memref<1x2048xf32, #tpu.memory_space<vmem>>, vector<1x128xf32>
    tpu.vector_store %arg18[%c0_257, %c896], %281 {strides = array<i32>} : memref<1x2048xf32, #tpu.memory_space<vmem>>, vector<1x128xf32>,
    %c40 = arith.constant 40 : index
    %c0_258 = arith.constant 0 : index
    %283 = tpu.strided_load %arg17[%c40, %c0_258] {strides = array<i32: 2, 1>} : memref<80x128xf32, #tpu.memory_space<vmem>>, vector<4x128xf32>
    %c41_259 = arith.constant 41 : index
    %c0_260 = arith.constant 0 : index
    %284 = tpu.strided_load %arg17[%c41_259, %c0_260] {strides = array<i32: 2, 1>} : memref<80x128xf32, #tpu.memory_space<vmem>>, vector<4x128xf32>
    %285 = arith.maximumf %283, %284 : vector<4x128xf32>
    %c50 = arith.constant 50 : index
    %c0_261 = arith.constant 0 : index
    %286 = tpu.strided_load %arg17[%c50, %c0_261] {strides = array<i32: 2, 1>} : memref<80x128xf32, #tpu.memory_space<vmem>>, vector<4x128xf32>
    %c51_262 = arith.constant 51 : index
    %c0_263 = arith.constant 0 : index
    %287 = tpu.strided_load %arg17[%c51_262, %c0_263] {strides = array<i32: 2, 1>} : memref<80x128xf32, #tpu.memory_space<vmem>>, vector<4x128xf32>
    %288 = arith.maximumf %286, %287 : vector<4x128xf32>
    %289 = arith.maximumf %285, %288 : vector<4x128xf32>
    %290 = vector.broadcast %3 : vector<1x128xf32> to vector<4x128xf32>
    %291 = arith.addf %289, %290 : vector<4x128xf32>
    %cst_264 = arith.constant 0.000000e+00 : f32
    %292 = vector.broadcast %cst_264 : f32 to vector<4x128xf32>
    %293 = arith.maximumf %291, %292 : vector<4x128xf32>
    %294 = vector.extract_strided_slice %293 {offsets = [0, 0], sizes = [1, 128], strides = [1, 1]} : vector<4x128xf32> to vector<1x128xf32>
    %c0_265 = arith.constant 0 : index
    %c1024 = arith.constant 1024 : index
    %295 = vector.load %arg18[%c0_265, %c1024] : memref<1x2048xf32, #tpu.memory_space<vmem>>, vector<1x128xf32>
    tpu.vector_store %arg18[%c0_265, %c1024], %294 {strides = array<i32>} : memref<1x2048xf32, #tpu.memory_space<vmem>>, vector<1x128xf32>,
    %296 = vector.extract_strided_slice %293 {offsets = [1, 0], sizes = [1, 128], strides = [1, 1]} : vector<4x128xf32> to vector<1x128xf32>
    %c0_266 = arith.constant 0 : index
    %c1152 = arith.constant 1152 : index
    %297 = vector.load %arg18[%c0_266, %c1152] : memref<1x2048xf32, #tpu.memory_space<vmem>>, vector<1x128xf32>
    tpu.vector_store %arg18[%c0_266, %c1152], %296 {strides = array<i32>} : memref<1x2048xf32, #tpu.memory_space<vmem>>, vector<1x128xf32>,
    %298 = vector.extract_strided_slice %293 {offsets = [2, 0], sizes = [1, 128], strides = [1, 1]} : vector<4x128xf32> to vector<1x128xf32>
    %c0_267 = arith.constant 0 : index
    %c1280 = arith.constant 1280 : index
    %299 = vector.load %arg18[%c0_267, %c1280] : memref<1x2048xf32, #tpu.memory_space<vmem>>, vector<1x128xf32>
    tpu.vector_store %arg18[%c0_267, %c1280], %298 {strides = array<i32>} : memref<1x2048xf32, #tpu.memory_space<vmem>>, vector<1x128xf32>,
    %300 = vector.extract_strided_slice %293 {offsets = [3, 0], sizes = [1, 128], strides = [1, 1]} : vector<4x128xf32> to vector<1x128xf32>
    %c0_268 = arith.constant 0 : index
    %c1408 = arith.constant 1408 : index
    %301 = vector.load %arg18[%c0_268, %c1408] : memref<1x2048xf32, #tpu.memory_space<vmem>>, vector<1x128xf32>
    tpu.vector_store %arg18[%c0_268, %c1408], %300 {strides = array<i32>} : memref<1x2048xf32, #tpu.memory_space<vmem>>, vector<1x128xf32>,
    %c60 = arith.constant 60 : index
    %c0_269 = arith.constant 0 : index
    %302 = tpu.strided_load %arg17[%c60, %c0_269] {strides = array<i32: 2, 1>} : memref<80x128xf32, #tpu.memory_space<vmem>>, vector<4x128xf32>
    %c61_270 = arith.constant 61 : index
    %c0_271 = arith.constant 0 : index
    %303 = tpu.strided_load %arg17[%c61_270, %c0_271] {strides = array<i32: 2, 1>} : memref<80x128xf32, #tpu.memory_space<vmem>>, vector<4x128xf32>
    %304 = arith.maximumf %302, %303 : vector<4x128xf32>
    %c70 = arith.constant 70 : index
    %c0_272 = arith.constant 0 : index
    %305 = tpu.strided_load %arg17[%c70, %c0_272] {strides = array<i32: 2, 1>} : memref<80x128xf32, #tpu.memory_space<vmem>>, vector<4x128xf32>
    %c71_273 = arith.constant 71 : index
    %c0_274 = arith.constant 0 : index
    %306 = tpu.strided_load %arg17[%c71_273, %c0_274] {strides = array<i32: 2, 1>} : memref<80x128xf32, #tpu.memory_space<vmem>>, vector<4x128xf32>
    %307 = arith.maximumf %305, %306 : vector<4x128xf32>
    %308 = arith.maximumf %304, %307 : vector<4x128xf32>
    %309 = vector.broadcast %3 : vector<1x128xf32> to vector<4x128xf32>
    %310 = arith.addf %308, %309 : vector<4x128xf32>
    %cst_275 = arith.constant 0.000000e+00 : f32
    %311 = vector.broadcast %cst_275 : f32 to vector<4x128xf32>
    %312 = arith.maximumf %310, %311 : vector<4x128xf32>
    %313 = vector.extract_strided_slice %312 {offsets = [0, 0], sizes = [1, 128], strides = [1, 1]} : vector<4x128xf32> to vector<1x128xf32>
    %c0_276 = arith.constant 0 : index
    %c1536 = arith.constant 1536 : index
    %314 = vector.load %arg18[%c0_276, %c1536] : memref<1x2048xf32, #tpu.memory_space<vmem>>, vector<1x128xf32>
    tpu.vector_store %arg18[%c0_276, %c1536], %313 {strides = array<i32>} : memref<1x2048xf32, #tpu.memory_space<vmem>>, vector<1x128xf32>,
    %315 = vector.extract_strided_slice %312 {offsets = [1, 0], sizes = [1, 128], strides = [1, 1]} : vector<4x128xf32> to vector<1x128xf32>
    %c0_277 = arith.constant 0 : index
    %c1664 = arith.constant 1664 : index
    %316 = vector.load %arg18[%c0_277, %c1664] : memref<1x2048xf32, #tpu.memory_space<vmem>>, vector<1x128xf32>
    tpu.vector_store %arg18[%c0_277, %c1664], %315 {strides = array<i32>} : memref<1x2048xf32, #tpu.memory_space<vmem>>, vector<1x128xf32>,
    %317 = vector.extract_strided_slice %312 {offsets = [2, 0], sizes = [1, 128], strides = [1, 1]} : vector<4x128xf32> to vector<1x128xf32>
    %c0_278 = arith.constant 0 : index
    %c1792 = arith.constant 1792 : index
    %318 = vector.load %arg18[%c0_278, %c1792] : memref<1x2048xf32, #tpu.memory_space<vmem>>, vector<1x128xf32>
    tpu.vector_store %arg18[%c0_278, %c1792], %317 {strides = array<i32>} : memref<1x2048xf32, #tpu.memory_space<vmem>>, vector<1x128xf32>,
    %319 = vector.extract_strided_slice %312 {offsets = [3, 0], sizes = [1, 128], strides = [1, 1]} : vector<4x128xf32> to vector<1x128xf32>
    %c0_279 = arith.constant 0 : index
    %c1920 = arith.constant 1920 : index
    %320 = vector.load %arg18[%c0_279, %c1920] : memref<1x2048xf32, #tpu.memory_space<vmem>>, vector<1x128xf32>
    tpu.vector_store %arg18[%c0_279, %c1920], %319 {strides = array<i32>} : memref<1x2048xf32, #tpu.memory_space<vmem>>, vector<1x128xf32>,
    %c0_280 = arith.constant 0 : index
    %c0_281 = arith.constant 0 : index
    %321 = vector.load %arg18[%c0_280, %c0_281] : memref<1x2048xf32, #tpu.memory_space<vmem>>, vector<1x2048xf32>
    %322 = arith.truncf %321 : vector<1x2048xf32> to vector<1x2048xbf16>
    %c0_282 = arith.constant 0 : index
    %c0_283 = arith.constant 0 : index
    %323 = vector.load %arg9[%c0_282, %c0_283] : memref<2048x256xbf16, #tpu.memory_space<vmem>>, vector<2048x256xbf16>
    %cst_284 = arith.constant dense<0.000000e+00> : vector<1x256xf32>
    %324 = tpu.matmul %322, %323, %cst_284 {dimension_numbers = #tpu.dot_dimension_numbers<[1], [0], [0], [1], [0, 0, 1, 1], [], []>} : vector<1x2048xbf16>, vector<2048x256xbf16>, vector<1x256xf32> -> vector<1x256xf32>
    %c0_285 = arith.constant 0 : index
    %c0_286 = arith.constant 0 : index
    %325 = vector.load %arg10[%c0_285, %c0_286] : memref<1x256xf32, #tpu.memory_space<vmem>>, vector<1x256xf32>
    %326 = arith.addf %324, %325 : vector<1x256xf32>
    %cst_287 = arith.constant 0.000000e+00 : f32
    %327 = vector.broadcast %cst_287 : f32 to vector<1x256xf32>
    %328 = arith.maximumf %326, %327 : vector<1x256xf32>
    %329 = arith.truncf %328 : vector<1x256xf32> to vector<1x256xbf16>
    %c0_288 = arith.constant 0 : index
    %c0_289 = arith.constant 0 : index
    %330 = vector.load %arg11[%c0_288, %c0_289] : memref<256x128xbf16, #tpu.memory_space<vmem>>, vector<256x128xbf16>
    %cst_290 = arith.constant dense<0.000000e+00> : vector<1x128xf32>
    %331 = tpu.matmul %329, %330, %cst_290 {dimension_numbers = #tpu.dot_dimension_numbers<[1], [0], [0], [1], [0, 0, 1, 1], [], []>} : vector<1x256xbf16>, vector<256x128xbf16>, vector<1x128xf32> -> vector<1x128xf32>
    %c0_291 = arith.constant 0 : index
    %c0_292 = arith.constant 0 : index
    %332 = vector.load %arg12[%c0_291, %c0_292] : memref<1x128xf32, #tpu.memory_space<vmem>>, vector<1x128xf32>
    %333 = arith.addf %331, %332 : vector<1x128xf32>
    %c0_293 = arith.constant 0 : index
    %c0_294 = arith.constant 0 : index
    %c0_295 = arith.constant 0 : index
    %334 = vector.load %arg13[%c0_293, %c0_294, %c0_295] : memref<1x1x128xf32, #tpu.memory_space<vmem>>, vector<1x1x128xf32>
    %335 = vector.shape_cast %334 : vector<1x1x128xf32> to vector<1x128xf32>
    %336 = vector.shape_cast %333 : vector<1x128xf32> to vector<1x1x128xf32>
    tpu.vector_store %arg13[%c0_293, %c0_294, %c0_295], %336 {strides = array<i32>} : memref<1x1x128xf32, #tpu.memory_space<vmem>>, vector<1x1x128xf32>,
    return
  }
  func.func @transform_0(%arg0: i32) -> (i32, i32, i32, i32) {
    %c0_i32 = arith.constant 0 : i32
    %c0_i32_0 = arith.constant 0 : i32
    %c0_i32_1 = arith.constant 0 : i32
    %c0_i32_2 = arith.constant 0 : i32
    return %arg0, %c0_i32, %c0_i32_0, %c0_i32_1 : i32, i32, i32, i32
  }
  func.func @transform_1(%arg0: i32) -> (i32, i32) {
    %c0_i32 = arith.constant 0 : i32
    %c0_i32_0 = arith.constant 0 : i32
    %c0_i32_1 = arith.constant 0 : i32
    return %c0_i32, %c0_i32_0 : i32, i32
  }
  func.func @transform_2(%arg0: i32) -> (i32, i32) {
    %c0_i32 = arith.constant 0 : i32
    %c0_i32_0 = arith.constant 0 : i32
    %c0_i32_1 = arith.constant 0 : i32
    return %c0_i32, %c0_i32_0 : i32, i32
  }
  func.func @transform_3(%arg0: i32) -> (i32, i32) {
    %c0_i32 = arith.constant 0 : i32
    %c0_i32_0 = arith.constant 0 : i32
    %c0_i32_1 = arith.constant 0 : i32
    return %c0_i32, %c0_i32_0 : i32, i32
  }
  func.func @transform_4(%arg0: i32) -> (i32, i32, i32) {
    %c0_i32 = arith.constant 0 : i32
    %c0_i32_0 = arith.constant 0 : i32
    %c0_i32_1 = arith.constant 0 : i32
    %c0_i32_2 = arith.constant 0 : i32
    return %c0_i32, %c0_i32_0, %c0_i32_1 : i32, i32, i32
  }
  func.func @transform_5(%arg0: i32) -> (i32, i32) {
    %c0_i32 = arith.constant 0 : i32
    %c0_i32_0 = arith.constant 0 : i32
    %c0_i32_1 = arith.constant 0 : i32
    return %c0_i32, %c0_i32_0 : i32, i32
  }
  func.func @transform_6(%arg0: i32) -> (i32, i32, i32) {
    %c0_i32 = arith.constant 0 : i32
    %c0_i32_0 = arith.constant 0 : i32
    %c0_i32_1 = arith.constant 0 : i32
    %c0_i32_2 = arith.constant 0 : i32
    return %c0_i32, %c0_i32_0, %c0_i32_1 : i32, i32, i32
  }
  func.func @transform_7(%arg0: i32) -> (i32, i32) {
    %c0_i32 = arith.constant 0 : i32
    %c0_i32_0 = arith.constant 0 : i32
    %c0_i32_1 = arith.constant 0 : i32
    return %c0_i32, %c0_i32_0 : i32, i32
  }
  func.func @transform_8(%arg0: i32) -> (i32, i32) {
    %c0_i32 = arith.constant 0 : i32
    %c0_i32_0 = arith.constant 0 : i32
    %c0_i32_1 = arith.constant 0 : i32
    return %c0_i32, %c0_i32_0 : i32, i32
  }
  func.func @transform_9(%arg0: i32) -> (i32, i32) {
    %c0_i32 = arith.constant 0 : i32
    %c0_i32_0 = arith.constant 0 : i32
    %c0_i32_1 = arith.constant 0 : i32
    return %c0_i32, %c0_i32_0 : i32, i32
  }
  func.func @transform_10(%arg0: i32) -> (i32, i32) {
    %c0_i32 = arith.constant 0 : i32
    %c0_i32_0 = arith.constant 0 : i32
    %c0_i32_1 = arith.constant 0 : i32
    return %c0_i32, %c0_i32_0 : i32, i32
  }
  func.func @transform_11(%arg0: i32) -> (i32, i32) {
    %c0_i32 = arith.constant 0 : i32
    %c0_i32_0 = arith.constant 0 : i32
    %c0_i32_1 = arith.constant 0 : i32
    return %c0_i32, %c0_i32_0 : i32, i32
  }
  func.func @transform_12(%arg0: i32) -> (i32, i32, i32) {
    %c0_i32 = arith.constant 0 : i32
    %c0_i32_0 = arith.constant 0 : i32
    %c0_i32_1 = arith.constant 0 : i32
    return %arg0, %c0_i32, %c0_i32_0 : i32, i32, i32
  }
}

</mosaic_0001>

<bundles_post_ra>
// kernel: simple_cnn_forward.1
= control target key start
LH: loop header
LB: loop body
LE: loop exit
PB: predicated region body
PF: predicated region fallthrough
CT: control target
= control target key end

     0   :  { %s17157_s0 = inlined_call_operand.vmem [shape: bf16[2,1,328,32], index: 0, kind: input, shape index: {}]   ;;  %s17158_s1 = inlined_call_operand.vmem [shape: f32[328,1], index: 1, kind: input, shape index: {}]   ;;  %s17159_s2 = inlined_call_operand.vmem [shape: bf16[32,128], index: 2, kind: input, shape index: {}]   ;;  %s17160_s3 = inlined_call_operand.vmem [shape: f32[1,128], index: 3, kind: input, shape index: {}]   ;;  %s17161_s4 = inlined_call_operand.vmem [shape: bf16[9,128,128], index: 4, kind: input, shape index: {}]   ;;  %s17162_s5 = inlined_call_operand.vmem [shape: f32[1,128], index: 5, kind: input, shape index: {}]   ;;  %s17163_s6 = inlined_call_operand.vmem [shape: bf16[9,128,128], index: 6, kind: input, shape index: {}]   ;;  %s17164_s7 = inlined_call_operand.vmem [shape: f32[1,128], index: 7, kind: input, shape index: {}]   ;;  %s17165_s8 = inlined_call_operand.vmem [shape: bf16[2048,256], index: 8, kind: input, shape index: {}]   ;;  %s17166_s9 = inlined_call_operand.vmem [shape: f32[1,256], index: 9, kind: input, shape index: {}]   ;;  %s17167_s10 = inlined_call_operand.vmem [shape: bf16[256,128], index: 10, kind: input, shape index: {}]   ;;  %s17168_s11 = inlined_call_operand.vmem [shape: f32[1,128], index: 11, kind: input, shape index: {}]   ;;  %s17169_s12 = inlined_call_operand.hbm [shape: f32[2,1,128], index: 12, kind: output, shape index: {}]  }
   0x1   :  { %17172 = sst [smem:[#allocation88_spill]] %s17159_s2 }
   0x2   :  { %17 = vsyncpa [#allocation8], 0 }
   0x3   :  { %19 = vsyncpa [#allocation8 + $0x1], 0  ;;  %s13921_s21 = smov 0   ;;  %s13923_s22 = smov 0  }
   0x4   :  { %s13925_s23 = smov 0   ;;  %s13927_s24 = smov 0  }
   0x5 LB: > { %s13942_s25 = sadd.s32 4294967295, %s13849_s24   ;;  %s10626_s26 = sadd.s32 4294967294, %s13849_s24   ;;  %s13849_s24 = sphi %s13927_s24, %s17379_s24   ;;  %s13845_s23 = sphi %s13925_s23, %s17378_s23   ;;  %s13841_s22 = sphi %s13923_s22, %s17377_s22   ;;  %s13837_s21 = sphi %s13921_s21, %s17376_s21  }
   0x6   : > { %s13946_s27 = sadd.s32 1, %s13849_s24   ;;  %s289_s28 = sadd.s32 1, %s13845_s23 }
   0x7   : > { %s286_s29 = ssub.s32 %s13849_s24, %s13946_s27  ;;  %p299_p0 = scmp.ne.s32.totalorder %s13845_s23, %s13841_s22 }
   0x8   : > { %p287_p1 = scmp.eq.s32.totalorder %s286_s29, 0  ;;  %p300_p2 = scmp.eq.s32.totalorder %s13942_s25, 1 }
   0x9   : > { %p305_p3 = scmp.ne.s32.totalorder %s13841_s22, %s13837_s21  ;;  %p306_p4 = scmp.eq.s32.totalorder %s10626_s26, 1 }
   0xa   : > { %s13957_s30 = scalar_select %p287_p1, %s13845_s23, %s289_s28  }
   0xb   : > { %p13959_p5 = por %p300_p2, %p299_p0  ;;  %p13963_p6 = por %p306_p4, %p305_p3 }
   0xc   : > { %17173 = sst [smem:[#allocation10_spill]] %s13957_s30  ;;  %p10629_p7 = scmp.ge.s32.totalorder %s13849_s24, 1 }
   0xd   : > { %p365_p8 = scmp.lt.s32.totalorder %s13849_s24, 3 }
   0xf   : > { %p366_p9 = pnand %p10629_p7, %p365_p8 }
  0x11   : > { %369 = sbr.rel (%p366_p9) target bundleno = 1882 (0x75a), region = 68 }
  0x16   : > { %s17176_s2 = sld [smem:[#allocation88_spill]]  ;;  %v13851_v1 = vmov 0.0   ;;  %vm13852_vm0 = vmmov 0   ;;  %p406_p10 = scmp.lt.s32.totalorder %s13942_s25, 1  ;;  %v412_v3 = vld [vmem:[%s17158_s1] sm:$0xff]  ;;  %v414_v4 = vld [vmem:[%s17158_s1 + $0x10] sm:$0xff] }
  0x17   : > { %12120 = vmatprep.subr.bf16.mxu0 %v13851_v1  ;;  %6463 = vst [vmem:[#allocation4] sm:$0xff] %v13851_v1  ;;  %6464 = vst [vmem:[#allocation4 + $0x8] sm:$0xff] %v13851_v1  ;;  %12124 = vmatprep.mubr.msk.bf16.mxu0 %vm13852_vm0, %v13851_v1  ;;  %v13853_v5 = vmov 0   ;;  %v413_v6 = vld [vmem:[%s17158_s1 + $0x8] sm:$0xff]  ;;  %v415_v7 = vld [vmem:[%s17158_s1 + $0x18] sm:$0xff]  ;;  %vm622_vm1 = vcmask 261120  }
  0x18   : > { %6465 = vst [vmem:[#allocation4 + $0x10] sm:$0xff] %v13851_v1  ;;  %6466 = vst [vmem:[#allocation4 + $0x18] sm:$0xff] %v13851_v1  ;;  %13044 = vset.pattern.permute.xlu0 %v13853_v5  ;;  %s407_s29 = scalar_select %p406_p10, %s13942_s25, 1  ;;  %13045 = vset.pattern.permute.xlu1 %v13853_v5  ;;  %v416_v8 = vld [vmem:[%s17158_s1 + $0x20] sm:$0xff]  ;;  %v417_v10 = vld [vmem:[%s17158_s1 + $0x28] sm:$0xff]  ;;  %vm2594_vm2 = vcmask 1046528  }
  0x19   : > { %6467 = vst [vmem:[#allocation4 + $0x20] sm:$0xff] %v13851_v1  ;;  %6468 = vst [vmem:[#allocation4 + $0x28] sm:$0xff] %v13851_v1  ;;  %929 = vperm.xlu0 %13044, %v412_v3   ;;  %939 = vperm.xlu1 %13045, %v414_v4   ;;  %v418_v11 = vld [vmem:[%s17158_s1 + $0x30] sm:$0xff]  ;;  %v419_v12 = vld [vmem:[%s17158_s1 + $0x38] sm:$0xff]  ;;  %vm1947_vm3 = vsmask.f32 7424 }
  0x1a   : > { %6469 = vst [vmem:[#allocation4 + $0x30] sm:$0xff] %v13851_v1  ;;  %6470 = vst [vmem:[#allocation4 + $0x38] sm:$0xff] %v13851_v1  ;;  %s13000_s17 = smul.u32 164, %s407_s29  ;;  %v420_v14 = vld [vmem:[%s17158_s1 + $0x40] sm:$0xff]  ;;  %v421_v15 = vld [vmem:[%s17158_s1 + $0x48] sm:$0xff]  ;;  %vm4334_vm5 = vcmask 1045504  }
  0x1b   : > { %6471 = vst [vmem:[#allocation4 + $0x40] sm:$0xff] %v13851_v1  ;;  %6472 = vst [vmem:[#allocation4 + $0x48] sm:$0xff] %v13851_v1  ;;  %v422_v16 = vld [vmem:[%s17158_s1 + $0x50] sm:$0xff]  ;;  %v423_v17 = vld [vmem:[%s17158_s1 + $0x58] sm:$0xff]  ;;  %vm3665_vm4 = vsmask.f32 6400 }
  0x1c   : > { %v13046_v0 = vld [vmem:[%s17176_s2 + $0x8] sm:$0xff]   ;;  %6473 = vst [vmem:[#allocation4 + $0x50] sm:$0xff] %v13851_v1  ;;  %6474 = vst [vmem:[#allocation4 + $0x58] sm:$0xff] %v13851_v1  ;;  %v13047_v2 = vld [vmem:[%s17176_s2] sm:$0xff]   ;;  %s14009_s28 = scalar_lea.vmem %s17157_s0, %s13000_s17  ;;  %vm6074_vm6 = vcmask 1044480   ;;  %s404_s16 = sand.u32 1, %s13841_s22  }
  0x1d   : > { %6475 = vst [vmem:[#allocation4 + $0x60] sm:$0xff] %v13851_v1  ;;  %12121 = vmatpush3.bf16.msra.mxu0 %v13046_v0  ;;  %934 = vperm.xlu0 %13044, %v413_v6   ;;  %v13048_v9 = vld [vmem:[%s14009_s28] sm:$0xff]   ;;  %v13049_v13 = vld [vmem:[%s14009_s28 + $0x8] sm:$0xff]   ;;  %v13050_v18 = vld [vmem:[%s14009_s28 + $0x10] sm:$0xff]   ;;  %vm5405_vm7 = vsmask.f32 5376 }
  0x1e   : > { %12122 = vmatprep.subr.bf16.mxu0 %v13851_v1  ;;  %944 = vperm.xlu1 %13045, %v415_v7   ;;  %v424_v19 = vld [vmem:[%s17158_s1 + $0x60] sm:$0xff]  ;;  %v425_v20 = vld [vmem:[%s17158_s1 + $0x68] sm:$0xff]  ;;  %v426_v21 = vld [vmem:[%s17158_s1 + $0x70] sm:$0xff]  ;;  %s11561_s30 = sshll.u32 %s13942_s25, 4  ;;  %s405_s18 = scalar_lea.vmem [#allocation7], %s404_s16 }
  0x1f   : > { %v427_v22 = vld [vmem:[%s17158_s1 + $0x78] sm:$0xff]  ;;  %v428_v24 = vld [vmem:[%s17158_s1 + $0x80] sm:$0xff]  ;;  %v429_v25 = vld [vmem:[%s17158_s1 + $0x88] sm:$0xff]  ;;  %s10571_s19 = sshll.u32 %s405_s18, 4  ;;  %s17122_s26 = scalar_lea.hbm %s17169_s12, %s11561_s30  ;;  %s10572_s19 = int_to_ptr.vmem [resolvable:$true] %s10571_s19 }
  0x20   : > { %v13051_v23 = vld [vmem:[%s14009_s28 + $0x18] sm:$0xff]   ;;  %v430_v26 = vld [vmem:[%s17158_s1 + $0x90] sm:$0xff]  ;;  %v13052_v28 = vld [vmem:[%s14009_s28 + $0x20] sm:$0xff]   ;;  %s10559_s29 = scalar_lea.sflag [#allocation8], %s404_s16  ;;  %s13789_s15 = scalar_lea.vmem %s10572_s19, 16 }
  0x21   : > { %12123 = vmatpush3.bf16.msra.mxu0 %v13047_v2  ;;  %949 = vperm.xlu0 %13044, %v416_v8   ;;  %v431_v27 = vld [vmem:[%s17158_s1 + $0x98] sm:$0xff]  ;;  %v432_v29 = vld [vmem:[%s17158_s1 + $0xa0] sm:$0xff]  ;;  %v433_v30 = vld [vmem:[%s17158_s1 + $0xa8] sm:$0xff]  ;;  %p13790_p11 = scmp.ne.s32.totalorder %s10572_s19, %s13789_s15  ;;  %s13855_s25 = smov [#allocation7]  }
  0x22   : > { %954 = vperm.xlu1 %13045, %v417_v10   ;;  %v434_v31 = vld [vmem:[%s17158_s1 + $0xb0] sm:$0xff]  ;;  %v13069_v32 = vld [vmem:[%s17161_s4 + $0x38] sm:$0xff]   ;;  %v13053_v34 = vld [vmem:[%s14009_s28 + $0x28] sm:$0xff]   ;;  %s13793_s17 = sshll.u32 %s13855_s25, 4  ;;  %s13794_s17 = int_to_ptr.vmem [resolvable:$false] %s13793_s17 }
  0x23   : > { %v435_v33 = vld [vmem:[%s17158_s1 + $0xb8] sm:$0xff]  ;;  %12208 = vmatprep.subr.bf16.mxu1 %v13069_v32  ;;  %v436_v35 = vld [vmem:[%s17158_s1 + $0xc0] sm:$0xff]  ;;  %v437_v36 = vld [vmem:[%s17158_s1 + $0xc8] sm:$0xff]  ;;  %p13791_p12 = pnand %p13790_p11, %p13959_p5  ;;  %s13795_s2 = scalar_lea.vmem %s13794_s17, 32 }
  0x24   : > { %12125 = vmatmul.mubr.msk.bf16.vlgmr.msra.gmra.mxu0 %vm622_vm1, %v13048_v9  ;;  %12209 = vmatpush3.bf16.msra.mxu1 %v13069_v32  ;;  %v438_v37 = vld [vmem:[%s17158_s1 + $0xd0] sm:$0xff]  ;;  %v439_v38 = vld [vmem:[%s17158_s1 + $0xd8] sm:$0xff]  ;;  %v440_v40 = vld [vmem:[%s17158_s1 + $0xe0] sm:$0xff]  ;;  %p13796_p0 = scmp.lt.s32.totalorder %s10572_s19, %s13794_s17  ;;  %p13797_p1 = scmp.lt.s32.totalorder %s13795_s2, %s13789_s15 }
  0x25   : > { %12128 = vmatprep.mubr.msk.bf16.mxu0 %vm13852_vm0, %v13851_v1  ;;  %959 = vperm.xlu0 %13044, %v418_v11   ;;  %v13054_v39 = vld [vmem:[%s14009_s28 + $0x30] sm:$0xff]   ;;  %v441_v41 = vld [vmem:[%s17158_s1 + $0xe8] sm:$0xff]  ;;  %v443_v43 = vld [vmem:[%s17158_s1 + $0xf8] sm:$0xff]  ;;  %p13792_p13 = pneg %p13791_p12 }
  0x26   : > { %964 = vperm.xlu1 %13045, %v419_v12   ;;  %v442_v42 = vld [vmem:[%s17158_s1 + $0xf0] sm:$0xff]  ;;  %v13055_v44 = vld [vmem:[%s14009_s28 + $0x38] sm:$0xff]   ;;  %v444_v45 = vld [vmem:[%s17158_s1 + $0x100] sm:$0xff]  ;;  %p13798_p2 = por %p13797_p1, %p13796_p0 }
  0x27   : > { %v445_v46 = vld [vmem:[%s17158_s1 + $0x108] sm:$0xff]  ;;  %v446_v47 = vld [vmem:[%s17158_s1 + $0x110] sm:$0xff]  ;;  %v447_v48 = vld [vmem:[%s17158_s1 + $0x118] sm:$0xff] }
  0x28   : > { %v13056_v49 = vld [vmem:[%s14009_s28 + $0x40] sm:$0xff]   ;;  %v449_v51 = vld [vmem:[%s17158_s1 + $0x128] sm:$0xff]  ;;  %v450_v52 = vld [vmem:[%s17158_s1 + $0x130] sm:$0xff]  ;;  %p13799_p3 = pnand %p13798_p2, %p13792_p13 }
  0x29   : > { %969 = vperm.xlu0 %13044, %v420_v14   ;;  %v448_v50 = vld [vmem:[%s17158_s1 + $0x120] sm:$0xff]  ;;  %v13070_v53 = vld [vmem:[%s17161_s4 + $0x30] sm:$0xff]   ;;  %v451_v54 = vld [vmem:[%s17158_s1 + $0x138] sm:$0xff] }
  0x2a   : > { %974 = vperm.xlu1 %13045, %v421_v15   ;;  %v13057_v55 = vld [vmem:[%s14009_s28 + $0x48] sm:$0xff]   ;;  %12210 = vmatprep.subr.bf16.mxu1 %v13070_v53  ;;  %v452_v56 = vld [vmem:[%s17158_s1 + $0x140] sm:$0xff]  ;;  %v13072_v58 = vld [vmem:[%s17161_s4 + $0xb8] sm:$0xff]  }
  0x2b   : > { %12211 = vmatpush3.bf16.msra.mxu1 %v13070_v53  ;;  %v13071_v57 = vld [vmem:[%s17161_s4 + $0x28] sm:$0xff]   ;;  %v13073_v59 = vld [vmem:[%s17161_s4 + $0x20] sm:$0xff]   ;;  %v13058_v60 = vld [vmem:[%s14009_s28 + $0x50] sm:$0xff]   ;;  %12312 = vmatprep.subr.bf16.mxu0 %v13072_v58 }
  0x2c   : > { %12129 = vmatmul.mubr.msk.bf16.gmra.mxu0 %vm622_vm1, %v13049_v13  ;;  %12212 = vmatprep.subr.bf16.mxu1 %v13071_v57  ;;  %v13074_v61 = vld [vmem:[%s17161_s4 + $0xb0] sm:$0xff]   ;;  %v13075_v62 = vld [vmem:[%s17161_s4 + $0x18] sm:$0xff]   ;;  %v13076_v63 = vld [vmem:[%s17161_s4 + $0xa8] sm:$0xff]  }
  0x2d   : > { %12132 = vmatprep.mubr.msk.bf16.mxu0 %vm13852_vm0, %v13851_v1  ;;  %979 = vperm.xlu0 %13044, %v422_v16   ;;  %v13077_v0 = vld [vmem:[%s17161_s4 + $0x10] sm:$0xff]   ;;  %v13059_v2 = vld [vmem:[%s14009_s28 + $0x58] sm:$0xff]   ;;  %v13078_v3 = vld [vmem:[%s17161_s4 + $0xa0] sm:$0xff]  }
  0x2e   : > { %984 = vperm.xlu1 %13045, %v423_v17   ;;  %12313 = vmatpush3.bf16.msra.mxu0 %v13072_v58  ;;  %v13079_v4 = vld [vmem:[%s17161_s4 + $0x8] sm:$0xff]   ;;  %v13081_v5 = vld [vmem:[%s17161_s4 + $0x98] sm:$0xff]   ;;  %v13082_v6 = vld [vmem:[%s17161_s4] sm:$0xff]  }
  0x2f   : > { %12213 = vmatpush3.bf16.msra.mxu1 %v13071_v57  ;;  %12314 = vmatprep.subr.bf16.mxu0 %v13074_v61  ;;  %v13060_v7 = vld [vmem:[%s14009_s28 + $0x60] sm:$0xff]   ;;  %v13083_v8 = vld [vmem:[%s17161_s4 + $0x90] sm:$0xff]   ;;  %v13085_v9 = vld [vmem:[%s17161_s4 + $0x88] sm:$0xff]  }
  0x30   : > { %12214 = vmatprep.subr.bf16.mxu1 %v13073_v59  ;;  %v13061_v10 = vld [vmem:[%s14009_s28 + $0x68] sm:$0xff]   ;;  %v13088_v11 = vld [vmem:[%s17161_s4 + $0x80] sm:$0xff]   ;;  %v13062_v12 = vld [vmem:[%s14009_s28 + $0x70] sm:$0xff]  }
  0x31   : > { %989 = vperm.xlu0 %13044, %v424_v19   ;;  %v13063_v13 = vld [vmem:[%s14009_s28 + $0x78] sm:$0xff]   ;;  %v13783_v14 = vld [vmem:[#allocation4] sm:$0xff]  ;;  %v13066_v17 = vld [vmem:[%s14009_s28 + $0x90] sm:$0xff]  }
  0x32   : > { %994 = vperm.xlu1 %13045, %v425_v20   ;;  %12315 = vmatpush3.bf16.msra.mxu0 %v13074_v61  ;;  %v13064_v15 = vld [vmem:[%s14009_s28 + $0x80] sm:$0xff]   ;;  %v13065_v16 = vld [vmem:[%s14009_s28 + $0x88] sm:$0xff]   ;;  %v14250_v19 = vld [vmem:[%s17161_s4 + $0x78] sm:$0xff]  }
  0x33   : > { %12215 = vmatpush3.bf16.msra.mxu1 %v13073_v59  ;;  %12316 = vmatprep.subr.bf16.mxu0 %v13076_v63  ;;  %v14256_v20 = vld [vmem:[%s17160_s3] ss:$0 sm:$0xff] }
  0x34   : > { %12133 = vmatmul.mubr.msk.bf16.gmra.mxu0 %vm622_vm1, %v13050_v18  ;;  %12216 = vmatprep.subr.bf16.mxu1 %v13075_v62  ;;  %v13068_v18 = vld [vmem:[%s14009_s28 + $0xa0] ss:$0 sps:$4 sm:$0xff]  }
  0x35   : > { %12136 = vmatprep.mubr.msk.bf16.mxu0 %vm13852_vm0, %v13851_v1  ;;  %999 = vperm.xlu0 %13044, %v426_v21  }
  0x36   : > { %1004 = vperm.xlu1 %13045, %v427_v22   ;;  %12317 = vmatpush3.bf16.msra.mxu0 %v13076_v63 }
  0x37   : > { %12217 = vmatpush3.bf16.msra.mxu1 %v13075_v62  ;;  %12318 = vmatprep.subr.bf16.mxu0 %v13078_v3 }
  0x38   : > { %12218 = vmatprep.subr.bf16.mxu1 %v13077_v0 }
  0x39   : > { %1009 = vperm.xlu0 %13044, %v428_v24  }
  0x3a   : > { %1014 = vperm.xlu1 %13045, %v429_v25   ;;  %12319 = vmatpush3.bf16.msra.mxu0 %v13078_v3 }
  0x3b   : > { %12219 = vmatpush3.bf16.msra.mxu1 %v13077_v0  ;;  %12320 = vmatprep.subr.bf16.mxu0 %v13081_v5  ;;  %v13107_v0 = vld [vmem:[%s17161_s4 + $0x70] sm:$0xff]  }
  0x3c   : > { %12137 = vmatmul.mubr.msk.bf16.gmra.mxu0 %vm622_vm1, %v13051_v23  ;;  %12220 = vmatprep.subr.bf16.mxu1 %v13079_v4 }
  0x3d   : > { %12140 = vmatprep.mubr.msk.bf16.mxu0 %vm13852_vm0, %v13851_v1  ;;  %1019 = vperm.xlu0 %13044, %v430_v26  }
  0x3e   : > { %1024 = vperm.xlu1 %13045, %v431_v27   ;;  %12321 = vmatpush3.bf16.msra.mxu0 %v13081_v5 }
  0x3f   : > { %12221 = vmatpush3.bf16.msra.mxu1 %v13079_v4  ;;  %12322 = vmatprep.subr.bf16.mxu0 %v13083_v8 }
  0x40   : > { %12222 = vmatprep.subr.bf16.mxu1 %v13082_v6 }
  0x41   : > { %1029 = vperm.xlu0 %13044, %v432_v29  }
  0x42   : > { %1034 = vperm.xlu1 %13045, %v433_v30   ;;  %12323 = vmatpush3.bf16.msra.mxu0 %v13083_v8 }
  0x43   : > { %12223 = vmatpush3.bf16.msra.mxu1 %v13082_v6  ;;  %12324 = vmatprep.subr.bf16.mxu0 %v13085_v9 }
  0x44   : > { %12141 = vmatmul.mubr.msk.bf16.gmra.mxu0 %vm622_vm1, %v13052_v28  ;;  %12260 = vmatprep.subr.bf16.mxu1 %v14250_v19 }
  0x45   : > { %12144 = vmatprep.mubr.msk.bf16.mxu0 %vm13852_vm0, %v13851_v1  ;;  %1039 = vperm.xlu0 %13044, %v434_v31  }
  0x46   : > { %1044 = vperm.xlu1 %13045, %v435_v33   ;;  %12325 = vmatpush3.bf16.msra.mxu0 %v13085_v9 }
  0x47   : > { %12326 = vmatprep.subr.bf16.mxu0 %v13088_v11 }
  0x49   : > { %1049 = vperm.xlu0 %13044, %v436_v35  }
  0x4a   : > { %1054 = vperm.xlu1 %13045, %v437_v36   ;;  %12327 = vmatpush3.bf16.msra.mxu0 %v13088_v11 }
  0x4c   : > { %12145 = vmatmul.mubr.msk.bf16.gmra.mxu0 %vm622_vm1, %v13053_v34 }
  0x4d   : > { %12148 = vmatprep.mubr.msk.bf16.mxu0 %vm13852_vm0, %v13851_v1  ;;  %1059 = vperm.xlu0 %13044, %v438_v37  }
  0x4e   : > { %1064 = vperm.xlu1 %13045, %v439_v38  }
  0x51   : > { %1069 = vperm.xlu0 %13044, %v440_v40  }
  0x52   : > { %1074 = vperm.xlu1 %13045, %v441_v41  }
  0x54   : > { %12149 = vmatmul.mubr.msk.bf16.gmra.mxu0 %vm622_vm1, %v13054_v39 }
  0x55   : > { %12152 = vmatprep.mubr.msk.bf16.mxu0 %vm13852_vm0, %v13851_v1  ;;  %1079 = vperm.xlu0 %13044, %v442_v42  }
  0x56   : > { %1084 = vperm.xlu1 %13045, %v443_v43  }
  0x59   : > { %1089 = vperm.xlu0 %13044, %v444_v45   ;;  %v14265_v45 = vld [vmem:[%s17161_s4 + $0x138] sm:$0xff]  }
  0x5a   : > { %1094 = vperm.xlu1 %13045, %v445_v46   ;;  %12416 = vmatprep.subr.bf16.mxu0 %v14265_v45 }
  0x5c   : > { %12153 = vmatmul.mubr.msk.bf16.gmra.mxu0 %vm622_vm1, %v13055_v44 }
  0x5d   : > { %12156 = vmatprep.mubr.msk.bf16.mxu0 %vm13852_vm0, %v13851_v1  ;;  %1099 = vperm.xlu0 %13044, %v446_v47  }
  0x5e   : > { %1104 = vperm.xlu1 %13045, %v447_v48  }
  0x61   : > { %1109 = vperm.xlu0 %13044, %v448_v50  }
  0x62   : > { %1114 = vperm.xlu1 %13045, %v449_v51  }
  0x64   : > { %12157 = vmatmul.mubr.msk.bf16.gmra.mxu0 %vm622_vm1, %v13056_v49 }
  0x65   : > { %12160 = vmatprep.mubr.msk.bf16.mxu0 %vm13852_vm0, %v13851_v1  ;;  %1119 = vperm.xlu0 %13044, %v450_v52  }
  0x66   : > { %1124 = vperm.xlu1 %13045, %v451_v54  }
  0x69   : > { %1129 = vperm.xlu0 %13044, %v452_v56  }
  0x6c   : > { %12161 = vmatmul.mubr.msk.bf16.gmra.mxu0 %vm622_vm1, %v13057_v55 }
  0x6d   : > { %12164 = vmatprep.mubr.msk.bf16.mxu0 %vm13852_vm0, %v13851_v1 }
  0x74   : > { %12165 = vmatmul.mubr.msk.bf16.gmra.mxu0 %vm622_vm1, %v13058_v60 }
  0x75   : > { %12168 = vmatprep.mubr.msk.bf16.mxu0 %vm13852_vm0, %v13851_v1 }
  0x7c   : > { %12169 = vmatmul.mubr.msk.bf16.gmra.mxu0 %vm622_vm1, %v13059_v2 }
  0x7d   : > { %12172 = vmatprep.mubr.msk.bf16.mxu0 %vm13852_vm0, %v13851_v1 }
  0x84   : > { %12173 = vmatmul.mubr.msk.bf16.gmra.mxu0 %vm622_vm1, %v13060_v7 }
  0x85   : > { %12176 = vmatprep.mubr.msk.bf16.mxu0 %vm13852_vm0, %v13851_v1 }
  0x8c   : > { %12177 = vmatmul.mubr.msk.bf16.gmra.mxu0 %vm622_vm1, %v13061_v10 }
  0x8d   : > { %12180 = vmatprep.mubr.msk.bf16.mxu0 %vm13852_vm0, %v13851_v1 }
  0x94   : > { %12181 = vmatmul.mubr.msk.bf16.gmra.mxu0 %vm622_vm1, %v13062_v12  ;;  %v930_v23 = vpop.permute.xlu0 %929  ;;  %v940_v35 = vpop.permute.xlu1 %939 }
  0x95   : > { %12184 = vmatprep.mubr.msk.bf16.mxu0 %vm13852_vm0, %v13851_v1  ;;  %v13067_v1 = vld [vmem:[%s14009_s28 + $0x98] sm:$0xff]  }
  0x98   : > { %v935_v30 = vpop.permute.xlu0 %934 }
  0x99   : > { %v945_v43 = vpop.permute.xlu1 %944 }
  0x9c   : > { %12185 = vmatmul.mubr.msk.bf16.gmra.mxu0 %vm622_vm1, %v13063_v13  ;;  %v950_v56 = vpop.permute.xlu0 %949 }
  0x9d   : > { %12188 = vmatprep.mubr.msk.bf16.mxu0 %vm13852_vm0, %v13783_v14  ;;  %v955_v58 = vpop.permute.xlu1 %954 }
  0xa0   : > { %v960_v10 = vpop.permute.xlu0 %959 }
  0xa4   : > { %12189 = vmatmul.mubr.msk.bf16.gmra.mxu0 %vm622_vm1, %v13064_v15 }
  0xa5   : > { %12192 = vmatprep.mubr.msk.bf16.mxu0 %vm13852_vm0, %v13783_v14 }
  0xac   : > { %12193 = vmatmul.mubr.msk.bf16.gmra.mxu0 %vm622_vm1, %v13065_v16  ;;  %v13110_v16 = vld [vmem:[%s17161_s4 + $0x68] sm:$0xff]  }
  0xad   : > { %12196 = vmatprep.mubr.msk.bf16.mxu0 %vm13852_vm0, %v13783_v14 }
  0xb4   : > { %12197 = vmatmul.mubr.msk.bf16.gmra.mxu0 %vm622_vm1, %v13066_v17 }
  0xb5   : > { %12200 = vmatprep.mubr.msk.bf16.mxu0 %vm13852_vm0, %v13783_v14 }
  0xbc   : > { %12201 = vmatmul.mubr.msk.bf16.gmra.mxu0 %vm622_vm1, %v13067_v1 }
  0xbd   : > { %12204 = vmatprep.mubr.msk.bf16.mxu0 %vm13852_vm0, %v13783_v14  ;;  %v965_v14 = vpop.permute.xlu1 %964 }
  0xc4   : > { %12205 = vmatmul.mubr.msk.bf16.gmra.mxu0 %vm622_vm1, %v13068_v18 }
  0xe4   : > { %v720_v21 = vpop.f32.mrf.mxu0 }
  0xe5   : > { %v721_v22 = vadd.f32 %v14256_v20, %v720_v21 }
  0xe6   : > { %v12126_v24 = vpop.f32.mrf.mxu0 }
  0xe7   : > { %v886_v26 = vmax.f32 %v721_v22, 0.0 }
  0xe8   : > { %v723_v25 = vpop.f32.mrf.mxu0 }
  0xe9   : > { %v724_v27 = vadd.f32 %v14256_v20, %v723_v25  ;;  %v1132_v32 = vmul.f32 %v930_v23, %v886_v26 }
  0xea   : > { %v12127_v28 = vpop.f32.mrf.mxu0 }
  0xeb   : > { %v887_v29 = vmax.f32 %v724_v27, 0.0 }
  0xec   : > { %v728_v31 = vpop.f32.mrf.mxu0 }
  0xed   : > { %v1133_v33 = vmul.f32 %v935_v30, %v887_v29  ;;  %v729_v34 = vadd.f32 %v14256_v20, %v728_v31  ;;  %v970_v30 = vpop.permute.xlu0 %969 }
  0xee   : > { %v12130_v36 = vpop.f32.mrf.mxu0 }
  0xef   : > { %v11608_v37 = vpack.c.bf16 %v1133_v33, %v1132_v32  ;;  %v888_v39 = vmax.f32 %v729_v34, 0.0  ;;  %v13116_v33 = vld [vmem:[%s17161_s4 + $0x58] sm:$0xff]   ;;  %v975_v34 = vpop.permute.xlu1 %974  ;;  %v13125_v36 = vld [vmem:[%s17161_s4 + $0x130] sm:$0xff]  }
  0xf0   : > { %v731_v38 = vpop.f32.mrf.mxu0 }
  0xf1   : > { %11609 = vst [vmem:[#allocation2] sm:$0xff] %v11608_v37   ;;  %v732_v40 = vadd.f32 %v14256_v20, %v731_v38  ;;  %v1134_v46 = vmul.f32 %v940_v35, %v888_v39 }
  0xf2   : > { %v12131_v41 = vpop.f32.mrf.mxu0 }
  0xf3   : > { %v889_v42 = vmax.f32 %v732_v40, 0.0 }
  0xf4   : > { %v736_v44 = vpop.f32.mrf.mxu0 }
  0xf5   : > { %v1135_v47 = vmul.f32 %v945_v43, %v889_v42  ;;  %v737_v48 = vadd.f32 %v14256_v20, %v736_v44  ;;  %v13120_v42 = vld [vmem:[%s17161_s4 + $0x50] sm:$0xff]   ;;  %v13128_v44 = vld [vmem:[%s17161_s4 + $0x128] sm:$0xff]  }
  0xf6   : > { %v12134_v49 = vpop.f32.mrf.mxu0 }
  0xf7   : > { %v11613_v50 = vpack.c.bf16 %v1135_v47, %v1134_v46  ;;  %v890_v53 = vmax.f32 %v737_v48, 0.0 }
  0xf8   : > { %v739_v51 = vpop.f32.mrf.mxu0  ;;  %v13080_v52 = vld [vmem:[#allocation2] sm:$0xff]  }
  0xf9   : > { %11705 = vst [vmem:[#allocation2 + $0x8] sm:$0xff] %v11613_v50   ;;  %v740_v54 = vadd.f32 %v14256_v20, %v739_v51  ;;  %12224 = vmatprep.mubr.bf16.mxu1 %v13080_v52  ;;  %v1136_v60 = vmul.f32 %v950_v56, %v890_v53  ;;  %v13086_v3 = vld [vmem:[#allocation2] sm:$0xfe]   ;;  %v980_v52 = vpop.permute.xlu0 %979 }
  0xfa   : > { %v12135_v55 = vpop.f32.mrf.mxu0  ;;  %v2595_v12 = vrot.slane %v13086_v3, 1 }
  0xfb   : > { %v891_v57 = vmax.f32 %v740_v54, 0.0  ;;  %v985_v55 = vpop.permute.xlu1 %984 }
  0xfc   : > { %v744_v59 = vpop.f32.mrf.mxu0 }
  0xfd   : > { %v1137_v61 = vmul.f32 %v955_v58, %v891_v57  ;;  %v745_v62 = vadd.f32 %v14256_v20, %v744_v59  ;;  %v13130_v57 = vld [vmem:[%s17161_s4 + $0x120] sm:$0xff]  }
  0xfe   : > { %v12138_v63 = vpop.f32.mrf.mxu0 }
  0xff   : > { %v11618_v2 = vpack.c.bf16 %v1137_v61, %v1136_v60  ;;  %v892_v6 = vmax.f32 %v745_v62, 0.0 }
 0x100   : > { %v747_v4 = vpop.f32.mrf.mxu0  ;;  %v13084_v5 = vld [vmem:[#allocation2 + $0x8] sm:$0xff]  }
 0x101   : > { %11706 = vst [vmem:[#allocation2 + $0x10] sm:$0xff] %v11618_v2   ;;  %v748_v7 = vadd.f32 %v14256_v20, %v747_v4  ;;  %v13087_v8 = vld [vmem:[#allocation2 + $0x8] sm:$0xff]   ;;  %12225 = vmatmul.mubr.bf16.vlgmr.msra.gmra.mxu1 %v13084_v5  ;;  %v1138_v17 = vmul.f32 %v960_v10, %v892_v6  ;;  %v13135_v2 = vld [vmem:[%s17161_s4 + $0x118] sm:$0xff]  }
 0x102   : > { %v12139_v9 = vpop.f32.mrf.mxu0  ;;  %v2596_v13 = vrot.slane %v13087_v8, 1  ;;  %12261 = vmatpush3.bf16.msra.mxu1 %v14250_v19  ;;  %v13113_v19 = vld [vmem:[%s17161_s4 + $0x60] sm:$0xff]  }
 0x103   : > { %v893_v11 = vmax.f32 %v748_v7, 0.0  ;;  %12262 = vmatprep.subr.bf16.mxu1 %v13107_v0  ;;  %v990_v9 = vpop.permute.xlu0 %989 }
 0x104   : > { %v752_v15 = vpop.f32.mrf.mxu0  ;;  %v2597_v21 = vsel %vm2594_vm2, %v2595_v12, %v2596_v13  ;;  %v995_v12 = vpop.permute.xlu1 %994 }
 0x105   : > { %v1139_v1 = vmul.f32 %v965_v14, %v893_v11  ;;  %v753_v18 = vadd.f32 %v14256_v20, %v752_v15  ;;  %12328 = vmatprep.mubr.bf16.mxu0 %v2597_v21  ;;  %v13136_v14 = vld [vmem:[%s17161_s4 + $0xf8] sm:$0xff]   ;;  %v13137_v15 = vld [vmem:[%s17161_s4 + $0x110] sm:$0xff]  }
 0x106   : > { %v12142_v22 = vpop.f32.mrf.mxu0  ;;  %12263 = vmatpush3.bf16.msra.mxu1 %v13107_v0  ;;  %v13129_v0 = vld [vmem:[%s17161_s4 + $0x40] sm:$0xff]  }
 0x107   : > { %v11623_v23 = vpack.c.bf16 %v1139_v1, %v1138_v17  ;;  %12264 = vmatprep.subr.bf16.mxu1 %v13110_v16  ;;  %v894_v26 = vmax.f32 %v753_v18, 0.0 }
 0x108   : > { %v755_v24 = vpop.f32.mrf.mxu0  ;;  %v13089_v25 = vld [vmem:[#allocation2 + $0x10] sm:$0xff]  }
 0x109   : > { %11707 = vst [vmem:[#allocation2 + $0x18] sm:$0xff] %v11623_v23   ;;  %v756_v27 = vadd.f32 %v14256_v20, %v755_v24  ;;  %v13090_v28 = vld [vmem:[#allocation2 + $0x10] sm:$0xff]   ;;  %12228 = vmatprep.mubr.bf16.mxu1 %v13089_v25  ;;  %v1140_v37 = vmul.f32 %v970_v30, %v894_v26  ;;  %v13141_v23 = vld [vmem:[%s17161_s4 + $0x108] sm:$0xff]  }
 0x10a   : > { %v12143_v29 = vpop.f32.mrf.mxu0  ;;  %v2598_v32 = vrot.slane %v13090_v28, 1  ;;  %12265 = vmatpush3.bf16.msra.mxu1 %v13110_v16 }
 0x10b   : > { %v895_v31 = vmax.f32 %v756_v27, 0.0  ;;  %12266 = vmatprep.subr.bf16.mxu1 %v13113_v19  ;;  %v1000_v29 = vpop.permute.xlu0 %999 }
 0x10c   : > { %v760_v35 = vpop.f32.mrf.mxu0  ;;  %v2599_v40 = vsel %vm2594_vm2, %v2596_v13, %v2598_v32 }
 0x10d   : > { %v1141_v38 = vmul.f32 %v975_v34, %v895_v31  ;;  %v761_v39 = vadd.f32 %v14256_v20, %v760_v35  ;;  %12329 = vmatmul.mubr.bf16.vlgmr.msra.gmra.mxu0 %v2599_v40  ;;  %v13144_v34 = vld [vmem:[%s17161_s4 + $0x100] sm:$0xff]  }
 0x10e   : > { %v12146_v41 = vpop.f32.mrf.mxu0  ;;  %12267 = vmatpush3.bf16.msra.mxu1 %v13113_v19  ;;  %12417 = vmatpush3.bf16.msra.mxu0 %v14265_v45  ;;  %v13124_v45 = vld [vmem:[%s17161_s4 + $0x48] sm:$0xff]  }
 0x10f   : > { %v11628_v43 = vpack.c.bf16 %v1141_v38, %v1140_v37  ;;  %12268 = vmatprep.subr.bf16.mxu1 %v13116_v33  ;;  %12418 = vmatprep.subr.bf16.mxu0 %v13125_v36  ;;  %v896_v48 = vmax.f32 %v761_v39, 0.0 }
 0x110   : > { %v763_v46 = vpop.f32.mrf.mxu0  ;;  %v13091_v47 = vld [vmem:[#allocation2 + $0x18] sm:$0xff]  }
 0x111   : > { %11708 = vst [vmem:[#allocation2 + $0x20] sm:$0xff] %v11628_v43   ;;  %v764_v49 = vadd.f32 %v14256_v20, %v763_v46  ;;  %v13092_v50 = vld [vmem:[#allocation2 + $0x18] sm:$0xff]   ;;  %12229 = vmatmul.mubr.bf16.gmra.mxu1 %v13091_v47  ;;  %v1142_v58 = vmul.f32 %v980_v52, %v896_v48  ;;  %v1010_v48 = vpop.permute.xlu0 %1009 }
 0x112   : > { %v12147_v51 = vpop.f32.mrf.mxu0  ;;  %v2600_v54 = vrot.slane %v13092_v50, 1  ;;  %12269 = vmatpush3.bf16.msra.mxu1 %v13116_v33  ;;  %12419 = vmatpush3.bf16.msra.mxu0 %v13125_v36 }
 0x113   : > { %v897_v53 = vmax.f32 %v764_v49, 0.0  ;;  %12270 = vmatprep.subr.bf16.mxu1 %v13120_v42  ;;  %12420 = vmatprep.subr.bf16.mxu0 %v13128_v44 }
 0x114   : > { %v768_v56 = vpop.f32.mrf.mxu0  ;;  %v2601_v61 = vsel %vm2594_vm2, %v2598_v32, %v2600_v54  ;;  %v1005_v32 = vpop.permute.xlu1 %1004 }
 0x115   : > { %v1143_v59 = vmul.f32 %v985_v55, %v897_v53  ;;  %v769_v60 = vadd.f32 %v14256_v20, %v768_v56  ;;  %12332 = vmatprep.mubr.bf16.mxu0 %v2601_v61 }
 0x116   : > { %v12150_v62 = vpop.f32.mrf.mxu0  ;;  %12271 = vmatpush3.bf16.msra.mxu1 %v13120_v42  ;;  %12421 = vmatpush3.bf16.msra.mxu0 %v13128_v44 }
 0x117   : > { %v11633_v63 = vpack.c.bf16 %v1143_v59, %v1142_v58  ;;  %12272 = vmatprep.subr.bf16.mxu1 %v13124_v45  ;;  %12422 = vmatprep.subr.bf16.mxu0 %v13130_v57  ;;  %v898_v5 = vmax.f32 %v769_v60, 0.0 }
 0x118   : > { %v771_v3 = vpop.f32.mrf.mxu0  ;;  %v13093_v4 = vld [vmem:[#allocation2 + $0x20] sm:$0xff]   ;;  %v1015_v51 = vpop.permute.xlu1 %1014 }
 0x119   : > { %11709 = vst [vmem:[#allocation2 + $0x28] sm:$0xff] %v11633_v63   ;;  %v772_v6 = vadd.f32 %v14256_v20, %v771_v3  ;;  %v13094_v7 = vld [vmem:[#allocation2 + $0x20] sm:$0xff]   ;;  %12232 = vmatprep.mubr.bf16.mxu1 %v13093_v4  ;;  %v1144_v16 = vmul.f32 %v990_v9, %v898_v5 }
 0x11a   : > { %v12151_v8 = vpop.f32.mrf.mxu0  ;;  %v2602_v11 = vrot.slane %v13094_v7, 1  ;;  %12273 = vmatpush3.bf16.msra.mxu1 %v13124_v45  ;;  %12423 = vmatpush3.bf16.msra.mxu0 %v13130_v57 }
 0x11b   : > { %v899_v10 = vmax.f32 %v772_v6, 0.0  ;;  %12274 = vmatprep.subr.bf16.mxu1 %v13129_v0  ;;  %12424 = vmatprep.subr.bf16.mxu0 %v13135_v2 }
 0x11c   : > { %v776_v13 = vpop.f32.mrf.mxu0  ;;  %v2603_v18 = vsel %vm2594_vm2, %v2600_v54, %v2602_v11  ;;  %v1025_v4 = vpop.permute.xlu1 %1024 }
 0x11d   : > { %v1145_v17 = vmul.f32 %v995_v12, %v899_v10  ;;  %v777_v1 = vadd.f32 %v14256_v20, %v776_v13  ;;  %12333 = vmatmul.mubr.bf16.gmra.mxu0 %v2603_v18 }
 0x11e   : > { %v12154_v21 = vpop.f32.mrf.mxu0  ;;  %12275 = vmatpush3.bf16.msra.mxu1 %v13129_v0  ;;  %12425 = vmatpush3.bf16.msra.mxu0 %v13135_v2  ;;  %v1020_v0 = vpop.permute.xlu0 %1019 }
 0x11f   : > { %v11638_v22 = vpack.c.bf16 %v1145_v17, %v1144_v16  ;;  %12364 = vmatprep.subr.bf16.mxu1 %v13136_v14  ;;  %12426 = vmatprep.subr.bf16.mxu0 %v13137_v15  ;;  %v900_v25 = vmax.f32 %v777_v1, 0.0 }
 0x120   : > { %v779_v19 = vpop.f32.mrf.mxu0  ;;  %v13095_v24 = vld [vmem:[#allocation2 + $0x28] sm:$0xff]  }
 0x121   : > { %11710 = vst [vmem:[#allocation2 + $0x30] sm:$0xff] %v11638_v22   ;;  %v780_v26 = vadd.f32 %v14256_v20, %v779_v19  ;;  %v13096_v27 = vld [vmem:[#allocation2 + $0x28] sm:$0xff]   ;;  %12233 = vmatmul.mubr.bf16.gmra.mxu1 %v13095_v24  ;;  %v1146_v35 = vmul.f32 %v1000_v29, %v900_v25  ;;  %v1035_v22 = vpop.permute.xlu1 %1034 }
 0x122   : > { %v12155_v28 = vpop.f32.mrf.mxu0  ;;  %v2604_v31 = vrot.slane %v13096_v27, 1  ;;  %12427 = vmatpush3.bf16.msra.mxu0 %v13137_v15  ;;  %v1030_v1 = vpop.permute.xlu0 %1029  ;;  %v14345_v27 = vld [vmem:[%s17161_s4 + $0x1b8] sm:$0xff]  }
 0x123   : > { %v901_v30 = vmax.f32 %v780_v26, 0.0  ;;  %12428 = vmatprep.subr.bf16.mxu0 %v13141_v23 }
 0x124   : > { %v784_v33 = vpop.f32.mrf.mxu0  ;;  %v2605_v38 = vsel %vm2594_vm2, %v2602_v11, %v2604_v31 }
 0x125   : > { %v1147_v36 = vmul.f32 %v1005_v32, %v901_v30  ;;  %v785_v37 = vadd.f32 %v14256_v20, %v784_v33  ;;  %12336 = vmatprep.mubr.bf16.mxu0 %v2605_v38 }
 0x126   : > { %v12158_v39 = vpop.f32.mrf.mxu0  ;;  %12429 = vmatpush3.bf16.msra.mxu0 %v13141_v23 }
 0x127   : > { %v11643_v40 = vpack.c.bf16 %v1147_v36, %v1146_v35  ;;  %12430 = vmatprep.subr.bf16.mxu0 %v13144_v34  ;;  %v902_v43 = vmax.f32 %v785_v37, 0.0  ;;  %v1040_v36 = vpop.permute.xlu0 %1039  ;;  %v1045_v39 = vpop.permute.xlu1 %1044 }
 0x128   : > { %v787_v41 = vpop.f32.mrf.mxu0  ;;  %v13097_v42 = vld [vmem:[#allocation2 + $0x30] sm:$0xff]  }
 0x129   : > { %11711 = vst [vmem:[#allocation2 + $0x38] sm:$0xff] %v11643_v40   ;;  %v788_v44 = vadd.f32 %v14256_v20, %v787_v41  ;;  %v13098_v46 = vld [vmem:[#allocation2 + $0x30] sm:$0xff]   ;;  %12236 = vmatprep.mubr.bf16.mxu1 %v13097_v42  ;;  %v1148_v53 = vmul.f32 %v1010_v48, %v902_v43 }
 0x12a   : > { %v12159_v47 = vpop.f32.mrf.mxu0  ;;  %v2606_v50 = vrot.slane %v13098_v46, 1  ;;  %12431 = vmatpush3.bf16.msra.mxu0 %v13144_v34 }
 0x12b   : > { %v903_v49 = vmax.f32 %v788_v44, 0.0  ;;  %12520 = vmatprep.subr.bf16.mxu0 %v14345_v27 }
 0x12c   : > { %v792_v52 = vpop.f32.mrf.mxu0  ;;  %v2607_v55 = vsel %vm2594_vm2, %v2604_v31, %v2606_v50 }
 0x12d   : > { %v1149_v54 = vmul.f32 %v1015_v51, %v903_v49  ;;  %v793_v45 = vadd.f32 %v14256_v20, %v792_v52  ;;  %12337 = vmatmul.mubr.bf16.gmra.mxu0 %v2607_v55 }
 0x12e   : > { %v12162_v56 = vpop.f32.mrf.mxu0 }
 0x12f   : > { %v11648_v57 = vpack.c.bf16 %v1149_v54, %v1148_v53  ;;  %v904_v60 = vmax.f32 %v793_v45, 0.0  ;;  %v1050_v54 = vpop.permute.xlu0 %1049  ;;  %v1055_v56 = vpop.permute.xlu1 %1054 }
 0x130   : > { %v795_v58 = vpop.f32.mrf.mxu0  ;;  %v13099_v59 = vld [vmem:[#allocation2 + $0x38] sm:$0xff]  }
 0x131   : > { %11712 = vst [vmem:[#allocation2 + $0x40] sm:$0xff] %v11648_v57   ;;  %v796_v61 = vadd.f32 %v14256_v20, %v795_v58  ;;  %v13100_v62 = vld [vmem:[#allocation2 + $0x38] sm:$0xff]   ;;  %12237 = vmatmul.mubr.bf16.gmra.mxu1 %v13099_v59  ;;  %v1150_v6 = vmul.f32 %v1020_v0, %v904_v60 }
 0x132   : > { %v12163_v63 = vpop.f32.mrf.mxu0  ;;  %v2608_v3 = vrot.slane %v13100_v62, 1 }
 0x133   : > { %v905_v2 = vmax.f32 %v796_v61, 0.0 }
 0x134   : > { %v800_v5 = vpop.f32.mrf.mxu0  ;;  %v2609_v9 = vsel %vm2594_vm2, %v2606_v50, %v2608_v3 }
 0x135   : > { %v1151_v7 = vmul.f32 %v1025_v4, %v905_v2  ;;  %v801_v8 = vadd.f32 %v14256_v20, %v800_v5  ;;  %12340 = vmatprep.mubr.bf16.mxu0 %v2609_v9  ;;  %v14357_v4 = vld [vmem:[%s17160_s3] ss:$0 sm:$0xff] }
 0x136   : > { %v12166_v10 = vpop.f32.mrf.mxu0 }
 0x137   : > { %v11653_v11 = vpack.c.bf16 %v1151_v7, %v1150_v6  ;;  %v906_v14 = vmax.f32 %v801_v8, 0.0  ;;  %v1065_v10 = vpop.permute.xlu1 %1064 }
 0x138   : > { %v803_v12 = vpop.f32.mrf.mxu0  ;;  %v13101_v13 = vld [vmem:[#allocation2 + $0x40] sm:$0xff]  }
 0x139   : > { %11713 = vst [vmem:[#allocation2 + $0x48] sm:$0xff] %v11653_v11   ;;  %v804_v15 = vadd.f32 %v14256_v20, %v803_v12  ;;  %v13102_v16 = vld [vmem:[#allocation2 + $0x40] sm:$0xff]   ;;  %12240 = vmatprep.mubr.bf16.mxu1 %v13101_v13  ;;  %v1152_v19 = vmul.f32 %v1030_v1, %v906_v14 }
 0x13a   : > { %v12167_v17 = vpop.f32.mrf.mxu0  ;;  %v2610_v21 = vrot.slane %v13102_v16, 1 }
 0x13b   : > { %v907_v18 = vmax.f32 %v804_v15, 0.0 }
 0x13c   : > { %v808_v23 = vpop.f32.mrf.mxu0  ;;  %v2611_v26 = vsel %vm2594_vm2, %v2608_v3, %v2610_v21 }
 0x13d   : > { %v1153_v24 = vmul.f32 %v1035_v22, %v907_v18  ;;  %v809_v25 = vadd.f32 %v14256_v20, %v808_v23  ;;  %12341 = vmatmul.mubr.bf16.gmra.mxu0 %v2611_v26 }
 0x13e   : > { %v12170_v28 = vpop.f32.mrf.mxu0 }
 0x13f   : > { %v11658_v29 = vpack.c.bf16 %v1153_v24, %v1152_v19  ;;  %v908_v32 = vmax.f32 %v809_v25, 0.0  ;;  %v1075_v28 = vpop.permute.xlu1 %1074 }
 0x140   : > { %v811_v30 = vpop.f32.mrf.mxu0  ;;  %v13104_v31 = vld [vmem:[#allocation2 + $0x48] sm:$0xff]  }
 0x141   : > { %11714 = vst [vmem:[#allocation2 + $0x50] sm:$0xff] %v11658_v29   ;;  %v812_v33 = vadd.f32 %v14256_v20, %v811_v30  ;;  %v13105_v34 = vld [vmem:[#allocation2 + $0x48] sm:$0xff]   ;;  %12241 = vmatmul.mubr.bf16.gmra.mxu1 %v13104_v31  ;;  %v1154_v41 = vmul.f32 %v1040_v36, %v908_v32 }
 0x142   : > { %v12171_v35 = vpop.f32.mrf.mxu0  ;;  %v2612_v38 = vrot.slane %v13105_v34, 1 }
 0x143   : > { %v909_v37 = vmax.f32 %v812_v33, 0.0 }
 0x144   : > { %v816_v40 = vpop.f32.mrf.mxu0  ;;  %v2613_v44 = vsel %vm2594_vm2, %v2610_v21, %v2612_v38 }
 0x145   : > { %v1155_v42 = vmul.f32 %v1045_v39, %v909_v37  ;;  %v817_v43 = vadd.f32 %v14256_v20, %v816_v40  ;;  %12344 = vmatprep.mubr.bf16.mxu0 %v2613_v44 }
 0x146   : > { %v12174_v46 = vpop.f32.mrf.mxu0 }
 0x147   : > { %v11663_v47 = vpack.c.bf16 %v1155_v42, %v1154_v41  ;;  %v910_v50 = vmax.f32 %v817_v43, 0.0  ;;  %v1085_v46 = vpop.permute.xlu1 %1084 }
 0x148   : > { %v819_v48 = vpop.f32.mrf.mxu0  ;;  %v13106_v49 = vld [vmem:[#allocation2 + $0x50] sm:$0xff]  }
 0x149   : > { %11715 = vst [vmem:[#allocation2 + $0x58] sm:$0xff] %v11663_v47   ;;  %v820_v51 = vadd.f32 %v14256_v20, %v819_v48  ;;  %v13108_v52 = vld [vmem:[#allocation2 + $0x50] sm:$0xff]   ;;  %12244 = vmatprep.mubr.bf16.mxu1 %v13106_v49  ;;  %v1156_v58 = vmul.f32 %v1050_v54, %v910_v50 }
 0x14a   : > { %v12175_v53 = vpop.f32.mrf.mxu0  ;;  %v2614_v55 = vrot.slane %v13108_v52, 1 }
 0x14b   : > { %v911_v45 = vmax.f32 %v820_v51, 0.0 }
 0x14c   : > { %v824_v57 = vpop.f32.mrf.mxu0  ;;  %v2615_v61 = vsel %vm2594_vm2, %v2612_v38, %v2614_v55 }
 0x14d   : > { %v1157_v59 = vmul.f32 %v1055_v56, %v911_v45  ;;  %v825_v60 = vadd.f32 %v14256_v20, %v824_v57  ;;  %12345 = vmatmul.mubr.bf16.gmra.mxu0 %v2615_v61  ;;  %v1060_v20 = vpop.permute.xlu0 %1059 }
 0x14e   : > { %v12178_v62 = vpop.f32.mrf.mxu0 }
 0x14f   : > { %v11668_v63 = vpack.c.bf16 %v1157_v59, %v1156_v58  ;;  %v912_v3 = vmax.f32 %v825_v60, 0.0  ;;  %v1095_v62 = vpop.permute.xlu1 %1094 }
 0x150   : > { %v827_v0 = vpop.f32.mrf.mxu0  ;;  %v13109_v2 = vld [vmem:[#allocation2 + $0x58] sm:$0xff]  }
 0x151   : > { %11716 = vst [vmem:[#allocation2 + $0x60] sm:$0xff] %v11668_v63   ;;  %v828_v5 = vadd.f32 %v14357_v4, %v827_v0  ;;  %v13111_v6 = vld [vmem:[#allocation2 + $0x58] sm:$0xff]   ;;  %12245 = vmatmul.mubr.bf16.gmra.mxu1 %v13109_v2  ;;  %v1158_v12 = vmul.f32 %v1060_v20, %v912_v3  ;;  %v1070_v24 = vpop.permute.xlu0 %1069 }
 0x152   : > { %v12179_v7 = vpop.f32.mrf.mxu0  ;;  %v2616_v9 = vrot.slane %v13111_v6, 1 }
 0x153   : > { %v913_v8 = vmax.f32 %v828_v5, 0.0 }
 0x154   : > { %v832_v11 = vpop.f32.mrf.mxu0  ;;  %v2617_v15 = vsel %vm2594_vm2, %v2614_v55, %v2616_v9 }
 0x155   : > { %v1159_v13 = vmul.f32 %v1065_v10, %v913_v8  ;;  %v833_v14 = vadd.f32 %v14357_v4, %v832_v11  ;;  %12348 = vmatprep.mubr.bf16.mxu0 %v2617_v15  ;;  %v1080_v42 = vpop.permute.xlu0 %1079 }
 0x156   : > { %v12182_v16 = vpop.f32.mrf.mxu0 }
 0x157   : > { %v11673_v17 = vpack.c.bf16 %v1159_v13, %v1158_v12  ;;  %v914_v21 = vmax.f32 %v833_v14, 0.0  ;;  %v13132_v12 = vld [vmem:[#allocation2] sm:$0xff]   ;;  %v14372_v14 = vld [vmem:[#allocation2 + $0x8] sm:$0xff]  }
 0x158   : > { %v835_v1 = vpop.f32.mrf.mxu0  ;;  %v13112_v18 = vld [vmem:[#allocation2 + $0x60] sm:$0xff]  }
 0x159   : > { %11717 = vst [vmem:[#allocation2 + $0x68] sm:$0xff] %v11673_v17   ;;  %v836_v22 = vadd.f32 %v14357_v4, %v835_v1  ;;  %v13114_v23 = vld [vmem:[#allocation2 + $0x60] sm:$0xff]   ;;  %12248 = vmatprep.mubr.bf16.mxu1 %v13112_v18  ;;  %v1160_v30 = vmul.f32 %v1070_v24, %v914_v21  ;;  %v1090_v59 = vpop.permute.xlu0 %1089  ;;  %v1105_v1 = vpop.permute.xlu1 %1104  ;;  %v14374_v21 = vld [vmem:[#allocation2 + $0x8] sm:$0xfe]  }
 0x15a   : > { %v12183_v19 = vpop.f32.mrf.mxu0  ;;  %v2618_v26 = vrot.slane %v13114_v23, 1 }
 0x15b   : > { %v915_v25 = vmax.f32 %v836_v22, 0.0 }
 0x15c   : > { %v840_v29 = vpop.f32.mrf.mxu0  ;;  %v2619_v33 = vsel %vm2594_vm2, %v2616_v9, %v2618_v26 }
 0x15d   : > { %v1161_v31 = vmul.f32 %v1075_v28, %v915_v25  ;;  %v841_v32 = vadd.f32 %v14357_v4, %v840_v29  ;;  %12349 = vmatmul.mubr.bf16.gmra.mxu0 %v2619_v33  ;;  %v1100_v15 = vpop.permute.xlu0 %1099  ;;  %v1951_v29 = vshll.u32 %v13132_v12, 16  ;;  %v3667_v33 = vshrl.u32 %v14374_v21, 16 }
 0x15e   : > { %v12186_v34 = vpop.f32.mrf.mxu0 }
 0x15f   : > { %v11678_v35 = vpack.c.bf16 %v1161_v31, %v1160_v30  ;;  %v916_v38 = vmax.f32 %v841_v32, 0.0  ;;  %v1956_v30 = vshll.u32 %v14372_v14, 16 }
 0x160   : > { %v843_v36 = vpop.f32.mrf.mxu0  ;;  %v13115_v37 = vld [vmem:[#allocation2 + $0x68] sm:$0xff]  }
 0x161   : > { %11718 = vst [vmem:[#allocation2 + $0x70] sm:$0xff] %v11678_v35   ;;  %v844_v39 = vadd.f32 %v14357_v4, %v843_v36  ;;  %v13117_v40 = vld [vmem:[#allocation2 + $0x68] sm:$0xff]   ;;  %12249 = vmatmul.mubr.bf16.gmra.mxu1 %v13115_v37  ;;  %v1162_v48 = vmul.f32 %v1080_v42, %v916_v38 }
 0x162   : > { %v12187_v41 = vpop.f32.mrf.mxu0  ;;  %v2620_v44 = vrot.slane %v13117_v40, 1  ;;  %v1110_v40 = vpop.permute.xlu0 %1109 }
 0x163   : > { %v917_v43 = vmax.f32 %v844_v39, 0.0  ;;  %v13143_v39 = vld [vmem:[#allocation2 + $0x10] sm:$0xff]  }
 0x164   : > { %v848_v47 = vpop.f32.mrf.mxu0  ;;  %v2621_v51 = vsel %vm2594_vm2, %v2618_v26, %v2620_v44  ;;  %v14378_v26 = vld [vmem:[#allocation2 + $0x10] sm:$0xff]  }
 0x165   : > { %v1163_v49 = vmul.f32 %v1085_v46, %v917_v43  ;;  %v849_v50 = vadd.f32 %v14357_v4, %v848_v47  ;;  %12352 = vmatprep.mubr.bf16.mxu0 %v2621_v51  ;;  %v1964_v38 = vshll.u32 %v14378_v26, 16  ;;  %v1115_v43 = vpop.permute.xlu1 %1114  ;;  %v1949_v46 = vshrl.u32 %v13132_v12, 16 }
 0x166   : > { %v12190_v52 = vpop.f32.mrf.mxu0  ;;  %v1953_v47 = vrot.slane %v1951_v29, 1 }
 0x167   : > { %v11683_v53 = vpack.c.bf16 %v1163_v49, %v1162_v48  ;;  %v918_v55 = vmax.f32 %v849_v50, 0.0  ;;  %v1960_v48 = vshrl.u32 %v14372_v14, 16 }
 0x168   : > { %v851_v54 = vpop.f32.mrf.mxu0  ;;  %v13118_v45 = vld [vmem:[#allocation2 + $0x70] sm:$0xff]  }
 0x169   : > { %11719 = vst [vmem:[#allocation2 + $0x78] sm:$0xff] %v11683_v53   ;;  %v852_v56 = vadd.f32 %v14357_v4, %v851_v54  ;;  %v13119_v57 = vld [vmem:[#allocation2 + $0x70] sm:$0xff]   ;;  %12252 = vmatprep.mubr.bf16.mxu1 %v13118_v45  ;;  %v1164_v0 = vmul.f32 %v1090_v59, %v918_v55  ;;  %v1958_v54 = vrot.slane %v1956_v30, 1  ;;  %v14387_v45 = vld [vmem:[#allocation2 + $0x18] sm:$0xff]   ;;  %v14389_v55 = vrot.slane %v3667_v33, 1  ;;  %v1125_v14 = vpop.permute.xlu1 %1124 }
 0x16a   : > { %v12191_v58 = vpop.f32.mrf.mxu0  ;;  %v2622_v61 = vrot.slane %v13119_v57, 1  ;;  %v3675_v57 = vshrl.u32 %v13143_v39, 16  ;;  %v1966_v59 = vrot.slane %v1964_v38, 1 }
 0x16b   : > { %v919_v60 = vmax.f32 %v852_v56, 0.0  ;;  %v3670_v56 = vshll.u32 %v14374_v21, 16  ;;  %v1962_v12 = vor.u32 %v1960_v48, %v1958_v54 }
 0x16c   : > { %v856_v63 = vpop.f32.mrf.mxu0  ;;  %v2623_v5 = vsel %vm2594_vm2, %v2620_v44, %v2622_v61 }
 0x16d   : > { %v1165_v2 = vmul.f32 %v1095_v62, %v919_v60  ;;  %v857_v3 = vadd.f32 %v14357_v4, %v856_v63  ;;  %12353 = vmatmul.mubr.bf16.gmra.mxu0 %v2623_v5  ;;  %v13148_v60 = vld [vmem:[#allocation2 + $0x18] sm:$0xff]   ;;  %v1954_v63 = vor.u32 %v1953_v47, %v1949_v46  ;;  %v3672_v29 = vrot.slane %v3670_v56, 2  ;;  %v13152_v56 = vld [vmem:[%s17161_s4 + $0xe8] sm:$0xff]  }
 0x16e   : > { %v12194_v6 = vpop.f32.mrf.mxu0 }
 0x16f   : > { %v11688_v7 = vpack.c.bf16 %v1165_v2, %v1164_v0  ;;  %v920_v9 = vmax.f32 %v857_v3, 0.0  ;;  %v3678_v0 = vshll.u32 %v13143_v39, 16  ;;  %v14392_v2 = vld [vmem:[#allocation2 + $0x20] sm:$0xff]  }
 0x170   : > { %v859_v20 = vpop.f32.mrf.mxu0  ;;  %v13121_v8 = vld [vmem:[#allocation2 + $0x78] sm:$0xff]   ;;  %v1980_v30 = vshll.u32 %v14392_v2, 16 }
 0x171   : > { %11720 = vst [vmem:[#allocation2 + $0x80] sm:$0xff] %v11688_v7   ;;  %v860_v10 = vadd.f32 %v14357_v4, %v859_v20  ;;  %v13122_v11 = vld [vmem:[#allocation2 + $0x78] sm:$0xff]   ;;  %12253 = vmatmul.mubr.bf16.gmra.mxu1 %v13121_v8  ;;  %v1166_v22 = vmul.f32 %v1100_v15, %v920_v9  ;;  %v1120_v7 = vpop.permute.xlu0 %1119  ;;  %v1959_v8 = vsel %vm1947_vm3, %v1954_v63, %v1958_v54  ;;  %v1972_v9 = vshll.u32 %v14387_v45, 16 }
 0x172   : > { %v12195_v13 = vpop.f32.mrf.mxu0  ;;  %v2624_v17 = vrot.slane %v13122_v11, 1  ;;  %v1982_v54 = vrot.slane %v1980_v30, 1  ;;  %v1976_v63 = vshrl.u32 %v14387_v45, 16 }
 0x173   : > { %v921_v16 = vmax.f32 %v860_v10, 0.0  ;;  %v13149_v10 = vld [vmem:[#allocation2 + $0x20] sm:$0xff]  }
 0x174   : > { %v864_v18 = vpop.f32.mrf.mxu0  ;;  %v2625_v24 = vsel %vm2594_vm2, %v2622_v61, %v2624_v17 }
 0x175   : > { %v1167_v23 = vmul.f32 %v1105_v1, %v921_v16  ;;  %v865_v19 = vadd.f32 %v14357_v4, %v864_v18  ;;  %12356 = vmatprep.mubr.bf16.mxu0 %v2625_v24  ;;  %v3677_v16 = vrot.slane %v3675_v57, 1  ;;  %v3684_v1 = vshrl.u32 %v13148_v60, 16  ;;  %v14399_v24 = vld [vmem:[#allocation2 + $0x28] sm:$0xff]  }
 0x176   : > { %v12198_v25 = vpop.f32.mrf.mxu0  ;;  %v3687_v18 = vshll.u32 %v13148_v60, 16 }
 0x177   : > { %v11693_v28 = vpack.c.bf16 %v1167_v23, %v1166_v22  ;;  %v922_v34 = vmax.f32 %v865_v19, 0.0  ;;  %v1968_v25 = vshrl.u32 %v14378_v26, 16  ;;  %v13153_v26 = vld [vmem:[#allocation2 + $0x28] sm:$0xff]  }
 0x178   : > { %v867_v31 = vpop.f32.mrf.mxu0  ;;  %v13126_v32 = vld [vmem:[#allocation2 + $0x80] sm:$0xff]   ;;  %v3689_v46 = vrot.slane %v3687_v18, 2  ;;  %v3702_v60 = vshrl.u32 %v13153_v26, 16 }
 0x179   : > { %11721 = vst [vmem:[#allocation2 + $0x88] sm:$0xff] %v11693_v28   ;;  %v868_v35 = vadd.f32 %v14357_v4, %v867_v31  ;;  %v13127_v36 = vld [vmem:[#allocation2 + $0x80] sm:$0xff]   ;;  %12256 = vmatprep.mubr.bf16.mxu1 %v13126_v32  ;;  %v1168_v49 = vmul.f32 %v1110_v40, %v922_v34  ;;  %v1974_v28 = vrot.slane %v1972_v9, 1  ;;  %v13146_v34 = vld [vmem:[%s17161_s4 + $0xf0] sm:$0xff]   ;;  %v1970_v38 = vor.u32 %v1968_v25, %v1966_v59 }
 0x17a   : > { %v12199_v37 = vpop.f32.mrf.mxu0  ;;  %v2626_v42 = vrot.slane %v13127_v36, 1  ;;  %v1130_v36 = vpop.permute.xlu0 %1129  ;;  %v1992_v9 = vshrl.u32 %v14399_v24, 16  ;;  %v3704_v45 = vrot.slane %v3702_v60, 1  ;;  %v13176_v25 = vld [vmem:[%s17161_s4 + $0x1b0] sm:$0xff]  }
 0x17b   : > { %v923_v41 = vmax.f32 %v868_v35, 0.0  ;;  %v3693_v35 = vshrl.u32 %v13149_v10, 16  ;;  %v1967_v37 = vsel %vm1947_vm3, %v1962_v12, %v1966_v59  ;;  %v1975_v47 = vsel %vm1947_vm3, %v1970_v38, %v1974_v28 }
 0x17c   : > { %v872_v44 = vpop.f32.mrf.mxu0  ;;  %v2627_v52 = vsel %vm2594_vm2, %v2624_v17, %v2626_v42  ;;  %v3680_v17 = vrot.slane %v3678_v0, 2  ;;  %v3705_v0 = vshll.u32 %v13153_v26, 16 }
 0x17d   : > { %v1169_v50 = vmul.f32 %v1115_v43, %v923_v41  ;;  %v873_v51 = vadd.f32 %v14357_v4, %v872_v44  ;;  %12357 = vmatmul.mubr.bf16.gmra.mxu0 %v2627_v52  ;;  %v1988_v43 = vshll.u32 %v14399_v24, 16  ;;  %v3686_v44 = vrot.slane %v3684_v1, 1  ;;  %v13785_v52 = vld [vmem:[%s17161_s4 + $0xf8] sm:$0xff]   ;;  %v13159_v1 = vld [vmem:[#allocation2 + $0x40] sm:$0xff]  }
 0x17e   : > { %v12202_v53 = vpop.f32.mrf.mxu0  ;;  %v14407_v40 = vor.u32 %v3680_v17, %v3677_v16  ;;  %v3707_v16 = vrot.slane %v3705_v0, 2 }
 0x17f   : > { %v11698_v58 = vpack.c.bf16 %v1169_v50, %v1168_v49  ;;  %v924_v3 = vmax.f32 %v873_v51, 0.0  ;;  %v14411_v49 = vld [vmem:[#allocation2 + $0x30] sm:$0xff]   ;;  %v3673_v53 = vor.u32 %v3672_v29, %v14389_v55  ;;  %v14424_v55 = vld [vmem:[#allocation2 + $0x38] sm:$0xff]  }
 0x180   : > { %v875_v61 = vpop.f32.mrf.mxu0  ;;  %v13131_v62 = vld [vmem:[#allocation2 + $0x88] sm:$0xff]  }
 0x181   : > { %11722 = vst [vmem:[#allocation2 + $0x90] sm:$0xff] %v11698_v58   ;;  %v876_v5 = vadd.f32 %v14357_v4, %v875_v61  ;;  %v13134_v6 = vld [vmem:[#allocation2 + $0x88] sm:$0xff]   ;;  %12257 = vmatmul.mubr.bf16.gmra.mxu1 %v13131_v62  ;;  %v1170_v21 = vmul.f32 %v1120_v7, %v924_v3  ;;  %v3695_v58 = vrot.slane %v3693_v35, 1  ;;  %v13154_v61 = vld [vmem:[#allocation2 + $0x30] sm:$0xff]   ;;  %v3682_v62 = vsel %vm3665_vm4, %v3673_v53, %v14407_v40  ;;  %v13158_v7 = vld [vmem:[#allocation2 + $0x38] sm:$0xff]  }
 0x182   : > { %v12203_v20 = vpop.f32.mrf.mxu0  ;;  %12276 = vmatprep.mubr.bf16.mxu1 %v1959_v8  ;;  %v2628_v13 = vrot.slane %v13134_v6, 1  ;;  %v1984_v3 = vshrl.u32 %v14392_v2, 16  ;;  %v1996_v6 = vshll.u32 %v14411_v49, 16  ;;  %v3690_v8 = vor.u32 %v3689_v46, %v3686_v44  ;;  %v13157_v2 = vld [vmem:[%s17161_s4 + $0xe0] sm:$0xff]   ;;  %v14452_v35 = vld [vmem:[#allocation2 + $0x48] sm:$0xff]  }
 0x183   : > { %v925_v11 = vmax.f32 %v876_v5, 0.0  ;;  %v1990_v5 = vrot.slane %v1988_v43, 1  ;;  %v1978_v20 = vor.u32 %v1976_v63, %v1974_v28  ;;  %v3711_v12 = vshrl.u32 %v13154_v61, 16  ;;  %v13163_v44 = vld [vmem:[#allocation2 + $0x48] sm:$0xff]  }
 0x184   : > { %v880_v15 = vpop.f32.mrf.mxu0  ;;  %v2629_v19 = vsel %vm2594_vm2, %v2626_v42, %v2628_v13  ;;  %v3714_v17 = vshll.u32 %v13154_v61, 16  ;;  %v3723_v24 = vshll.u32 %v13158_v7, 16  ;;  %v3691_v28 = vsel %vm3665_vm4, %v14407_v40, %v3690_v8  ;;  %v13168_v40 = vld [vmem:[%s17161_s4 + $0xd0] sm:$0xff]   ;;  %v13175_v53 = vld [vmem:[%s17161_s4 + $0xc8] sm:$0xff]  }
 0x185   : > { %v1171_v22 = vmul.f32 %v1125_v14, %v925_v11  ;;  %v881_v23 = vadd.f32 %v14357_v4, %v880_v15  ;;  %12360 = vmatprep.mubr.bf16.mxu0 %v2629_v19  ;;  %v3696_v4 = vshll.u32 %v13149_v10, 16  ;;  %v1986_v10 = vor.u32 %v1984_v3, %v1982_v54  ;;  %v13162_v19 = vld [vmem:[%s17161_s4 + $0xd8] sm:$0xff]   ;;  %v13182_v3 = vld [vmem:[%s17161_s4 + $0xc0] sm:$0xff]  }
 0x186   : > { %v12206_v31 = vpop.f32.mrf.mxu0  ;;  %v1983_v14 = vsel %vm1947_vm3, %v1978_v20, %v1982_v54  ;;  %v2004_v15 = vshll.u32 %v14424_v55, 16  ;;  %v3713_v30 = vrot.slane %v3711_v12, 1  ;;  %v3725_v38 = vrot.slane %v3723_v24, 2 }
 0x187   : > { %v11703_v32 = vpack.c.bf16 %v1171_v22, %v1170_v21  ;;  %v926_v33 = vmax.f32 %v881_v23, 0.0  ;;  %v3698_v59 = vrot.slane %v3696_v4, 2  ;;  %v1991_v18 = vsel %vm1947_vm3, %v1986_v10, %v1990_v5  ;;  %v13167_v10 = vld [vmem:[#allocation2 + $0x58] sm:$0xff]  }
 0x188   : > { %v13140_v39 = vld [vmem:[#allocation2 + $0x90] ss:$0 sps:$4 sm:$0x11]   ;;  %v883_v41 = vpop.f32.mrf.mxu0  ;;  %v1998_v21 = vrot.slane %v1996_v6, 1  ;;  %v2000_v22 = vshrl.u32 %v14411_v49, 16  ;;  %v3720_v23 = vshrl.u32 %v13158_v7, 16 }
 0x189   : > { %11723 = vst [vmem:[#allocation2 + $0x98] sm:$0xff] %v11703_v32   ;;  %v1172_v42 = vmul.f32 %v1130_v36, %v926_v33  ;;  %12277 = vmatmul.mubr.bf16.vlgmr.msra.gmra.mxu1 %v1967_v37  ;;  %v2630_v48 = vrot.slane %v13140_v39, 1  ;;  %v14429_v11 = vor.u32 %v3698_v59, %v3695_v58  ;;  %v2006_v32 = vrot.slane %v2004_v15, 1  ;;  %v14464_v49 = vld [vmem:[#allocation2 + $0x50] sm:$0xff]   ;;  %v13188_v7 = vld [vmem:[%s17161_s4 + $0x198] sm:$0xff]  }
 0x18a   : > { %v12207_v50 = vpop.f32.mrf.mxu0  ;;  %12365 = vmatpush3.bf16.msra.mxu1 %v13785_v52  ;;  %12280 = vmatprep.mubr.bf16.mxu1 %v1975_v47  ;;  %v3716_v33 = vrot.slane %v3714_v17, 2  ;;  %v3729_v4 = vshrl.u32 %v13159_v1, 16  ;;  %v1994_v36 = vor.u32 %v1992_v9, %v1990_v5  ;;  %v3722_v37 = vrot.slane %v3720_v23, 1  ;;  %v13164_v52 = vld [vmem:[#allocation2 + $0x50] sm:$0xff]   ;;  %v14493_v17 = vld [vmem:[%s17161_s4 + $0x178] sm:$0xff]  }
 0x18b   : > { %v11604_v51 = vpack.c.bf16 %v1172_v42, %v1172_v42  ;;  %v2631_v57 = vsel %vm2594_vm2, %v2628_v13, %v2630_v48  ;;  %12366 = vmatprep.subr.bf16.mxu1 %v13146_v34  ;;  %v14431_v13 = vld [vmem:[#allocation2 + $0x40] sm:$0xff]   ;;  %v3700_v29 = vsel %vm3665_vm4, %v3690_v8, %v14429_v11  ;;  %v3732_v39 = vshll.u32 %v13159_v1, 16 }
 0x18c   : > { %12361 = vmatmul.mubr.bf16.gmra.mxu0 %v2631_v57  ;;  %v2012_v31 = vshll.u32 %v14431_v13, 16  ;;  %v2002_v26 = vor.u32 %v2000_v22, %v1998_v21  ;;  %v3708_v41 = vor.u32 %v3707_v16, %v3704_v45  ;;  %v2016_v43 = vshrl.u32 %v14431_v13, 16  ;;  %v13165_v22 = vld [vmem:[#allocation2 + $0x60] sm:$0xff]  }
 0x18d   : > { %1378 = vst [vmem:[#allocation2 + $0xa0] sm:$0xf] %v11604_v51  ;;  %12432 = vmatprep.mubr.bf16.mxu0 %v3682_v62  ;;  %v1999_v46 = vsel %vm1947_vm3, %v1994_v36, %v1998_v21  ;;  %v3717_v47 = vor.u32 %v3716_v33, %v3713_v30  ;;  %v2020_v48 = vshll.u32 %v14452_v35, 16  ;;  %v3731_v51 = vrot.slane %v3729_v4, 1 }
 0x18e   : > { %12367 = vmatpush3.bf16.msra.mxu1 %v13146_v34  ;;  %v2008_v34 = vshrl.u32 %v14424_v55, 16  ;;  %v2014_v42 = vrot.slane %v2012_v31, 1  ;;  %v2007_v50 = vsel %vm1947_vm3, %v2002_v26, %v2006_v32  ;;  %v3734_v54 = vrot.slane %v3732_v39, 2  ;;  %v14478_v55 = vld [vmem:[#allocation2 + $0x58] sm:$0xff]  }
 0x18f   : > { %12368 = vmatprep.subr.bf16.mxu1 %v13152_v56  ;;  %v3709_v57 = vsel %vm3665_vm4, %v14429_v11, %v3708_v41  ;;  %v2024_v58 = vshrl.u32 %v14452_v35, 16  ;;  %v3738_v59 = vshrl.u32 %v13163_v44, 16  ;;  %v3718_v60 = vsel %vm3665_vm4, %v3708_v41, %v3717_v47  ;;  %v13198_v41 = vld [vmem:[%s17161_s4 + $0x180] sm:$0xff]  }
 0x190   : > { %v2022_v61 = vrot.slane %v2020_v48, 1  ;;  %v3741_v62 = vshll.u32 %v13163_v44, 16  ;;  %v2028_v63 = vshll.u32 %v14464_v49, 16  ;;  %v3747_v0 = vshrl.u32 %v13164_v52, 16  ;;  %v13170_v44 = vld [vmem:[#allocation2 + $0x70] sm:$0xff]  }
 0x191   : > { %12281 = vmatmul.mubr.bf16.gmra.mxu1 %v1983_v14  ;;  %v2010_v5 = vor.u32 %v2008_v34, %v2006_v32  ;;  %v3750_v6 = vshll.u32 %v13164_v52, 16  ;;  %v2018_v20 = vor.u32 %v2016_v43, %v2014_v42  ;;  %v3726_v8 = vor.u32 %v3725_v38, %v3722_v37  ;;  %v13195_v32 = vld [vmem:[%s17161_s4 + $0x188] sm:$0xff]   ;;  %v13174_v48 = vld [vmem:[#allocation2 + $0x70] sm:$0xff]  }
 0x192   : > { %12284 = vmatprep.mubr.bf16.mxu1 %v1991_v18  ;;  %12369 = vmatpush3.bf16.msra.mxu1 %v13152_v56  ;;  %v13183_v56 = vld [vmem:[%s17161_s4 + $0x1a0] sm:$0xff]   ;;  %v3740_v9 = vrot.slane %v3738_v59, 1  ;;  %v3735_v45 = vor.u32 %v3734_v54, %v3731_v51  ;;  %v2032_v12 = vshrl.u32 %v14464_v49, 16  ;;  %v3743_v13 = vrot.slane %v3741_v62, 2  ;;  %v13191_v18 = vld [vmem:[%s17161_s4 + $0x190] sm:$0xff]  }
 0x193   : > { %12370 = vmatprep.subr.bf16.mxu1 %v13157_v2  ;;  %v2015_v11 = vsel %vm1947_vm3, %v2010_v5, %v2014_v42  ;;  %v2030_v14 = vrot.slane %v2028_v63, 1  ;;  %v2036_v15 = vshll.u32 %v14478_v55, 16  ;;  %v3749_v16 = vrot.slane %v3747_v0, 1 }
 0x194   : > { %12433 = vmatmul.mubr.bf16.vlgmr.msra.gmra.mxu0 %v3691_v28  ;;  %v3752_v1 = vrot.slane %v3750_v6, 2  ;;  %v3727_v21 = vsel %vm3665_vm4, %v3717_v47, %v3726_v8  ;;  %v3756_v23 = vshrl.u32 %v13167_v10, 16  ;;  %v2040_v24 = vshrl.u32 %v14478_v55, 16 }
 0x195   : > { %12436 = vmatprep.mubr.bf16.mxu0 %v3700_v29  ;;  %12521 = vmatpush3.bf16.msra.mxu0 %v14345_v27  ;;  %v13180_v27 = vld [vmem:[%s17161_s4 + $0x1a8] sm:$0xff]   ;;  %v2038_v28 = vrot.slane %v2036_v15, 1  ;;  %v2026_v30 = vor.u32 %v2024_v58, %v2022_v61  ;;  %v3759_v31 = vshll.u32 %v13167_v10, 16  ;;  %v2034_v33 = vor.u32 %v2032_v12, %v2030_v14  ;;  %v14520_v58 = vld [vmem:[%s17161_s4 + $0x238] sm:$0xff]   ;;  %v13181_v12 = vld [vmem:[#allocation2 + $0x80] sm:$0xff]  }
 0x196   : > { %12371 = vmatpush3.bf16.msra.mxu1 %v13157_v2  ;;  %12522 = vmatprep.subr.bf16.mxu0 %v13176_v25  ;;  %v2023_v2 = vsel %vm1947_vm3, %v2018_v20, %v2022_v61  ;;  %v14501_v29 = vld [vmem:[#allocation2 + $0x68] sm:$0xff]   ;;  %v3744_v34 = vor.u32 %v3743_v13, %v3740_v9  ;;  %v2044_v35 = vshll.u32 %v13165_v22, 16  ;;  %v3758_v4 = vrot.slane %v3756_v23, 1 }
 0x197   : > { %12372 = vmatprep.subr.bf16.mxu1 %v13162_v19  ;;  %v2031_v36 = vsel %vm1947_vm3, %v2026_v30, %v2030_v14  ;;  %v3753_v37 = vor.u32 %v3752_v1, %v3749_v16  ;;  %v2052_v26 = vshll.u32 %v14501_v29, 16  ;;  %v2048_v42 = vshrl.u32 %v13165_v22, 16 }
 0x198   : > { %v3761_v43 = vrot.slane %v3759_v31, 2  ;;  %v2046_v47 = vrot.slane %v2044_v35, 1  ;;  %v2042_v54 = vor.u32 %v2040_v24, %v2038_v28  ;;  %v2060_v61 = vshll.u32 %v13170_v44, 16  ;;  %v13184_v35 = vld [vmem:[#allocation2 + $0x90] ss:$0 sps:$4 sm:$0x11]  }
 0x199   : > { %12285 = vmatmul.mubr.bf16.gmra.mxu1 %v1999_v46  ;;  %12523 = vmatpush3.bf16.msra.mxu0 %v13176_v25  ;;  %v13169_v25 = vld [vmem:[#allocation2 + $0x60] sm:$0xff]   ;;  %v3745_v46 = vsel %vm3665_vm4, %v3735_v45, %v3744_v34  ;;  %v3754_v49 = vsel %vm3665_vm4, %v3744_v34, %v3753_v37  ;;  %v2054_v52 = vrot.slane %v2052_v26, 1  ;;  %v3783_v62 = vshrl.u32 %v13174_v48, 16  ;;  %v13189_v26 = vld [vmem:[#allocation2 + $0x90] sm:$0xff]  }
 0x19a   : > { %12288 = vmatprep.mubr.bf16.mxu1 %v2007_v50  ;;  %12373 = vmatpush3.bf16.msra.mxu1 %v13162_v19  ;;  %v3736_v19 = vsel %vm3665_vm4, %v3726_v8, %v3735_v45  ;;  %v3765_v38 = vshrl.u32 %v13169_v25, 16  ;;  %v3768_v39 = vshll.u32 %v13169_v25, 16  ;;  %v2050_v59 = vor.u32 %v2048_v42, %v2046_v47  ;;  %v13177_v45 = vld [vmem:[#allocation2 + $0x80] sm:$0xff]  }
 0x19b   : > { %12374 = vmatprep.subr.bf16.mxu1 %v13168_v40  ;;  %12524 = vmatprep.subr.bf16.mxu0 %v13180_v27  ;;  %v2047_v63 = vsel %vm1947_vm3, %v2042_v54, %v2046_v47  ;;  %v3786_v0 = vshll.u32 %v13174_v48, 16  ;;  %v2056_v9 = vshrl.u32 %v14501_v29, 16  ;;  %v2062_v10 = vrot.slane %v2060_v61, 1 }
 0x19c   : > { %12437 = vmatmul.mubr.bf16.gmra.mxu0 %v3709_v57  ;;  %v3767_v50 = vrot.slane %v3765_v38, 1  ;;  %v3770_v51 = vrot.slane %v3768_v39, 2  ;;  %v2055_v5 = vsel %vm1947_vm3, %v2050_v59, %v2054_v52  ;;  %v2064_v16 = vshrl.u32 %v13170_v44, 16  ;;  %v13185_v59 = vld [vmem:[#allocation2 + $0x8] sm:$0xfe]  }
 0x19d   : > { %12440 = vmatprep.mubr.bf16.mxu0 %v3718_v60  ;;  %12525 = vmatpush3.bf16.msra.mxu0 %v13180_v27  ;;  %v13172_v27 = vld [vmem:[#allocation2 + $0x68] sm:$0xff]   ;;  %v3762_v60 = vor.u32 %v3761_v43, %v3758_v4  ;;  %v2058_v15 = vor.u32 %v2056_v9, %v2054_v52  ;;  %v2076_v24 = vshll.u32 %v13177_v45, 16  ;;  %v3801_v25 = vshrl.u32 %v13181_v12, 16 }
 0x19e   : > { %12375 = vmatpush3.bf16.msra.mxu1 %v13168_v40  ;;  %12526 = vmatprep.subr.bf16.mxu0 %v13183_v56  ;;  %v2039_v40 = vsel %vm1947_vm3, %v2034_v33, %v2038_v28  ;;  %v3777_v57 = vshll.u32 %v13172_v27, 16  ;;  %v3771_v55 = vor.u32 %v3770_v51, %v3767_v50  ;;  %v3804_v31 = vshll.u32 %v13181_v12, 16  ;;  %v13187_v4 = vld [vmem:[#allocation2 + $0x88] sm:$0xff]  }
 0x19f   : > { %12376 = vmatprep.subr.bf16.mxu1 %v13175_v53  ;;  %v3763_v8 = vsel %vm3665_vm4, %v3753_v37, %v3762_v60  ;;  %v2063_v23 = vsel %vm1947_vm3, %v2058_v15, %v2062_v10  ;;  %v2078_v37 = vrot.slane %v2076_v24, 1  ;;  %v3803_v38 = vrot.slane %v3801_v25, 1  ;;  %v13202_v24 = vld [vmem:[#allocation2 + $0x20] sm:$0xff]  }
 0x1a0   : > { %v3779_v20 = vrot.slane %v3777_v57, 2  ;;  %v3772_v13 = vsel %vm3665_vm4, %v3762_v60, %v3771_v55  ;;  %v2080_v42 = vshrl.u32 %v13177_v45, 16  ;;  %v3810_v44 = vshrl.u32 %v13187_v4, 16 }
 0x1a1   : > { %12289 = vmatmul.mubr.bf16.gmra.mxu1 %v2015_v11  ;;  %12527 = vmatpush3.bf16.msra.mxu0 %v13183_v56  ;;  %v3774_v56 = vshrl.u32 %v13172_v27, 16  ;;  %v3785_v11 = vrot.slane %v3783_v62, 1  ;;  %v3813_v48 = vshll.u32 %v13187_v4, 16  ;;  %v2092_v50 = vshll.u32 %v13184_v35, 16 }
 0x1a2   : > { %12292 = vmatprep.mubr.bf16.mxu1 %v2023_v2  ;;  %12377 = vmatpush3.bf16.msra.mxu1 %v13175_v53  ;;  %v14515_v53 = vld [vmem:[#allocation2 + $0x78] sm:$0xff]   ;;  %v3788_v2 = vrot.slane %v3786_v0, 2  ;;  %v3819_v51 = vshrl.u32 %v13189_v26, 16  ;;  %v3822_v52 = vshll.u32 %v13189_v26, 16  ;;  %v3812_v60 = vrot.slane %v3810_v44, 1  ;;  %v13206_v26 = vld [vmem:[%s17161_s4 + $0x168] sm:$0xff]  }
 0x1a3   : > { %12378 = vmatprep.subr.bf16.mxu1 %v13182_v3  ;;  %12528 = vmatprep.subr.bf16.mxu0 %v13188_v7  ;;  %v2068_v6 = vshll.u32 %v14515_v53, 16  ;;  %v2072_v29 = vshrl.u32 %v14515_v53, 16  ;;  %v3130_v9 = vrot.slane %v13185_v59, 1 }
 0x1a4   : > { %12441 = vmatmul.mubr.bf16.gmra.mxu0 %v3727_v21  ;;  %v3789_v28 = vor.u32 %v3788_v2, %v3785_v11 }
 0x1a5   : > { %12444 = vmatprep.mubr.bf16.mxu0 %v3736_v19  ;;  %12529 = vmatpush3.bf16.msra.mxu0 %v13188_v7  ;;  %v3776_v7 = vrot.slane %v3774_v56, 1  ;;  %v2070_v1 = vrot.slane %v2068_v6, 1  ;;  %v2066_v19 = vor.u32 %v2064_v16, %v2062_v10  ;;  %v13186_v56 = vld [vmem:[#allocation2 + $0x10] sm:$0xff]   ;;  %v3824_v6 = vrot.slane %v3822_v52, 2  ;;  %v13192_v10 = vld [vmem:[#allocation2 + $0x18] sm:$0xff]   ;;  %v13193_v16 = vld [vmem:[#allocation2 + $0x20] sm:$0xff]  }
 0x1a6   : > { %12379 = vmatpush3.bf16.msra.mxu1 %v13182_v3  ;;  %12530 = vmatprep.subr.bf16.mxu0 %v13191_v18  ;;  %v13179_v3 = vld [vmem:[#allocation2 + $0x78] sm:$0xff]  }
 0x1a7   : > { %12468 = vmatprep.subr.bf16.mxu1 %v14493_v17  ;;  %v3792_v14 = vshrl.u32 %v13179_v3, 16  ;;  %v3795_v21 = vshll.u32 %v13179_v3, 16  ;;  %v3780_v22 = vor.u32 %v3779_v20, %v3776_v7  ;;  %v2094_v3 = vrot.slane %v2092_v50, 1 }
 0x1a8   : > { %v3131_v20 = vrot.slane %v13186_v56, 1 }
 0x1a9   : > { %12293 = vmatmul.mubr.bf16.gmra.mxu1 %v2031_v36  ;;  %12531 = vmatpush3.bf16.msra.mxu0 %v13191_v18  ;;  %v13178_v18 = vld [vmem:[#allocation2 + $0x88] sm:$0xff]   ;;  %v3794_v30 = vrot.slane %v3792_v14, 1  ;;  %v3797_v34 = vrot.slane %v3795_v21, 2  ;;  %v3781_v36 = vsel %vm3665_vm4, %v3771_v55, %v3780_v22  ;;  %v3790_v39 = vsel %vm3665_vm4, %v3780_v22, %v3789_v28  ;;  %v13194_v55 = vld [vmem:[#allocation2 + $0x98] ss:$0 sps:$4 sm:$0x33]  }
 0x1aa   : > { %12296 = vmatprep.mubr.bf16.mxu1 %v2039_v40  ;;  %12532 = vmatprep.subr.bf16.mxu0 %v13195_v32  ;;  %v2084_v33 = vshll.u32 %v13178_v18, 16  ;;  %v3806_v40 = vrot.slane %v3804_v31, 2  ;;  %v2088_v57 = vshrl.u32 %v13178_v18, 16  ;;  %v3828_v12 = vshrl.u32 %v13194_v55, 16  ;;  %v13196_v18 = vld [vmem:[#allocation2 + $0x10] sm:$0xfc]  }
 0x1ab   : > { %v3798_v47 = vor.u32 %v3797_v34, %v3794_v30  ;;  %v3132_v15 = vsel %vm2594_vm2, %v3130_v9, %v3131_v20  ;;  %v13201_v30 = vld [vmem:[#allocation2 + $0x30] sm:$0xff]   ;;  %v4870_v34 = vrot.slane %v13196_v18, 2 }
 0x1ac   : > { %12445 = vmatmul.mubr.bf16.gmra.mxu0 %v3745_v46  ;;  %v2086_v43 = vrot.slane %v2084_v33, 1  ;;  %v2082_v46 = vor.u32 %v2080_v42, %v2078_v37  ;;  %v3830_v22 = vrot.slane %v3828_v12, 1  ;;  %v13200_v33 = vld [vmem:[%s17161_s4 + $0x170] sm:$0xff]  }
 0x1ad   : > { %12448 = vmatprep.mubr.bf16.mxu0 %v3754_v49  ;;  %12533 = vmatpush3.bf16.msra.mxu0 %v13195_v32  ;;  %v2071_v32 = vsel %vm1947_vm3, %v2066_v19, %v2070_v1  ;;  %v3807_v49 = vor.u32 %v3806_v40, %v3803_v38  ;;  %v3799_v62 = vsel %vm3665_vm4, %v3789_v28, %v3798_v47  ;;  %v13197_v19 = vld [vmem:[#allocation2 + $0x18] sm:$0xff]   ;;  %v13199_v28 = vld [vmem:[#allocation2 + $0x28] sm:$0xff]  }
 0x1ae   : > { %12534 = vmatprep.subr.bf16.mxu0 %v13198_v41  ;;  %v2087_v54 = vsel %vm1947_vm3, %v2082_v46, %v2086_v43  ;;  %v4871_v35 = vrot.slane %v13197_v19, 2  ;;  %v3137_v4 = vrot.slane %v13199_v28, 1  ;;  %v13203_v40 = vld [vmem:[#allocation2 + $0x28] sm:$0xff]  }
 0x1af   : > { %v3808_v0 = vsel %vm3665_vm4, %v3798_v47, %v3807_v49 }
 0x1b1   : > { %12297 = vmatmul.mubr.bf16.gmra.mxu1 %v2047_v63  ;;  %12535 = vmatpush3.bf16.msra.mxu0 %v13198_v41  ;;  %v2074_v41 = vor.u32 %v2072_v29, %v2070_v1  ;;  %v3815_v63 = vrot.slane %v3813_v48, 2  ;;  %v3133_v1 = vrot.slane %v13192_v10, 1  ;;  %v3135_v29 = vrot.slane %v13193_v16, 1 }
 0x1b2   : > { %12300 = vmatprep.mubr.bf16.mxu1 %v2055_v5  ;;  %12624 = vmatprep.subr.bf16.mxu0 %v14520_v58  ;;  %v3821_v5 = vrot.slane %v3819_v51, 1  ;;  %v4875_v48 = vrot.slane %v13203_v40, 2  ;;  %v13230_v51 = vld [vmem:[%s17161_s4 + $0x230] sm:$0xff]  }
 0x1b3   : > { %v2079_v27 = vsel %vm1947_vm3, %v2074_v41, %v2078_v37  ;;  %v3816_v45 = vor.u32 %v3815_v63, %v3812_v60  ;;  %v3134_v31 = vsel %vm2594_vm2, %v3131_v20, %v3133_v1  ;;  %v3136_v38 = vsel %vm2594_vm2, %v3133_v1, %v3135_v29  ;;  %v13208_v60 = vld [vmem:[#allocation2 + $0x38] sm:$0xff]   ;;  %v13222_v63 = vld [vmem:[%s17161_s4 + $0x150] sm:$0xff]  }
 0x1b4   : > { %12449 = vmatmul.mubr.bf16.gmra.mxu0 %v3763_v8  ;;  %v2090_v8 = vor.u32 %v2088_v57, %v2086_v43  ;;  %v3825_v14 = vor.u32 %v3824_v6, %v3821_v5  ;;  %v4872_v43 = vsel %vm4334_vm5, %v4870_v34, %v4871_v35  ;;  %v3138_v47 = vsel %vm2594_vm2, %v3135_v29, %v3137_v4  ;;  %v13209_v6 = vld [vmem:[#allocation2 + $0x48] sm:$0xff]   ;;  %v14582_v20 = vld [vmem:[#allocation2 + $0x50] sm:$0xff]   ;;  %v13215_v29 = vld [vmem:[#allocation2 + $0x60] sm:$0xff]  }
 0x1b5   : > { %12452 = vmatprep.mubr.bf16.mxu0 %v3772_v13  ;;  %v3831_v13 = vshll.u32 %v13194_v55, 16  ;;  %v3817_v21 = vsel %vm3665_vm4, %v3807_v49, %v3816_v45  ;;  %v14557_v49 = vld [vmem:[#allocation2 + $0x40] sm:$0xff]   ;;  %v13234_v55 = vld [vmem:[%s17161_s4 + $0x228] sm:$0xff]   ;;  %v4879_v5 = vrot.slane %v13208_v60, 2  ;;  %v3147_v16 = vrot.slane %v14582_v20, 1  ;;  %v14614_v34 = vld [vmem:[%s17161_s4 + $0x1f8] sm:$0xff]  }
 0x1b6   : > { %v2095_v2 = vsel %vm1947_vm3, %v2090_v8, %v2094_v3  ;;  %v3826_v25 = vsel %vm3665_vm4, %v3816_v45, %v3825_v14  ;;  %v13237_v8 = vld [vmem:[%s17161_s4 + $0x220] sm:$0xff]   ;;  %v13229_v45 = vld [vmem:[%s17161_s4 + $0x148] sm:$0xff]  }
 0x1b9   : > { %12301 = vmatmul.mubr.bf16.gmra.mxu1 %v2063_v23  ;;  %v3833_v23 = vrot.slane %v3831_v13, 2 }
 0x1ba   : > { %12304 = vmatprep.mubr.bf16.mxu1 %v2071_v32 }
 0x1bb   : > { %v3834_v32 = vor.u32 %v3833_v23, %v3830_v22  ;;  %v13242_v22 = vld [vmem:[%s17161_s4 + $0x218] sm:$0xff]  }
 0x1bc   : > { %12453 = vmatmul.mubr.bf16.gmra.mxu0 %v3781_v36  ;;  %v4873_v36 = vrot.slane %v13202_v24, 2 }
 0x1bd   : > { %12456 = vmatprep.mubr.bf16.mxu0 %v3790_v39  ;;  %v3139_v39 = vrot.slane %v13201_v30, 1  ;;  %v3835_v42 = vsel %vm3665_vm4, %v3825_v14, %v3834_v32  ;;  %v13213_v14 = vld [vmem:[#allocation2 + $0x48] sm:$0xff]  }
 0x1be   : > { %v4874_v52 = vsel %vm4334_vm5, %v4871_v35, %v4873_v36  ;;  %v4876_v57 = vsel %vm4334_vm5, %v4873_v36, %v4875_v48  ;;  %v4883_v24 = vrot.slane %v13213_v14, 2  ;;  %v13218_v36 = vld [vmem:[#allocation2 + $0x58] sm:$0xff]  }
 0x1bf   : > { %v3140_v50 = vsel %vm2594_vm2, %v3137_v4, %v3139_v39 }
 0x1c1   : > { %v12226_v53 = vpop.f32.mrf.mxu1  ;;  %12305 = vmatmul.mubr.bf16.gmra.mxu1 %v2079_v27  ;;  %v13204_v27 = vld [vmem:[#allocation2 + $0x38] sm:$0xff]  }
 0x1c2   : > { %1766 = vst [vmem:[#allocation3 + $0x10] sm:$0xff] %v12226_v53  ;;  %12308 = vmatprep.mubr.bf16.mxu1 %v2087_v54  ;;  %v13207_v53 = vld [vmem:[#allocation2 + $0x30] sm:$0xff]   ;;  %v13216_v54 = vld [vmem:[%s17161_s4 + $0x158] sm:$0xff]   ;;  %v3141_v59 = vrot.slane %v13204_v27, 1 }
 0x1c3   : > { %v1621_v61 = vpop.f32.mrf.mxu1 }
 0x1c4   : > { %1764 = vst [vmem:[#allocation3] sm:$0xff] %v1621_v61  ;;  %12457 = vmatmul.mubr.bf16.gmra.mxu0 %v3799_v62  ;;  %v3143_v61 = vrot.slane %v14557_v49, 1  ;;  %v4877_v62 = vrot.slane %v13207_v53, 2  ;;  %v3142_v3 = vsel %vm2594_vm2, %v3139_v39, %v3141_v59  ;;  %v13249_v39 = vld [vmem:[%s17161_s4 + $0x208] sm:$0xff]   ;;  %v13221_v49 = vld [vmem:[#allocation2 + $0x60] sm:$0xff]  }
 0x1c5   : > { %v12227_v7 = vpop.f32.mrf.mxu1  ;;  %12460 = vmatprep.mubr.bf16.mxu0 %v3808_v0  ;;  %v4889_v60 = vrot.slane %v13221_v49, 2 }
 0x1c6   : > { %1767 = vst [vmem:[#allocation3 + $0x18] sm:$0xff] %v12227_v7  ;;  %v4878_v10 = vsel %vm4334_vm5, %v4875_v48, %v4877_v62  ;;  %v4880_v13 = vsel %vm4334_vm5, %v4877_v62, %v4879_v5 }
 0x1c7   : > { %v1624_v11 = vpop.f32.mrf.mxu1 }
 0x1c8   : > { %1765 = vst [vmem:[#allocation3 + $0x8] sm:$0xff] %v1624_v11  ;;  %v13212_v11 = vld [vmem:[#allocation2 + $0x40] sm:$0xff]  }
 0x1c9   : > { %12309 = vmatmul.mubr.bf16.gmra.mxu1 %v2095_v2  ;;  %v3145_v2 = vrot.slane %v13209_v6, 1  ;;  %v4881_v18 = vrot.slane %v13212_v11, 2  ;;  %v14638_v6 = vld [vmem:[#allocation4] sm:$0xff] }
 0x1ca   : > { %12380 = vmatprep.mubr.bf16.mxu1 %v3132_v15 }
 0x1cb   : > { %v3146_v19 = vsel %vm2594_vm2, %v3143_v61, %v3145_v2  ;;  %v3148_v28 = vsel %vm2594_vm2, %v3145_v2, %v3147_v16  ;;  %v4882_v32 = vsel %vm4334_vm5, %v4879_v5, %v4881_v18  ;;  %v4884_v35 = vsel %vm4334_vm5, %v4881_v18, %v4883_v24  ;;  %v13225_v5 = vld [vmem:[#allocation2 + $0x80] sm:$0xff]   ;;  %v13232_v18 = vld [vmem:[#allocation2 + $0x90] sm:$0xff]  }
 0x1cc   : > { %12461 = vmatmul.mubr.bf16.gmra.mxu0 %v3817_v21  ;;  %v13236_v21 = vld [vmem:[%s17161_s4 + $0x140] sm:$0xff]   ;;  %v3159_v11 = vrot.slane %v13225_v5, 1 }
 0x1cd   : > { %12464 = vmatprep.mubr.bf16.mxu0 %v3826_v25  ;;  %v14567_v56 = vpop.f32.mrf.mxu0  ;;  %v13214_v25 = vld [vmem:[#allocation2 + $0x58] sm:$0xff]   ;;  %v13248_v5 = vld [vmem:[#allocation2 + $0xa0] ss:$0 sps:$4 sm:$0x33]  }
 0x1ce   : > { %v3149_v4 = vrot.slane %v13214_v25, 1 }
 0x1cf   : > { %v14578_v0 = vpop.f32.mrf.mxu0 }
 0x1d1   : > { %v12230_v37 = vpop.f32.mrf.mxu1  ;;  %12381 = vmatmul.mubr.bf16.vlgmr.msra.gmra.mxu1 %v3134_v31  ;;  %v14591_v12 = vpop.f32.mrf.mxu0  ;;  %v13245_v31 = vld [vmem:[%s17161_s4 + $0x210] sm:$0xff]  }
 0x1d2   : > { %1770 = vst [vmem:[#allocation3 + $0x30] sm:$0xff] %v12230_v37  ;;  %12469 = vmatpush3.bf16.msra.mxu1 %v14493_v17  ;;  %12384 = vmatprep.mubr.bf16.mxu1 %v3136_v38  ;;  %v13211_v17 = vld [vmem:[%s17161_s4 + $0x160] sm:$0xff]   ;;  %v3151_v37 = vrot.slane %v13215_v29, 1  ;;  %v13235_v29 = vld [vmem:[#allocation2 + $0x88] sm:$0xff]  }
 0x1d3   : > { %v1637_v41 = vpop.f32.mrf.mxu1  ;;  %12470 = vmatprep.subr.bf16.mxu1 %v13200_v33  ;;  %v14601_v23 = vpop.f32.mrf.mxu0 }
 0x1d4   : > { %1768 = vst [vmem:[#allocation3 + $0x20] sm:$0xff] %v1637_v41  ;;  %12465 = vmatmul.mubr.bf16.gmra.mxu0 %v3835_v42  ;;  %17177 = vst [vmem:[#allocation11_spill] sm:$0xff] %v14601_v23  ;;  %v4887_v41 = vrot.slane %v13218_v36, 2  ;;  %v13219_v42 = vld [vmem:[#allocation2 + $0x68] sm:$0xff]  }
 0x1d5   : > { %v12231_v44 = vpop.f32.mrf.mxu1  ;;  %12536 = vmatprep.mubr.bf16.mxu0 %v4872_v43 }
 0x1d6   : > { %1771 = vst [vmem:[#allocation3 + $0x38] sm:$0xff] %v12231_v44  ;;  %12471 = vmatpush3.bf16.msra.mxu1 %v13200_v33  ;;  %v13217_v33 = vld [vmem:[#allocation2 + $0x50] sm:$0xff]   ;;  %v3152_v44 = vsel %vm2594_vm2, %v3149_v4, %v3151_v37 }
 0x1d7   : > { %v1640_v46 = vpop.f32.mrf.mxu1  ;;  %12472 = vmatprep.subr.bf16.mxu1 %v13206_v26  ;;  %v4885_v40 = vrot.slane %v13217_v33, 2 }
 0x1d8   : > { %1769 = vst [vmem:[#allocation3 + $0x28] sm:$0xff] %v1640_v46  ;;  %v13252_v46 = vld [vmem:[%s17161_s4 + $0x200] sm:$0xff]  }
 0x1d9   : > { %12385 = vmatmul.mubr.bf16.gmra.mxu1 %v3138_v47  ;;  %v4886_v48 = vsel %vm4334_vm5, %v4883_v24, %v4885_v40 }
 0x1da   : > { %12388 = vmatprep.mubr.bf16.mxu1 %v3140_v50  ;;  %12473 = vmatpush3.bf16.msra.mxu1 %v13206_v26  ;;  %v3150_v26 = vsel %vm2594_vm2, %v3147_v16, %v3149_v4  ;;  %v4888_v50 = vsel %vm4334_vm5, %v4885_v40, %v4887_v41 }
 0x1db   : > { %12474 = vmatprep.subr.bf16.mxu1 %v13211_v17 }
 0x1dc   : > { %12537 = vmatmul.mubr.bf16.vlgmr.msra.gmra.mxu0 %v4874_v52  ;;  %v13223_v52 = vld [vmem:[#allocation2 + $0x68] sm:$0xff]  }
 0x1dd   : > { %12540 = vmatprep.mubr.bf16.mxu0 %v4876_v57  ;;  %12625 = vmatpush3.bf16.msra.mxu0 %v14520_v58  ;;  %v3144_v58 = vsel %vm2594_vm2, %v3141_v59, %v3143_v61  ;;  %v14605_v30 = vpop.f32.mrf.mxu0 }
 0x1de   : > { %12475 = vmatpush3.bf16.msra.mxu1 %v13211_v17  ;;  %12626 = vmatprep.subr.bf16.mxu0 %v13230_v51  ;;  %v13220_v17 = vld [vmem:[#allocation2 + $0x70] sm:$0xff]  }
 0x1df   : > { %12476 = vmatprep.subr.bf16.mxu1 %v13216_v54  ;;  %v14617_v38 = vpop.f32.mrf.mxu0 }
 0x1e1   : > { %v12234_v7 = vpop.f32.mrf.mxu1  ;;  %12389 = vmatmul.mubr.bf16.gmra.mxu1 %v3142_v3  ;;  %12627 = vmatpush3.bf16.msra.mxu0 %v13230_v51  ;;  %v14625_v27 = vpop.f32.mrf.mxu0  ;;  %v3153_v51 = vrot.slane %v13219_v42, 1 }
 0x1e2   : > { %1774 = vst [vmem:[#allocation3 + $0x50] sm:$0xff] %v12234_v7  ;;  %12392 = vmatprep.mubr.bf16.mxu1 %v3144_v58  ;;  %12477 = vmatpush3.bf16.msra.mxu1 %v13216_v54  ;;  %v3155_v54 = vrot.slane %v13220_v17, 1  ;;  %v4890_v7 = vsel %vm4334_vm5, %v4887_v41, %v4889_v60  ;;  %v13226_v58 = vld [vmem:[#allocation2 + $0x70] sm:$0xff]  }
 0x1e3   : > { %v1653_v9 = vpop.f32.mrf.mxu1  ;;  %12478 = vmatprep.subr.bf16.mxu1 %v13222_v63  ;;  %12628 = vmatprep.subr.bf16.mxu0 %v13234_v55  ;;  %v14632_v57 = vpop.f32.mrf.mxu0  ;;  %v3154_v62 = vsel %vm2594_vm2, %v3151_v37, %v3153_v51  ;;  %v4899_v37 = vrot.slane %v13235_v29, 2 }
 0x1e4   : > { %1772 = vst [vmem:[#allocation3 + $0x40] sm:$0xff] %v1653_v9  ;;  %12541 = vmatmul.mubr.bf16.gmra.mxu0 %v4878_v10  ;;  %17178 = vst [vmem:[#allocation12_spill] sm:$0xff] %v14632_v57  ;;  %v3156_v3 = vsel %vm2594_vm2, %v3153_v51, %v3155_v54  ;;  %v13228_v10 = vld [vmem:[#allocation2 + $0x78] sm:$0xff]  }
 0x1e5   : > { %v12235_v15 = vpop.f32.mrf.mxu1  ;;  %12544 = vmatprep.mubr.bf16.mxu0 %v4880_v13  ;;  %12629 = vmatpush3.bf16.msra.mxu0 %v13234_v55  ;;  %v13224_v55 = vld [vmem:[#allocation2 + $0x78] sm:$0xff]   ;;  %v4895_v14 = vrot.slane %v13228_v10, 2 }
 0x1e6   : > { %1775 = vst [vmem:[#allocation3 + $0x58] sm:$0xff] %v12235_v15  ;;  %12479 = vmatpush3.bf16.msra.mxu1 %v13222_v63  ;;  %12630 = vmatprep.subr.bf16.mxu0 %v13237_v8  ;;  %v4891_v63 = vrot.slane %v13223_v52, 2  ;;  %v3157_v9 = vrot.slane %v13224_v55, 1  ;;  %v13231_v15 = vld [vmem:[#allocation2 + $0x88] sm:$0xff]  }
 0x1e7   : > { %v1656_v1 = vpop.f32.mrf.mxu1  ;;  %12480 = vmatprep.subr.bf16.mxu1 %v13229_v45 }
 0x1e8   : > { %1773 = vst [vmem:[#allocation3 + $0x48] sm:$0xff] %v1656_v1  ;;  %v3158_v2 = vsel %vm2594_vm2, %v3155_v54, %v3157_v9  ;;  %v3160_v1 = vsel %vm2594_vm2, %v3157_v9, %v3159_v11  ;;  %v13246_v54 = vld [vmem:[#allocation2 + $0x18] sm:$0xff]  }
 0x1e9   : > { %12393 = vmatmul.mubr.bf16.gmra.mxu1 %v3146_v19  ;;  %12631 = vmatpush3.bf16.msra.mxu0 %v13237_v8  ;;  %v4892_v8 = vsel %vm4334_vm5, %v4889_v60, %v4891_v63  ;;  %v13233_v19 = vld [vmem:[#allocation2 + $0x80] sm:$0xff]   ;;  %v13251_v9 = vld [vmem:[#allocation2 + $0x18] sm:$0xff]  }
 0x1ea   : > { %12396 = vmatprep.mubr.bf16.mxu1 %v3148_v28  ;;  %12481 = vmatpush3.bf16.msra.mxu1 %v13229_v45  ;;  %v4893_v45 = vrot.slane %v13226_v58, 2  ;;  %v3161_v28 = vrot.slane %v13231_v15, 1  ;;  %v4897_v4 = vrot.slane %v13233_v19, 2 }
 0x1eb   : > { %12482 = vmatprep.subr.bf16.mxu1 %v13236_v21  ;;  %12632 = vmatprep.subr.bf16.mxu0 %v13242_v22 }
 0x1ec   : > { %12545 = vmatmul.mubr.bf16.gmra.mxu0 %v4882_v32  ;;  %v4896_v25 = vsel %vm4334_vm5, %v4893_v45, %v4895_v14  ;;  %v3163_v32 = vrot.slane %v13232_v18, 1  ;;  %v3162_v36 = vsel %vm2594_vm2, %v3159_v11, %v3161_v28  ;;  %v4898_v42 = vsel %vm4334_vm5, %v4895_v14, %v4897_v4  ;;  %v13250_v11 = vld [vmem:[#allocation2 + $0x10] sm:$0xf8]  }
 0x1ed   : > { %12548 = vmatprep.mubr.bf16.mxu0 %v4884_v35  ;;  %12633 = vmatpush3.bf16.msra.mxu0 %v13242_v22  ;;  %v14634_v61 = vpop.f32.mrf.mxu0  ;;  %v4894_v22 = vsel %vm4334_vm5, %v4891_v63, %v4893_v45  ;;  %v4900_v17 = vsel %vm4334_vm5, %v4897_v4, %v4899_v37  ;;  %v4905_v45 = vrot.slane %v13248_v5, 2 }
 0x1ee   : > { %12483 = vmatpush3.bf16.msra.mxu1 %v13236_v21  ;;  %12634 = vmatprep.subr.bf16.mxu0 %v13245_v31  ;;  %v3164_v40 = vsel %vm2594_vm2, %v3161_v28, %v3163_v32  ;;  %v13260_v28 = vld [vmem:[%s17161_s4 + $0x1e8] sm:$0xff]  }
 0x1ef   : > { %12572 = vmatprep.subr.bf16.mxu1 %v14614_v34  ;;  %v14642_v20 = vpop.f32.mrf.mxu0 }
 0x1f1   : > { %v12238_v43 = vpop.f32.mrf.mxu1  ;;  %12397 = vmatmul.mubr.bf16.gmra.mxu1 %v3150_v26  ;;  %12635 = vmatpush3.bf16.msra.mxu0 %v13245_v31  ;;  %v14645_v13 = vpop.f32.mrf.mxu0  ;;  %v13240_v26 = vld [vmem:[#allocation2 + $0x10] sm:$0xff]  }
 0x1f2   : > { %1778 = vst [vmem:[#allocation3 + $0x70] sm:$0xff] %v12238_v43  ;;  %12400 = vmatprep.mubr.bf16.mxu1 %v3152_v44  ;;  %12636 = vmatprep.subr.bf16.mxu0 %v13249_v39  ;;  %v13239_v43 = vld [vmem:[#allocation2 + $0x8] sm:$0xfc]   ;;  %v13241_v44 = vld [vmem:[#allocation2 + $0x90] sm:$0xff]  }
 0x1f3   : > { %v1669_v47 = vpop.f32.mrf.mxu1  ;;  %v14650_v24 = vpop.f32.mrf.mxu0  ;;  %v4901_v51 = vrot.slane %v13241_v44, 2  ;;  %v13259_v44 = vld [vmem:[#allocation2 + $0x40] sm:$0xff]  }
 0x1f4   : > { %1776 = vst [vmem:[#allocation3 + $0x60] sm:$0xff] %v1669_v47  ;;  %12549 = vmatmul.mubr.bf16.gmra.mxu0 %v4886_v48  ;;  %17179 = vst [vmem:[#allocation13_spill] sm:$0xff] %v14650_v24  ;;  %v13243_v47 = vld [vmem:[#allocation2 + $0x98] sm:$0xff]   ;;  %v4336_v48 = vrot.slane %v13240_v26, 2 }
 0x1f5   : > { %v12239_v53 = vpop.f32.mrf.mxu1  ;;  %12552 = vmatprep.mubr.bf16.mxu0 %v4888_v50  ;;  %12637 = vmatpush3.bf16.msra.mxu0 %v13249_v39  ;;  %v13238_v39 = vld [vmem:[#allocation2 + $0x98] ss:$0 sps:$4 sm:$0x11]   ;;  %v4335_v50 = vrot.slane %v13239_v43, 2 }
 0x1f6   : > { %1779 = vst [vmem:[#allocation3 + $0x78] sm:$0xff] %v12239_v53  ;;  %12638 = vmatprep.subr.bf16.mxu0 %v13252_v46  ;;  %v4903_v53 = vrot.slane %v13243_v47, 2 }
 0x1f7   : > { %v1672_v59 = vpop.f32.mrf.mxu1  ;;  %v4337_v60 = vsel %vm4334_vm5, %v4335_v50, %v4336_v48  ;;  %v13270_v50 = vld [vmem:[%s17161_s4 + $0x1d8] sm:$0xff]  }
 0x1f8   : > { %1777 = vst [vmem:[#allocation3 + $0x68] sm:$0xff] %v1672_v59  ;;  %v4904_v58 = vsel %vm4334_vm5, %v4901_v51, %v4903_v53  ;;  %v4906_v19 = vsel %vm4334_vm5, %v4903_v53, %v4905_v45  ;;  %v13262_v53 = vld [vmem:[#allocation2 + $0x38] sm:$0xff]  }
 0x1f9   : > { %12401 = vmatmul.mubr.bf16.gmra.mxu1 %v3154_v62  ;;  %12639 = vmatpush3.bf16.msra.mxu0 %v13252_v46  ;;  %v3165_v46 = vrot.slane %v13238_v39, 1  ;;  %v13247_v62 = vld [vmem:[#allocation2 + $0x20] sm:$0xff]  }
 0x1fa   : > { %12404 = vmatprep.mubr.bf16.mxu1 %v3156_v3  ;;  %12748 = vmatprep.subr.bf16.mxu0 %v14638_v6  ;;  %v4902_v3 = vsel %vm4334_vm5, %v4899_v37, %v4901_v51  ;;  %v4340_v10 = vrot.slane %v13247_v62, 2  ;;  %v13265_v37 = vld [vmem:[%s17161_s4 + $0x1e0] sm:$0xff]  }
 0x1fb   : > { %v3166_v52 = vsel %vm2594_vm2, %v3163_v32, %v3165_v46 }
 0x1fc   : > { %12553 = vmatmul.mubr.bf16.gmra.mxu0 %v4890_v7 }
 0x1fd   : > { %12556 = vmatprep.mubr.bf16.mxu0 %v4892_v8  ;;  %v14653_v33 = vpop.f32.mrf.mxu0  ;;  %v4338_v8 = vrot.slane %v13246_v54, 2 }
 0x1ff   : > { %v14657_v41 = vpop.f32.mrf.mxu0  ;;  %v4339_v15 = vsel %vm4334_vm5, %v4336_v48, %v4338_v8  ;;  %v4341_v18 = vsel %vm4334_vm5, %v4338_v8, %v4340_v10  ;;  %v13261_v48 = vld [vmem:[#allocation2 + $0x30] sm:$0xff]   ;;  %v13263_v8 = vld [vmem:[#allocation2 + $0x48] sm:$0xff]  }
 0x201   : > { %v12242_v16 = vpop.f32.mrf.mxu1  ;;  %12405 = vmatmul.mubr.bf16.gmra.mxu1 %v3158_v2  ;;  %v14661_v49 = vpop.f32.mrf.mxu0  ;;  %v13254_v2 = vld [vmem:[%s17161_s4 + $0x1f0] sm:$0xff]  }
 0x202   : > { %1782 = vst [vmem:[#allocation3 + $0x90] sm:$0xff] %v12242_v16  ;;  %12408 = vmatprep.mubr.bf16.mxu1 %v3160_v1  ;;  %v6076_v16 = vrot.slane %v13251_v9, 3  ;;  %v13253_v1 = vld [vmem:[#allocation2 + $0x28] sm:$0xff]  }
 0x203   : > { %v1685_v21 = vpop.f32.mrf.mxu1  ;;  %v14667_v63 = vpop.f32.mrf.mxu0  ;;  %v4342_v32 = vrot.slane %v13253_v1, 2 }
 0x204   : > { %1780 = vst [vmem:[#allocation3 + $0x80] sm:$0xff] %v1685_v21  ;;  %12557 = vmatmul.mubr.bf16.gmra.mxu0 %v4894_v22  ;;  %17181 = vst [vmem:[#allocation15_spill] sm:$0xff] %v14667_v63  ;;  %v13255_v21 = vld [vmem:[#allocation2 + $0x30] sm:$0xff]   ;;  %v6075_v22 = vrot.slane %v13250_v11, 3 }
 0x205   : > { %v12243_v31 = vpop.f32.mrf.mxu1  ;;  %12560 = vmatprep.mubr.bf16.mxu0 %v4896_v25  ;;  %v13256_v25 = vld [vmem:[#allocation2 + $0x20] sm:$0xff]   ;;  %v4344_v4 = vrot.slane %v13255_v21, 2  ;;  %v13264_v11 = vld [vmem:[#allocation2 + $0x50] sm:$0xff]   ;;  %v13267_v21 = vld [vmem:[#allocation2 + $0x48] sm:$0xff]  }
 0x206   : > { %1783 = vst [vmem:[#allocation3 + $0x98] sm:$0xff] %v12243_v31  ;;  %v6077_v31 = vsel %vm6074_vm6, %v6075_v22, %v6076_v16 }
 0x207   : > { %v1688_v35 = vpop.f32.mrf.mxu1  ;;  %v4345_v43 = vsel %vm4334_vm5, %v4342_v32, %v4344_v4 }
 0x208   : > { %1781 = vst [vmem:[#allocation3 + $0x88] sm:$0xff] %v1688_v35  ;;  %v13257_v35 = vld [vmem:[#allocation2 + $0x28] sm:$0xff]  }
 0x209   : > { %12409 = vmatmul.mubr.bf16.gmra.mxu1 %v3162_v36  ;;  %v6078_v36 = vrot.slane %v13256_v25, 3  ;;  %v6080_v26 = vrot.slane %v13257_v35, 3 }
 0x20a   : > { %12412 = vmatprep.mubr.bf16.mxu1 %v3164_v40  ;;  %v4343_v40 = vsel %vm4334_vm5, %v4340_v10, %v4342_v32 }
 0x20b   : > { %v6079_v47 = vsel %vm6074_vm6, %v6076_v16, %v6078_v36  ;;  %v6081_v51 = vsel %vm6074_vm6, %v6078_v36, %v6080_v26  ;;  %v13282_v16 = vld [vmem:[%s17161_s4 + $0x1c8] sm:$0xff]   ;;  %v13268_v36 = vld [vmem:[#allocation2 + $0x58] sm:$0xff]  }
 0x20c   : > { %12561 = vmatmul.mubr.bf16.gmra.mxu0 %v4898_v42  ;;  %v13258_v42 = vld [vmem:[#allocation2 + $0x38] sm:$0xff]  }
 0x20d   : > { %12564 = vmatprep.mubr.bf16.mxu0 %v4900_v17  ;;  %v14670_v7 = vpop.f32.mrf.mxu0 }
 0x20e   : > { %17182 = vst [vmem:[#allocation16_spill] sm:$0xff] %v14670_v7 }
 0x20f   : > { %v14676_v14 = vpop.f32.mrf.mxu0 }
 0x210   : > { %17183 = vst [vmem:[#allocation17_spill] sm:$0xff] %v14676_v14 }
 0x211   : > { %v14664_v59 = vpop.f32.mrf.mxu1  ;;  %12413 = vmatmul.mubr.bf16.gmra.mxu1 %v3166_v52  ;;  %v14685_v29 = vpop.f32.mrf.mxu0  ;;  %v4346_v52 = vrot.slane %v13258_v42, 2 }
 0x212   : > { %17180 = vst [vmem:[#allocation14_spill] sm:$0xff] %v14664_v59  ;;  %12484 = vmatprep.mubr.bf16.mxu1 %v4337_v60  ;;  %17184 = vst [vmem:[#allocation18_spill] sm:$0xff] %v14685_v29  ;;  %v4348_v60 = vrot.slane %v13259_v44, 2  ;;  %v13271_v44 = vld [vmem:[#allocation2 + $0x50] sm:$0xff]  }
 0x213   : > { %v1701_v55 = vpop.f32.mrf.mxu1  ;;  %v14693_v39 = vpop.f32.mrf.mxu0  ;;  %v4347_v5 = vsel %vm4334_vm5, %v4344_v4, %v4346_v52  ;;  %v6088_v4 = vrot.slane %v13267_v21, 3  ;;  %v13277_v21 = vld [vmem:[#allocation2 + $0x68] sm:$0xff]  }
 0x214   : > { %1784 = vst [vmem:[#allocation3 + $0xa0] sm:$0xff] %v1701_v55  ;;  %12565 = vmatmul.mubr.bf16.gmra.mxu0 %v4902_v3  ;;  %17186 = vst [vmem:[#allocation20_spill] sm:$0xff] %v14693_v39  ;;  %v6082_v55 = vrot.slane %v13261_v48, 3  ;;  %v13276_v3 = vld [vmem:[%s17161_s4 + $0x1d0] sm:$0xff]   ;;  %v4349_v10 = vsel %vm4334_vm5, %v4346_v52, %v4348_v60 }
 0x215   : > { %12568 = vmatprep.mubr.bf16.mxu0 %v4904_v58  ;;  %v6084_v58 = vrot.slane %v13262_v53, 3 }
 0x217   : > { %v6085_v1 = vsel %vm6074_vm6, %v6082_v55, %v6084_v58 }
 0x219   : > { %12485 = vmatmul.mubr.bf16.vlgmr.msra.gmra.mxu1 %v4339_v15  ;;  %v13266_v15 = vld [vmem:[#allocation2 + $0x40] sm:$0xff]  }
 0x21a   : > { %12573 = vmatpush3.bf16.msra.mxu1 %v14614_v34  ;;  %12488 = vmatprep.mubr.bf16.mxu1 %v4341_v18  ;;  %v14688_v34 = vpop.f32.mrf.mxu1  ;;  %v4350_v18 = vrot.slane %v13263_v8, 2 }
 0x21b   : > { %12574 = vmatprep.subr.bf16.mxu1 %v13254_v2  ;;  %17185 = vst [vmem:[#allocation19_spill] sm:$0xff] %v14688_v34 }
 0x21c   : > { %12569 = vmatmul.mubr.bf16.gmra.mxu0 %v4906_v19  ;;  %v14699_v46 = vpop.f32.mrf.mxu1  ;;  %v4352_v19 = vrot.slane %v13264_v11, 2  ;;  %v4351_v35 = vsel %vm4334_vm5, %v4348_v60, %v4350_v18  ;;  %v6090_v60 = vrot.slane %v13271_v44, 3  ;;  %v13279_v44 = vld [vmem:[#allocation2 + $0x80] sm:$0xff]  }
 0x21d   : > { %12640 = vmatprep.mubr.bf16.mxu0 %v6077_v31  ;;  %v14697_v17 = vpop.f32.mrf.mxu0  ;;  %17188 = vst [vmem:[#allocation22_spill] sm:$0xff] %v14699_v46  ;;  %v13287_v31 = vld [vmem:[%s17161_s4 + $0x1c0] sm:$0xff]  }
 0x21e   : > { %12575 = vmatpush3.bf16.msra.mxu1 %v13254_v2  ;;  %17187 = vst [vmem:[#allocation21_spill] sm:$0xff] %v14697_v17  ;;  %v6083_v2 = vsel %vm6074_vm6, %v6080_v26, %v6082_v55  ;;  %v13269_v26 = vld [vmem:[#allocation2 + $0x60] sm:$0xff]  }
 0x21f   : > { %12576 = vmatprep.subr.bf16.mxu1 %v13260_v28  ;;  %v14708_v62 = vpop.f32.mrf.mxu0  ;;  %v4356_v52 = vrot.slane %v13269_v26, 2  ;;  %v13278_v26 = vld [vmem:[#allocation2 + $0x78] sm:$0xff]  }
 0x220   : > { %17190 = vst [vmem:[#allocation24_spill] sm:$0xff] %v14708_v62 }
 0x221   : > { %12489 = vmatmul.mubr.bf16.gmra.mxu1 %v4343_v40  ;;  %v14706_v54 = vpop.f32.mrf.mxu1  ;;  %v14717_v45 = vpop.f32.mrf.mxu0  ;;  %v4353_v40 = vsel %vm4334_vm5, %v4350_v18, %v4352_v19 }
 0x222   : > { %12492 = vmatprep.mubr.bf16.mxu1 %v4345_v43  ;;  %12577 = vmatpush3.bf16.msra.mxu1 %v13260_v28  ;;  %17189 = vst [vmem:[#allocation23_spill] sm:$0xff] %v14706_v54  ;;  %17192 = vst [vmem:[#allocation26_spill] sm:$0xff] %v14717_v45  ;;  %v6086_v28 = vrot.slane %v13266_v15, 3  ;;  %v13275_v15 = vld [vmem:[#allocation2 + $0x60] sm:$0xff]  }
 0x223   : > { %12578 = vmatprep.subr.bf16.mxu1 %v13265_v37  ;;  %v14714_v9 = vpop.f32.mrf.mxu1  ;;  %v14726_v25 = vpop.f32.mrf.mxu0 }
 0x224   : > { %12641 = vmatmul.mubr.bf16.vlgmr.msra.gmra.mxu0 %v6079_v47  ;;  %17191 = vst [vmem:[#allocation25_spill] sm:$0xff] %v14714_v9  ;;  %17194 = vst [vmem:[#allocation28_spill] sm:$0xff] %v14726_v25  ;;  %v6087_v43 = vsel %vm6074_vm6, %v6084_v58, %v6086_v28  ;;  %v6089_v48 = vsel %vm6074_vm6, %v6086_v28, %v6088_v4  ;;  %v13273_v58 = vld [vmem:[#allocation2 + $0x68] sm:$0xff]  }
 0x225   : > { %12644 = vmatprep.mubr.bf16.mxu0 %v6081_v51  ;;  %v14724_v22 = vpop.f32.mrf.mxu1  ;;  %v13272_v51 = vld [vmem:[#allocation2 + $0x58] sm:$0xff]   ;;  %v4358_v18 = vrot.slane %v13273_v58, 2 }
 0x226   : > { %12579 = vmatpush3.bf16.msra.mxu1 %v13265_v37  ;;  %17193 = vst [vmem:[#allocation27_spill] sm:$0xff] %v14724_v22  ;;  %v13281_v58 = vld [vmem:[#allocation2 + $0x78] sm:$0xff]   ;;  %v13296_v22 = vld [vmem:[#allocation2 + $0x30] sm:$0xff]  }
 0x227   : > { %12580 = vmatprep.subr.bf16.mxu1 %v13270_v50  ;;  %v14734_v37 = vpop.f32.mrf.mxu1 }
 0x228   : > { %17196 = vst [vmem:[#allocation30_spill] sm:$0xff] %v14734_v37 }
 0x229   : > { %12493 = vmatmul.mubr.bf16.gmra.mxu1 %v4347_v5  ;;  %v6092_v5 = vrot.slane %v13272_v51, 3 }
 0x22a   : > { %12496 = vmatprep.mubr.bf16.mxu1 %v4349_v10  ;;  %12581 = vmatpush3.bf16.msra.mxu1 %v13270_v50  ;;  %v4354_v50 = vrot.slane %v13268_v36, 2  ;;  %v13274_v10 = vld [vmem:[#allocation2 + $0x70] sm:$0xff]   ;;  %v4359_v36 = vsel %vm4334_vm5, %v4356_v52, %v4358_v18 }
 0x22b   : > { %12582 = vmatprep.subr.bf16.mxu1 %v13276_v3 }
 0x22c   : > { %12645 = vmatmul.mubr.bf16.gmra.mxu0 %v6083_v2  ;;  %v4357_v8 = vsel %vm4334_vm5, %v4354_v50, %v4356_v52  ;;  %v6091_v2 = vsel %vm6074_vm6, %v6088_v4, %v6090_v60  ;;  %v4362_v52 = vrot.slane %v13278_v26, 2  ;;  %v13284_v26 = vld [vmem:[#allocation2 + $0x90] sm:$0xff]  }
 0x22d   : > { %12648 = vmatprep.mubr.bf16.mxu0 %v6085_v1  ;;  %v14731_v32 = vpop.f32.mrf.mxu0  ;;  %v6093_v1 = vsel %vm6074_vm6, %v6090_v60, %v6092_v5  ;;  %v13280_v60 = vld [vmem:[#allocation2 + $0x70] sm:$0xff]   ;;  %v4368_v25 = vrot.slane %v13284_v26, 2 }
 0x22e   : > { %12583 = vmatpush3.bf16.msra.mxu1 %v13276_v3  ;;  %17195 = vst [vmem:[#allocation29_spill] sm:$0xff] %v14731_v32  ;;  %v4355_v3 = vsel %vm4334_vm5, %v4352_v19, %v4354_v50  ;;  %v4360_v19 = vrot.slane %v13274_v10, 2  ;;  %v4364_v10 = vrot.slane %v13279_v44, 2 }
 0x22f   : > { %12584 = vmatprep.subr.bf16.mxu1 %v13282_v16  ;;  %v14740_v47 = vpop.f32.mrf.mxu0 }
 0x230   : > { %17198 = vst [vmem:[#allocation32_spill] sm:$0xff] %v14740_v47 }
 0x231   : > { %12497 = vmatmul.mubr.bf16.gmra.mxu1 %v4351_v35  ;;  %v14737_v42 = vpop.f32.mrf.mxu1  ;;  %v14746_v55 = vpop.f32.mrf.mxu0  ;;  %v6094_v35 = vrot.slane %v13275_v15, 3 }
 0x232   : > { %12500 = vmatprep.mubr.bf16.mxu1 %v4353_v40  ;;  %12585 = vmatpush3.bf16.msra.mxu1 %v13282_v16  ;;  %17197 = vst [vmem:[#allocation31_spill] sm:$0xff] %v14737_v42  ;;  %17200 = vst [vmem:[#allocation34_spill] sm:$0xff] %v14746_v55  ;;  %v6096_v40 = vrot.slane %v13277_v21, 3  ;;  %v6100_v21 = vrot.slane %v13281_v58, 3 }
 0x233   : > { %12586 = vmatprep.subr.bf16.mxu1 %v13287_v31  ;;  %v14743_v53 = vpop.f32.mrf.mxu1  ;;  %v14753_v16 = vpop.f32.mrf.mxu0  ;;  %v6095_v51 = vsel %vm6074_vm6, %v6092_v5, %v6094_v35 }
 0x234   : > { %12649 = vmatmul.mubr.bf16.gmra.mxu0 %v6087_v43  ;;  %17199 = vst [vmem:[#allocation33_spill] sm:$0xff] %v14743_v53  ;;  %17202 = vst [vmem:[#allocation36_spill] sm:$0xff] %v14753_v16  ;;  %v4361_v43 = vsel %vm4334_vm5, %v4358_v18, %v4360_v19  ;;  %v4363_v18 = vsel %vm4334_vm5, %v4360_v19, %v4362_v52  ;;  %v13285_v16 = vld [vmem:[#allocation2 + $0x80] sm:$0xff]  }
 0x235   : > { %12652 = vmatprep.mubr.bf16.mxu0 %v6089_v48  ;;  %v14750_v11 = vpop.f32.mrf.mxu1 }
 0x236   : > { %12587 = vmatpush3.bf16.msra.mxu1 %v13287_v31  ;;  %17201 = vst [vmem:[#allocation35_spill] sm:$0xff] %v14750_v11 }
 0x237   : > { %12676 = vmatprep.subr.bf16.mxu1 %v14638_v6  ;;  %v14758_v31 = vpop.f32.mrf.mxu1 }
 0x239   : > { %12501 = vmatmul.mubr.bf16.gmra.mxu1 %v4355_v3  ;;  %v6097_v3 = vsel %vm6074_vm6, %v6094_v35, %v6096_v40  ;;  %v4365_v35 = vsel %vm4334_vm5, %v4362_v52, %v4364_v10 }
 0x23a   : > { %12504 = vmatprep.mubr.bf16.mxu1 %v4357_v8 }
 0x23c   : > { %12653 = vmatmul.mubr.bf16.gmra.mxu0 %v6091_v2 }
 0x23d   : > { %12656 = vmatprep.mubr.bf16.mxu0 %v6093_v1  ;;  %v14756_v28 = vpop.f32.mrf.mxu0  ;;  %v6098_v1 = vrot.slane %v13280_v60, 3  ;;  %v13289_v60 = vld [vmem:[#allocation2 + $0x10] sm:$0xfc]  }
 0x23e   : > { %17203 = vst [vmem:[#allocation37_spill] sm:$0xff] %v14756_v28  ;;  %v5407_v24 = vshrl.u32 %v13289_v60, 16  ;;  %v5410_v57 = vshll.u32 %v13289_v60, 16 }
 0x23f   : > { %v14764_v48 = vpop.f32.mrf.mxu0  ;;  %v6101_v19 = vsel %vm6074_vm6, %v6098_v1, %v6100_v21 }
 0x240   : > { %17204 = vst [vmem:[#allocation38_spill] sm:$0xff] %v14764_v48  ;;  %v13294_v48 = vld [vmem:[#allocation2 + $0x28] sm:$0xff]   ;;  %v5412_v28 = vrot.slane %v5410_v57, 3 }
 0x241   : > { %v14761_v4 = vpop.f32.mrf.mxu1  ;;  %12505 = vmatmul.mubr.bf16.gmra.mxu1 %v4359_v36  ;;  %v14772_v2 = vpop.f32.mrf.mxu0  ;;  %v13283_v36 = vld [vmem:[#allocation2 + $0x88] sm:$0xff]   ;;  %v5436_v42 = vshll.u32 %v13294_v48, 16 }
 0x242   : > { %12508 = vmatprep.mubr.bf16.mxu1 %v4361_v43  ;;  %17205 = vst [vmem:[#allocation39_spill] sm:$0xff] %v14772_v2  ;;  %v13290_v43 = vld [vmem:[#allocation2 + $0x18] sm:$0xff]   ;;  %v4366_v58 = vrot.slane %v13283_v36, 2 }
 0x243   : > { %v14766_v50 = vpop.f32.mrf.mxu1  ;;  %v5415_v46 = vshrl.u32 %v13290_v43, 16 }
 0x244   : > { %12657 = vmatmul.mubr.bf16.gmra.mxu0 %v6095_v51  ;;  %v14780_v51 = vpop.f32.mrf.mxu0  ;;  %v4369_v26 = vsel %vm4334_vm5, %v4366_v58, %v4368_v25 }
 0x245   : > { %v14770_v8 = vpop.f32.mrf.mxu1  ;;  %12660 = vmatprep.mubr.bf16.mxu0 %v6097_v3  ;;  %v6099_v3 = vsel %vm6074_vm6, %v6096_v40, %v6098_v1  ;;  %v6102_v40 = vrot.slane %v13285_v16, 3  ;;  %v4367_v1 = vsel %vm4334_vm5, %v4364_v10, %v4366_v58  ;;  %v5409_v10 = vrot.slane %v5407_v24, 2  ;;  %v13292_v58 = vld [vmem:[#allocation2 + $0x98] sm:$0xff]  }
 0x247   : > { %v14774_v15 = vpop.f32.mrf.mxu1  ;;  %v6103_v60 = vsel %vm6074_vm6, %v6100_v21, %v6102_v40  ;;  %v5413_v24 = vor.u32 %v5412_v28, %v5409_v10 }
 0x248   : > { %17206 = vst [vmem:[#allocation40_spill] sm:$0xff] %v14774_v15  ;;  %v13293_v15 = vld [vmem:[#allocation2 + $0x20] sm:$0xff]  }
 0x249   : > { %v14777_v5 = vpop.f32.mrf.mxu1  ;;  %12509 = vmatmul.mubr.bf16.gmra.mxu1 %v4363_v18  ;;  %v14788_v18 = vld [vmem:[#allocation2 + $0x88] sm:$0xff]  }
 0x24a   : > { %12512 = vmatprep.mubr.bf16.mxu1 %v4365_v35  ;;  %v5418_v35 = vshll.u32 %v13290_v43, 16  ;;  %v6104_v36 = vrot.slane %v14788_v18, 3  ;;  %v5417_v43 = vrot.slane %v5415_v46, 2  ;;  %v13291_v18 = vld [vmem:[#allocation2 + $0x90] sm:$0xff]   ;;  %v5424_v46 = vshrl.u32 %v13293_v15, 16 }
 0x24b   : > { %v14782_v44 = vpop.f32.mrf.mxu1  ;;  %v6106_v21 = vrot.slane %v13291_v18, 3 }
 0x24c   : > { %v14785_v37 = vpop.f32.mrf.mxu0  ;;  %12661 = vmatmul.mubr.bf16.gmra.mxu0 %v6099_v3  ;;  %v13288_v3 = vld [vmem:[#allocation2 + $0x98] ss:$0 sps:$4 sm:$0x33]   ;;  %v5426_v32 = vrot.slane %v5424_v46, 2  ;;  %v5442_v46 = vshrl.u32 %v13296_v22, 16 }
 0x24d   : > { %v14790_v52 = vpop.f32.mrf.mxu1  ;;  %12664 = vmatprep.mubr.bf16.mxu0 %v6101_v19  ;;  %v5420_v19 = vrot.slane %v5418_v35, 3  ;;  %v4370_v53 = vrot.slane %v13288_v3, 2  ;;  %v5427_v35 = vshll.u32 %v13293_v15, 16  ;;  %v6108_v3 = vrot.slane %v13292_v58, 3 }
 0x24e   : > { %v14792_v39 = vpop.f32.mrf.mxu0  ;;  %v6107_v10 = vsel %vm6074_vm6, %v6104_v36, %v6106_v21  ;;  %v5444_v54 = vrot.slane %v5442_v46, 2 }
 0x24f   : > { %v14794_v63 = vpop.f32.mrf.mxu1  ;;  %v5429_v15 = vrot.slane %v5427_v35, 3  ;;  %v6109_v18 = vsel %vm6074_vm6, %v6106_v21, %v6108_v3  ;;  %v5445_v35 = vshll.u32 %v13296_v22, 16 }
 0x250   : > { %17207 = vst [vmem:[#allocation41_spill] sm:$0xff] %v14794_v63  ;;  %v14796_v23 = vpop.f32.mrf.mxu0 }
 0x251   : > { %v14800_v2 = vpop.f32.mrf.mxu1  ;;  %12513 = vmatmul.mubr.bf16.gmra.mxu1 %v4367_v1  ;;  %v6105_v1 = vsel %vm6074_vm6, %v6102_v40, %v6104_v36  ;;  %v4371_v40 = vsel %vm4334_vm5, %v4368_v25, %v4370_v53  ;;  %v13295_v25 = vld [vmem:[#allocation2 + $0xa0] ss:$0 sps:$4 sm:$0x77]   ;;  %v5430_v58 = vor.u32 %v5429_v15, %v5426_v32  ;;  %v5447_v21 = vrot.slane %v5445_v35, 3 }
 0x252   : > { %v14803_v63 = vpop.f32.mrf.mxu0  ;;  %12516 = vmatprep.mubr.bf16.mxu1 %v4369_v26  ;;  %v5421_v26 = vor.u32 %v5420_v19, %v5417_v43  ;;  %v5438_v19 = vrot.slane %v5436_v42, 3  ;;  %v6110_v36 = vrot.slane %v13295_v25, 3  ;;  %v13298_v32 = vld [vmem:[#allocation2 + $0x40] sm:$0xff]  }
 0x253   : > { %17208 = vst [vmem:[#allocation42_spill] sm:$0xff] %v14803_v63  ;;  %v14805_v16 = vpop.f32.mrf.mxu1  ;;  %v5433_v63 = vshrl.u32 %v13294_v48, 16  ;;  %v5460_v46 = vshrl.u32 %v13298_v32, 16  ;;  %v5463_v35 = vshll.u32 %v13298_v32, 16 }
 0x254   : > { %v14808_v11 = vpop.f32.mrf.mxu0  ;;  %12665 = vmatmul.mubr.bf16.gmra.mxu0 %v6103_v60  ;;  %v5422_v48 = vsel %vm5405_vm7, %v5413_v24, %v5421_v26  ;;  %v6111_v25 = vsel %vm6074_vm6, %v6108_v3, %v6110_v36 }
 0x255   : > { %v14811_v55 = vpop.f32.mrf.mxu1  ;;  %12668 = vmatprep.mubr.bf16.mxu0 %v6105_v1  ;;  %v5435_v43 = vrot.slane %v5433_v63, 2  ;;  %v13297_v1 = vld [vmem:[#allocation2 + $0x38] sm:$0xff]   ;;  %v5462_v36 = vrot.slane %v5460_v46, 2 }
 0x256   : > { %v14813_v47 = vpop.f32.mrf.mxu0  ;;  %v5451_v42 = vshrl.u32 %v13297_v1, 16 }
 0x257   : > { %v14815_v57 = vpop.f32.mrf.mxu1  ;;  %v5439_v63 = vor.u32 %v5438_v19, %v5435_v43 }
 0x258   : > { %17209 = vst [vmem:[#allocation43_spill] sm:$0xff] %v14815_v57  ;;  %v14817_v60 = vpop.f32.mrf.mxu0  ;;  %v5453_v43 = vrot.slane %v5451_v42, 2 }
 0x259   : > { %v14820_v9 = vpop.f32.mrf.mxu1  ;;  %12517 = vmatmul.mubr.bf16.gmra.mxu1 %v4371_v40  ;;  %v5454_v40 = vshll.u32 %v13297_v1, 16  ;;  %v5440_v22 = vsel %vm5405_vm7, %v5430_v58, %v5439_v63  ;;  %v13299_v1 = vld [vmem:[#allocation2 + $0x48] sm:$0xff]  }
 0x25a   : > { %v14823_v45 = vpop.f32.mrf.mxu0  ;;  %12588 = vmatprep.mubr.bf16.mxu1 %v5422_v48  ;;  %v5472_v42 = vshll.u32 %v13299_v1, 16 }
 0x25b   : > { %17210 = vst [vmem:[#allocation44_spill] sm:$0xff] %v14823_v45  ;;  %v14825_v28 = vpop.f32.mrf.mxu1  ;;  %v5456_v19 = vrot.slane %v5454_v40, 3 }
 0x25c   : > { %v14828_v53 = vpop.f32.mrf.mxu0  ;;  %12669 = vmatmul.mubr.bf16.gmra.mxu0 %v6107_v10  ;;  %v5431_v10 = vsel %vm5405_vm7, %v5421_v26, %v5430_v58  ;;  %v5448_v26 = vor.u32 %v5447_v21, %v5444_v54  ;;  %v5469_v58 = vshrl.u32 %v13299_v1, 16  ;;  %v5465_v54 = vrot.slane %v5463_v35, 3  ;;  %v13300_v21 = vld [vmem:[#allocation2 + $0x50] sm:$0xff]  }
 0x25d   : > { %v14831_v24 = vpop.f32.mrf.mxu1  ;;  %12672 = vmatprep.mubr.bf16.mxu0 %v6109_v18  ;;  %v5474_v1 = vrot.slane %v5472_v42, 3  ;;  %v5481_v46 = vshll.u32 %v13300_v21, 16 }
 0x25e   : > { %v14833_v48 = vpop.f32.mrf.mxu0  ;;  %v5449_v3 = vsel %vm5405_vm7, %v5439_v63, %v5448_v26  ;;  %v5466_v29 = vor.u32 %v5465_v54, %v5462_v36  ;;  %v5478_v63 = vshrl.u32 %v13300_v21, 16 }
 0x25f   : > { %v14835_v45 = vpop.f32.mrf.mxu1 }
 0x260   : > { %17211 = vst [vmem:[#allocation45_spill] sm:$0xff] %v14835_v45  ;;  %v14837_v57 = vpop.f32.mrf.mxu0 }
 0x261   : > { %v14840_v15 = vpop.f32.mrf.mxu1  ;;  %12589 = vmatmul.mubr.bf16.vlgmr.msra.gmra.mxu1 %v5431_v10  ;;  %v5457_v10 = vor.u32 %v5456_v19, %v5453_v43  ;;  %v5471_v19 = vrot.slane %v5469_v58, 2 }
 0x262   : > { %v14843_v18 = vpop.f32.mrf.mxu0  ;;  %12592 = vmatprep.mubr.bf16.mxu1 %v5440_v22 }
 0x263   : > { %17212 = vst [vmem:[#allocation46_spill] sm:$0xff] %v14843_v18  ;;  %v14845_v45 = vpop.f32.mrf.mxu1  ;;  %v5458_v43 = vsel %vm5405_vm7, %v5448_v26, %v5457_v10  ;;  %v5475_v59 = vor.u32 %v5474_v1, %v5471_v19  ;;  %v5467_v42 = vsel %vm5405_vm7, %v5457_v10, %v5466_v29  ;;  %v13303_v19 = vld [vmem:[#allocation2 + $0x68] sm:$0xff]  }
 0x264   : > { %v14848_v62 = vpop.f32.mrf.mxu0  ;;  %12673 = vmatmul.mubr.bf16.gmra.mxu0 %v6111_v25  ;;  %v13301_v25 = vld [vmem:[#allocation2 + $0x58] sm:$0xff]  }
 0x265   : > { %v14850_v17 = vpop.f32.mrf.mxu1  ;;  %12764 = vmatprep.mubr.msk.bf16.mxu0 %vm13852_vm0, %v14638_v6  ;;  %v5487_v14 = vshrl.u32 %v13301_v25, 16  ;;  %v5476_v36 = vsel %vm5405_vm7, %v5466_v29, %v5475_v59 }
 0x266   : > { %v14854_v40 = vpop.f32.mrf.mxu0 }
 0x267   : > { %v14856_v22 = vpop.f32.mrf.mxu1  ;;  %v5489_v54 = vrot.slane %v5487_v14, 2 }
 0x268   : > { %17213 = vst [vmem:[#allocation47_spill] sm:$0xff] %v14856_v22  ;;  %v14858_v18 = vpop.f32.mrf.mxu0 }
 0x269   : > { %v14861_v32 = vpop.f32.mrf.mxu1  ;;  %12593 = vmatmul.mubr.bf16.gmra.mxu1 %v5449_v3  ;;  %v5490_v3 = vshll.u32 %v13301_v25, 16 }
 0x26a   : > { %v14864_v6 = vpop.f32.mrf.mxu0  ;;  %12596 = vmatprep.mubr.bf16.mxu1 %v5458_v43  ;;  %v5480_v43 = vrot.slane %v5478_v63, 2 }
 0x26b   : > { %17214 = vst [vmem:[#allocation48_spill] sm:$0xff] %v14864_v6  ;;  %v14866_v34 = vpop.f32.mrf.mxu1  ;;  %v5483_v6 = vrot.slane %v5481_v46, 3  ;;  %v5492_v21 = vrot.slane %v5490_v3, 3 }
 0x26c   : > { %17215 = vst [vmem:[#allocation49_spill] sm:$0xff] %v14866_v34  ;;  %v14868_v22 = vpop.f32.mrf.mxu0  ;;  %v13302_v34 = vld [vmem:[#allocation2 + $0x60] sm:$0xff]  }
 0x26d   : > { %17216 = vst [vmem:[#allocation50_spill] sm:$0xff] %v14868_v22  ;;  %v14870_v35 = vpop.f32.mrf.mxu1  ;;  %v5496_v10 = vshrl.u32 %v13302_v34, 16  ;;  %v5499_v63 = vshll.u32 %v13302_v34, 16 }
 0x26e   : > { %17217 = vst [vmem:[#allocation51_spill] sm:$0xff] %v14870_v35  ;;  %v14872_v7 = vpop.f32.mrf.mxu0  ;;  %v5493_v35 = vor.u32 %v5492_v21, %v5489_v54  ;;  %v13305_v54 = vld [vmem:[#allocation2 + $0x78] sm:$0xff]  }
 0x26f   : > { %17218 = vst [vmem:[#allocation52_spill] sm:$0xff] %v14872_v7  ;;  %v14874_v26 = vpop.f32.mrf.mxu1 }
 0x270   : > { %17219 = vst [vmem:[#allocation53_spill] sm:$0xff] %v14874_v26  ;;  %v14876_v58 = vpop.f32.mrf.mxu0 }
 0x271   : > { %17220 = vst [vmem:[#allocation54_spill] sm:$0xff] %v14876_v58  ;;  %v14879_v22 = vpop.f32.mrf.mxu1  ;;  %12597 = vmatmul.mubr.bf16.gmra.mxu1 %v5467_v42  ;;  %v5484_v58 = vor.u32 %v5483_v6, %v5480_v43  ;;  %v5508_v42 = vshll.u32 %v13303_v19, 16 }
 0x272   : > { %17221 = vst [vmem:[#allocation55_spill] sm:$0xff] %v14879_v22  ;;  %v14882_v1 = vpop.f32.mrf.mxu0  ;;  %12600 = vmatprep.mubr.bf16.mxu1 %v5476_v36  ;;  %v5505_v22 = vshrl.u32 %v13303_v19, 16  ;;  %v5498_v36 = vrot.slane %v5496_v10, 2 }
 0x273   : > { %17222 = vst [vmem:[#allocation56_spill] sm:$0xff] %v14882_v1  ;;  %v14884_v25 = vpop.f32.mrf.mxu1  ;;  %v5485_v3 = vsel %vm5405_vm7, %v5475_v59, %v5484_v58  ;;  %v5501_v1 = vrot.slane %v5499_v63, 3  ;;  %v5494_v34 = vsel %vm5405_vm7, %v5484_v58, %v5493_v35  ;;  %v5510_v43 = vrot.slane %v5508_v42, 3 }
 0x274   : > { %17223 = vst [vmem:[#allocation57_spill] sm:$0xff] %v14884_v25  ;;  %v14886_v26 = vpop.f32.mrf.mxu0  ;;  %v13304_v25 = vld [vmem:[#allocation2 + $0x70] sm:$0xff]   ;;  %v5507_v6 = vrot.slane %v5505_v22, 2 }
 0x275   : > { %17224 = vst [vmem:[#allocation58_spill] sm:$0xff] %v14886_v26  ;;  %v14888_v46 = vpop.f32.mrf.mxu1  ;;  %v5514_v59 = vshrl.u32 %v13304_v25, 16  ;;  %v5517_v10 = vshll.u32 %v13304_v25, 16 }
 0x276   : > { %17225 = vst [vmem:[#allocation59_spill] sm:$0xff] %v14888_v46  ;;  %v14890_v7 = vpop.f32.mrf.mxu0  ;;  %v5511_v46 = vor.u32 %v5510_v43, %v5507_v6  ;;  %v13307_v6 = vld [vmem:[#allocation2 + $0x88] sm:$0xff]  }
 0x277   : > { %17226 = vst [vmem:[#allocation60_spill] sm:$0xff] %v14890_v7  ;;  %v14892_v14 = vpop.f32.mrf.mxu1 }
 0x278   : > { %17227 = vst [vmem:[#allocation61_spill] sm:$0xff] %v14892_v14  ;;  %v14894_v29 = vpop.f32.mrf.mxu0 }
 0x279   : > { %17228 = vst [vmem:[#allocation62_spill] sm:$0xff] %v14894_v29  ;;  %v14897_v26 = vpop.f32.mrf.mxu1  ;;  %12601 = vmatmul.mubr.bf16.gmra.mxu1 %v5485_v3  ;;  %v5502_v29 = vor.u32 %v5501_v1, %v5498_v36  ;;  %v5526_v3 = vshll.u32 %v13305_v54, 16 }
 0x27a   : > { %17229 = vst [vmem:[#allocation63_spill] sm:$0xff] %v14897_v26  ;;  %v14900_v21 = vpop.f32.mrf.mxu0  ;;  %12604 = vmatprep.mubr.bf16.mxu1 %v5494_v34  ;;  %v5523_v26 = vshrl.u32 %v13305_v54, 16  ;;  %v5516_v34 = vrot.slane %v5514_v59, 2 }
 0x27b   : > { %17230 = vst [vmem:[#allocation64_spill] sm:$0xff] %v14900_v21  ;;  %v14902_v19 = vpop.f32.mrf.mxu1  ;;  %v5503_v42 = vsel %vm5405_vm7, %v5493_v35, %v5502_v29  ;;  %v5519_v21 = vrot.slane %v5517_v10, 3  ;;  %v5512_v1 = vsel %vm5405_vm7, %v5502_v29, %v5511_v46  ;;  %v5528_v36 = vrot.slane %v5526_v3, 3  ;;  %v13308_v29 = vld [vmem:[#allocation2 + $0x90] sm:$0xff]  }
 0x27c   : > { %17231 = vst [vmem:[#allocation65_spill] sm:$0xff] %v14902_v19  ;;  %v14904_v14 = vpop.f32.mrf.mxu0  ;;  %v13306_v19 = vld [vmem:[#allocation2 + $0x80] sm:$0xff]   ;;  %v5525_v25 = vrot.slane %v5523_v26, 2 }
 0x27d   : > { %17232 = vst [vmem:[#allocation66_spill] sm:$0xff] %v14904_v14  ;;  %v14906_v63 = vpop.f32.mrf.mxu1  ;;  %v5532_v35 = vshrl.u32 %v13306_v19, 16  ;;  %v5535_v59 = vshll.u32 %v13306_v19, 16 }
 0x27e   : > { %17233 = vst [vmem:[#allocation67_spill] sm:$0xff] %v14906_v63  ;;  %v14908_v7 = vpop.f32.mrf.mxu0  ;;  %v5529_v63 = vor.u32 %v5528_v36, %v5525_v25  ;;  %v13309_v36 = vld [vmem:[#allocation2 + $0x98] sm:$0xff]  }
 0x27f   : > { %17234 = vst [vmem:[#allocation68_spill] sm:$0xff] %v14908_v7  ;;  %v14910_v22 = vpop.f32.mrf.mxu1 }
 0x280   : > { %17235 = vst [vmem:[#allocation69_spill] sm:$0xff] %v14910_v22  ;;  %v14912_v58 = vpop.f32.mrf.mxu0 }
 0x281   : > { %17236 = vst [vmem:[#allocation70_spill] sm:$0xff] %v14912_v58  ;;  %v14915_v14 = vpop.f32.mrf.mxu1  ;;  %12605 = vmatmul.mubr.bf16.gmra.mxu1 %v5503_v42  ;;  %v5520_v58 = vor.u32 %v5519_v21, %v5516_v34  ;;  %v5544_v42 = vshll.u32 %v13307_v6, 16 }
 0x282   : > { %17237 = vst [vmem:[#allocation71_spill] sm:$0xff] %v14915_v14  ;;  %v14918_v43 = vpop.f32.mrf.mxu0  ;;  %12608 = vmatprep.mubr.bf16.mxu1 %v5512_v1  ;;  %v5541_v14 = vshrl.u32 %v13307_v6, 16 }
 0x283   : > { %17238 = vst [vmem:[#allocation72_spill] sm:$0xff] %v14918_v43  ;;  %v14920_v54 = vpop.f32.mrf.mxu1  ;;  %v5521_v1 = vsel %vm5405_vm7, %v5511_v46, %v5520_v58  ;;  %v5530_v19 = vsel %vm5405_vm7, %v5520_v58, %v5529_v63  ;;  %v5546_v25 = vrot.slane %v5544_v42, 3  ;;  %v5550_v46 = vshrl.u32 %v13308_v29, 16 }
 0x284   : > { %17239 = vst [vmem:[#allocation73_spill] sm:$0xff] %v14920_v54  ;;  %v14922_v22 = vpop.f32.mrf.mxu0  ;;  %v5534_v54 = vrot.slane %v5532_v35, 2  ;;  %v5543_v34 = vrot.slane %v5541_v14, 2  ;;  %v5553_v35 = vshll.u32 %v13308_v29, 16 }
 0x285   : > { %17240 = vst [vmem:[#allocation74_spill] sm:$0xff] %v14922_v22  ;;  %v14924_v10 = vpop.f32.mrf.mxu1  ;;  %v5537_v22 = vrot.slane %v5535_v59, 3 }
 0x286   : > { %17241 = vst [vmem:[#allocation75_spill] sm:$0xff] %v14924_v10  ;;  %v14926_v7 = vpop.f32.mrf.mxu0 }
 0x287   : > { %v2311_v26 = vpop.f32.mrf.mxu1  ;;  %v5538_v14 = vor.u32 %v5537_v22, %v5534_v54  ;;  %v5552_v22 = vrot.slane %v5550_v46, 2  ;;  %v13310_v54 = vld [vmem:[#allocation2 + $0xa0] ss:$0 sps:$4 sm:$0x77]  }
 0x288   : > { %v2404_v3 = vadd.f32 %v2311_v26, %v14758_v31  ;;  %v14929_v43 = vpop.f32.mrf.mxu0  ;;  %v2341_v26 = vld [vmem:[#allocation3 + $0x10] sm:$0xff] }
 0x289   : > { %17242 = vst [vmem:[#allocation76_spill] sm:$0xff] %v14929_v43  ;;  %v12310_v21 = vpop.f32.mrf.mxu1  ;;  %12609 = vmatmul.mubr.bf16.gmra.mxu1 %v5521_v1  ;;  %v2377_v59 = vadd.f32 %v14777_v5, %v2341_v26 }
 0x28a   : > { %v2409_v6 = vadd.f32 %v12310_v21, %v14761_v4  ;;  %v14934_v10 = vpop.f32.mrf.mxu0  ;;  %12612 = vmatprep.mubr.bf16.mxu1 %v5530_v19  ;;  %v14937_v31 = vadd.f32 %v14780_v51, %v2404_v3  ;;  %v2339_v4 = vld [vmem:[#allocation3] sm:$0xff]  ;;  %v5547_v19 = vor.u32 %v5546_v25, %v5543_v34  ;;  %v5562_v51 = vshll.u32 %v13309_v36, 16 }
 0x28b   : > { %17243 = vst [vmem:[#allocation77_spill] sm:$0xff] %v14934_v10  ;;  %v2324_v43 = vpop.f32.mrf.mxu1  ;;  %v5559_v10 = vshrl.u32 %v13309_v36, 16  ;;  %v2375_v3 = vadd.f32 %v2339_v4, %v14782_v44  ;;  %v2913_v25 = vadd.f32 %v14567_v56, %v2377_v59  ;;  %v5539_v44 = vsel %vm5405_vm7, %v5529_v63, %v5538_v14  ;;  %v2345_v4 = vld [vmem:[#allocation3 + $0x30] sm:$0xff] }
 0x28c   : > { %17244 = vst [vmem:[#allocation78_spill] sm:$0xff] %v14937_v31  ;;  %v2407_v1 = vadd.f32 %v2324_v43, %v14766_v50  ;;  %v14941_v58 = vpop.f32.mrf.mxu0  ;;  %v14944_v42 = vadd.f32 %v14785_v37, %v2409_v6  ;;  %v2342_v50 = vld [vmem:[#allocation3 + $0x18] sm:$0xff]  ;;  %v5555_v37 = vrot.slane %v5553_v35, 3  ;;  %v5568_v59 = vshrl.u32 %v13310_v54, 16 }
 0x28d   : > { %v12311_v21 = vpop.f32.mrf.mxu1  ;;  %v2378_v6 = vadd.f32 %v14790_v52, %v2342_v50  ;;  %v5561_v26 = vrot.slane %v5559_v10, 2  ;;  %v2911_v52 = vadd.f32 %v14578_v0, %v2375_v3  ;;  %v5571_v63 = vshll.u32 %v13310_v54, 16 }
 0x28e   : > { %v2410_v31 = vadd.f32 %v12311_v21, %v14770_v8  ;;  %v14948_v29 = vpop.f32.mrf.mxu0  ;;  %v14951_v5 = vadd.f32 %v14792_v39, %v2407_v1  ;;  %v5548_v39 = vsel %vm5405_vm7, %v5538_v14, %v5547_v19  ;;  %v5564_v1 = vrot.slane %v5562_v51, 3  ;;  %v2343_v51 = vld [vmem:[#allocation3 + $0x20] sm:$0xff] }
 0x28f   : > { %v14953_v43 = vpop.f32.mrf.mxu1  ;;  %v5556_v56 = vor.u32 %v5555_v37, %v5552_v22  ;;  %v2914_v14 = vadd.f32 %v14591_v12, %v2378_v6  ;;  %v2379_v0 = vadd.f32 %v2343_v51, %v14805_v16  ;;  %v5570_v54 = vrot.slane %v5568_v59, 2 }
 0x290   : > { %17245 = vst [vmem:[#allocation79_spill] sm:$0xff] %v14953_v43  ;;  %v14956_v34 = vpop.f32.mrf.mxu0  ;;  %v14961_v8 = vadd.f32 %v14796_v23, %v2410_v31  ;;  %v2381_v23 = vadd.f32 %v14800_v2, %v2345_v4  ;;  %v2346_v2 = vld [vmem:[#allocation3 + $0x38] sm:$0xff] }
 0x291   : > { %v12382_v36 = vpop.f32.mrf.mxu1  ;;  %12613 = vmatmul.mubr.bf16.gmra.mxu1 %v5539_v44  ;;  %v5565_v44 = vor.u32 %v5564_v1, %v5561_v26  ;;  %v2382_v12 = vadd.f32 %v14811_v55, %v2346_v2  ;;  %v5557_v26 = vsel %vm5405_vm7, %v5547_v19, %v5556_v56  ;;  %v2915_v4 = vadd.f32 %v14617_v38, %v2379_v0  ;;  %v2349_v55 = vld [vmem:[#allocation3 + $0x50] sm:$0xff]  ;;  %v2350_v0 = vld [vmem:[#allocation3 + $0x58] sm:$0xff] }
 0x292   : > { %v3448_v46 = vadd.f32 %v12382_v36, %v2913_v25  ;;  %v14964_v35 = vpop.f32.mrf.mxu0  ;;  %12616 = vmatprep.mubr.bf16.mxu1 %v5548_v39  ;;  %v5573_v39 = vrot.slane %v5571_v63, 3  ;;  %v2917_v6 = vadd.f32 %v14605_v30, %v2381_v23  ;;  %v2385_v30 = vadd.f32 %v14820_v9, %v2349_v55 }
 0x293   : > { %17246 = vst [vmem:[#allocation80_spill] sm:$0xff] %v14964_v35  ;;  %v3267_v21 = vpop.f32.mrf.mxu1  ;;  %v17276_v35 = vld [vmem:[#allocation23_spill] sm:$0xff] }
 0x294   : > { %v3446_v31 = vadd.f32 %v3267_v21, %v2911_v52  ;;  %v14968_v50 = vpop.f32.mrf.mxu0  ;;  %v14972_v10 = vadd.f32 %v14808_v11, %v3448_v46  ;;  %v5574_v59 = vor.u32 %v5573_v39, %v5570_v54 }
 0x295   : > { %v12383_v25 = vpop.f32.mrf.mxu1 }
 0x296   : > { %v3449_v3 = vadd.f32 %v12383_v25, %v2914_v14  ;;  %v14975_v36 = vpop.f32.mrf.mxu0  ;;  %v14978_v22 = vadd.f32 %v14813_v47, %v3446_v31  ;;  %v5566_v47 = vsel %vm5405_vm7, %v5556_v56, %v5565_v44  ;;  %v2347_v56 = vld [vmem:[#allocation3 + $0x40] sm:$0xff] }
 0x297   : > { %v14980_v37 = vpop.f32.mrf.mxu1  ;;  %v2383_v14 = vadd.f32 %v2347_v56, %v14825_v28  ;;  %v13311_v28 = vld [vmem:[%s17163_s6 + $0x38] sm:$0xff]  }
 0x298   : > { %17247 = vst [vmem:[#allocation81_spill] sm:$0xff] %v14980_v37  ;;  %v14983_v11 = vpop.f32.mrf.mxu0  ;;  %v14988_v16 = vadd.f32 %v14817_v60, %v3449_v3  ;;  %v2918_v60 = vadd.f32 %v14625_v27, %v2382_v12  ;;  %v2386_v3 = vadd.f32 %v14831_v24, %v2350_v0  ;;  %v2921_v27 = vadd.f32 %v14634_v61, %v2385_v30  ;;  %v2353_v61 = vld [vmem:[#allocation3 + $0x70] sm:$0xff] }
 0x299   : > { %v12386_v1 = vpop.f32.mrf.mxu1  ;;  %12617 = vmatmul.mubr.bf16.gmra.mxu1 %v5557_v26  ;;  %v2919_v24 = vadd.f32 %v14642_v20, %v2383_v14  ;;  %v2351_v20 = vld [vmem:[#allocation3 + $0x60] sm:$0xff] }
 0x29a   : > { %v3452_v46 = vadd.f32 %v12386_v1, %v2917_v6  ;;  %v14991_v52 = vpop.f32.mrf.mxu0  ;;  %12620 = vmatprep.mubr.bf16.mxu1 %v5566_v47  ;;  %12677 = vmatpush3.bf16.msra.mxu1 %v13311_v28  ;;  %v15023_v6 = vld [vmem:[#allocation4] sm:$0xff]  ;;  %v2922_v47 = vadd.f32 %v14645_v13, %v2386_v3  ;;  %v2387_v55 = vadd.f32 %v2351_v20, %v14845_v45 }
 0x29b   : > { %17248 = vst [vmem:[#allocation82_spill] sm:$0xff] %v14991_v52  ;;  %v3283_v21 = vpop.f32.mrf.mxu1  ;;  %17251 = vst [vmem:[#allocation85_spill] sm:$0xff] %v15023_v6  ;;  %12678 = vmatprep.subr.bf16.mxu1 %v15023_v6  ;;  %v17254_v28 = vld [vmem:[#allocation50_spill] sm:$0xff] }
 0x29c   : > { %v3450_v63 = vadd.f32 %v3283_v21, %v2915_v4  ;;  %v14995_v19 = vpop.f32.mrf.mxu0  ;;  %v14999_v23 = vadd.f32 %v14828_v53, %v3452_v46  ;;  %v5575_v53 = vsel %vm5405_vm7, %v5565_v44, %v5574_v59  ;;  %v2389_v44 = vadd.f32 %v14840_v15, %v2353_v61  ;;  %v17294_v52 = vld [vmem:[#allocation74_spill] sm:$0xff] }
 0x29d   : > { %v12387_v31 = vpop.f32.mrf.mxu1 }
 0x29e   : > { %v3453_v51 = vadd.f32 %v12387_v31, %v2918_v60  ;;  %v15002_v25 = vpop.f32.mrf.mxu0  ;;  %v15005_v38 = vadd.f32 %v14833_v48, %v3450_v63  ;;  %v2354_v63 = vld [vmem:[#allocation3 + $0x78] sm:$0xff]  ;;  %v2925_v13 = vadd.f32 %v14653_v33, %v2389_v44 }
 0x29f   : > { %v15007_v9 = vpop.f32.mrf.mxu1  ;;  %v2390_v60 = vadd.f32 %v14850_v17, %v2354_v63 }
 0x2a0   : > { %17249 = vst [vmem:[#allocation83_spill] sm:$0xff] %v15007_v9  ;;  %v15010_v2 = vpop.f32.mrf.mxu0  ;;  %v15015_v54 = vadd.f32 %v14837_v57, %v3453_v51  ;;  %v2923_v51 = vadd.f32 %v14657_v41, %v2387_v55  ;;  %v17256_v41 = vld [vmem:[#allocation52_spill] sm:$0xff] }
 0x2a1   : > { %v12390_v48 = vpop.f32.mrf.mxu1  ;;  %12621 = vmatmul.mubr.bf16.gmra.mxu1 %v5575_v53  ;;  %v2926_v17 = vadd.f32 %v14661_v49, %v2390_v60  ;;  %v17259_v49 = vld [vmem:[#allocation16_spill] sm:$0xff] }
 0x2a2   : > { %v3456_v39 = vadd.f32 %v12390_v48, %v2921_v27  ;;  %v15020_v12 = vpop.f32.mrf.mxu0  ;;  %12692 = vmatprep.mubr.msk.bf16.mxu1 %vm13852_vm0, %v15023_v6 }
 0x2a3   : > { %17250 = vst [vmem:[#allocation84_spill] sm:$0xff] %v15020_v12  ;;  %v3299_v57 = vpop.f32.mrf.mxu1 }
 0x2a4   : > { %v3454_v26 = vadd.f32 %v3299_v57, %v2919_v24  ;;  %v15029_v1 = vpop.f32.mrf.mxu0  ;;  %v15033_v46 = vadd.f32 %v14848_v62, %v3456_v39  ;;  %v17255_v39 = vld [vmem:[#allocation49_spill] sm:$0xff] }
 0x2a5   : > { %v12391_v4 = vpop.f32.mrf.mxu1 }
 0x2a6   : > { %v3457_v21 = vadd.f32 %v12391_v4, %v2922_v47  ;;  %v15036_v59 = vpop.f32.mrf.mxu0  ;;  %v15039_v30 = vadd.f32 %v14854_v40, %v3454_v26  ;;  %v2357_v40 = vld [vmem:[#allocation3 + $0x90] sm:$0xff]  ;;  %v2358_v26 = vld [vmem:[#allocation3 + $0x98] sm:$0xff] }
 0x2a7   : > { %v15041_v15 = vpop.f32.mrf.mxu1  ;;  %v2393_v3 = vadd.f32 %v14861_v32, %v2357_v40  ;;  %v17258_v47 = vld [vmem:[#allocation51_spill] sm:$0xff] }
 0x2a8   : > { %17252 = vst [vmem:[#allocation86_spill] sm:$0xff] %v15041_v15  ;;  %v15044_v56 = vpop.f32.mrf.mxu0  ;;  %v15048_v62 = vadd.f32 %v14858_v18, %v3457_v21  ;;  %v2355_v18 = vld [vmem:[#allocation3 + $0x80] sm:$0xff]  ;;  %v2394_v20 = vadd.f32 %v17258_v47, %v2358_v26 }
 0x2a9   : > { %v12394_v31 = vpop.f32.mrf.mxu1  ;;  %v2391_v24 = vadd.f32 %v2355_v18, %v17255_v39  ;;  %v2929_v55 = vadd.f32 %v17259_v49, %v2393_v3  ;;  %v17260_v21 = vld [vmem:[#allocation54_spill] sm:$0xff]  ;;  %v17267_v49 = vld [vmem:[#allocation57_spill] sm:$0xff] }
 0x2aa   : > { %v3460_v45 = vadd.f32 %v12394_v31, %v2925_v13  ;;  %v15050_v14 = vpop.f32.mrf.mxu0  ;;  %v2359_v26 = vld [vmem:[#allocation3 + $0xa0] sm:$0xff] }
 0x2ab   : > { %17253 = vst [vmem:[#allocation87_spill] sm:$0xff] %v15050_v14  ;;  %v3315_v0 = vpop.f32.mrf.mxu1  ;;  %v17279_v15 = vld [vmem:[#allocation66_spill] sm:$0xff] }
 0x2ac   : > { %v3458_v27 = vadd.f32 %v3315_v0, %v2923_v51  ;;  %v15054_v53 = vpop.f32.mrf.mxu0  ;;  %v15058_v33 = vadd.f32 %v17254_v28, %v3460_v45  ;;  %v17262_v45 = vld [vmem:[#allocation17_spill] sm:$0xff]  ;;  %v17263_v0 = vld [vmem:[#allocation14_spill] sm:$0xff] }
 0x2ad   : > { %v12395_v48 = vpop.f32.mrf.mxu1  ;;  %v2927_v51 = vadd.f32 %v17262_v45, %v2391_v24  ;;  %v2395_v24 = vadd.f32 %v2359_v26, %v17267_v49 }
 0x2ae   : > { %v3461_v61 = vadd.f32 %v12395_v48, %v2926_v17  ;;  %v15061_v57 = vpop.f32.mrf.mxu0  ;;  %v15064_v44 = vadd.f32 %v17256_v41, %v3458_v27  ;;  %v17264_v27 = vld [vmem:[#allocation55_spill] sm:$0xff]  ;;  %v17265_v48 = vld [vmem:[#allocation18_spill] sm:$0xff] }
 0x2af   : > { %v15066_v32 = vpop.f32.mrf.mxu1  ;;  %v2397_v17 = vadd.f32 %v17264_v27, %v17263_v0  ;;  %v2930_v39 = vadd.f32 %v17265_v48, %v2394_v20  ;;  %v17266_v41 = vld [vmem:[#allocation58_spill] sm:$0xff]  ;;  %v17270_v20 = vld [vmem:[#allocation19_spill] sm:$0xff]  ;;  %v17272_v27 = vld [vmem:[#allocation21_spill] sm:$0xff] }
 0x2b0   : > { %17257 = vst [vmem:[#allocation50_spill] sm:$0xff] %v15066_v32  ;;  %v15069_v4 = vpop.f32.mrf.mxu0  ;;  %v15073_v63 = vadd.f32 %v17260_v21, %v3461_v61  ;;  %v13312_v61 = vld [vmem:[%s17163_s6 + $0x30] sm:$0xff]  }
 0x2b1   : > { %v12398_v60 = vpop.f32.mrf.mxu1  ;;  %12679 = vmatpush3.bf16.msra.mxu1 %v13312_v61  ;;  %v2933_v48 = vadd.f32 %v17272_v27, %v2397_v17  ;;  %v17280_v27 = vld [vmem:[#allocation25_spill] sm:$0xff] }
 0x2b2   : > { %v3464_v13 = vadd.f32 %v12398_v60, %v2929_v55  ;;  %v15075_v31 = vpop.f32.mrf.mxu0  ;;  %v17268_v60 = vld [vmem:[#allocation60_spill] sm:$0xff]  ;;  %12680 = vmatprep.subr.bf16.mxu1 %v15023_v6 }
 0x2b3   : > { %17261 = vst [vmem:[#allocation49_spill] sm:$0xff] %v15075_v31  ;;  %v3331_v40 = vpop.f32.mrf.mxu1 }
 0x2b4   : > { %v3462_v28 = vadd.f32 %v3331_v40, %v2927_v51  ;;  %v15080_v18 = vpop.f32.mrf.mxu0  ;;  %v15084_v3 = vadd.f32 %v17266_v41, %v3464_v13  ;;  %v17271_v13 = vld [vmem:[#allocation59_spill] sm:$0xff]  ;;  %v17273_v41 = vld [vmem:[#allocation62_spill] sm:$0xff] }
 0x2b5   : > { %v12399_v47 = vpop.f32.mrf.mxu1  ;;  %v2398_v40 = vadd.f32 %v17271_v13, %v17270_v20  ;;  %v17278_v20 = vld [vmem:[#allocation26_spill] sm:$0xff] }
 0x2b6   : > { %v3465_v55 = vadd.f32 %v12399_v47, %v2930_v39  ;;  %v15090_v21 = vpop.f32.mrf.mxu0  ;;  %v15093_v45 = vadd.f32 %v17268_v60, %v3462_v28  ;;  %v17275_v28 = vld [vmem:[#allocation24_spill] sm:$0xff] }
 0x2b7   : > { %v15095_v51 = vpop.f32.mrf.mxu1  ;;  %v2931_v61 = vadd.f32 %v17275_v28, %v2395_v24  ;;  %v2934_v13 = vadd.f32 %v17278_v20, %v2398_v40  ;;  %v17282_v24 = vld [vmem:[#allocation68_spill] sm:$0xff]  ;;  %v17286_v40 = vld [vmem:[#allocation29_spill] sm:$0xff] }
 0x2b8   : > { %17269 = vst [vmem:[#allocation52_spill] sm:$0xff] %v15095_v51  ;;  %v15100_v0 = vpop.f32.mrf.mxu0  ;;  %v15104_v26 = vadd.f32 %v17273_v41, %v3465_v55  ;;  %v17277_v51 = vld [vmem:[#allocation63_spill] sm:$0xff]  ;;  %v17281_v41 = vld [vmem:[#allocation65_spill] sm:$0xff] }
 0x2b9   : > { %v12402_v39 = vpop.f32.mrf.mxu1  ;;  %v2401_v31 = vadd.f32 %v17277_v51, %v17276_v35  ;;  %v17284_v35 = vld [vmem:[#allocation27_spill] sm:$0xff] }
 0x2ba   : > { %v3468_v47 = vadd.f32 %v12402_v39, %v2933_v48  ;;  %v15106_v49 = vpop.f32.mrf.mxu0  ;;  %v2399_v48 = vadd.f32 %v17281_v41, %v17280_v27  ;;  %v17285_v51 = vld [vmem:[#allocation67_spill] sm:$0xff]  ;;  %v17290_v41 = vld [vmem:[#allocation32_spill] sm:$0xff] }
 0x2bb   : > { %17274 = vst [vmem:[#allocation51_spill] sm:$0xff] %v15106_v49  ;;  %v3347_v60 = vpop.f32.mrf.mxu1 }
 0x2bc   : > { %v3466_v32 = vadd.f32 %v3347_v60, %v2931_v61  ;;  %v15111_v14 = vpop.f32.mrf.mxu0  ;;  %v15115_v17 = vadd.f32 %v17279_v15, %v3468_v47  ;;  %v2402_v61 = vadd.f32 %v17285_v51, %v17284_v35  ;;  %v2937_v15 = vadd.f32 %v17286_v40, %v2401_v31  ;;  %v17287_v47 = vld [vmem:[#allocation70_spill] sm:$0xff]  ;;  %v17291_v35 = vld [vmem:[#allocation31_spill] sm:$0xff] }
 0x2bd   : > { %v12403_v55 = vpop.f32.mrf.mxu1  ;;  %v17292_v51 = vld [vmem:[#allocation71_spill] sm:$0xff] }
 0x2be   : > { %v3469_v39 = vadd.f32 %v12403_v55, %v2934_v13  ;;  %v15119_v49 = vpop.f32.mrf.mxu0  ;;  %v15122_v28 = vadd.f32 %v17282_v24, %v3466_v32  ;;  %v13313_v13 = vld [vmem:[%s17163_s6 + $0x28] sm:$0xff]   ;;  %v2935_v24 = vadd.f32 %v17290_v41, %v2399_v48  ;;  %v2405_v31 = vadd.f32 %v17292_v51, %v17291_v35 }
 0x2bf   : > { %v15124_v12 = vpop.f32.mrf.mxu1  ;;  %12681 = vmatpush3.bf16.msra.mxu1 %v13313_v13 }
 0x2c0   : > { %17283 = vst [vmem:[#allocation16_spill] sm:$0xff] %v15124_v12  ;;  %v15128_v60 = vpop.f32.mrf.mxu0  ;;  %v15132_v20 = vadd.f32 %v17287_v47, %v3469_v39  ;;  %12682 = vmatprep.subr.bf16.mxu1 %v15023_v6  ;;  %v17293_v47 = vld [vmem:[#allocation34_spill] sm:$0xff] }
 0x2c1   : > { %v12406_v55 = vpop.f32.mrf.mxu1  ;;  %v2938_v9 = vadd.f32 %v17293_v47, %v2402_v61  ;;  %v17300_v61 = vld [vmem:[#allocation37_spill] sm:$0xff] }
 0x2c2   : > { %17288 = vst [vmem:[#allocation54_spill] sm:$0xff] %v15132_v20  ;;  %v3472_v27 = vadd.f32 %v12406_v55, %v2937_v15  ;;  %v15137_v32 = vpop.f32.mrf.mxu0  ;;  %v17295_v55 = vld [vmem:[#allocation33_spill] sm:$0xff] }
 0x2c3   : > { %17289 = vst [vmem:[#allocation17_spill] sm:$0xff] %v15137_v32  ;;  %v3363_v12 = vpop.f32.mrf.mxu1  ;;  %v17296_v32 = vld [vmem:[#allocation73_spill] sm:$0xff] }
 0x2c4   : > { %v3470_v40 = vadd.f32 %v3363_v12, %v2935_v24  ;;  %v15143_v39 = vpop.f32.mrf.mxu0  ;;  %v15147_v37 = vadd.f32 %v17294_v52, %v3472_v27  ;;  %v2403_v43 = vadd.f32 %v17296_v32, %v17295_v55  ;;  %v17298_v12 = vld [vmem:[#allocation35_spill] sm:$0xff]  ;;  %v2941_v52 = vadd.f32 %v17300_v61, %v2405_v31  ;;  %v17301_v27 = vld [vmem:[#allocation76_spill] sm:$0xff]  ;;  %v17303_v55 = vld [vmem:[#allocation38_spill] sm:$0xff] }
 0x2c5   : > { %v12407_v15 = vpop.f32.mrf.mxu1  ;;  %v17299_v24 = vld [vmem:[#allocation75_spill] sm:$0xff] }
 0x2c6   : > { %v3473_v48 = vadd.f32 %v12407_v15, %v2938_v9  ;;  %v15151_v13 = vpop.f32.mrf.mxu0  ;;  %v15154_v41 = vadd.f32 %v14926_v7, %v3470_v40  ;;  %v2406_v35 = vadd.f32 %v17299_v24, %v17298_v12  ;;  %v13314_v9 = vld [vmem:[%s17163_s6 + $0xb8] sm:$0xff]   ;;  %v13316_v7 = vld [vmem:[%s17163_s6 + $0x20] sm:$0xff]   ;;  %v2939_v12 = vadd.f32 %v17303_v55, %v2403_v43  ;;  %v13315_v31 = vld [vmem:[%s17163_s6 + $0xb0] sm:$0xff]  }
 0x2c7   : > { %v15156_v20 = vpop.f32.mrf.mxu1  ;;  %12749 = vmatpush3.bf16.msra.mxu0 %v13314_v9  ;;  %12683 = vmatpush3.bf16.msra.mxu1 %v13316_v7  ;;  %v13317_v7 = vld [vmem:[%s17163_s6 + $0xa8] sm:$0xff]  }
 0x2c8   : > { %17297 = vst [vmem:[#allocation14_spill] sm:$0xff] %v15156_v20  ;;  %v15160_v51 = vpop.f32.mrf.mxu0  ;;  %v15164_v47 = vadd.f32 %v17301_v27, %v3473_v48  ;;  %12750 = vmatprep.subr.bf16.mxu0 %v15023_v6  ;;  %12684 = vmatprep.subr.bf16.mxu1 %v15023_v6  ;;  %v17304_v27 = vld [vmem:[#allocation39_spill] sm:$0xff] }
 0x2c9   : > { %v12410_v32 = vpop.f32.mrf.mxu1 }
 0x2ca   : > { %v3476_v40 = vadd.f32 %v12410_v32, %v2941_v52  ;;  %v15172_v15 = vpop.f32.mrf.mxu0  ;;  %v2942_v52 = vadd.f32 %v17304_v27, %v2406_v35 }
 0x2cb   : > { %17302 = vst [vmem:[#allocation55_spill] sm:$0xff] %v15172_v15  ;;  %v3379_v48 = vpop.f32.mrf.mxu1  ;;  %12751 = vmatpush3.bf16.msra.mxu0 %v13315_v31 }
 0x2cc   : > { %v3474_v24 = vadd.f32 %v3379_v48, %v2939_v12  ;;  %v15180_v61 = vpop.f32.mrf.mxu0  ;;  %v15184_v32 = vadd.f32 %v14941_v58, %v3476_v40  ;;  %12752 = vmatprep.subr.bf16.mxu0 %v15023_v6 }
 0x2cd   : > { %v12411_v43 = vpop.f32.mrf.mxu1 }
 0x2ce   : > { %v3477_v9 = vadd.f32 %v12411_v43, %v2942_v52  ;;  %v15186_v55 = vpop.f32.mrf.mxu0  ;;  %v15189_v15 = vadd.f32 %v14948_v29, %v3474_v24 }
 0x2cf   : > { %v15194_v12 = vpop.f32.mrf.mxu1  ;;  %12753 = vmatpush3.bf16.msra.mxu0 %v13317_v7 }
 0x2d0   : > { %17305 = vst [vmem:[#allocation18_spill] sm:$0xff] %v15194_v12  ;;  %v15197_v35 = vpop.f32.mrf.mxu0  ;;  %v15200_v58 = vadd.f32 %v14956_v34, %v3477_v9  ;;  %12754 = vmatprep.subr.bf16.mxu0 %v15023_v6  ;;  %v13318_v34 = vld [vmem:[%s17163_s6 + $0xa0] sm:$0xff]  }
 0x2d1   : > { %v12414_v40 = vpop.f32.mrf.mxu1 }
 0x2d2   : > { %v3480_v48 = vadd.f32 %v12414_v40, %v14944_v42  ;;  %v15203_v27 = vpop.f32.mrf.mxu0  ;;  %v13319_v42 = vld [vmem:[%s17163_s6 + $0x18] sm:$0xff]  }
 0x2d3   : > { %17306 = vst [vmem:[#allocation58_spill] sm:$0xff] %v15203_v27  ;;  %v3395_v29 = vpop.f32.mrf.mxu1  ;;  %12755 = vmatpush3.bf16.msra.mxu0 %v13318_v34  ;;  %12685 = vmatpush3.bf16.msra.mxu1 %v13319_v42 }
 0x2d4   : > { %v3478_v31 = vadd.f32 %v3395_v29, %v14951_v5  ;;  %v15207_v24 = vpop.f32.mrf.mxu0  ;;  %v15210_v52 = vadd.f32 %v14968_v50, %v3480_v48  ;;  %v13320_v50 = vld [vmem:[%s17163_s6 + $0x98] sm:$0xff]   ;;  %12756 = vmatprep.subr.bf16.mxu0 %v15023_v6  ;;  %12686 = vmatprep.subr.bf16.mxu1 %v15023_v6 }
 0x2d5   : > { %v12415_v43 = vpop.f32.mrf.mxu1 }
 0x2d6   : > { %v3481_v9 = vadd.f32 %v12415_v43, %v14961_v8  ;;  %v15219_v7 = vpop.f32.mrf.mxu0  ;;  %v15222_v5 = vadd.f32 %v14975_v36, %v3478_v31 }
 0x2d7   : > { %v15227_v40 = vpop.f32.mrf.mxu1  ;;  %12757 = vmatpush3.bf16.msra.mxu0 %v13320_v50 }
 0x2d8   : > { %v15231_v48 = vpop.f32.mrf.mxu0  ;;  %v15234_v8 = vadd.f32 %v14983_v11, %v3481_v9  ;;  %12758 = vmatprep.subr.bf16.mxu0 %v15023_v6  ;;  %v13321_v11 = vld [vmem:[%s17163_s6 + $0x10] sm:$0xff]  }
 0x2d9   : > { %v12486_v29 = vpop.f32.mrf.mxu1  ;;  %12687 = vmatpush3.bf16.msra.mxu1 %v13321_v11 }
 0x2da   : > { %v4653_v36 = vadd.f32 %v12486_v29, %v14972_v10  ;;  %v15237_v31 = vpop.f32.mrf.mxu0  ;;  %v13322_v10 = vld [vmem:[%s17163_s6 + $0x90] sm:$0xff]   ;;  %12688 = vmatprep.subr.bf16.mxu1 %v15023_v6 }
 0x2db   : > { %17307 = vst [vmem:[#allocation57_spill] sm:$0xff] %v15237_v31  ;;  %v4472_v34 = vpop.f32.mrf.mxu1  ;;  %12759 = vmatpush3.bf16.msra.mxu0 %v13322_v10 }
 0x2dc   : > { %v4651_v42 = vadd.f32 %v4472_v34, %v14978_v22  ;;  %v15241_v43 = vpop.f32.mrf.mxu0  ;;  %v15244_v27 = vadd.f32 %v14995_v19, %v4653_v36  ;;  %v13323_v19 = vld [vmem:[%s17163_s6 + $0x8] sm:$0xff]   ;;  %12760 = vmatprep.subr.bf16.mxu0 %v15023_v6 }
 0x2dd   : > { %v12487_v9 = vpop.f32.mrf.mxu1  ;;  %v13324_v36 = vld [vmem:[%s17163_s6 + $0x88] sm:$0xff]   ;;  %12689 = vmatpush3.bf16.msra.mxu1 %v13323_v19 }
 0x2de   : > { %v4654_v50 = vadd.f32 %v12487_v9, %v14988_v16  ;;  %v15253_v29 = vpop.f32.mrf.mxu0  ;;  %v15256_v22 = vadd.f32 %v15002_v25, %v4651_v42  ;;  %12690 = vmatprep.subr.bf16.mxu1 %v15023_v6 }
 0x2df   : > { %17308 = vst [vmem:[#allocation60_spill] sm:$0xff] %v15253_v29  ;;  %v15264_v34 = vpop.f32.mrf.mxu1  ;;  %12761 = vmatpush3.bf16.msra.mxu0 %v13324_v36 }
 0x2e0   : > { %v15268_v16 = vpop.f32.mrf.mxu0  ;;  %v15271_v25 = vadd.f32 %v15010_v2, %v4654_v50  ;;  %12762 = vmatprep.subr.bf16.mxu0 %v15023_v6  ;;  %v13326_v2 = vld [vmem:[%s17163_s6 + $0x80] sm:$0xff]  }
 0x2e1   : > { %17309 = vst [vmem:[#allocation19_spill] sm:$0xff] %v15268_v16  ;;  %v12490_v42 = vpop.f32.mrf.mxu1 }
 0x2e2   : > { %v4657_v11 = vadd.f32 %v12490_v42, %v14999_v23  ;;  %v15274_v10 = vpop.f32.mrf.mxu0  ;;  %v13325_v23 = vld [vmem:[%s17163_s6] sm:$0xff]  }
 0x2e3   : > { %17310 = vst [vmem:[#allocation59_spill] sm:$0xff] %v15274_v10  ;;  %v4488_v9 = vpop.f32.mrf.mxu1  ;;  %12691 = vmatpush3.bf16.msra.mxu1 %v13325_v23  ;;  %12763 = vmatpush3.bf16.msra.mxu0 %v13326_v2 }
 0x2e4   : > { %v4655_v29 = vadd.f32 %v4488_v9, %v15005_v38  ;;  %v15279_v31 = vpop.f32.mrf.mxu0  ;;  %v15282_v16 = vadd.f32 %v15029_v1, %v4657_v11  ;;  %12712 = vmatprep.subr.bf16.mxu1 %v15023_v6  ;;  %12820 = vmatprep.subr.bf16.mxu0 %v15023_v6 }
 0x2e5   : > { %v12491_v50 = vpop.f32.mrf.mxu1 }
 0x2e6   : > { %v4658_v19 = vadd.f32 %v12491_v50, %v15015_v54  ;;  %v15291_v36 = vpop.f32.mrf.mxu0  ;;  %v15294_v38 = vadd.f32 %v15036_v59, %v4655_v29 }
 0x2e7   : > { %v15296_v1 = vpop.f32.mrf.mxu1 }
 0x2e8   : > { %v15300_v42 = vpop.f32.mrf.mxu0  ;;  %v15303_v11 = vadd.f32 %v15044_v56, %v4658_v19 }
 0x2e9   : > { %v12494_v9 = vpop.f32.mrf.mxu1 }
 0x2ea   : > { %v4661_v54 = vadd.f32 %v12494_v9, %v15033_v46  ;;  %v15306_v50 = vpop.f32.mrf.mxu0 }
 0x2eb   : > { %v4504_v59 = vpop.f32.mrf.mxu1 }
 0x2ec   : > { %v4659_v29 = vadd.f32 %v4504_v59, %v15039_v30  ;;  %v15310_v23 = vadd.f32 %v15054_v53, %v4661_v54  ;;  %v15312_v2 = vpop.f32.mrf.mxu0 }
 0x2ed   : > { %v12495_v10 = vpop.f32.mrf.mxu1 }
 0x2ee   : > { %v4662_v12 = vadd.f32 %v12495_v10, %v15048_v62  ;;  %v15316_v20 = vadd.f32 %v15061_v57, %v4659_v29  ;;  %v15323_v19 = vpop.f32.mrf.mxu0 }
 0x2ef   : > { %v15318_v56 = vpop.f32.mrf.mxu1 }
 0x2f0   : > { %v15321_v46 = vadd.f32 %v15069_v4, %v4662_v12  ;;  %v15330_v62 = vpop.f32.mrf.mxu0 }
 0x2f1   : > { %v12498_v9 = vpop.f32.mrf.mxu1 }
 0x2f2   : > { %v4665_v30 = vadd.f32 %v12498_v9, %v15058_v33  ;;  %v15341_v33 = vpop.f32.mrf.mxu0 }
 0x2f3   : > { %v4520_v53 = vpop.f32.mrf.mxu1 }
 0x2f4   : > { %v4663_v54 = vadd.f32 %v4520_v53, %v15064_v44  ;;  %v15328_v59 = vadd.f32 %v15080_v18, %v4665_v30 }
 0x2f5   : > { %v12499_v57 = vpop.f32.mrf.mxu1 }
 0x2f6   : > { %v4666_v10 = vadd.f32 %v12499_v57, %v15073_v63  ;;  %v15334_v29 = vadd.f32 %v15090_v21, %v4663_v54  ;;  %v15348_v63 = vpop.f32.mrf.mxu0 }
 0x2f7   : > { %v15336_v4 = vpop.f32.mrf.mxu1 }
 0x2f8   : > { %v15339_v12 = vadd.f32 %v15100_v0, %v4666_v10 }
 0x2f9   : > { %v12502_v9 = vpop.f32.mrf.mxu1 }
 0x2fa   : > { %v4669_v44 = vadd.f32 %v12502_v9, %v15084_v3  ;;  %v15359_v3 = vpop.f32.mrf.mxu0 }
 0x2fb   : > { %v4536_v18 = vpop.f32.mrf.mxu1 }
 0x2fc   : > { %v4667_v30 = vadd.f32 %v4536_v18, %v15093_v45  ;;  %v15346_v53 = vadd.f32 %v15111_v14, %v4669_v44 }
 0x2fd   : > { %v12503_v21 = vpop.f32.mrf.mxu1 }
 0x2fe   : > { %v4670_v54 = vadd.f32 %v12503_v21, %v15104_v26  ;;  %v15352_v57 = vadd.f32 %v15119_v49, %v4667_v30  ;;  %v15366_v26 = vpop.f32.mrf.mxu0  ;;  %v17311_v30 = vld [vmem:[#allocation54_spill] sm:$0xff] }
 0x2ff   : > { %v15354_v0 = vpop.f32.mrf.mxu1 }
 0x300   : > { %v15357_v10 = vadd.f32 %v15128_v60, %v4670_v54 }
 0x301   : > { %v12506_v9 = vpop.f32.mrf.mxu1 }
 0x302   : > { %v4673_v45 = vadd.f32 %v12506_v9, %v15115_v17  ;;  %v15377_v17 = vpop.f32.mrf.mxu0 }
 0x303   : > { %v4552_v14 = vpop.f32.mrf.mxu1 }
 0x304   : > { %v4671_v44 = vadd.f32 %v4552_v14, %v15122_v28  ;;  %v15364_v18 = vadd.f32 %v15143_v39, %v4673_v45 }
 0x305   : > { %v12507_v49 = vpop.f32.mrf.mxu1 }
 0x306   : > { %v4674_v21 = vadd.f32 %v12507_v49, %v17311_v30  ;;  %v15370_v6 = vadd.f32 %v15151_v13, %v4671_v44  ;;  %v15384_v49 = vpop.f32.mrf.mxu0 }
 0x307   : > { %v15372_v60 = vpop.f32.mrf.mxu1 }
 0x308   : > { %v15375_v54 = vadd.f32 %v15160_v51, %v4674_v21 }
 0x309   : > { %v12510_v9 = vpop.f32.mrf.mxu1 }
 0x30a   : > { %17312 = vst [vmem:[#allocation21_spill] sm:$0xff] %v15375_v54  ;;  %v4677_v28 = vadd.f32 %v12510_v9, %v15147_v37  ;;  %v15395_v37 = vpop.f32.mrf.mxu0 }
 0x30b   : > { %v4568_v39 = vpop.f32.mrf.mxu1 }
 0x30c   : > { %v4675_v45 = vadd.f32 %v4568_v39, %v15154_v41  ;;  %v15382_v14 = vadd.f32 %v15180_v61, %v4677_v28  ;;  %v17316_v28 = vld [vmem:[#allocation40_spill] sm:$0xff]  ;;  %v17317_v39 = vld [vmem:[#allocation79_spill] sm:$0xff] }
 0x30d   : > { %v12511_v13 = vpop.f32.mrf.mxu1 }
 0x30e   : > { %17313 = vst [vmem:[#allocation62_spill] sm:$0xff] %v15382_v14  ;;  %v4678_v44 = vadd.f32 %v12511_v13, %v15164_v47  ;;  %v15388_v30 = vadd.f32 %v15186_v55, %v4675_v45  ;;  %v2408_v14 = vadd.f32 %v17317_v39, %v17316_v28  ;;  %v2340_v55 = vld [vmem:[#allocation3 + $0x8] sm:$0xff]  ;;  %v15404_v45 = vpop.f32.mrf.mxu0 }
 0x30f   : > { %v15390_v51 = vpop.f32.mrf.mxu1 }
 0x310   : > { %17314 = vst [vmem:[#allocation24_spill] sm:$0xff] %v15388_v30  ;;  %v15393_v21 = vadd.f32 %v15197_v35, %v4678_v44  ;;  %v17319_v35 = vld [vmem:[#allocation41_spill] sm:$0xff] }
 0x311   : > { %v12514_v9 = vpop.f32.mrf.mxu1  ;;  %v2376_v44 = vadd.f32 %v2340_v55, %v17319_v35 }
 0x312   : > { %17315 = vst [vmem:[#allocation23_spill] sm:$0xff] %v15393_v21  ;;  %v4681_v41 = vadd.f32 %v12514_v9, %v15184_v32  ;;  %v17320_v9 = vld [vmem:[#allocation42_spill] sm:$0xff] }
 0x313   : > { %v4584_v61 = vpop.f32.mrf.mxu1  ;;  %v2944_v28 = vadd.f32 %v17320_v9, %v2408_v14  ;;  %v2344_v14 = vld [vmem:[#allocation3 + $0x28] sm:$0xff] }
 0x314   : > { %v4679_v54 = vadd.f32 %v4584_v61, %v15189_v15  ;;  %v15402_v47 = vadd.f32 %v15207_v24, %v4681_v41  ;;  %v15417_v24 = vpop.f32.mrf.mxu0  ;;  %v17322_v61 = vld [vmem:[#allocation11_spill] sm:$0xff] }
 0x315   : > { %v12515_v13 = vpop.f32.mrf.mxu1  ;;  %v2912_v39 = vadd.f32 %v17322_v61, %v2376_v44  ;;  %v17324_v9 = vld [vmem:[#allocation43_spill] sm:$0xff] }
 0x316   : > { %17318 = vst [vmem:[#allocation63_spill] sm:$0xff] %v15402_v47  ;;  %v4682_v21 = vadd.f32 %v12515_v13, %v15200_v58  ;;  %v15409_v30 = vadd.f32 %v15219_v7, %v4679_v54  ;;  %v3479_v47 = vadd.f32 %v15227_v40, %v2944_v28  ;;  %v17323_v13 = vld [vmem:[#allocation81_spill] sm:$0xff]  ;;  %v17325_v40 = vld [vmem:[#allocation82_spill] sm:$0xff] }
 0x317   : > { %v15411_v32 = vpop.f32.mrf.mxu1  ;;  %v3447_v7 = vadd.f32 %v17323_v13, %v2912_v39 }
 0x318   : > { %v15415_v15 = vadd.f32 %v15231_v48, %v4682_v21  ;;  %v15427_v48 = vpop.f32.mrf.mxu0  ;;  %v4148_v28 = vadd.f32 %v17325_v40, %v3479_v47 }
 0x319   : > { %v12518_v41 = vpop.f32.mrf.mxu1 }
 0x31a   : > { %17321 = vst [vmem:[#allocation26_spill] sm:$0xff] %v15415_v15  ;;  %v4685_v55 = vadd.f32 %v12518_v41, %v15210_v52  ;;  %v2380_v15 = vadd.f32 %v2344_v14, %v17324_v9  ;;  %v17326_v41 = vld [vmem:[#allocation44_spill] sm:$0xff]  ;;  %v17328_v9 = vld [vmem:[#allocation83_spill] sm:$0xff] }
 0x31b   : > { %v4600_v58 = vpop.f32.mrf.mxu1  ;;  %v4116_v61 = vadd.f32 %v17326_v41, %v3447_v7  ;;  %v2348_v7 = vld [vmem:[#allocation3 + $0x48] sm:$0xff]  ;;  %v17330_v41 = vld [vmem:[#allocation84_spill] sm:$0xff] }
 0x31c   : > { %v4683_v54 = vadd.f32 %v4600_v58, %v15222_v5  ;;  %v15425_v35 = vadd.f32 %v15241_v43, %v4685_v55  ;;  %v15433_v5 = vpop.f32.mrf.mxu0  ;;  %v17327_v55 = vld [vmem:[#allocation12_spill] sm:$0xff] }
 0x31d   : > { %v12519_v21 = vpop.f32.mrf.mxu1  ;;  %v2916_v58 = vadd.f32 %v17327_v55, %v2380_v15  ;;  %v4652_v13 = vadd.f32 %v15264_v34, %v4116_v61 }
 0x31e   : > { %4719 = vst [vmem:[#allocation3 + $0x100] sm:$0xff] %v4683_v54  ;;  %v4686_v44 = vadd.f32 %v12519_v21, %v15234_v8 }
 0x31f   : > { %v4603_v52 = vpop.f32.mrf.mxu1  ;;  %v3451_v8 = vadd.f32 %v17328_v9, %v2916_v58 }
 0x320   : > { %4722 = vst [vmem:[#allocation3 + $0x118] sm:$0xff] %v4686_v44  ;;  %v4684_v39 = vadd.f32 %v4603_v52, %v4148_v28  ;;  %v15441_v44 = vpop.f32.mrf.mxu0  ;;  %v17329_v28 = vld [vmem:[#allocation45_spill] sm:$0xff] }
 0x321   : > { %v12590_v43 = vpop.f32.mrf.mxu1  ;;  %v2384_v52 = vadd.f32 %v2348_v7, %v17329_v28 }
 0x322   : > { %4720 = vst [vmem:[#allocation3 + $0x108] sm:$0xff] %v4684_v39  ;;  %v5857_v14 = vadd.f32 %v12590_v43, %v15244_v27  ;;  %v5187_v27 = vadd.f32 %v17330_v41, %v4652_v13  ;;  %v17331_v39 = vld [vmem:[#allocation46_spill] sm:$0xff]  ;;  %v15449_v55 = vpop.f32.mrf.mxu0 }
 0x323   : > { %v5676_v54 = vpop.f32.mrf.mxu1  ;;  %v4120_v43 = vadd.f32 %v17331_v39, %v3451_v8 }
 0x324   : > { %v6393_v47 = vadd.f32 %v15279_v31, %v5857_v14  ;;  %v5855_v21 = vadd.f32 %v5676_v54, %v15256_v22  ;;  %v17332_v14 = vld [vmem:[#allocation13_spill] sm:$0xff] }
 0x325   : > { %v12591_v40 = vpop.f32.mrf.mxu1  ;;  %v2920_v54 = vadd.f32 %v17332_v14, %v2384_v52  ;;  %v4656_v9 = vadd.f32 %v15296_v1, %v4120_v43  ;;  %v17338_v14 = vld [vmem:[#allocation50_spill] sm:$0xff] }
 0x326   : > { %6429 = vst [vmem:[#allocation3 + $0x10] sm:$0xff] %v6393_v47  ;;  %v6391_v15 = vadd.f32 %v15291_v36, %v5855_v21  ;;  %v5858_v34 = vadd.f32 %v12591_v40, %v15271_v25  ;;  %v2352_v47 = vld [vmem:[#allocation3 + $0x68] sm:$0xff] }
 0x327   : > { %v5679_v61 = vpop.f32.mrf.mxu1  ;;  %v17333_v21 = vld [vmem:[#allocation86_spill] sm:$0xff]  ;;  %v17334_v40 = vld [vmem:[#allocation47_spill] sm:$0xff] }
 0x328   : > { %6427 = vst [vmem:[#allocation3] sm:$0xff] %v6391_v15  ;;  %v6394_v31 = vadd.f32 %v15300_v42, %v5858_v34  ;;  %v5856_v22 = vadd.f32 %v5679_v61, %v5187_v27  ;;  %v3455_v8 = vadd.f32 %v17333_v21, %v2920_v54  ;;  %v2388_v28 = vadd.f32 %v2352_v47, %v17334_v40  ;;  %v15459_v15 = vpop.f32.mrf.mxu0  ;;  %v17336_v27 = vld [vmem:[#allocation48_spill] sm:$0xff] }
 0x329   : > { %v12594_v58 = vpop.f32.mrf.mxu1 }
 0x32a   : > { %6430 = vst [vmem:[#allocation3 + $0x18] sm:$0xff] %v6394_v31  ;;  %v6392_v36 = vadd.f32 %v15306_v50, %v5856_v22  ;;  %v5861_v25 = vadd.f32 %v12594_v58, %v15282_v16  ;;  %v17335_v16 = vld [vmem:[#allocation87_spill] sm:$0xff]  ;;  %v4124_v61 = vadd.f32 %v17336_v27, %v3455_v8  ;;  %v15467_v31 = vpop.f32.mrf.mxu0  ;;  %v17342_v27 = vld [vmem:[#allocation20_spill] sm:$0xff] }
 0x32b   : > { %v5692_v13 = vpop.f32.mrf.mxu1  ;;  %v5191_v34 = vadd.f32 %v17335_v16, %v4656_v9 }
 0x32c   : > { %6428 = vst [vmem:[#allocation3 + $0x8] sm:$0xff] %v6392_v36  ;;  %v6397_v42 = vadd.f32 %v15312_v2, %v5861_v25  ;;  %v5859_v7 = vadd.f32 %v5692_v13, %v15294_v38  ;;  %v17337_v38 = vld [vmem:[#allocation15_spill] sm:$0xff]  ;;  %v4660_v58 = vadd.f32 %v15318_v56, %v4124_v61  ;;  %v17339_v13 = vld [vmem:[#allocation53_spill] sm:$0xff]  ;;  %v15476_v21 = vpop.f32.mrf.mxu0 }
 0x32d   : > { %v12595_v52 = vpop.f32.mrf.mxu1  ;;  %v2924_v43 = vadd.f32 %v17337_v38, %v2388_v28  ;;  %v2356_v36 = vld [vmem:[#allocation3 + $0x88] sm:$0xff]  ;;  %v17341_v28 = vld [vmem:[#allocation56_spill] sm:$0xff] }
 0x32e   : > { %6433 = vst [vmem:[#allocation3 + $0x30] sm:$0xff] %v6397_v42  ;;  %v6395_v1 = vadd.f32 %v15323_v19, %v5859_v7  ;;  %v5862_v50 = vadd.f32 %v12595_v52, %v15303_v11  ;;  %v2392_v47 = vadd.f32 %v2356_v36, %v17339_v13  ;;  %v17340_v7 = vld [vmem:[#allocation49_spill] sm:$0xff] }
 0x32f   : > { %v5695_v41 = vpop.f32.mrf.mxu1  ;;  %v3459_v54 = vadd.f32 %v17338_v14, %v2924_v43  ;;  %v5195_v40 = vadd.f32 %v17340_v7, %v4660_v58  ;;  %v17345_v36 = vld [vmem:[#allocation61_spill] sm:$0xff] }
 0x330   : > { %6431 = vst [vmem:[#allocation3 + $0x20] sm:$0xff] %v6395_v1  ;;  %v6398_v2 = vadd.f32 %v15330_v62, %v5862_v50  ;;  %v5860_v39 = vadd.f32 %v5695_v41, %v5191_v34  ;;  %v2928_v61 = vadd.f32 %v17342_v27, %v2392_v47  ;;  %v17349_v27 = vld [vmem:[#allocation16_spill] sm:$0xff] }
 0x331   : > { %v12598_v22 = vpop.f32.mrf.mxu1  ;;  %v4128_v52 = vadd.f32 %v17341_v28, %v3459_v54 }
 0x332   : > { %6434 = vst [vmem:[#allocation3 + $0x38] sm:$0xff] %v6398_v2  ;;  %v6396_v19 = vadd.f32 %v15341_v33, %v5860_v39  ;;  %v5865_v11 = vadd.f32 %v12598_v22, %v15310_v23  ;;  %v15484_v2 = vpop.f32.mrf.mxu0 }
 0x333   : > { %v5708_v9 = vpop.f32.mrf.mxu1  ;;  %v6476_v8 = vld [vmem:[#allocation3] ss:$2 sm:$0xff]  ;;  %v6478_v56 = vld [vmem:[#allocation3 + $0x1] ss:$2 sm:$0xff]  ;;  %v4664_v39 = vadd.f32 %v15336_v4, %v4128_v52 }
 0x334   : > { %6432 = vst [vmem:[#allocation3 + $0x28] sm:$0xff] %v6396_v19  ;;  %v6401_v62 = vadd.f32 %v15348_v63, %v5865_v11  ;;  %v5863_v25 = vadd.f32 %v5708_v9, %v15316_v20  ;;  %v6479_v20 = vmax.f32 %v6476_v8, %v6478_v56  ;;  %v17344_v9 = vld [vmem:[#allocation22_spill] sm:$0xff]  ;;  %v15500_v4 = vpop.f32.mrf.mxu0  ;;  %v17346_v56 = vld [vmem:[#allocation51_spill] sm:$0xff] }
 0x335   : > { %v12599_v42 = vpop.f32.mrf.mxu1 }
 0x336   : > { %6437 = vst [vmem:[#allocation3 + $0x50] sm:$0xff] %v6401_v62  ;;  %v6399_v33 = vadd.f32 %v15359_v3, %v5863_v25  ;;  %v5866_v23 = vadd.f32 %v12599_v42, %v15321_v46  ;;  %v15489_v46 = vld [vmem:[%s17162_s5] ss:$0 sm:$0xff]  ;;  %v2396_v62 = vadd.f32 %v17345_v36, %v17344_v9  ;;  %v5199_v42 = vadd.f32 %v17346_v56, %v4664_v39  ;;  %v17353_v9 = vld [vmem:[#allocation72_spill] sm:$0xff] }
 0x337   : > { %v6481_v1 = vld [vmem:[#allocation3 + $0x12] ss:$2 sm:$0xff]  ;;  %v6483_v63 = vld [vmem:[#allocation3 + $0x13] ss:$2 sm:$0xff]  ;;  %v5711_v50 = vpop.f32.mrf.mxu1 }
 0x338   : > { %v6484_v16 = vmax.f32 %v6481_v1, %v6483_v63  ;;  %6435 = vst [vmem:[#allocation3 + $0x40] sm:$0xff] %v6399_v33  ;;  %v6402_v34 = vadd.f32 %v15366_v26, %v5866_v23  ;;  %v5864_v41 = vadd.f32 %v5711_v50, %v5195_v40  ;;  %v17343_v26 = vld [vmem:[#allocation52_spill] sm:$0xff] }
 0x339   : > { %v12602_v3 = vpop.f32.mrf.mxu1  ;;  %v3463_v58 = vadd.f32 %v17343_v26, %v2928_v61  ;;  %v17347_v33 = vld [vmem:[#allocation64_spill] sm:$0xff] }
 0x33a   : > { %v6485_v38 = vmax.f32 %v6479_v20, %v6484_v16  ;;  %6438 = vst [vmem:[#allocation3 + $0x58] sm:$0xff] %v6402_v34  ;;  %v6400_v43 = vadd.f32 %v15377_v17, %v5864_v41  ;;  %v5869_v22 = vadd.f32 %v12602_v3, %v15328_v59  ;;  %v17348_v63 = vld [vmem:[#allocation28_spill] sm:$0xff]  ;;  %v15508_v20 = vpop.f32.mrf.mxu0 }
 0x33b   : > { %v5724_v19 = vpop.f32.mrf.mxu1  ;;  %v6496_v25 = vld [vmem:[#allocation3 + $0x24] ss:$2 sm:$0xff]  ;;  %v6498_v13 = vld [vmem:[#allocation3 + $0x25] ss:$2 sm:$0xff]  ;;  %v2932_v50 = vadd.f32 %v17348_v63, %v2396_v62  ;;  %v13331_v56 = vld [vmem:[%s17163_s6 + $0x138] sm:$0xff]  }
 0x33c   : > { %v6492_v11 = vadd.f32 %v15489_v46, %v6485_v38  ;;  %6436 = vst [vmem:[#allocation3 + $0x48] sm:$0xff] %v6400_v43  ;;  %v6405_v14 = vadd.f32 %v15384_v49, %v5869_v22  ;;  %v5867_v54 = vadd.f32 %v5724_v19, %v15334_v29  ;;  %v4132_v49 = vadd.f32 %v17347_v33, %v3463_v58  ;;  %v17350_v43 = vld [vmem:[#allocation30_spill] sm:$0xff]  ;;  %v17351_v22 = vld [vmem:[#allocation69_spill] sm:$0xff] }
 0x33d   : > { %v12603_v17 = vpop.f32.mrf.mxu1  ;;  %v6499_v40 = vmax.f32 %v6496_v25, %v6498_v13  ;;  %v3467_v61 = vadd.f32 %v17349_v27, %v2932_v50  ;;  %v2400_v26 = vadd.f32 %v17351_v22, %v17350_v43  ;;  %v6938_v19 = vld [vmem:[#allocation4 + $0x2] sm:$0xff]  ;;  %v13327_v25 = vld [vmem:[%s17163_s6 + $0x78] sm:$0xff]  }
 0x33e   : > { %v6493_v47 = vmax.f32 %v6492_v11, 0.0  ;;  %6441 = vst [vmem:[#allocation3 + $0x70] sm:$0xff] %v6405_v14  ;;  %v6403_v59 = vadd.f32 %v15395_v37, %v5867_v54  ;;  %v5870_v8 = vadd.f32 %v12603_v17, %v15339_v12  ;;  %v4668_v12 = vadd.f32 %v15354_v0, %v4132_v49  ;;  %v15519_v0 = vpop.f32.mrf.mxu0  ;;  %v17352_v14 = vld [vmem:[#allocation17_spill] sm:$0xff]  ;;  %v13329_v22 = vld [vmem:[%s17163_s6 + $0x68] sm:$0xff]  }
 0x33f   : > { %v6501_v23 = vld [vmem:[#allocation3 + $0x36] ss:$2 sm:$0xff]  ;;  %v6503_v29 = vld [vmem:[#allocation3 + $0x37] ss:$2 sm:$0xff]  ;;  %v5727_v7 = vpop.f32.mrf.mxu1  ;;  %v4136_v36 = vadd.f32 %v17353_v9, %v3467_v61  ;;  %v17358_v61 = vld [vmem:[#allocation55_spill] sm:$0xff] }
 0x340   : > { %6494 = vst [vmem:[#allocation4 + $0xb] sm:$0xff] %v6493_v47  ;;  %v6504_v28 = vmax.f32 %v6501_v23, %v6503_v29  ;;  %6439 = vst [vmem:[#allocation3 + $0x60] sm:$0xff] %v6403_v59  ;;  %v6406_v52 = vadd.f32 %v15404_v45, %v5870_v8  ;;  %v5868_v1 = vadd.f32 %v5727_v7, %v5199_v42  ;;  %v17355_v42 = vld [vmem:[#allocation36_spill] sm:$0xff]  ;;  %v15537_v49 = vpop.f32.mrf.mxu0 }
 0x341   : > { %v12606_v37 = vpop.f32.mrf.mxu1  ;;  %v5203_v54 = vadd.f32 %v17352_v14, %v4668_v12  ;;  %v2936_v33 = vadd.f32 %v17355_v42, %v2400_v26  ;;  %v4672_v29 = vadd.f32 %v15372_v60, %v4136_v36  ;;  %v13333_v12 = vld [vmem:[%s17163_s6 + $0x130] sm:$0xff]  }
 0x342   : > { %v6505_v16 = vmax.f32 %v6499_v40, %v6504_v28  ;;  %6442 = vst [vmem:[#allocation3 + $0x78] sm:$0xff] %v6406_v52  ;;  %v6404_v34 = vadd.f32 %v15417_v24, %v5868_v1  ;;  %v5873_v41 = vadd.f32 %v12606_v37, %v15346_v53  ;;  %v17356_v40 = vld [vmem:[#allocation14_spill] sm:$0xff]  ;;  %v13328_v37 = vld [vmem:[%s17163_s6 + $0x70] sm:$0xff]  }
 0x343   : > { %v5740_v3 = vpop.f32.mrf.mxu1  ;;  %v6510_v13 = vld [vmem:[#allocation3 + $0x48] ss:$2 sm:$0xff]  ;;  %v6512_v17 = vld [vmem:[#allocation3 + $0x49] ss:$2 sm:$0xff]  ;;  %v3471_v28 = vadd.f32 %v17356_v40, %v2936_v33  ;;  %v13336_v33 = vld [vmem:[%s17163_s6 + $0x120] sm:$0xff]  }
 0x344   : > { %v6506_v39 = vadd.f32 %v15489_v46, %v6505_v16  ;;  %6440 = vst [vmem:[#allocation3 + $0x68] sm:$0xff] %v6404_v34  ;;  %v6409_v45 = vadd.f32 %v15427_v48, %v5873_v41  ;;  %v5871_v38 = vadd.f32 %v5740_v3, %v15352_v57  ;;  %v6513_v52 = vmax.f32 %v6510_v13, %v6512_v17  ;;  %v15555_v16 = vpop.f32.mrf.mxu0  ;;  %v17357_v41 = vld [vmem:[#allocation21_spill] sm:$0xff]  ;;  %v17362_v13 = vld [vmem:[#allocation18_spill] sm:$0xff]  ;;  %v17363_v42 = vld [vmem:[#allocation24_spill] sm:$0xff] }
 0x345   : > { %v12607_v58 = vpop.f32.mrf.mxu1  ;;  %v5207_v3 = vadd.f32 %v17358_v61, %v4672_v29  ;;  %v17364_v40 = vld [vmem:[#allocation23_spill] sm:$0xff] }
 0x346   : > { %v6507_v24 = vmax.f32 %v6506_v39, 0.0  ;;  %6445 = vst [vmem:[#allocation3 + $0x90] sm:$0xff] %v6409_v45  ;;  %v6407_v53 = vadd.f32 %v15433_v5, %v5871_v38  ;;  %v5874_v11 = vadd.f32 %v12607_v58, %v15357_v10  ;;  %v17354_v10 = vld [vmem:[#allocation85_spill] sm:$0xff] }
 0x347   : > { %v5743_v48 = vpop.f32.mrf.mxu1  ;;  %v6594_v62 = vld [vmem:[#allocation4 + $0x8] sm:$0xff]  ;;  %v17359_v39 = vld [vmem:[#allocation77_spill] sm:$0xff] }
 0x348   : > { %v15525_v57 = vld [vmem:[#allocation4 + $0xa] sm:$0xff]  ;;  %6508 = vst [vmem:[#allocation4 + $0x15] sm:$0xff] %v6507_v24  ;;  %6443 = vst [vmem:[#allocation3 + $0x80] sm:$0xff] %v6407_v53  ;;  %v6410_v5 = vadd.f32 %v15441_v44, %v5874_v11  ;;  %v5872_v47 = vadd.f32 %v5743_v48, %v5203_v54  ;;  %v6603_v59 = vpack.c.bf16 %v6594_v62, %v17354_v10  ;;  %v15573_v11 = vpop.f32.mrf.mxu0  ;;  %v17360_v48 = vld [vmem:[#allocation62_spill] sm:$0xff] }
 0x349   : > { %v6948_v8 = vpack.c.bf16 %v15525_v57, %v6938_v19  ;;  %v12610_v23 = vpop.f32.mrf.mxu1  ;;  %v4140_v45 = vadd.f32 %v17359_v39, %v3471_v28  ;;  %v13335_v53 = vld [vmem:[%s17163_s6 + $0x128] sm:$0xff]  }
 0x34a   : > { %6446 = vst [vmem:[#allocation3 + $0x98] sm:$0xff] %v6410_v5  ;;  %v6408_v7 = vadd.f32 %v15449_v55, %v5872_v47  ;;  %v5877_v44 = vadd.f32 %v12610_v23, %v15364_v18  ;;  %12693 = vmatmul.mubr.bf16.vlgmr.msra.gmra.mxu1 %v6603_v59  ;;  %v15592_v23 = vpop.f32.mrf.mxu0 }
 0x34b   : > { %12765 = vmatmul.mubr.bf16.vlgmr.msra.gmra.mxu0 %v6948_v8  ;;  %v6515_v1 = vld [vmem:[#allocation3 + $0x5a] ss:$2 sm:$0xff]  ;;  %v6517_v63 = vld [vmem:[#allocation3 + $0x5b] ss:$2 sm:$0xff]  ;;  %v5756_v50 = vpop.f32.mrf.mxu1  ;;  %12696 = vmatprep.mubr.msk.bf16.mxu1 %vm13852_vm0, %v17354_v10  ;;  %v4676_v9 = vadd.f32 %v15390_v51, %v4140_v45 }
 0x34c   : > { %12768 = vmatprep.mubr.msk.bf16.mxu0 %vm13852_vm0, %v17354_v10  ;;  %v6518_v60 = vmax.f32 %v6515_v1, %v6517_v63  ;;  %6444 = vst [vmem:[#allocation3 + $0x88] sm:$0xff] %v6408_v7  ;;  %v6413_v55 = vadd.f32 %v15459_v15, %v5877_v44  ;;  %v5875_v18 = vadd.f32 %v5756_v50, %v15370_v6  ;;  %v6524_v58 = vld [vmem:[#allocation3 + $0x6c] ss:$2 sm:$0xff]  ;;  %v6526_v19 = vld [vmem:[#allocation3 + $0x6d] ss:$2 sm:$0xff]  ;;  %v15594_v7 = vld [vmem:[#allocation4] sm:$0xff] }
 0x34d   : > { %12713 = vmatpush3.bf16.msra.mxu1 %v13327_v25  ;;  %12821 = vmatpush3.bf16.msra.mxu0 %v13331_v56  ;;  %v12611_v34 = vpop.f32.mrf.mxu1  ;;  %v17361_v25 = vld [vmem:[#allocation78_spill] sm:$0xff]  ;;  %v6527_v5 = vmax.f32 %v6524_v58, %v6526_v19  ;;  %v17366_v63 = vld [vmem:[#allocation80_spill] sm:$0xff] }
 0x34e   : > { %12714 = vmatprep.subr.bf16.mxu1 %v17354_v10  ;;  %12822 = vmatprep.subr.bf16.mxu0 %v17354_v10  ;;  %v6519_v15 = vmax.f32 %v6513_v52, %v6518_v60  ;;  %6449 = vst [vmem:[#allocation3 + $0xb0] sm:$0xff] %v6413_v55  ;;  %v6411_v6 = vadd.f32 %v15467_v31, %v5875_v18  ;;  %v17365_v52 = vld [vmem:[#allocation58_spill] sm:$0xff] }
 0x34f   : > { %v5878_v27 = vadd.f32 %v12611_v34, %v17357_v41  ;;  %v5759_v38 = vpop.f32.mrf.mxu1  ;;  %v15563_v43 = vld [vmem:[#allocation4 + $0x12] sm:$0xff]  ;;  %v3475_v17 = vadd.f32 %v17362_v13, %v17361_v25  ;;  %v5211_v1 = vadd.f32 %v17365_v52, %v4676_v9  ;;  %v17369_v13 = vld [vmem:[#allocation26_spill] sm:$0xff] }
 0x350   : > { %v6520_v26 = vadd.f32 %v15489_v46, %v6519_v15  ;;  %6447 = vst [vmem:[#allocation3 + $0xa0] sm:$0xff] %v6411_v6  ;;  %v5876_v24 = vadd.f32 %v5759_v38, %v5207_v3  ;;  %v7131_v54 = vpack.c.bf16 %v15563_v43, %v15525_v57  ;;  %v6327_v6 = vpop.f32.mrf.mxu0  ;;  %v17367_v3 = vld [vmem:[#allocation63_spill] sm:$0xff]  ;;  %v15811_v57 = vld [vmem:[#allocation4 + $0x14] sm:$0xff] }
 0x351   : > { %v6414_v31 = vadd.f32 %v15476_v21, %v5878_v27  ;;  %12715 = vmatpush3.bf16.msra.mxu1 %v13328_v37  ;;  %12823 = vmatpush3.bf16.msra.mxu0 %v13333_v12  ;;  %v12614_v14 = vpop.f32.mrf.mxu1  ;;  %v4144_v50 = vadd.f32 %v17366_v63, %v3475_v17  ;;  %v6538_v55 = vld [vmem:[#allocation3 + $0x90] ss:$2 sm:$0xff]  ;;  %v6540_v18 = vld [vmem:[#allocation3 + $0x91] ss:$2 sm:$0xff]  ;;  %v5183_v52 = vld [vmem:[#allocation3 + $0x108] sm:$0xff] }
 0x352   : > { %12716 = vmatprep.subr.bf16.mxu1 %v17354_v10  ;;  %12824 = vmatprep.subr.bf16.mxu0 %v17354_v10  ;;  %v6521_v21 = vmax.f32 %v6520_v26, 0.0  ;;  %v6412_v36 = vadd.f32 %v15484_v2, %v5876_v24  ;;  %v5881_v62 = vadd.f32 %v12614_v14, %v17360_v48  ;;  %v13330_v2 = vld [vmem:[%s17163_s6 + $0x60] sm:$0xff]   ;;  %v13338_v27 = vld [vmem:[%s17163_s6 + $0x118] sm:$0xff]   ;;  %v6541_v38 = vmax.f32 %v6538_v55, %v6540_v18  ;;  %v17371_v18 = vld [vmem:[#allocation19_spill] sm:$0xff] }
 0x353   : > { %6450 = vst [vmem:[#allocation3 + $0xb8] sm:$0xff] %v6414_v31  ;;  %v6529_v47 = vld [vmem:[#allocation3 + $0x7e] ss:$2 sm:$0xff]  ;;  %v6531_v59 = vld [vmem:[#allocation3 + $0x7f] ss:$2 sm:$0xff]  ;;  %v5772_v8 = vpop.f32.mrf.mxu1  ;;  %v4680_v15 = vadd.f32 %v15411_v32, %v4144_v50  ;;  %v6595_v45 = vld [vmem:[#allocation4 + $0x10] sm:$0xff] }
 0x354   : > { %6522 = vst [vmem:[#allocation4 + $0x1f] sm:$0xff] %v6521_v21  ;;  %v6532_v10 = vmax.f32 %v6529_v47, %v6531_v59  ;;  %6448 = vst [vmem:[#allocation3 + $0xa8] sm:$0xff] %v6412_v36  ;;  %v6417_v56 = vadd.f32 %v15500_v4, %v5881_v62  ;;  %v5879_v51 = vadd.f32 %v5772_v8, %v17363_v42  ;;  %v17368_v21 = vld [vmem:[#allocation57_spill] sm:$0xff]  ;;  %v13334_v62 = vld [vmem:[%s17163_s6 + $0x50] sm:$0xff]  }
 0x355   : > { %12717 = vmatpush3.bf16.msra.mxu1 %v13329_v22  ;;  %12825 = vmatpush3.bf16.msra.mxu0 %v13335_v53  ;;  %v12615_v29 = vpop.f32.mrf.mxu1  ;;  %v5215_v36 = vadd.f32 %v17368_v21, %v4680_v15  ;;  %v5182_v47 = vld [vmem:[#allocation3 + $0x100] sm:$0xff]  ;;  %v5185_v42 = vld [vmem:[#allocation3 + $0x118] sm:$0xff] }
 0x356   : > { %12718 = vmatprep.subr.bf16.mxu1 %v15594_v7  ;;  %12826 = vmatprep.subr.bf16.mxu0 %v15594_v7  ;;  %v6533_v4 = vmax.f32 %v6527_v5, %v6532_v10  ;;  %6453 = vst [vmem:[#allocation3 + $0xd0] sm:$0xff] %v6417_v56  ;;  %v6415_v44 = vadd.f32 %v15508_v20, %v5879_v51  ;;  %v13332_v20 = vld [vmem:[%s17163_s6 + $0x58] sm:$0xff]  }
 0x357   : > { %v5882_v28 = vadd.f32 %v12615_v29, %v17364_v40  ;;  %v5775_v60 = vpop.f32.mrf.mxu1  ;;  %v13342_v29 = vld [vmem:[%s17163_s6 + $0x108] sm:$0xff]   ;;  %v17370_v40 = vld [vmem:[#allocation60_spill] sm:$0xff] }
 0x358   : > { %v15603_v37 = vadd.f32 %v15489_v46, %v6533_v4  ;;  %6451 = vst [vmem:[#allocation3 + $0xc0] sm:$0xff] %v6415_v44  ;;  %v5880_v34 = vadd.f32 %v5775_v60, %v5211_v1 }
 0x359   : > { %v6418_v12 = vadd.f32 %v15519_v0, %v5882_v28  ;;  %12719 = vmatpush3.bf16.msra.mxu1 %v13330_v2  ;;  %12827 = vmatpush3.bf16.msra.mxu0 %v13336_v33  ;;  %v12618_v41 = vpop.f32.mrf.mxu1  ;;  %v13337_v33 = vld [vmem:[%s17163_s6 + $0x48] sm:$0xff]   ;;  %v5218_v28 = vadd.f32 %v5182_v47, %v17370_v40 }
 0x35a   : > { %12720 = vmatprep.subr.bf16.mxu1 %v15594_v7  ;;  %12828 = vmatprep.subr.bf16.mxu0 %v15594_v7  ;;  %v6535_v0 = vmax.f32 %v15603_v37, 0.0  ;;  %v6416_v61 = vadd.f32 %v15537_v49, %v5880_v34  ;;  %v5885_v39 = vadd.f32 %v12618_v41, %v17367_v3  ;;  %v12674_v49 = vpop.f32.mrf.mxu0 }
 0x35b   : > { %6454 = vst [vmem:[#allocation3 + $0xd8] sm:$0xff] %v6418_v12  ;;  %v6543_v32 = vld [vmem:[#allocation3 + $0xa2] ss:$2 sm:$0xff]  ;;  %v6545_v22 = vld [vmem:[#allocation3 + $0xa3] ss:$2 sm:$0xff]  ;;  %v5788_v26 = vpop.f32.mrf.mxu1  ;;  %v6596_v58 = vld [vmem:[#allocation4 + $0x18] sm:$0xff]  ;;  %v5221_v12 = vadd.f32 %v17371_v18, %v5185_v42 }
 0x35c   : > { %6536 = vst [vmem:[#allocation4 + $0x29] sm:$0xff] %v6535_v0  ;;  %v6546_v19 = vmax.f32 %v6543_v32, %v6545_v22  ;;  %6452 = vst [vmem:[#allocation3 + $0xc8] sm:$0xff] %v6416_v61  ;;  %v6421_v31 = vadd.f32 %v15555_v16, %v5885_v39  ;;  %v5883_v24 = vadd.f32 %v5788_v26, %v15409_v30  ;;  %v15622_v14 = vld [vmem:[#allocation4 + $0x1a] sm:$0xff]  ;;  %v13340_v30 = vld [vmem:[%s17163_s6 + $0x110] sm:$0xff]   ;;  %v6340_v51 = vpop.f32.mrf.mxu0 }
 0x35d   : > { %v6604_v53 = vpack.c.bf16 %v6596_v58, %v6595_v45  ;;  %12721 = vmatpush3.bf16.msra.mxu1 %v13332_v20  ;;  %v12619_v9 = vpop.f32.mrf.mxu1  ;;  %v6949_v48 = vpack.c.bf16 %v15622_v14, %v15563_v43  ;;  %12829 = vmatpush3.bf16.msra.mxu0 %v13338_v27  ;;  %v6597_v1 = vld [vmem:[#allocation4 + $0x20] sm:$0xff]  ;;  %v17372_v39 = vld [vmem:[#allocation59_spill] sm:$0xff] }
 0x35e   : > { %12722 = vmatprep.subr.bf16.mxu1 %v15594_v7  ;;  %v6547_v16 = vmax.f32 %v6541_v38, %v6546_v19  ;;  %6457 = vst [vmem:[#allocation3 + $0xf0] sm:$0xff] %v6421_v31  ;;  %v6419_v25 = vadd.f32 %v15573_v11, %v5883_v24  ;;  %v5886_v17 = vadd.f32 %v12619_v9, %v17369_v13  ;;  %v12675_v61 = vpop.f32.mrf.mxu0  ;;  %v13339_v32 = vld [vmem:[%s17163_s6 + $0x40] sm:$0xff]   ;;  %v13361_v43 = vld [vmem:[%s17163_s6 + $0x168] sm:$0xff]  }
 0x35f   : > { %12697 = vmatmul.mubr.bf16.gmra.mxu1 %v6604_v53  ;;  %12830 = vmatprep.subr.bf16.mxu0 %v15594_v7  ;;  %v5791_v5 = vpop.f32.mrf.mxu1  ;;  %v6552_v8 = vld [vmem:[#allocation3 + $0xb4] ss:$2 sm:$0xff]  ;;  %v6554_v10 = vld [vmem:[#allocation3 + $0xb5] ss:$2 sm:$0xff]  ;;  %v5219_v45 = vadd.f32 %v5183_v52, %v17372_v39 }
 0x360   : > { %12769 = vmatmul.mubr.bf16.gmra.mxu0 %v6949_v48  ;;  %12700 = vmatprep.mubr.msk.bf16.mxu1 %vm13852_vm0, %v15594_v7  ;;  %v15640_v59 = vadd.f32 %v15489_v46, %v6547_v16  ;;  %6455 = vst [vmem:[#allocation3 + $0xe0] sm:$0xff] %v6419_v25  ;;  %v6422_v56 = vadd.f32 %v15592_v23, %v5886_v17  ;;  %v13344_v31 = vld [vmem:[%s17163_s6 + $0x100] sm:$0xff]   ;;  %v6343_v21 = vpop.f32.mrf.mxu0 }
 0x361   : > { %v5884_v11 = vadd.f32 %v5791_v5, %v5215_v36  ;;  %12772 = vmatprep.mubr.msk.bf16.mxu0 %vm13852_vm0, %v15594_v7  ;;  %v12622_v2 = vpop.f32.mrf.mxu1  ;;  %12723 = vmatpush3.bf16.msra.mxu1 %v13334_v62  ;;  %v6555_v63 = vmax.f32 %v6552_v8, %v6554_v10  ;;  %v6758_v39 = vld [vmem:[#allocation4 + $0x19] sm:$0xff] }
 0x362   : > { %12831 = vmatpush3.bf16.msra.mxu0 %v13340_v30  ;;  %v6549_v4 = vmax.f32 %v15640_v59, 0.0  ;;  %6458 = vst [vmem:[#allocation3 + $0xf8] sm:$0xff] %v6422_v56  ;;  %v5889_v44 = vadd.f32 %v12622_v2, %v15425_v35  ;;  %12724 = vmatprep.subr.bf16.mxu1 %v15594_v7 }
 0x363   : > { %v6420_v23 = vadd.f32 %v6327_v6, %v5884_v11  ;;  %12832 = vmatprep.subr.bf16.mxu0 %v15594_v7  ;;  %v6557_v50 = vld [vmem:[#allocation3 + $0xc6] ss:$2 sm:$0xff]  ;;  %v6559_v60 = vld [vmem:[#allocation3 + $0xc7] ss:$2 sm:$0xff]  ;;  %v5804_v55 = vpop.f32.mrf.mxu1 }
 0x364   : > { %v6598_v34 = vld [vmem:[#allocation4 + $0x28] sm:$0xff]  ;;  %6550 = vst [vmem:[#allocation4 + $0x33] sm:$0xff] %v6549_v4  ;;  %v6560_v20 = vmax.f32 %v6557_v50, %v6559_v60  ;;  %v6425_v35 = vadd.f32 %v12674_v49, %v5889_v44  ;;  %v5887_v15 = vadd.f32 %v5804_v55, %v5218_v28 }
 0x365   : > { %6456 = vst [vmem:[#allocation3 + $0xe8] sm:$0xff] %v6420_v23  ;;  %v6605_v6 = vpack.c.bf16 %v6598_v34, %v6597_v1  ;;  %v15659_v41 = vld [vmem:[#allocation4 + $0x22] sm:$0xff]  ;;  %v15661_v27 = vld [vmem:[#allocation4 + $0x2a] sm:$0xff]  ;;  %v12623_v3 = vpop.f32.mrf.mxu1  ;;  %12725 = vmatpush3.bf16.msra.mxu1 %v13337_v33 }
 0x366   : > { %v6950_v38 = vpack.c.bf16 %v15661_v27, %v15659_v41  ;;  %12833 = vmatpush3.bf16.msra.mxu0 %v13342_v29  ;;  %v7132_v22 = vpack.c.bf16 %v15659_v41, %v15622_v14  ;;  %v6561_v26 = vmax.f32 %v6555_v63, %v6560_v20  ;;  %6461 = vst [vmem:[#allocation3 + $0x110] sm:$0xff] %v6425_v35  ;;  %v6755_v20 = vld [vmem:[#allocation4 + $0x1] sm:$0xff]  ;;  %v6756_v35 = vld [vmem:[#allocation4 + $0x9] sm:$0xff] }
 0x367   : > { %v6423_v58 = vadd.f32 %v6340_v51, %v5887_v15  ;;  %v5890_v19 = vadd.f32 %v12623_v3, %v5221_v12  ;;  %12701 = vmatmul.mubr.bf16.gmra.mxu1 %v6605_v6  ;;  %12726 = vmatprep.subr.bf16.mxu1 %v15594_v7  ;;  %v5807_v24 = vpop.f32.mrf.mxu1  ;;  %v6566_v36 = vld [vmem:[#allocation3 + $0xd8] ss:$2 sm:$0xff]  ;;  %v6568_v48 = vld [vmem:[#allocation3 + $0xd9] ss:$2 sm:$0xff]  ;;  %v6765_v6 = vpack.c.bf16 %v6756_v35, %v6755_v20  ;;  %v13343_v3 = vld [vmem:[%s17163_s6 + $0xf0] sm:$0xff]  }
 0x368   : > { %12773 = vmatmul.mubr.bf16.gmra.mxu0 %v6950_v38  ;;  %12704 = vmatprep.mubr.msk.bf16.mxu1 %vm13852_vm0, %v15594_v7  ;;  %v6562_v53 = vadd.f32 %v15489_v46, %v6561_v26  ;;  %v5888_v9 = vadd.f32 %v5807_v24, %v5219_v45  ;;  %v6569_v13 = vmax.f32 %v6566_v36, %v6568_v48  ;;  %v7305_v45 = vld [vmem:[#allocation4 + $0x13] sm:$0xff]  ;;  %v13345_v26 = vld [vmem:[%s17163_s6 + $0xe8] sm:$0xff]   ;;  %v13346_v24 = vld [vmem:[%s17163_s6 + $0xe0] sm:$0xff]  }
 0x369   : > { %6459 = vst [vmem:[#allocation3 + $0x100] sm:$0xff] %v6423_v58  ;;  %v6426_v49 = vadd.f32 %v12675_v61, %v5890_v19  ;;  %12776 = vmatprep.mubr.msk.bf16.mxu0 %vm13852_vm0, %v15594_v7  ;;  %12727 = vmatpush3.bf16.msra.mxu1 %v13339_v32  ;;  %v6757_v38 = vld [vmem:[#allocation4 + $0x11] sm:$0xff]  ;;  %v15839_v41 = vld [vmem:[#allocation4 + $0x24] sm:$0xff] }
 0x36a   : > { %12834 = vmatprep.subr.bf16.mxu0 %v15594_v7  ;;  %v6563_v62 = vmax.f32 %v6562_v53, 0.0  ;;  %v6424_v30 = vadd.f32 %v6343_v21, %v5888_v9  ;;  %12784 = vmatprep.subr.bf16.mxu1 %v15594_v7  ;;  %v7304_v32 = vld [vmem:[#allocation4 + $0xb] sm:$0xff]  ;;  %v6766_v58 = vpack.c.bf16 %v6758_v39, %v6757_v38  ;;  %v6759_v53 = vld [vmem:[#allocation4 + $0x21] sm:$0xff]  ;;  %v13348_v36 = vld [vmem:[%s17163_s6 + $0xd8] sm:$0xff]  }
 0x36b   : > { %6462 = vst [vmem:[#allocation3 + $0x118] sm:$0xff] %v6426_v49  ;;  %12835 = vmatpush3.bf16.msra.mxu0 %v13344_v31  ;;  %v15683_v5 = vld [vmem:[#allocation4 + $0x32] sm:$0xff]  ;;  %v7314_v19 = vpack.c.bf16 %v7305_v45, %v7304_v32  ;;  %v7307_v49 = vld [vmem:[#allocation4 + $0x23] sm:$0xff]  ;;  %v7306_v21 = vld [vmem:[#allocation4 + $0x1b] sm:$0xff]  ;;  %v6767_v48 = vpack.c.bf16 %v6535_v0, %v6759_v53 }
 0x36c   : > { %v6571_v16 = vld [vmem:[#allocation3 + $0xea] ss:$2 sm:$0xff]  ;;  %v6573_v25 = vld [vmem:[#allocation3 + $0xeb] ss:$2 sm:$0xff]  ;;  %12892 = vmatprep.subr.bf16.mxu0 %v15594_v7  ;;  %6564 = vst [vmem:[#allocation4 + $0x3d] sm:$0xff] %v6563_v62  ;;  %6460 = vst [vmem:[#allocation3 + $0x108] sm:$0xff] %v6424_v30  ;;  %v7133_v47 = vpack.c.bf16 %v15683_v5, %v15661_v27  ;;  %v7315_v62 = vpack.c.bf16 %v7307_v49, %v7306_v21 }
 0x36d   : > { %v6574_v17 = vmax.f32 %v6571_v16, %v6573_v25  ;;  %v6599_v11 = vld [vmem:[#allocation4 + $0x30] sm:$0xff]  ;;  %v13351_v30 = vld [vmem:[%s17163_s6 + $0x1a8] sm:$0xff]   ;;  %v13371_v45 = vld [vmem:[%s17163_s6 + $0x140] sm:$0xff]  }
 0x36e   : > { %v13347_v31 = vld [vmem:[%s17163_s6 + $0x1b8] sm:$0xff]   ;;  %v13349_v9 = vld [vmem:[%s17163_s6 + $0x1b0] sm:$0xff]   ;;  %v13376_v53 = vld [vmem:[%s17163_s6 + $0x200] sm:$0xff]  }
 0x36f   : > { %v6575_v8 = vmax.f32 %v6569_v13, %v6574_v17  ;;  %v13350_v16 = vld [vmem:[%s17163_s6 + $0xd0] sm:$0xff]   ;;  %v13352_v13 = vld [vmem:[%s17163_s6 + $0x1a0] sm:$0xff]   ;;  %v13353_v17 = vld [vmem:[%s17163_s6 + $0xc8] sm:$0xff]  }
 0x370   : > { %v7308_v0 = vld [vmem:[#allocation4 + $0x2b] sm:$0xff]  ;;  %v13370_v39 = vld [vmem:[%s17163_s6 + $0x218] sm:$0xff]  }
 0x371   : > { %v6576_v10 = vadd.f32 %v15489_v46, %v6575_v8  ;;  %v6761_v25 = vld [vmem:[#allocation4 + $0x31] sm:$0xff] }
 0x372   : > { %v15833_v20 = vld [vmem:[#allocation4 + $0x2c] sm:$0xff] }
 0x373   : > { %v6577_v56 = vmax.f32 %v6576_v10, 0.0  ;;  %v6580_v42 = vld [vmem:[#allocation3 + $0xfc] ss:$2 sm:$0xff]  ;;  %v6582_v51 = vld [vmem:[#allocation3 + $0xfd] ss:$2 sm:$0xff]  ;;  %v7316_v10 = vpack.c.bf16 %v6549_v4, %v7308_v0  ;;  %v13365_v14 = vld [vmem:[%s17163_s6 + $0x230] sm:$0xff]   ;;  %v7681_v35 = vpack.c.bf16 %v15833_v20, %v15839_v41 }
 0x374   : > { %v6585_v2 = vld [vmem:[#allocation3 + $0x10e] ss:$2 sm:$0xff]  ;;  %v6583_v33 = vmax.f32 %v6580_v42, %v6582_v51  ;;  %v6587_v29 = vld [vmem:[#allocation3 + $0x10f] ss:$2 sm:$0xff] }
 0x375   : > { %6578 = vst [vmem:[#allocation4 + $0x47] sm:$0xff] %v6577_v56  ;;  %v6600_v23 = vld [vmem:[#allocation4 + $0x38] sm:$0xff]  ;;  %v6588_v40 = vmax.f32 %v6585_v2, %v6587_v29  ;;  %v13356_v2 = vld [vmem:[%s17163_s6 + $0x190] sm:$0xff]  }
 0x376   : > { %v15688_v44 = vld [vmem:[#allocation4 + $0x3a] sm:$0xff]  ;;  %v6606_v28 = vpack.c.bf16 %v6600_v23, %v6599_v11  ;;  %v13358_v23 = vld [vmem:[%s17163_s6 + $0x188] sm:$0xff]   ;;  %v13375_v21 = vld [vmem:[%s17163_s6 + $0x1f0] sm:$0xff]  }
 0x377   : > { %v6951_v52 = vpack.c.bf16 %v15688_v44, %v15683_v5  ;;  %v6589_v1 = vmax.f32 %v6583_v33, %v6588_v40  ;;  %v6762_v37 = vld [vmem:[#allocation4 + $0x39] sm:$0xff]  ;;  %v8039_v0 = vld [vmem:[#allocation4 + $0x2e] sm:$0xff] }
 0x378   : > { %12705 = vmatmul.mubr.bf16.gmra.mxu1 %v6606_v28  ;;  %v6768_v8 = vpack.c.bf16 %v6762_v37, %v6761_v25  ;;  %v13354_v56 = vld [vmem:[%s17163_s6 + $0x198] sm:$0xff]   ;;  %v13355_v11 = vld [vmem:[%s17163_s6 + $0xc0] sm:$0xff]   ;;  %v8038_v25 = vld [vmem:[#allocation4 + $0x26] sm:$0xff] }
 0x379   : > { %12777 = vmatmul.mubr.bf16.gmra.mxu0 %v6951_v52  ;;  %12708 = vmatprep.mubr.msk.bf16.mxu1 %vm13852_vm0, %v15594_v7  ;;  %v6590_v63 = vadd.f32 %v15489_v46, %v6589_v1  ;;  %v13341_v46 = vld [vmem:[%s17163_s6 + $0xf8] sm:$0xff]   ;;  %v13360_v1 = vld [vmem:[%s17163_s6 + $0x180] sm:$0xff]  }
 0x37a   : > { %12780 = vmatprep.mubr.msk.bf16.mxu0 %vm13852_vm0, %v15594_v7  ;;  %v7310_v51 = vld [vmem:[#allocation4 + $0x3b] sm:$0xff] }
 0x37b   : > { %v6591_v50 = vmax.f32 %v6590_v63, 0.0  ;;  %v13357_v52 = vld [vmem:[%s17163_s6 + $0x178] sm:$0xff]   ;;  %v15861_v27 = vld [vmem:[#allocation4 + $0x3c] sm:$0xff] }
 0x37c   : > { %v6601_v60 = vld [vmem:[#allocation4 + $0x40] sm:$0xff]  ;;  %v6602_v55 = vld [vmem:[#allocation4 + $0x48] sm:$0xff]  ;;  %v15864_v5 = vld [vmem:[#allocation4 + $0x34] sm:$0xff] }
 0x37d   : > { %v15697_v18 = vld [vmem:[#allocation4 + $0x42] sm:$0xff]  ;;  %v6607_v12 = vpack.c.bf16 %v6602_v55, %v6601_v60  ;;  %6592 = vst [vmem:[#allocation4 + $0x51] sm:$0xff] %v6591_v50  ;;  %v13359_v50 = vld [vmem:[%s17163_s6 + $0x170] sm:$0xff]   ;;  %v13363_v55 = vld [vmem:[%s17163_s6 + $0x238] sm:$0xff]  }
 0x37e   : > { %v7134_v34 = vpack.c.bf16 %v15697_v18, %v15688_v44  ;;  %v6763_v59 = vld [vmem:[#allocation4 + $0x41] sm:$0xff]  ;;  %v6764_v4 = vld [vmem:[#allocation4 + $0x49] sm:$0xff] }
 0x37f   : > { %v7311_v42 = vld [vmem:[#allocation4 + $0x43] sm:$0xff]  ;;  %v6769_v33 = vpack.c.bf16 %v6764_v4, %v6763_v59 }
 0x380   : > { %12709 = vmatmul.mubr.bf16.gmra.mxu1 %v6607_v12  ;;  %v7317_v29 = vpack.c.bf16 %v7311_v42, %v7310_v51  ;;  %v15808_v60 = vld [vmem:[#allocation4 + $0x1c] sm:$0xff]  ;;  %v13381_v59 = vld [vmem:[%s17163_s6 + $0x1c8] sm:$0xff]  }
 0x381   : > { %12728 = vmatprep.mubr.msk.bf16.mxu1 %vm13852_vm0, %v15594_v7  ;;  %v13362_v12 = vld [vmem:[%s17163_s6 + $0x160] sm:$0xff]  }
 0x382   : > { %v13378_v37 = vld [vmem:[%s17163_s6 + $0x1e0] sm:$0xff]  }
 0x383   : > { %v13382_v51 = vld [vmem:[%s17163_s6 + $0x1c0] sm:$0xff]  }
 0x384   : > { %v15703_v15 = vld [vmem:[#allocation4 + $0x4a] sm:$0xff]  ;;  %v7313_v28 = vld [vmem:[#allocation4 + $0x53] sm:$0xff] }
 0x385   : > { %v6952_v61 = vpack.c.bf16 %v15703_v15, %v15697_v18  ;;  %v7312_v40 = vld [vmem:[#allocation4 + $0x4b] sm:$0xff] }
 0x386   : > { %v7318_v63 = vpack.c.bf16 %v7313_v28, %v7312_v40  ;;  %v7130_v38 = vld [vmem:[#allocation4 + $0x52] sm:$0xff]  ;;  %v15893_v18 = vld [vmem:[#allocation4 + $0x44] sm:$0xff] }
 0x387   : > { %12781 = vmatmul.mubr.bf16.gmra.mxu0 %v6952_v61  ;;  %v13369_v61 = vld [vmem:[%s17163_s6 + $0x148] sm:$0xff]   ;;  %v15889_v44 = vld [vmem:[#allocation4 + $0x4c] sm:$0xff]  ;;  %v7135_v32 = vpack.c.bf16 %v7130_v38, %v15703_v15  ;;  %v15911_v15 = vld [vmem:[#allocation4 + $0x54] sm:$0xff]  ;;  %v7500_v4 = vpack.c.bf16 %v15893_v18, %v15861_v27 }
 0x388   : > { %12729 = vmatmul.mubr.bf16.vlgmr.msra.gmra.mxu1 %v6765_v6  ;;  %12836 = vmatprep.mubr.msk.bf16.mxu0 %vm13852_vm0, %v15594_v7  ;;  %v13366_v6 = vld [vmem:[%s17163_s6 + $0x150] sm:$0xff]   ;;  %v7854_v40 = vld [vmem:[#allocation4 + $0x1d] sm:$0xff] }
 0x389   : > { %12785 = vmatpush3.bf16.msra.mxu1 %v13341_v46  ;;  %12732 = vmatprep.mubr.msk.bf16.mxu1 %vm13852_vm0, %v15594_v7  ;;  %v13367_v46 = vld [vmem:[%s17163_s6 + $0x228] sm:$0xff]   ;;  %v8044_v28 = vld [vmem:[#allocation4 + $0x56] sm:$0xff] }
 0x38a   : > { %12786 = vmatprep.subr.bf16.mxu1 %v15594_v7 }
 0x38d   : > { %12787 = vmatpush3.bf16.msra.mxu1 %v13343_v3  ;;  %v7682_v3 = vpack.c.bf16 %v15861_v27, %v15864_v5 }
 0x38e   : > { %12788 = vmatprep.subr.bf16.mxu1 %v15594_v7 }
 0x38f   : > { %12837 = vmatmul.mubr.bf16.vlgmr.msra.gmra.mxu0 %v7314_v19  ;;  %v7679_v19 = vld [vmem:[#allocation4 + $0x5c] sm:$0xff] }
 0x390   : > { %12733 = vmatmul.mubr.bf16.gmra.mxu1 %v6766_v58  ;;  %12840 = vmatprep.mubr.msk.bf16.mxu0 %vm13852_vm0, %v15594_v7  ;;  %v13374_v58 = vld [vmem:[%s17163_s6 + $0x208] sm:$0xff]  }
 0x391   : > { %12789 = vmatpush3.bf16.msra.mxu1 %v13345_v26  ;;  %12736 = vmatprep.mubr.msk.bf16.mxu1 %vm13852_vm0, %v15594_v7  ;;  %v7683_v26 = vpack.c.bf16 %v15889_v44, %v15893_v18 }
 0x392   : > { %12790 = vmatprep.subr.bf16.mxu1 %v15594_v7  ;;  %12893 = vmatpush3.bf16.msra.mxu0 %v13347_v31  ;;  %v7487_v31 = vld [vmem:[#allocation4 + $0xc] sm:$0xff] }
 0x393   : > { %12894 = vmatprep.subr.bf16.mxu0 %v15594_v7  ;;  %v7497_v49 = vpack.c.bf16 %v15811_v57, %v7487_v31 }
 0x395   : > { %12791 = vmatpush3.bf16.msra.mxu1 %v13346_v24  ;;  %v13373_v24 = vld [vmem:[%s17163_s6 + $0x1f8] sm:$0xff]  }
 0x396   : > { %12792 = vmatprep.subr.bf16.mxu1 %v15594_v7  ;;  %12895 = vmatpush3.bf16.msra.mxu0 %v13349_v9  ;;  %v7684_v9 = vpack.c.bf16 %v7679_v19, %v15911_v15 }
 0x397   : > { %12841 = vmatmul.mubr.bf16.gmra.mxu0 %v7315_v62  ;;  %12896 = vmatprep.subr.bf16.mxu0 %v15594_v7  ;;  %v13377_v62 = vld [vmem:[%s17163_s6 + $0x1e8] sm:$0xff]  }
 0x398   : > { %12737 = vmatmul.mubr.bf16.gmra.mxu1 %v6767_v48  ;;  %12844 = vmatprep.mubr.msk.bf16.mxu0 %vm13852_vm0, %v15594_v7  ;;  %v8036_v48 = vld [vmem:[#allocation4 + $0x16] sm:$0xff] }
 0x399   : > { %12793 = vmatpush3.bf16.msra.mxu1 %v13348_v36  ;;  %12740 = vmatprep.mubr.msk.bf16.mxu1 %vm13852_vm0, %v15594_v7  ;;  %v8037_v36 = vld [vmem:[#allocation4 + $0x1e] sm:$0xff] }
 0x39a   : > { %12794 = vmatprep.subr.bf16.mxu1 %v15594_v7  ;;  %12897 = vmatpush3.bf16.msra.mxu0 %v13351_v30  ;;  %v7498_v30 = vpack.c.bf16 %v15839_v41, %v15808_v60  ;;  %v7857_v41 = vld [vmem:[#allocation4 + $0x35] sm:$0xff] }
 0x39b   : > { %12898 = vmatprep.subr.bf16.mxu0 %v15594_v7 }
 0x39d   : > { %12795 = vmatpush3.bf16.msra.mxu1 %v13350_v16  ;;  %v8046_v16 = vpack.c.bf16 %v8037_v36, %v8036_v48 }
 0x39e   : > { %12796 = vmatprep.subr.bf16.mxu1 %v15594_v7  ;;  %12899 = vmatpush3.bf16.msra.mxu0 %v13352_v13  ;;  %v13379_v13 = vld [vmem:[%s17163_s6 + $0x1d8] sm:$0xff]  }
 0x39f   : > { %12845 = vmatmul.mubr.bf16.gmra.mxu0 %v7316_v10  ;;  %12900 = vmatprep.subr.bf16.mxu0 %v15594_v7  ;;  %v13380_v10 = vld [vmem:[%s17163_s6 + $0x1d0] sm:$0xff]  }
 0x3a0   : > { %12741 = vmatmul.mubr.bf16.gmra.mxu1 %v6768_v8  ;;  %12848 = vmatprep.mubr.msk.bf16.mxu0 %vm13852_vm0, %v15594_v7  ;;  %v8047_v8 = vpack.c.bf16 %v8039_v0, %v8038_v25 }
 0x3a1   : > { %12797 = vmatpush3.bf16.msra.mxu1 %v13353_v17  ;;  %12744 = vmatprep.mubr.msk.bf16.mxu1 %vm13852_vm0, %v15594_v7  ;;  %v7499_v17 = vpack.c.bf16 %v15864_v5, %v15833_v20  ;;  %v7860_v5 = vld [vmem:[#allocation4 + $0x4d] sm:$0xff] }
 0x3a2   : > { %12798 = vmatprep.subr.bf16.mxu1 %v15594_v7  ;;  %12901 = vmatpush3.bf16.msra.mxu0 %v13354_v56  ;;  %v8040_v56 = vld [vmem:[#allocation4 + $0x36] sm:$0xff] }
 0x3a3   : > { %12902 = vmatprep.subr.bf16.mxu0 %v15594_v7 }
 0x3a5   : > { %12799 = vmatpush3.bf16.msra.mxu1 %v13355_v11  ;;  %v8041_v11 = vld [vmem:[#allocation4 + $0x3e] sm:$0xff] }
 0x3a6   : > { %12856 = vmatprep.subr.bf16.mxu1 %v15594_v7  ;;  %12903 = vmatpush3.bf16.msra.mxu0 %v13356_v2  ;;  %v8048_v42 = vpack.c.bf16 %v8041_v11, %v8040_v56  ;;  %v8043_v2 = vld [vmem:[#allocation4 + $0x4e] sm:$0xff] }
 0x3a7   : > { %12849 = vmatmul.mubr.bf16.gmra.mxu0 %v7317_v29  ;;  %12904 = vmatprep.subr.bf16.mxu0 %v15594_v7  ;;  %v7501_v29 = vpack.c.bf16 %v15911_v15, %v15889_v44 }
 0x3a8   : > { %12745 = vmatmul.mubr.bf16.gmra.mxu1 %v6769_v33  ;;  %12852 = vmatprep.mubr.msk.bf16.mxu0 %vm13852_vm0, %v15594_v7  ;;  %v8042_v33 = vld [vmem:[#allocation4 + $0x46] sm:$0xff] }
 0x3a9   : > { %12800 = vmatprep.mubr.msk.bf16.mxu1 %vm13852_vm0, %v15594_v7 }
 0x3aa   : > { %12905 = vmatpush3.bf16.msra.mxu0 %v13358_v23  ;;  %v8049_v23 = vpack.c.bf16 %v8043_v2, %v8042_v33 }
 0x3ab   : > { %12906 = vmatprep.subr.bf16.mxu0 %v15594_v7 }
 0x3ae   : > { %12907 = vmatpush3.bf16.msra.mxu0 %v13360_v1  ;;  %v7853_v1 = vld [vmem:[#allocation4 + $0x15] sm:$0xff] }
 0x3af   : > { %12853 = vmatmul.mubr.bf16.gmra.mxu0 %v7318_v63  ;;  %12964 = vmatprep.subr.bf16.mxu0 %v15594_v7  ;;  %v7863_v63 = vpack.c.bf16 %v7854_v40, %v7853_v1  ;;  %v13385_v40 = vld [vmem:[%s17165_s8 + $0x74] ss:$8 sps:$4 sm:$0xff]  }
 0x3b0   : > { %12801 = vmatmul.mubr.bf16.vlgmr.msra.gmra.mxu1 %v7131_v54  ;;  %12908 = vmatprep.mubr.msk.bf16.mxu0 %vm13852_vm0, %v15594_v7  ;;  %v7680_v54 = vpack.c.bf16 %v15808_v60, %v15811_v57  ;;  %v7856_v60 = vld [vmem:[#allocation4 + $0x2d] sm:$0xff]  ;;  %v7855_v57 = vld [vmem:[#allocation4 + $0x25] sm:$0xff] }
 0x3b1   : > { %12857 = vmatpush3.bf16.msra.mxu1 %v13357_v52  ;;  %12804 = vmatprep.mubr.msk.bf16.mxu1 %vm13852_vm0, %v15594_v7  ;;  %v8045_v52 = vld [vmem:[#allocation4 + $0x5e] sm:$0xff] }
 0x3b2   : > { %12858 = vmatprep.subr.bf16.mxu1 %v15594_v7 }
 0x3b5   : > { %12859 = vmatpush3.bf16.msra.mxu1 %v13359_v50  ;;  %v8050_v50 = vpack.c.bf16 %v8045_v52, %v8044_v28  ;;  %v13386_v28 = vld [vmem:[%s17165_s8 + $0x170] ss:$8 sps:$4 sm:$0xff]  }
 0x3b6   : > { %12860 = vmatprep.subr.bf16.mxu1 %v15594_v7 }
 0x3b7   : > { %12909 = vmatmul.mubr.bf16.vlgmr.msra.gmra.mxu0 %v7680_v54 }
 0x3b8   : > { %12805 = vmatmul.mubr.bf16.gmra.mxu1 %v7132_v22  ;;  %12912 = vmatprep.mubr.msk.bf16.mxu0 %vm13852_vm0, %v15594_v7  ;;  %v13364_v22 = vld [vmem:[%s17163_s6 + $0x158] sm:$0xff]  }
 0x3b9   : > { %12861 = vmatpush3.bf16.msra.mxu1 %v13361_v43  ;;  %12808 = vmatprep.mubr.msk.bf16.mxu1 %vm13852_vm0, %v15594_v7  ;;  %v7864_v43 = vpack.c.bf16 %v7856_v60, %v7855_v57  ;;  %v13394_v57 = vld [vmem:[%s17165_s8 + $0x164] ss:$8 sps:$4 sm:$0xff]  }
 0x3ba   : > { %12862 = vmatprep.subr.bf16.mxu1 %v15594_v7  ;;  %12965 = vmatpush3.bf16.msra.mxu0 %v13363_v55 }
 0x3bb   : > { %12966 = vmatprep.subr.bf16.mxu0 %v15594_v7 }
 0x3bd   : > { %12863 = vmatpush3.bf16.msra.mxu1 %v13362_v12  ;;  %v7858_v12 = vld [vmem:[#allocation4 + $0x3d] sm:$0xff] }
 0x3be   : > { %12864 = vmatprep.subr.bf16.mxu1 %v15594_v7  ;;  %12967 = vmatpush3.bf16.msra.mxu0 %v13365_v14 }
 0x3bf   : > { %12913 = vmatmul.mubr.bf16.gmra.mxu0 %v7681_v35  ;;  %12968 = vmatprep.subr.bf16.mxu0 %v15594_v7 }
 0x3c0   : > { %12809 = vmatmul.mubr.bf16.gmra.mxu1 %v7133_v47  ;;  %12916 = vmatprep.mubr.msk.bf16.mxu0 %vm13852_vm0, %v15594_v7  ;;  %v13368_v47 = vld [vmem:[%s17163_s6 + $0x220] sm:$0xff]  }
 0x3c1   : > { %12865 = vmatpush3.bf16.msra.mxu1 %v13364_v22  ;;  %12812 = vmatprep.mubr.msk.bf16.mxu1 %vm13852_vm0, %v15594_v7  ;;  %v7865_v22 = vpack.c.bf16 %v7858_v12, %v7857_v41 }
 0x3c2   : > { %12866 = vmatprep.subr.bf16.mxu1 %v15594_v7  ;;  %12969 = vmatpush3.bf16.msra.mxu0 %v13367_v46 }
 0x3c3   : > { %12970 = vmatprep.subr.bf16.mxu0 %v15594_v7 }
 0x3c5   : > { %12867 = vmatpush3.bf16.msra.mxu1 %v13366_v6 }
 0x3c6   : > { %12868 = vmatprep.subr.bf16.mxu1 %v15594_v7  ;;  %12971 = vmatpush3.bf16.msra.mxu0 %v13368_v47  ;;  %v7859_v47 = vld [vmem:[#allocation4 + $0x45] sm:$0xff] }
 0x3c7   : > { %12917 = vmatmul.mubr.bf16.gmra.mxu0 %v7682_v3  ;;  %12972 = vmatprep.subr.bf16.mxu0 %v15594_v7  ;;  %v7861_v3 = vld [vmem:[#allocation4 + $0x55] sm:$0xff] }
 0x3c8   : > { %12813 = vmatmul.mubr.bf16.gmra.mxu1 %v7134_v34  ;;  %12920 = vmatprep.mubr.msk.bf16.mxu0 %vm13852_vm0, %v15594_v7  ;;  %v13372_v34 = vld [vmem:[%s17163_s6 + $0x210] sm:$0xff]  }
 0x3c9   : > { %12869 = vmatpush3.bf16.msra.mxu1 %v13369_v61  ;;  %12816 = vmatprep.mubr.msk.bf16.mxu1 %vm13852_vm0, %v15594_v7  ;;  %v7866_v61 = vpack.c.bf16 %v7860_v5, %v7859_v47 }
 0x3ca   : > { %12870 = vmatprep.subr.bf16.mxu1 %v15594_v7  ;;  %12973 = vmatpush3.bf16.msra.mxu0 %v13370_v39  ;;  %v7862_v39 = vld [vmem:[#allocation4 + $0x5d] sm:$0xff] }
 0x3cb   : > { %12974 = vmatprep.subr.bf16.mxu0 %v15594_v7 }
 0x3cd   : > { %12871 = vmatpush3.bf16.msra.mxu1 %v13371_v45  ;;  %v7867_v45 = vpack.c.bf16 %v7862_v39, %v7861_v3 }
 0x3ce   : > { %12928 = vmatprep.subr.bf16.mxu1 %v15594_v7  ;;  %12975 = vmatpush3.bf16.msra.mxu0 %v13372_v34 }
 0x3cf   : > { %12921 = vmatmul.mubr.bf16.gmra.mxu0 %v7683_v26  ;;  %12976 = vmatprep.subr.bf16.mxu0 %v15594_v7 }
 0x3d0   : > { %12817 = vmatmul.mubr.bf16.gmra.mxu1 %v7135_v32  ;;  %12924 = vmatprep.mubr.msk.bf16.mxu0 %vm13852_vm0, %v15594_v7 }
 0x3d1   : > { %12872 = vmatprep.mubr.msk.bf16.mxu1 %vm13852_vm0, %v15594_v7 }
 0x3d2   : > { %12977 = vmatpush3.bf16.msra.mxu0 %v13374_v58 }
 0x3d3   : > { %12978 = vmatprep.subr.bf16.mxu0 %v15594_v7 }
 0x3d6   : > { %12979 = vmatpush3.bf16.msra.mxu0 %v13376_v53 }
 0x3d7   : > { %12925 = vmatmul.mubr.bf16.gmra.mxu0 %v7684_v9 }
 0x3d8   : > { %12873 = vmatmul.mubr.bf16.vlgmr.msra.gmra.mxu1 %v7497_v49  ;;  %12980 = vmatprep.mubr.msk.bf16.mxu0 %vm13852_vm0, %v15594_v7 }
 0x3d9   : > { %12929 = vmatpush3.bf16.msra.mxu1 %v13373_v24  ;;  %12876 = vmatprep.mubr.msk.bf16.mxu1 %vm13852_vm0, %v15594_v7 }
 0x3da   : > { %12930 = vmatprep.subr.bf16.mxu1 %v15594_v7 }
 0x3dd   : > { %12931 = vmatpush3.bf16.msra.mxu1 %v13375_v21 }
 0x3de   : > { %12932 = vmatprep.subr.bf16.mxu1 %v15594_v7 }
 0x3df   : > { %12981 = vmatmul.mubr.bf16.vlgmr.msra.gmra.mxu0 %v8046_v16 }
 0x3e0   : > { %12877 = vmatmul.mubr.bf16.gmra.mxu1 %v7498_v30  ;;  %12984 = vmatprep.mubr.msk.bf16.mxu0 %vm13852_vm0, %v15594_v7 }
 0x3e1   : > { %12933 = vmatpush3.bf16.msra.mxu1 %v13377_v62  ;;  %12880 = vmatprep.mubr.msk.bf16.mxu1 %vm13852_vm0, %v15594_v7 }
 0x3e2   : > { %12934 = vmatprep.subr.bf16.mxu1 %v15594_v7 }
 0x3e5   : > { %12935 = vmatpush3.bf16.msra.mxu1 %v13378_v37 }
 0x3e6   : > { %12936 = vmatprep.subr.bf16.mxu1 %v15594_v7 }
 0x3e7   : > { %12985 = vmatmul.mubr.bf16.gmra.mxu0 %v8047_v8 }
 0x3e8   : > { %12881 = vmatmul.mubr.bf16.gmra.mxu1 %v7499_v17  ;;  %12988 = vmatprep.mubr.msk.bf16.mxu0 %vm13852_vm0, %v15594_v7 }
 0x3e9   : > { %12937 = vmatpush3.bf16.msra.mxu1 %v13379_v13  ;;  %12884 = vmatprep.mubr.msk.bf16.mxu1 %vm13852_vm0, %v15594_v7 }
 0x3ea   : > { %12938 = vmatprep.subr.bf16.mxu1 %v15594_v7 }
 0x3ed   : > { %12939 = vmatpush3.bf16.msra.mxu1 %v13380_v10 }
 0x3ee   : > { %12940 = vmatprep.subr.bf16.mxu1 %v15594_v7 }
 0x3ef   : > { %12989 = vmatmul.mubr.bf16.gmra.mxu0 %v8048_v42 }
 0x3f0   : > { %12885 = vmatmul.mubr.bf16.gmra.mxu1 %v7500_v4  ;;  %12992 = vmatprep.mubr.msk.bf16.mxu0 %vm13852_vm0, %v15594_v7 }
 0x3f1   : > { %12941 = vmatpush3.bf16.msra.mxu1 %v13381_v59  ;;  %12888 = vmatprep.mubr.msk.bf16.mxu1 %vm13852_vm0, %v15594_v7 }
 0x3f2   : > { %12942 = vmatprep.subr.bf16.mxu1 %v15594_v7 }
 0x3f5   : > { %12943 = vmatpush3.bf16.msra.mxu1 %v13382_v51 }
 0x3f6   : > { %10056 = vmatprep.subr.bf16.mxu1 %v13385_v40 }
 0x3f7   : > { %12993 = vmatmul.mubr.bf16.gmra.mxu0 %v8049_v23  ;;  %v13383_v23 = vld [vmem:[%s17165_s8 + $0x70] ss:$8 sps:$4 sm:$0xff]  }
 0x3f8   : > { %12889 = vmatmul.mubr.bf16.gmra.mxu1 %v7501_v29  ;;  %12996 = vmatprep.mubr.msk.bf16.mxu0 %vm13852_vm0, %v15594_v7 }
 0x3f9   : > { %12944 = vmatprep.mubr.msk.bf16.mxu1 %vm13852_vm0, %v15594_v7 }
 0x3ff   : > { %12997 = vmatmul.mubr.bf16.gmra.mxu0 %v8050_v50  ;;  %v13391_v50 = vld [vmem:[%s17165_s8 + $0x64] ss:$8 sps:$4 sm:$0xff]  }
 0x400   : > { %12945 = vmatmul.mubr.bf16.vlgmr.msra.gmra.mxu1 %v7863_v63  ;;  %v13388_v63 = vld [vmem:[%s17165_s8 + $0x174] ss:$8 sps:$4 sm:$0xff]  }
 0x401   : > { %12948 = vmatprep.mubr.msk.bf16.mxu1 %vm13852_vm0, %v15594_v7  ;;  %10097 = vmatprep.subr.bf16.mxu0 %v13388_v63  ;;  %v13409_v63 = vld [vmem:[%s17165_s8 + $0x34] ss:$8 sps:$4 sm:$0xff]  }
 0x402   : > { %10057 = vmatpush1.bf16.msra.mxu1 %v13383_v23  ;;  %10098 = vmatpush1.bf16.msra.mxu0 %v13386_v28 }
 0x403   : > { %10058 = vmatprep.subr.bf16.mxu1 %v13391_v50  ;;  %10099 = vmatprep.subr.bf16.mxu0 %v13394_v57 }
 0x408   : > { %12949 = vmatmul.mubr.bf16.gmra.mxu1 %v7864_v43 }
 0x409   : > { %12952 = vmatprep.mubr.msk.bf16.mxu1 %vm13852_vm0, %v15594_v7 }
 0x40a   : > { %v6706_v54 = vpop.f32.mrf.mxu1 }
 0x40b   : > { %v7052_v55 = vpop.f32.mrf.mxu0 }
 0x40c   : > { %v12694_v20 = vpop.f32.mrf.mxu1 }
 0x40d   : > { %v12766_v14 = vpop.f32.mrf.mxu0  ;;  %v13392_v20 = vld [vmem:[%s17165_s8 + $0x160] ss:$8 sps:$4 sm:$0xff]  }
 0x40e   : > { %v6709_v35 = vpop.f32.mrf.mxu1  ;;  %10100 = vmatpush1.bf16.msra.mxu0 %v13392_v20 }
 0x40f   : > { %v7055_v46 = vpop.f32.mrf.mxu0 }
 0x410   : > { %12953 = vmatmul.mubr.bf16.gmra.mxu1 %v7865_v22  ;;  %v12695_v6 = vpop.f32.mrf.mxu1 }
 0x411   : > { %v12767_v27 = vpop.f32.mrf.mxu0  ;;  %12956 = vmatprep.mubr.msk.bf16.mxu1 %vm13852_vm0, %v15594_v7 }
 0x418   : > { %12957 = vmatmul.mubr.bf16.gmra.mxu1 %v7866_v61 }
 0x419   : > { %12960 = vmatprep.mubr.msk.bf16.mxu1 %vm13852_vm0, %v15594_v7 }
 0x41f   : > { %v6714_v38 = vpop.f32.mrf.mxu1 }
 0x420   : > { %v7060_v44 = vpop.f32.mrf.mxu0  ;;  %12961 = vmatmul.mubr.bf16.gmra.mxu1 %v7867_v45 }
 0x421   : > { %v12698_v18 = vpop.f32.mrf.mxu1 }
 0x422   : > { %v12770_v34 = vpop.f32.mrf.mxu0 }
 0x423   : > { %v6717_v32 = vpop.f32.mrf.mxu1 }
 0x424   : > { %v7063_v26 = vpop.f32.mrf.mxu0 }
 0x425   : > { %v12699_v58 = vpop.f32.mrf.mxu1 }
 0x426   : > { %v12771_v15 = vpop.f32.mrf.mxu0 }
 0x427   : > { %v6722_v19 = vpop.f32.mrf.mxu1 }
 0x428   : > { %v15986_v31 = vpop.f32.mrf.mxu0 }
 0x429   : > { %v12702_v24 = vpop.f32.mrf.mxu1 }
 0x42a   : > { %v12774_v53 = vpop.f32.mrf.mxu0 }
 0x42b   : > { %v15988_v49 = vpop.f32.mrf.mxu1 }
 0x42c   : > { %v15990_v7 = vpop.f32.mrf.mxu0 }
 0x42d   : > { %v12703_v9 = vpop.f32.mrf.mxu1 }
 0x42e   : > { %v12775_v21 = vpop.f32.mrf.mxu0 }
 0x438   : > { %v15992_v36 = vpop.f32.mrf.mxu1 }
 0x439   : > { %v15994_v48 = vpop.f32.mrf.mxu0 }
 0x43a   : > { %v12706_v62 = vpop.f32.mrf.mxu1 }
 0x43b   : > { %v12778_v30 = vpop.f32.mrf.mxu0 }
 0x43c   : > { %v15996_v16 = vpop.f32.mrf.mxu1 }
 0x43d   : > { %v15998_v37 = vpop.f32.mrf.mxu0 }
 0x43e   : > { %v12707_v0 = vpop.f32.mrf.mxu1 }
 0x43f   : > { %v12779_v25 = vpop.f32.mrf.mxu0  ;;  %v13397_v0 = vld [vmem:[%s17165_s8 + $0x54] ss:$8 sps:$4 sm:$0xff]  }
 0x440   : > { %v16000_v13 = vpop.f32.mrf.mxu1 }
 0x442   : > { %v12710_v17 = vpop.f32.mrf.mxu1 }
 0x443   : > { %v13400_v17 = vld [vmem:[%s17165_s8 + $0x154] ss:$8 sps:$4 sm:$0xff]  }
 0x444   : > { %v16002_v8 = vpop.f32.mrf.mxu1  ;;  %10101 = vmatprep.subr.bf16.mxu0 %v13400_v17  ;;  %v13431_v17 = vld [vmem:[%s17165_s8 + $0xf0] ss:$8 sps:$4 sm:$0xff]  }
 0x446   : > { %v12711_v10 = vpop.f32.mrf.mxu1 }
 0x447   : > { %v16004_v11 = vpop.f32.mrf.mxu0 }
 0x448   : > { %v6869_v56 = vpop.f32.mrf.mxu1 }
 0x449   : > { %v6918_v59 = vadd.f32 %v6869_v56, %v6706_v54  ;;  %v12782_v42 = vpop.f32.mrf.mxu0  ;;  %v13406_v56 = vld [vmem:[%s17165_s8 + $0x144] ss:$8 sps:$4 sm:$0xff]  }
 0x44a   : > { %v12730_v4 = vpop.f32.mrf.mxu1  ;;  %v13401_v42 = vld [vmem:[%s17165_s8 + $0x40] ss:$8 sps:$4 sm:$0xff]  }
 0x44b   : > { %v16006_v51 = vadd.f32 %v7052_v55, %v6918_v59  ;;  %v16008_v33 = vpop.f32.mrf.mxu0  ;;  %v13389_v55 = vld [vmem:[%s17165_s8 + $0x60] ss:$8 sps:$4 sm:$0xff]  }
 0x44c   : > { %v6872_v2 = vpop.f32.mrf.mxu1  ;;  %10059 = vmatpush1.bf16.msra.mxu1 %v13389_v55 }
 0x44d   : > { %v6919_v29 = vadd.f32 %v6872_v2, %v6709_v35  ;;  %v12783_v1 = vpop.f32.mrf.mxu0  ;;  %10060 = vmatprep.subr.bf16.mxu1 %v13397_v0 }
 0x44e   : > { %v12731_v52 = vpop.f32.mrf.mxu1 }
 0x44f   : > { %v16025_v60 = vadd.f32 %v7055_v46, %v6919_v29  ;;  %v16030_v54 = vpop.f32.mrf.mxu0 }
 0x450   : > { %v6877_v43 = vpop.f32.mrf.mxu1 }
 0x451   : > { %v6920_v12 = vadd.f32 %v6877_v43, %v6714_v38  ;;  %v12838_v41 = vpop.f32.mrf.mxu0  ;;  %v13412_v43 = vld [vmem:[%s17165_s8 + $0x134] ss:$8 sps:$4 sm:$0xff]  }
 0x452   : > { %v12734_v14 = vpop.f32.mrf.mxu1  ;;  %v13413_v41 = vld [vmem:[%s17165_s8 + $0x20] ss:$8 sps:$4 sm:$0xff]  }
 0x453   : > { %v16038_v22 = vadd.f32 %v7060_v44, %v6920_v12  ;;  %v16040_v46 = vpop.f32.mrf.mxu0  ;;  %v13418_v12 = vld [vmem:[%s17165_s8 + $0x124] ss:$8 sps:$4 sm:$0xff]  }
 0x454   : > { %v6880_v35 = vpop.f32.mrf.mxu1 }
 0x455   : > { %v6921_v6 = vadd.f32 %v6880_v35, %v6717_v32  ;;  %v12839_v5 = vpop.f32.mrf.mxu0 }
 0x456   : > { %v12735_v27 = vpop.f32.mrf.mxu1 }
 0x457   : > { %v16042_v47 = vadd.f32 %v7063_v26, %v6921_v6  ;;  %v16044_v3 = vpop.f32.mrf.mxu0  ;;  %v13421_v6 = vld [vmem:[%s17165_s8 + $0x14] ss:$8 sps:$4 sm:$0xff]  }
 0x458   : > { %v6885_v61 = vpop.f32.mrf.mxu1 }
 0x459   : > { %v6922_v39 = vadd.f32 %v6885_v61, %v6722_v19  ;;  %v12842_v38 = vpop.f32.mrf.mxu0  ;;  %v13424_v61 = vld [vmem:[%s17165_s8 + $0x114] ss:$8 sps:$4 sm:$0xff]  }
 0x45a   : > { %v12738_v45 = vpop.f32.mrf.mxu1  ;;  %v13419_v38 = vld [vmem:[%s17165_s8 + $0x10] ss:$8 sps:$4 sm:$0xff]  }
 0x45b   : > { %v16047_v18 = vadd.f32 %v15986_v31, %v6922_v39  ;;  %v16049_v34 = vpop.f32.mrf.mxu0 }
 0x45c   : > { %v6888_v44 = vpop.f32.mrf.mxu1 }
 0x45d   : > { %v6923_v58 = vadd.f32 %v6888_v44, %v15988_v49  ;;  %v12843_v15 = vpop.f32.mrf.mxu0 }
 0x45e   : > { %v12739_v32 = vpop.f32.mrf.mxu1 }
 0x45f   : > { %v16053_v24 = vadd.f32 %v15990_v7, %v6923_v58  ;;  %v16055_v53 = vpop.f32.mrf.mxu0  ;;  %v13395_v7 = vld [vmem:[%s17165_s8 + $0x50] ss:$8 sps:$4 sm:$0xff]  }
 0x460   : > { %v6893_v26 = vpop.f32.mrf.mxu1  ;;  %10061 = vmatpush1.bf16.msra.mxu1 %v13395_v7  ;;  %v13422_v58 = vld [vmem:[%s17165_s8 + $0x110] ss:$8 sps:$4 sm:$0xff]   ;;  %v13430_v7 = vld [vmem:[%s17165_s8 + $0x104] ss:$8 sps:$4 sm:$0xff]  }
 0x461   : > { %v6924_v19 = vadd.f32 %v6893_v26, %v15992_v36  ;;  %v12846_v21 = vpop.f32.mrf.mxu0  ;;  %v13398_v36 = vld [vmem:[%s17165_s8 + $0x150] ss:$8 sps:$4 sm:$0xff]  }
 0x462   : > { %v12742_v9 = vpop.f32.mrf.mxu1  ;;  %10102 = vmatpush1.bf16.msra.mxu0 %v13398_v36  ;;  %v13427_v21 = vld [vmem:[%s17165_s8 + $0x4] ss:$8 sps:$4 sm:$0xff]   ;;  %v13436_v36 = vld [vmem:[%s17165_s8 + $0x1f4] ss:$8 sps:$4 sm:$0xff]  }
 0x463   : > { %v16059_v31 = vadd.f32 %v15994_v48, %v6924_v19  ;;  %v16061_v30 = vpop.f32.mrf.mxu0  ;;  %10103 = vmatprep.subr.bf16.mxu0 %v13406_v56 }
 0x464   : > { %v6896_v62 = vpop.f32.mrf.mxu1 }
 0x465   : > { %v6925_v49 = vadd.f32 %v6896_v62, %v15996_v16  ;;  %v12847_v48 = vpop.f32.mrf.mxu0  ;;  %v13403_v16 = vld [vmem:[%s17165_s8 + $0x44] ss:$8 sps:$4 sm:$0xff]  }
 0x466   : > { %v12743_v25 = vpop.f32.mrf.mxu1  ;;  %10062 = vmatprep.subr.bf16.mxu1 %v13403_v16 }
 0x467   : > { %v16080_v10 = vadd.f32 %v15998_v37, %v6925_v49  ;;  %v16085_v4 = vpop.f32.mrf.mxu0  ;;  %v13404_v37 = vld [vmem:[%s17165_s8 + $0x140] ss:$8 sps:$4 sm:$0xff]   ;;  %10063 = vmatpush1.bf16.msra.mxu1 %v13401_v42 }
 0x468   : > { %v6901_v59 = vpop.f32.mrf.mxu1  ;;  %10104 = vmatpush1.bf16.msra.mxu0 %v13404_v37  ;;  %10064 = vmatprep.subr.bf16.mxu1 %v13409_v63 }
 0x469   : > { %v6926_v2 = vadd.f32 %v6901_v59, %v16000_v13  ;;  %v12850_v23 = vpop.f32.mrf.mxu0  ;;  %v13407_v13 = vld [vmem:[%s17165_s8 + $0x30] ss:$8 sps:$4 sm:$0xff]   ;;  %10105 = vmatprep.subr.bf16.mxu0 %v13412_v43 }
 0x46a   : > { %v12746_v29 = vpop.f32.mrf.mxu1  ;;  %v13439_v23 = vld [vmem:[%s17165_s8 + $0xe4] ss:$8 sps:$4 sm:$0xff]   ;;  %v13443_v43 = vld [vmem:[%s17165_s8 + $0xd0] ss:$8 sps:$4 sm:$0xff]  }
 0x46b   : > { %v16095_v40 = vadd.f32 %v16004_v11, %v6926_v2  ;;  %v16097_v52 = vpop.f32.mrf.mxu0  ;;  %v13410_v11 = vld [vmem:[%s17165_s8 + $0x130] ss:$8 sps:$4 sm:$0xff]   ;;  %10065 = vmatpush1.bf16.msra.mxu1 %v13407_v13  ;;  %v13442_v13 = vld [vmem:[%s17165_s8 + $0x1e4] ss:$8 sps:$4 sm:$0xff]  }
 0x46c   : > { %v6904_v28 = vpop.f32.mrf.mxu1  ;;  %10106 = vmatpush1.bf16.msra.mxu0 %v13410_v11  ;;  %v13448_v11 = vld [vmem:[%s17165_s8 + $0x1d4] ss:$8 sps:$4 sm:$0xff]  }
 0x46d   : > { %v6927_v1 = vadd.f32 %v6904_v28, %v16002_v8  ;;  %v12851_v57 = vpop.f32.mrf.mxu0  ;;  %v13415_v8 = vld [vmem:[%s17165_s8 + $0x24] ss:$8 sps:$4 sm:$0xff]   ;;  %10107 = vmatprep.subr.bf16.mxu0 %v13418_v12 }
 0x46e   : > { %v12747_v50 = vpop.f32.mrf.mxu1  ;;  %10066 = vmatprep.subr.bf16.mxu1 %v13415_v8  ;;  %v13451_v12 = vld [vmem:[%s17165_s8 + $0xc4] ss:$8 sps:$4 sm:$0xff]  }
 0x46f   : > { %v16116_v55 = vadd.f32 %v16008_v33, %v6927_v1  ;;  %v16121_v14 = vpop.f32.mrf.mxu0  ;;  %v13416_v33 = vld [vmem:[%s17165_s8 + $0x120] ss:$8 sps:$4 sm:$0xff]   ;;  %10067 = vmatpush1.bf16.msra.mxu1 %v13413_v41 }
 0x470   : > { %v7235_v20 = vpop.f32.mrf.mxu1  ;;  %10108 = vmatpush1.bf16.msra.mxu0 %v13416_v33  ;;  %10068 = vmatprep.subr.bf16.mxu1 %v13421_v6 }
 0x471   : > { %v7284_v35 = vadd.f32 %v7235_v20, %v16006_v51  ;;  %v12854_v5 = vpop.f32.mrf.mxu0  ;;  %10109 = vmatprep.subr.bf16.mxu0 %v13424_v61  ;;  %v13452_v61 = vld [vmem:[%s17165_s8 + $0x1c0] ss:$8 sps:$4 sm:$0xff]  }
 0x472   : > { %v12802_v27 = vpop.f32.mrf.mxu1 }
 0x473   : > { %v16137_v39 = vadd.f32 %v16030_v54, %v7284_v35  ;;  %v16139_v45 = vpop.f32.mrf.mxu0  ;;  %10069 = vmatpush1.bf16.msra.mxu1 %v13419_v38  ;;  %v13454_v35 = vld [vmem:[%s17165_s8 + $0x1c4] ss:$8 sps:$4 sm:$0xff]   ;;  %v13449_v27 = vld [vmem:[%s17165_s8 + $0xc0] ss:$8 sps:$4 sm:$0xff]  }
 0x474   : > { %v7238_v51 = vpop.f32.mrf.mxu1  ;;  %10110 = vmatpush1.bf16.msra.mxu0 %v13422_v58  ;;  %10070 = vmatprep.subr.bf16.mxu1 %v13427_v21 }
 0x475   : > { %v7285_v44 = vadd.f32 %v7238_v51, %v16025_v60  ;;  %v12855_v15 = vpop.f32.mrf.mxu0  ;;  %v13425_v60 = vld [vmem:[%s17165_s8] ss:$8 sps:$4 sm:$0xff]   ;;  %10111 = vmatprep.subr.bf16.mxu0 %v13430_v7 }
 0x476   : > { %v12803_v32 = vpop.f32.mrf.mxu1  ;;  %v13455_v15 = vld [vmem:[%s17165_s8 + $0xb0] ss:$8 sps:$4 sm:$0xff]   ;;  %v13461_v7 = vld [vmem:[%s17165_s8 + $0xa0] ss:$8 sps:$4 sm:$0xff]  }
 0x477   : > { %v16149_v54 = vadd.f32 %v16040_v46, %v7285_v44  ;;  %v16151_v19 = vpop.f32.mrf.mxu0  ;;  %v13428_v46 = vld [vmem:[%s17165_s8 + $0x100] ss:$8 sps:$4 sm:$0xff]   ;;  %10071 = vmatpush1.bf16.msra.mxu1 %v13425_v60  ;;  %v13460_v44 = vld [vmem:[%s17165_s8 + $0x1b4] ss:$8 sps:$4 sm:$0xff]  }
 0x478   : > { %v7243_v26 = vpop.f32.mrf.mxu1  ;;  %10112 = vmatpush1.bf16.msra.mxu0 %v13428_v46  ;;  %v13466_v46 = vld [vmem:[%s17165_s8 + $0x1a4] ss:$8 sps:$4 sm:$0xff]  }
 0x479   : > { %v7286_v9 = vadd.f32 %v7243_v26, %v16038_v22  ;;  %v12910_v49 = vpop.f32.mrf.mxu0  ;;  %v13433_v22 = vld [vmem:[%s17165_s8 + $0xf4] ss:$8 sps:$4 sm:$0xff]   ;;  %10113 = vmatprep.subr.bf16.mxu0 %v13436_v36  ;;  %v13464_v36 = vld [vmem:[%s17165_s8 + $0x1a0] ss:$8 sps:$4 sm:$0xff]  }
 0x47a   : > { %v12806_v62 = vpop.f32.mrf.mxu1  ;;  %10072 = vmatprep.subr.bf16.mxu1 %v13433_v22 }
 0x47b   : > { %v16170_v0 = vadd.f32 %v16044_v3, %v7286_v9  ;;  %v16175_v48 = vpop.f32.mrf.mxu0  ;;  %v13434_v3 = vld [vmem:[%s17165_s8 + $0x1f0] ss:$8 sps:$4 sm:$0xff]   ;;  %10073 = vmatpush2.bf16.msra.mxu1 %v13431_v17 }
 0x47c   : > { %v7246_v25 = vpop.f32.mrf.mxu1  ;;  %10114 = vmatpush2.bf16.msra.mxu0 %v13434_v3  ;;  %10074 = vmatprep.subr.bf16.mxu1 %v13439_v23  ;;  %v13458_v9 = vld [vmem:[%s17165_s8 + $0x1b0] ss:$8 sps:$4 sm:$0xff]  }
 0x47d   : > { %v7287_v16 = vadd.f32 %v7246_v25, %v16042_v47  ;;  %v12911_v59 = vpop.f32.mrf.mxu0  ;;  %v13437_v47 = vld [vmem:[%s17165_s8 + $0xe0] ss:$8 sps:$4 sm:$0xff]   ;;  %10115 = vmatprep.subr.bf16.mxu0 %v13442_v13 }
 0x47e   : > { %v12807_v56 = vpop.f32.mrf.mxu1  ;;  %v13467_v59 = vld [vmem:[%s17165_s8 + $0x90] ss:$8 sps:$4 sm:$0xff]   ;;  %v13473_v13 = vld [vmem:[%s17165_s8 + $0x80] ss:$8 sps:$4 sm:$0xff]  }
 0x47f   : > { %v16185_v42 = vadd.f32 %v16049_v34, %v7287_v16  ;;  %v16187_v37 = vpop.f32.mrf.mxu0  ;;  %v13440_v34 = vld [vmem:[%s17165_s8 + $0x1e0] ss:$8 sps:$4 sm:$0xff]   ;;  %10075 = vmatpush2.bf16.msra.mxu1 %v13437_v47  ;;  %v13472_v16 = vld [vmem:[%s17165_s8 + $0x194] ss:$8 sps:$4 sm:$0xff]  }
 0x480   : > { %v7251_v2 = vpop.f32.mrf.mxu1  ;;  %10116 = vmatpush2.bf16.msra.mxu0 %v13440_v34  ;;  %v13478_v34 = vld [vmem:[%s17165_s8 + $0x184] ss:$8 sps:$4 sm:$0xff]  }
 0x481   : > { %v7288_v29 = vadd.f32 %v7251_v2, %v16047_v18  ;;  %v12914_v1 = vpop.f32.mrf.mxu0  ;;  %v13445_v18 = vld [vmem:[%s17165_s8 + $0xd4] ss:$8 sps:$4 sm:$0xff]   ;;  %10117 = vmatprep.subr.bf16.mxu0 %v13448_v11  ;;  %v13476_v11 = vld [vmem:[%s17165_s8 + $0x180] ss:$8 sps:$4 sm:$0xff]  }
 0x482   : > { %v12810_v28 = vpop.f32.mrf.mxu1  ;;  %10076 = vmatprep.subr.bf16.mxu1 %v13445_v18 }
 0x483   : > { %v16206_v63 = vadd.f32 %v16055_v53, %v7288_v29  ;;  %v16211_v57 = vpop.f32.mrf.mxu0  ;;  %v13446_v53 = vld [vmem:[%s17165_s8 + $0x1d0] ss:$8 sps:$4 sm:$0xff]   ;;  %10077 = vmatpush2.bf16.msra.mxu1 %v13443_v43 }
 0x484   : > { %v7254_v50 = vpop.f32.mrf.mxu1  ;;  %10118 = vmatpush2.bf16.msra.mxu0 %v13446_v53  ;;  %10078 = vmatprep.subr.bf16.mxu1 %v13451_v12  ;;  %v13470_v29 = vld [vmem:[%s17165_s8 + $0x190] ss:$8 sps:$4 sm:$0xff]  }
 0x485   : > { %v7289_v8 = vadd.f32 %v7254_v50, %v16053_v24  ;;  %v12915_v41 = vpop.f32.mrf.mxu0  ;;  %10119 = vmatprep.subr.bf16.mxu0 %v13454_v35 }
 0x486   : > { %v12811_v20 = vpop.f32.mrf.mxu1 }
 0x487   : > { %v16227_v33 = vadd.f32 %v16061_v30, %v7289_v8  ;;  %v16229_v6 = vpop.f32.mrf.mxu0  ;;  %v13457_v30 = vld [vmem:[%s17165_s8 + $0xb4] ss:$8 sps:$4 sm:$0xff]   ;;  %10079 = vmatpush2.bf16.msra.mxu1 %v13449_v27 }
 0x488   : > { %v7259_v24 = vpop.f32.mrf.mxu1  ;;  %10120 = vmatpush2.bf16.msra.mxu0 %v13452_v61  ;;  %10080 = vmatprep.subr.bf16.mxu1 %v13457_v30  ;;  %v13484_v8 = vld [vmem:[%s17165_s8 + $0x374] ss:$8 sps:$4 sm:$0xff]  }
 0x489   : > { %v7290_v5 = vadd.f32 %v7259_v24, %v16059_v31  ;;  %v12918_v38 = vpop.f32.mrf.mxu0  ;;  %10121 = vmatprep.subr.bf16.mxu0 %v13460_v44 }
 0x48a   : > { %v12814_v51 = vpop.f32.mrf.mxu1 }
 0x48b   : > { %v16245_v58 = vadd.f32 %v16085_v4, %v7290_v5  ;;  %v16247_v32 = vpop.f32.mrf.mxu0  ;;  %v13463_v4 = vld [vmem:[%s17165_s8 + $0xa4] ss:$8 sps:$4 sm:$0xff]   ;;  %10081 = vmatpush2.bf16.msra.mxu1 %v13455_v15 }
 0x48c   : > { %v7262_v31 = vpop.f32.mrf.mxu1  ;;  %10122 = vmatpush2.bf16.msra.mxu0 %v13458_v9  ;;  %10082 = vmatprep.subr.bf16.mxu1 %v13463_v4 }
 0x48d   : > { %v7291_v26 = vadd.f32 %v7262_v31, %v16080_v10  ;;  %v12919_v21 = vpop.f32.mrf.mxu0  ;;  %10123 = vmatprep.subr.bf16.mxu0 %v13466_v46 }
 0x48e   : > { %v12815_v60 = vpop.f32.mrf.mxu1 }
 0x48f   : > { %v16263_v62 = vadd.f32 %v16097_v52, %v7291_v26  ;;  %v16265_v49 = vpop.f32.mrf.mxu0  ;;  %v13469_v52 = vld [vmem:[%s17165_s8 + $0x94] ss:$8 sps:$4 sm:$0xff]   ;;  %10083 = vmatpush2.bf16.msra.mxu1 %v13461_v7 }
 0x490   : > { %v7267_v10 = vpop.f32.mrf.mxu1  ;;  %10124 = vmatpush2.bf16.msra.mxu0 %v13464_v36  ;;  %10084 = vmatprep.subr.bf16.mxu1 %v13469_v52 }
 0x491   : > { %v7292_v22 = vadd.f32 %v7267_v10, %v16095_v40  ;;  %v12922_v17 = vpop.f32.mrf.mxu0  ;;  %10125 = vmatprep.subr.bf16.mxu0 %v13472_v16 }
 0x492   : > { %v12818_v25 = vpop.f32.mrf.mxu1 }
 0x493   : > { %v16281_v3 = vadd.f32 %v16121_v14, %v7292_v22  ;;  %v16283_v56 = vpop.f32.mrf.mxu0  ;;  %v13475_v14 = vld [vmem:[%s17165_s8 + $0x84] ss:$8 sps:$4 sm:$0xff]   ;;  %10085 = vmatpush2.bf16.msra.mxu1 %v13467_v59 }
 0x494   : > { %v7270_v40 = vpop.f32.mrf.mxu1  ;;  %10126 = vmatpush2.bf16.msra.mxu0 %v13470_v29  ;;  %10086 = vmatprep.subr.bf16.mxu1 %v13475_v14 }
 0x495   : > { %v7293_v2 = vadd.f32 %v7270_v40, %v16116_v55  ;;  %v12923_v23 = vpop.f32.mrf.mxu0  ;;  %10127 = vmatprep.subr.bf16.mxu0 %v13478_v34 }
 0x496   : > { %v12819_v47 = vpop.f32.mrf.mxu1 }
 0x497   : > { %v16299_v28 = vadd.f32 %v16139_v45, %v7293_v2  ;;  %v16301_v1 = vpop.f32.mrf.mxu0  ;;  %v13481_v45 = vld [vmem:[%s17165_s8 + $0x274] ss:$8 sps:$4 sm:$0xff]   ;;  %10087 = vmatpush2.bf16.msra.mxu1 %v13473_v13 }
 0x498   : > { %v7601_v55 = vpop.f32.mrf.mxu1  ;;  %10128 = vmatpush2.bf16.msra.mxu0 %v13476_v11  ;;  %10138 = vmatprep.subr.bf16.mxu1 %v13481_v45 }
 0x499   : > { %v7650_v18 = vadd.f32 %v7601_v55, %v16137_v39  ;;  %v12926_v43 = vpop.f32.mrf.mxu0  ;;  %10179 = vmatprep.subr.bf16.mxu0 %v13484_v8 }
 0x49a   : > { %v12874_v50 = vpop.f32.mrf.mxu1 }
 0x49b   : > { %v7833_v53 = vadd.f32 %v16151_v19, %v7650_v18  ;;  %v7819_v12 = vpop.f32.mrf.mxu0 }
 0x49c   : > { %v7604_v39 = vpop.f32.mrf.mxu1 }
 0x49d   : > { %v7651_v20 = vadd.f32 %v7604_v39, %v16149_v54  ;;  %v12927_v35 = vpop.f32.mrf.mxu0 }
 0x49e   : > { %v12875_v41 = vpop.f32.mrf.mxu1 }
 0x49f   : > { %v7834_v24 = vadd.f32 %v16175_v48, %v7651_v20  ;;  %v8150_v5 = vpop.f32.mrf.mxu0 }
 0x4a0   : > { %v7609_v27 = vpop.f32.mrf.mxu1 }
 0x4a1   : > { %v7652_v61 = vadd.f32 %v7609_v27, %v16170_v0  ;;  %v12982_v51 = vpop.f32.mrf.mxu0 }
 0x4a2   : > { %v12878_v30 = vpop.f32.mrf.mxu1 }
 0x4a3   : > { %v7835_v19 = vadd.f32 %v16187_v37, %v7652_v61  ;;  %v8153_v44 = vpop.f32.mrf.mxu0 }
 0x4a4   : > { %v7612_v38 = vpop.f32.mrf.mxu1 }
 0x4a5   : > { %v7653_v31 = vadd.f32 %v7612_v38, %v16185_v42  ;;  %v12983_v15 = vpop.f32.mrf.mxu0  ;;  %v8237_v38 = vlaneseq }
 0x4a6   : > { %v12879_v54 = vpop.f32.mrf.mxu1 }
 0x4a7   : > { %v7836_v26 = vadd.f32 %v16211_v57, %v7653_v31  ;;  %v8158_v4 = vpop.f32.mrf.mxu0  ;;  %v13854_v54 = vmov 1966171168   ;;  %vm16361_vm8 = vcmp.lt.s32.totalorder %v8237_v38, 128 }
 0x4a8   : > { %v7617_v9 = vpop.f32.mrf.mxu1  ;;  %v8244_v15 = vunpack.c.l.s4 %v13854_v54 }
 0x4a9   : > { %v7654_v48 = vadd.f32 %v7617_v9, %v16206_v63  ;;  %v12986_v21 = vpop.f32.mrf.mxu0 }
 0x4aa   : > { %v12882_v60 = vpop.f32.mrf.mxu1 }
 0x4ab   : > { %v7837_v0 = vadd.f32 %v16229_v6, %v7654_v48  ;;  %v8161_v10 = vpop.f32.mrf.mxu0 }
 0x4ac   : > { %v7620_v46 = vpop.f32.mrf.mxu1 }
 0x4ad   : > { %v7655_v37 = vadd.f32 %v7620_v46, %v16227_v33  ;;  %v12987_v22 = vpop.f32.mrf.mxu0 }
 0x4ae   : > { %v12883_v7 = vpop.f32.mrf.mxu1  ;;  %v16358_v22 = vld [vmem:[%s17164_s7] ss:$0 sm:$0xff] }
 0x4af   : > { %v16327_v42 = vadd.f32 %v16247_v32, %v7655_v37  ;;  %v8166_v52 = vpop.f32.mrf.mxu0 }
 0x4b0   : > { %v7625_v36 = vpop.f32.mrf.mxu1 }
 0x4b1   : > { %v7656_v57 = vadd.f32 %v7625_v36, %v16245_v58  ;;  %v12990_v17 = vpop.f32.mrf.mxu0 }
 0x4b2   : > { %v12886_v25 = vpop.f32.mrf.mxu1  ;;  %v13505_v17 = vld [vmem:[%s17165_s8 + $0x234] ss:$8 sps:$4 sm:$0xff]  }
 0x4b3   : > { %v16331_v63 = vadd.f32 %v16265_v49, %v7656_v57  ;;  %v8169_v6 = vpop.f32.mrf.mxu0 }
 0x4b4   : > { %v7628_v16 = vpop.f32.mrf.mxu1 }
 0x4b5   : > { %v7657_v40 = vadd.f32 %v7628_v16, %v16263_v62  ;;  %v12991_v33 = vpop.f32.mrf.mxu0 }
 0x4b6   : > { %v12887_v59 = vpop.f32.mrf.mxu1 }
 0x4b7   : > { %v16335_v2 = vadd.f32 %v16283_v56, %v7657_v40  ;;  %v16337_v29 = vpop.f32.mrf.mxu0 }
 0x4b8   : > { %v7633_v32 = vpop.f32.mrf.mxu1 }
 0x4b9   : > { %v7658_v14 = vadd.f32 %v7633_v32, %v16281_v3  ;;  %v12994_v47 = vpop.f32.mrf.mxu0 }
 0x4ba   : > { %v12890_v58 = vpop.f32.mrf.mxu1 }
 0x4bb   : > { %v16341_v23 = vadd.f32 %v16301_v1, %v7658_v14  ;;  %v16343_v34 = vpop.f32.mrf.mxu0 }
 0x4bc   : > { %v7636_v49 = vpop.f32.mrf.mxu1 }
 0x4bd   : > { %v7659_v62 = vadd.f32 %v7636_v49, %v16299_v28  ;;  %v12995_v13 = vpop.f32.mrf.mxu0 }
 0x4be   : > { %v12891_v55 = vpop.f32.mrf.mxu1 }
 0x4bf   : > { %v16346_v18 = vadd.f32 %v7819_v12, %v7659_v62  ;;  %v16348_v11 = vpop.f32.mrf.mxu0 }
 0x4c0   : > { %v7967_v56 = vpop.f32.mrf.mxu1 }
 0x4c1   : > { %v8016_v45 = vadd.f32 %v7967_v56, %v7833_v53  ;;  %v12998_v3 = vpop.f32.mrf.mxu0 }
 0x4c2   : > { %v12946_v50 = vpop.f32.mrf.mxu1 }
 0x4c3   : > { %v8199_v43 = vadd.f32 %v8150_v5, %v8016_v45  ;;  %v16350_v39 = vpop.f32.mrf.mxu0 }
 0x4c4   : > { %v7970_v8 = vpop.f32.mrf.mxu1 }
 0x4c5   : > { %8209 = vst [vmem:[#allocation5] sm:$0xff] %v8199_v43  ;;  %v8017_v1 = vadd.f32 %v7970_v8, %v7834_v24  ;;  %v12999_v41 = vpop.f32.mrf.mxu0 }
 0x4c6   : > { %v12947_v20 = vpop.f32.mrf.mxu1 }
 0x4c7   : > { %v8200_v35 = vadd.f32 %v8153_v44, %v8017_v1  ;;  %v16352_v44 = vshrl.u32 %v8237_v38, 7 }
 0x4c8   : > { %v7975_v28 = vpop.f32.mrf.mxu1 }
 0x4c9   : > { %8210 = vst [vmem:[#allocation5 + $0x8] sm:$0xff] %v8200_v35  ;;  %v8018_v27 = vadd.f32 %v7975_v28, %v7835_v19 }
 0x4ca   : > { %v12950_v12 = vpop.f32.mrf.mxu1 }
 0x4cb   : > { %v8201_v61 = vadd.f32 %v8158_v4, %v8018_v27 }
 0x4cc   : > { %v7978_v30 = vpop.f32.mrf.mxu1  ;;  %v8219_v24 = vld [vmem:[#allocation5] ss:$2 sm:$0xf]  ;;  %v8221_v48 = vld [vmem:[#allocation5 + $0x1] ss:$2 sm:$0xf] }
 0x4cd   : > { %8211 = vst [vmem:[#allocation5 + $0x10] sm:$0xff] %v8201_v61  ;;  %v8019_v51 = vadd.f32 %v7978_v30, %v7836_v26  ;;  %v8222_v37 = vmax.f32 %v8219_v24, %v8221_v48  ;;  %v8245_v26 = vunpack.c.0.s8 %v8244_v15 }
 0x4ce   : > { %v12951_v53 = vpop.f32.mrf.mxu1 }
 0x4cf   : > { %v8202_v31 = vadd.f32 %v8161_v10, %v8019_v51  ;;  %v16366_v16 = vsub.s32 %v8245_v26, %v16352_v44  ;;  %v16404_v26 = vsub.s32 1, %v16352_v44 }
 0x4d0   : > { %v7983_v5 = vpop.f32.mrf.mxu1 }
 0x4d1   : > { %8212 = vst [vmem:[#allocation5 + $0x18] sm:$0xff] %v8202_v31  ;;  %v8020_v9 = vadd.f32 %v7983_v5, %v7837_v0 }
 0x4d2   : > { %v12954_v60 = vpop.f32.mrf.mxu1 }
 0x4d3   : > { %v8203_v21 = vadd.f32 %v8166_v52, %v8020_v9 }
 0x4d4   : > { %v8224_v19 = vld [vmem:[#allocation5 + $0xa] ss:$2 sm:$0xf]  ;;  %v8226_v46 = vld [vmem:[#allocation5 + $0xb] ss:$2 sm:$0xf]  ;;  %v7986_v4 = vpop.f32.mrf.mxu1 }
 0x4d5   : > { %v8227_v7 = vmax.f32 %v8224_v19, %v8226_v46  ;;  %8213 = vst [vmem:[#allocation5 + $0x20] sm:$0xff] %v8203_v21  ;;  %v8021_v10 = vadd.f32 %v7986_v4, %v16327_v42 }
 0x4d6   : > { %v12955_v0 = vpop.f32.mrf.mxu1 }
 0x4d7   : > { %v8228_v36 = vmax.f32 %v8222_v37, %v8227_v7  ;;  %v8204_v57 = vadd.f32 %v8169_v6, %v8021_v10  ;;  %v8426_v10 = vsub.s32 3, %v16352_v44  ;;  %v16408_v0 = vsub.s32 0, %v16352_v44 }
 0x4d8   : > { %v7991_v25 = vpop.f32.mrf.mxu1  ;;  %v8274_v40 = vld [vmem:[#allocation5 + $0x14] ss:$2 sm:$0xf]  ;;  %v8276_v59 = vld [vmem:[#allocation5 + $0x15] ss:$2 sm:$0xf] }
 0x4d9   : > { %v8235_v52 = vadd.f32 %v16358_v22, %v8228_v36  ;;  %8214 = vst [vmem:[#allocation5 + $0x28] sm:$0xff] %v8204_v57  ;;  %v8022_v42 = vadd.f32 %v7991_v25, %v16331_v63  ;;  %v8277_v62 = vmax.f32 %v8274_v40, %v8276_v59  ;;  %v8422_v36 = vsub.s32 2, %v16352_v44 }
 0x4da   : > { %v12958_v33 = vpop.f32.mrf.mxu1  ;;  %v8434_v57 = vsub.s32 5, %v16352_v44  ;;  %v8442_v40 = vsub.s32 7, %v16352_v44 }
 0x4db   : > { %v8236_v32 = vmax.f32 %v8235_v52, 0.0  ;;  %v8205_v14 = vadd.f32 %v16337_v29, %v8022_v42 }
 0x4dc   : > { %v8279_v6 = vld [vmem:[#allocation5 + $0x1e] ss:$2 sm:$0xf]  ;;  %v8281_v58 = vld [vmem:[#allocation5 + $0x1f] ss:$2 sm:$0xf]  ;;  %v7994_v47 = vpop.f32.mrf.mxu1 }
 0x4dd   : > { %8241 = vst.msk [vmem:[#allocation6] sm:$0x1] %vm16361_vm8, %v8236_v32  ;;  %v8249_v49 = vrot.slane %v8236_v32, %v16366_v16  ;;  %v8282_v55 = vmax.f32 %v8279_v6, %v8281_v58  ;;  %8215 = vst [vmem:[#allocation5 + $0x30] sm:$0xff] %v8205_v14  ;;  %v8023_v13 = vadd.f32 %v7994_v47, %v16335_v2 }
 0x4de   : > { %v12959_v63 = vpop.f32.mrf.mxu1 }
 0x4df   : > { %v8250_v56 = vcombine.high %v8249_v49, %v8249_v49  ;;  %v8257_v45 = vrot.slane %v8249_v49, %v16366_v16  ;;  %v8283_v50 = vmax.f32 %v8277_v62, %v8282_v55  ;;  %v8206_v29 = vadd.f32 %v16343_v34, %v8023_v13  ;;  %v13479_v63 = vld [vmem:[%s17165_s8 + $0x270] ss:$8 sps:$4 sm:$0xff]  }
 0x4e0   : > { %v7999_v3 = vpop.f32.mrf.mxu1  ;;  %v8319_v12 = vld [vmem:[#allocation5 + $0x28] ss:$2 sm:$0xf]  ;;  %v8321_v61 = vld [vmem:[#allocation5 + $0x29] ss:$2 sm:$0xf] }
 0x4e1   : > { %v8264_v43 = vrot.slane %v8250_v56, %v16366_v16  ;;  %v8267_v8 = vcombine.high %v8257_v45, %v8257_v45  ;;  %v8284_v1 = vadd.f32 %v16358_v22, %v8283_v50  ;;  %8216 = vst [vmem:[#allocation5 + $0x38] sm:$0xff] %v8206_v29  ;;  %v8024_v20 = vadd.f32 %v7999_v3, %v16341_v23  ;;  %v13482_v50 = vld [vmem:[%s17165_s8 + $0x370] ss:$8 sps:$4 sm:$0xff]  }
 0x4e2   : > { %v12962_v41 = vpop.f32.mrf.mxu1  ;;  %v8322_v15 = vmax.f32 %v8319_v12, %v8321_v61  ;;  %v13496_v61 = vld [vmem:[%s17165_s8 + $0x354] ss:$8 sps:$4 sm:$0xff]  }
 0x4e3   : > { %8266 = vst.msk [vmem:[#allocation6 + $0x1] sm:$0x1] %vm16361_vm8, %v8264_v43  ;;  %8269 = vst.msk [vmem:[#allocation6 + $0x2] sm:$0x1] %vm16361_vm8, %v8267_v8  ;;  %v8270_v2 = vcombine.high %v8264_v43, %v8264_v43  ;;  %v8285_v35 = vmax.f32 %v8284_v1, 0.0  ;;  %v8207_v34 = vadd.f32 %v16348_v11, %v8024_v20 }
 0x4e4   : > { %v8002_v28 = vpop.f32.mrf.mxu1  ;;  %v13487_v8 = vld [vmem:[%s17165_s8 + $0x264] ss:$8 sps:$4 sm:$0xff]  }
 0x4e5   : > { %8272 = vst.msk [vmem:[#allocation6 + $0x3] sm:$0x1] %vm16361_vm8, %v8270_v2  ;;  %8286 = vst.msk [vmem:[#allocation6 + $0x4] sm:$0x1] %vm16361_vm8, %v8285_v35  ;;  %v8294_v23 = vrot.slane %v8285_v35, %v16366_v16  ;;  %v8025_v27 = vadd.f32 %v8002_v28, %v16346_v18  ;;  %v13490_v20 = vld [vmem:[%s17165_s8 + $0x364] ss:$8 sps:$4 sm:$0xff]  }
 0x4e6   : > { %8217 = vst [vmem:[#allocation5 + $0x40] sm:$0xff] %v8207_v34  ;;  %v12963_v30 = vpop.f32.mrf.mxu1  ;;  %v13485_v34 = vld [vmem:[%s17165_s8 + $0x260] ss:$8 sps:$4 sm:$0xff]  }
 0x4e7   : > { %v8295_v51 = vcombine.high %v8294_v23, %v8294_v23  ;;  %v8302_v53 = vrot.slane %v8294_v23, %v16366_v16  ;;  %v8208_v11 = vadd.f32 %v16350_v39, %v8025_v27  ;;  %v13488_v28 = vld [vmem:[%s17165_s8 + $0x360] ss:$8 sps:$4 sm:$0xff]   ;;  %v13493_v23 = vld [vmem:[%s17165_s8 + $0x254] ss:$8 sps:$4 sm:$0xff]  }
 0x4e8   : > { %v8324_v38 = vld [vmem:[#allocation5 + $0x32] ss:$2 sm:$0xf]  ;;  %v8326_v31 = vld [vmem:[#allocation5 + $0x33] ss:$2 sm:$0xf] }
 0x4e9   : > { %v8309_v5 = vrot.slane %v8295_v51, %v16366_v16  ;;  %v8312_v54 = vcombine.high %v8302_v53, %v8302_v53  ;;  %v8327_v9 = vmax.f32 %v8324_v38, %v8326_v31  ;;  %8218 = vst [vmem:[#allocation5 + $0x48] sm:$0xff] %v8208_v11  ;;  %v13494_v51 = vld [vmem:[%s17165_s8 + $0x350] ss:$8 sps:$4 sm:$0xff]   ;;  %v13499_v53 = vld [vmem:[%s17165_s8 + $0x244] ss:$8 sps:$4 sm:$0xff]  }
 0x4ea   : > { %v13502_v11 = vld [vmem:[%s17165_s8 + $0x344] ss:$8 sps:$4 sm:$0xff]   ;;  %v13497_v38 = vld [vmem:[%s17165_s8 + $0x240] ss:$8 sps:$4 sm:$0xff]  }
 0x4eb   : > { %8311 = vst.msk [vmem:[#allocation6 + $0x5] sm:$0x1] %vm16361_vm8, %v8309_v5  ;;  %8314 = vst.msk [vmem:[#allocation6 + $0x6] sm:$0x1] %vm16361_vm8, %v8312_v54  ;;  %v8315_v18 = vcombine.high %v8309_v5, %v8309_v5  ;;  %v8328_v24 = vmax.f32 %v8322_v15, %v8327_v9  ;;  %v13500_v31 = vld [vmem:[%s17165_s8 + $0x340] ss:$8 sps:$4 sm:$0xff]  }
 0x4ec   : > { %v13508_v5 = vld [vmem:[%s17165_s8 + $0x334] ss:$8 sps:$4 sm:$0xff]   ;;  %v13503_v54 = vld [vmem:[%s17165_s8 + $0x230] ss:$8 sps:$4 sm:$0xff]   ;;  %v13511_v9 = vld [vmem:[%s17165_s8 + $0x224] ss:$8 sps:$4 sm:$0xff]  }
 0x4ed   : > { %8317 = vst.msk [vmem:[#allocation6 + $0x7] sm:$0x1] %vm16361_vm8, %v8315_v18  ;;  %v8329_v39 = vadd.f32 %v16358_v22, %v8328_v24  ;;  %v8364_v48 = vld [vmem:[#allocation5 + $0x3c] ss:$2 sm:$0xf] }
 0x4ee   : > { %v8366_v60 = vld [vmem:[#allocation5 + $0x3d] ss:$2 sm:$0xf]  ;;  %v13506_v15 = vld [vmem:[%s17165_s8 + $0x330] ss:$8 sps:$4 sm:$0xff]  }
 0x4ef   : > { %v8330_v21 = vmax.f32 %v8329_v39, 0.0  ;;  %v8367_v37 = vmax.f32 %v8364_v48, %v8366_v60  ;;  %v13514_v24 = vld [vmem:[%s17165_s8 + $0x324] ss:$8 sps:$4 sm:$0xff]   ;;  %v13509_v60 = vld [vmem:[%s17165_s8 + $0x220] ss:$8 sps:$4 sm:$0xff]  }
 0x4f0   : > { %v8369_v19 = vld [vmem:[#allocation5 + $0x46] ss:$2 sm:$0xf]  ;;  %v8371_v46 = vld [vmem:[#allocation5 + $0x47] ss:$2 sm:$0xf] }
 0x4f1   : > { %8331 = vst.msk [vmem:[#allocation6 + $0x8] sm:$0x1] %vm16361_vm8, %v8330_v21  ;;  %v8339_v4 = vrot.slane %v8330_v21, %v16366_v16  ;;  %v8372_v7 = vmax.f32 %v8369_v19, %v8371_v46  ;;  %v13512_v21 = vld [vmem:[%s17165_s8 + $0x320] ss:$8 sps:$4 sm:$0xff]   ;;  %v13517_v19 = vld [vmem:[%s17165_s8 + $0x214] ss:$8 sps:$4 sm:$0xff]  }
 0x4f2   : > { %v13520_v46 = vld [vmem:[%s17165_s8 + $0x314] ss:$8 sps:$4 sm:$0xff]  }
 0x4f3   : > { %v8340_v25 = vcombine.high %v8339_v4, %v8339_v4  ;;  %v8347_v52 = vrot.slane %v8339_v4, %v16366_v16  ;;  %v8373_v42 = vmax.f32 %v8367_v37, %v8372_v7  ;;  %v13515_v4 = vld [vmem:[%s17165_s8 + $0x210] ss:$8 sps:$4 sm:$0xff]   ;;  %v13523_v7 = vld [vmem:[%s17165_s8 + $0x204] ss:$8 sps:$4 sm:$0xff]  }
 0x4f4   : > { %v16414_v59 = vld [vmem:[#allocation6] sm:$0xff]  ;;  %v13518_v37 = vld [vmem:[%s17165_s8 + $0x310] ss:$8 sps:$4 sm:$0xff]  }
 0x4f5   : > { %v8354_v33 = vrot.slane %v8340_v25, %v16366_v16  ;;  %v8357_v32 = vcombine.high %v8347_v52, %v8347_v52  ;;  %v8374_v14 = vadd.f32 %v16358_v22, %v8373_v42  ;;  %v8419_v6 = vrot.slane %v16414_v59, %v16404_v26  ;;  %v13521_v25 = vld [vmem:[%s17165_s8 + $0x200] ss:$8 sps:$4 sm:$0xff]   ;;  %v13529_v42 = vld [vmem:[%s17165_s8 + $0x2f4] ss:$8 sps:$4 sm:$0xff]  }
 0x4f6   : > { %v8427_v58 = vrot.slane %v16414_v59, %v8426_v10  ;;  %v8415_v47 = vrot.slane %v16414_v59, %v16408_v0  ;;  %v8423_v49 = vrot.slane %v16414_v59, %v8422_v36  ;;  %v8435_v62 = vrot.slane %v16414_v59, %v8434_v57  ;;  %v13524_v52 = vld [vmem:[%s17165_s8 + $0x300] ss:$8 sps:$4 sm:$0xff]  }
 0x4f7   : > { %8356 = vst.msk [vmem:[#allocation6 + $0x9] sm:$0x1] %vm16361_vm8, %v8354_v33  ;;  %8359 = vst.msk [vmem:[#allocation6 + $0xa] sm:$0x1] %vm16361_vm8, %v8357_v32  ;;  %v8360_v22 = vcombine.high %v8354_v33, %v8354_v33  ;;  %v8375_v55 = vmax.f32 %v8374_v14, 0.0  ;;  %v8493_v13 = vpack.c.bf16 %v8419_v6, %v8419_v6  ;;  %v8443_v56 = vrot.slane %v16414_v59, %v8442_v40 }
 0x4f8   : > { %v8495_v45 = vpack.c.bf16 %v8427_v58, %v8427_v58  ;;  %v8492_v29 = vpack.c.bf16 %v8415_v47, %v8415_v47  ;;  %v8494_v3 = vpack.c.bf16 %v8423_v49, %v8423_v49  ;;  %v8497_v1 = vpack.c.bf16 %v8435_v62, %v8435_v62  ;;  %v13527_v33 = vld [vmem:[%s17165_s8 + $0x2f0] ss:$8 sps:$4 sm:$0xff]   ;;  %v13535_v14 = vld [vmem:[%s17165_s8 + $0x2e4] ss:$8 sps:$4 sm:$0xff]   ;;  %v13533_v58 = vld [vmem:[%s17165_s8 + $0x2e0] ss:$8 sps:$4 sm:$0xff]  }
 0x4f9   : > { %8362 = vst.msk [vmem:[#allocation6 + $0xb] sm:$0x1] %vm16361_vm8, %v8360_v22  ;;  %8376 = vst.msk [vmem:[#allocation6 + $0xc] sm:$0x1] %vm16361_vm8, %v8375_v55  ;;  %v8384_v43 = vrot.slane %v8375_v55, %v16366_v16  ;;  %10088 = vmatprep.mubr.bf16.mxu1 %v8493_v13  ;;  %v8499_v35 = vpack.c.bf16 %v8443_v56, %v8443_v56  ;;  %v13530_v32 = vld [vmem:[%s17165_s8 + $0x3f0] ss:$8 sps:$4 sm:$0xff]  }
 0x4fa   : > { %10129 = vmatprep.mubr.bf16.mxu0 %v8495_v45  ;;  %10089 = vmatmul.mubr.bf16.vlgmr.msra.gmra.mxu1 %v8492_v29  ;;  %v13538_v6 = vld [vmem:[%s17165_s8 + $0x3e4] ss:$8 sps:$4 sm:$0xff]   ;;  %v13536_v47 = vld [vmem:[%s17165_s8 + $0x3e0] ss:$8 sps:$4 sm:$0xff]   ;;  %v13541_v49 = vld [vmem:[%s17165_s8 + $0x2d4] ss:$8 sps:$4 sm:$0xff]  }
 0x4fb   : > { %v8385_v41 = vcombine.high %v8384_v43, %v8384_v43  ;;  %v8392_v2 = vrot.slane %v8384_v43, %v16366_v16  ;;  %10130 = vmatmul.mubr.bf16.vlgmr.msra.gmra.mxu0 %v8494_v3  ;;  %10139 = vmatpush1.bf16.msra.mxu1 %v13479_v63  ;;  %v13544_v62 = vld [vmem:[%s17165_s8 + $0x3d4] ss:$8 sps:$4 sm:$0xff]   ;;  %v13539_v22 = vld [vmem:[%s17165_s8 + $0x2d0] ss:$8 sps:$4 sm:$0xff]   ;;  %v13547_v13 = vld [vmem:[%s17165_s8 + $0x2c4] ss:$8 sps:$4 sm:$0xff]  }
 0x4fc   : > { %10180 = vmatpush1.bf16.msra.mxu0 %v13482_v50  ;;  %10170 = vmatprep.mubr.bf16.mxu1 %v8497_v1  ;;  %v13542_v55 = vld [vmem:[%s17165_s8 + $0x3d0] ss:$8 sps:$4 sm:$0xff]   ;;  %v13550_v63 = vld [vmem:[%s17165_s8 + $0x3c4] ss:$8 sps:$4 sm:$0xff]   ;;  %v13545_v56 = vld [vmem:[%s17165_s8 + $0x2c0] ss:$8 sps:$4 sm:$0xff]  }
 0x4fd   : > { %v8399_v27 = vrot.slane %v8385_v41, %v16366_v16  ;;  %v8402_v12 = vcombine.high %v8392_v2, %v8392_v2  ;;  %10211 = vmatprep.mubr.bf16.mxu0 %v8499_v35  ;;  %10140 = vmatprep.subr.bf16.mxu1 %v13487_v8  ;;  %v13491_v16 = vld [vmem:[%s17165_s8 + $0x250] ss:$8 sps:$4 sm:$0xff]   ;;  %v13548_v45 = vld [vmem:[%s17165_s8 + $0x3c0] ss:$8 sps:$4 sm:$0xff]   ;;  %v13553_v50 = vld [vmem:[%s17165_s8 + $0x2b4] ss:$8 sps:$4 sm:$0xff]  }
 0x4fe   : > { %10181 = vmatprep.subr.bf16.mxu0 %v13490_v20  ;;  %v13556_v29 = vld [vmem:[%s17165_s8 + $0x3b4] ss:$8 sps:$4 sm:$0xff]   ;;  %v13551_v3 = vld [vmem:[%s17165_s8 + $0x2b0] ss:$8 sps:$4 sm:$0xff]   ;;  %v13559_v8 = vld [vmem:[%s17165_s8 + $0x2a4] ss:$8 sps:$4 sm:$0xff]  }
 0x4ff   : > { %8401 = vst.msk [vmem:[#allocation6 + $0xd] sm:$0x1] %vm16361_vm8, %v8399_v27  ;;  %8404 = vst.msk [vmem:[#allocation6 + $0xe] sm:$0x1] %vm16361_vm8, %v8402_v12  ;;  %v8405_v30 = vcombine.high %v8399_v27, %v8399_v27  ;;  %10141 = vmatpush1.bf16.msra.mxu1 %v13485_v34  ;;  %v13554_v43 = vld [vmem:[%s17165_s8 + $0x3b0] ss:$8 sps:$4 sm:$0xff]  }
 0x500   : > { %10182 = vmatpush1.bf16.msra.mxu0 %v13488_v28  ;;  %10142 = vmatprep.subr.bf16.mxu1 %v13493_v23  ;;  %v13562_v1 = vld [vmem:[%s17165_s8 + $0x3a4] ss:$8 sps:$4 sm:$0xff]   ;;  %v13557_v20 = vld [vmem:[%s17165_s8 + $0x2a0] ss:$8 sps:$4 sm:$0xff]   ;;  %v13565_v2 = vld [vmem:[%s17165_s8 + $0x294] ss:$8 sps:$4 sm:$0xff]  }
 0x501   : > { %8407 = vst.msk [vmem:[#allocation6 + $0xf] sm:$0x1] %vm16361_vm8, %v8405_v30  ;;  %10183 = vmatprep.subr.bf16.mxu0 %v13496_v61  ;;  %v13560_v41 = vld [vmem:[%s17165_s8 + $0x3a0] ss:$8 sps:$4 sm:$0xff]   ;;  %v13568_v35 = vld [vmem:[%s17165_s8 + $0x394] ss:$8 sps:$4 sm:$0xff]  }
 0x502   : > { %v13563_v34 = vld [vmem:[%s17165_s8 + $0x290] ss:$8 sps:$4 sm:$0xff]   ;;  %v13571_v23 = vld [vmem:[%s17165_s8 + $0x284] ss:$8 sps:$4 sm:$0xff]   ;;  %v8430_v27 = vsub.s32 4, %v16352_v44  ;;  %v8438_v12 = vsub.s32 6, %v16352_v44 }
 0x503   : > { %10143 = vmatpush1.bf16.msra.mxu1 %v13491_v16  ;;  %v13566_v28 = vld [vmem:[%s17165_s8 + $0x390] ss:$8 sps:$4 sm:$0xff]   ;;  %v13574_v61 = vld [vmem:[%s17165_s8 + $0x384] ss:$8 sps:$4 sm:$0xff]  }
 0x504   : > { %10184 = vmatpush1.bf16.msra.mxu0 %v13494_v51  ;;  %10144 = vmatprep.subr.bf16.mxu1 %v13499_v53  ;;  %v13569_v51 = vld [vmem:[%s17165_s8 + $0x280] ss:$8 sps:$4 sm:$0xff]   ;;  %v13679_v44 = vld [vmem:[%s17165_s8 + $0x664] ss:$8 sps:$4 sm:$0xff]  }
 0x505   : > { %10185 = vmatprep.subr.bf16.mxu0 %v13502_v11  ;;  %v13572_v53 = vld [vmem:[%s17165_s8 + $0x380] ss:$8 sps:$4 sm:$0xff]   ;;  %v8431_v11 = vrot.slane %v16414_v59, %v8430_v27 }
 0x507   : > { %10145 = vmatpush1.bf16.msra.mxu1 %v13497_v38  ;;  %v13577_v38 = vld [vmem:[%s17165_s8 + $0x474] ss:$8 sps:$4 sm:$0xff]  }
 0x508   : > { %10186 = vmatpush1.bf16.msra.mxu0 %v13500_v31  ;;  %10146 = vmatprep.subr.bf16.mxu1 %v13505_v17  ;;  %v16508_v18 = vld [vmem:[#allocation6 + $0x8] sm:$0xff]  ;;  %v8439_v31 = vrot.slane %v16414_v59, %v8438_v12  ;;  %v13580_v17 = vld [vmem:[%s17165_s8 + $0x574] ss:$8 sps:$4 sm:$0xff]   ;;  %v13578_v59 = vld [vmem:[%s17165_s8 + $0x570] ss:$8 sps:$4 sm:$0xff]  }
 0x509   : > { %10187 = vmatprep.subr.bf16.mxu0 %v13508_v5  ;;  %v16516_v39 = vrot.slane %v16508_v18, %v8434_v57  ;;  %v16521_v48 = vrot.slane %v16508_v18, %v8442_v40  ;;  %v13526_v57 = vld [vmem:[%s17165_s8 + $0x304] ss:$8 sps:$4 sm:$0xff]   ;;  %v13532_v40 = vld [vmem:[%s17165_s8 + $0x3f4] ss:$8 sps:$4 sm:$0xff]   ;;  %v16646_v30 = vrot.slane %v16508_v18, %v8430_v27  ;;  %v16649_v16 = vrot.slane %v16508_v18, %v8438_v12  ;;  %v13635_v27 = vld [vmem:[%s17165_s8 + $0x4d0] ss:$8 sps:$4 sm:$0xff]  }
 0x50a   : > { %v8451_v5 = vrot.slane %v16508_v18, %v16404_v26  ;;  %v13638_v12 = vld [vmem:[%s17165_s8 + $0x5d0] ss:$8 sps:$4 sm:$0xff]  }
 0x50b   : > { %10147 = vmatpush1.bf16.msra.mxu1 %v13503_v54  ;;  %v13575_v54 = vld [vmem:[%s17165_s8 + $0x470] ss:$8 sps:$4 sm:$0xff]  }
 0x50c   : > { %10188 = vmatpush1.bf16.msra.mxu0 %v13506_v15  ;;  %10148 = vmatprep.subr.bf16.mxu1 %v13511_v9  ;;  %v8459_v15 = vrot.slane %v16508_v18, %v8426_v10  ;;  %v8496_v9 = vpack.c.bf16 %v8431_v11, %v8431_v11  ;;  %v13644_v11 = vld [vmem:[%s17165_s8 + $0x5c0] ss:$8 sps:$4 sm:$0xff]  }
 0x50d   : > { %10189 = vmatprep.subr.bf16.mxu0 %v13514_v24  ;;  %v8498_v24 = vpack.c.bf16 %v8439_v31, %v8439_v31  ;;  %v13652_v31 = vld [vmem:[%s17165_s8 + $0x5b4] ss:$8 sps:$4 sm:$0xff]  }
 0x50e   : > { %v8503_v10 = vpack.c.bf16 %v8459_v15, %v8459_v15  ;;  %v13658_v15 = vld [vmem:[%s17165_s8 + $0x5a4] ss:$8 sps:$4 sm:$0xff]  }
 0x50f   : > { %10149 = vmatpush1.bf16.msra.mxu1 %v13509_v60  ;;  %v13583_v60 = vld [vmem:[%s17165_s8 + $0x464] ss:$8 sps:$4 sm:$0xff]  }
 0x510   : > { %10190 = vmatpush1.bf16.msra.mxu0 %v13512_v21  ;;  %10150 = vmatprep.subr.bf16.mxu1 %v13517_v19  ;;  %v8501_v21 = vpack.c.bf16 %v8451_v5, %v8451_v5  ;;  %v13586_v19 = vld [vmem:[%s17165_s8 + $0x564] ss:$8 sps:$4 sm:$0xff]   ;;  %v13650_v5 = vld [vmem:[%s17165_s8 + $0x5b0] ss:$8 sps:$4 sm:$0xff]  }
 0x511   : > { %10191 = vmatprep.subr.bf16.mxu0 %v13520_v46  ;;  %v13581_v46 = vld [vmem:[%s17165_s8 + $0x460] ss:$8 sps:$4 sm:$0xff]  }
 0x513   : > { %10151 = vmatpush1.bf16.msra.mxu1 %v13515_v4  ;;  %v13584_v4 = vld [vmem:[%s17165_s8 + $0x560] ss:$8 sps:$4 sm:$0xff]  }
 0x514   : > { %10192 = vmatpush1.bf16.msra.mxu0 %v13518_v37  ;;  %10152 = vmatprep.subr.bf16.mxu1 %v13523_v7  ;;  %v13589_v37 = vld [vmem:[%s17165_s8 + $0x454] ss:$8 sps:$4 sm:$0xff]  }
 0x515   : > { %10193 = vmatprep.subr.bf16.mxu0 %v13526_v57  ;;  %v13592_v7 = vld [vmem:[%s17165_s8 + $0x554] ss:$8 sps:$4 sm:$0xff]   ;;  %v13587_v57 = vld [vmem:[%s17165_s8 + $0x450] ss:$8 sps:$4 sm:$0xff]  }
 0x517   : > { %10153 = vmatpush1.bf16.msra.mxu1 %v13521_v25  ;;  %v13590_v25 = vld [vmem:[%s17165_s8 + $0x550] ss:$8 sps:$4 sm:$0xff]  }
 0x518   : > { %10194 = vmatpush1.bf16.msra.mxu0 %v13524_v52  ;;  %10154 = vmatprep.subr.bf16.mxu1 %v13529_v42  ;;  %v13595_v52 = vld [vmem:[%s17165_s8 + $0x444] ss:$8 sps:$4 sm:$0xff]  }
 0x519   : > { %10195 = vmatprep.subr.bf16.mxu0 %v13532_v40  ;;  %v13598_v42 = vld [vmem:[%s17165_s8 + $0x544] ss:$8 sps:$4 sm:$0xff]   ;;  %v13593_v40 = vld [vmem:[%s17165_s8 + $0x440] ss:$8 sps:$4 sm:$0xff]  }
 0x51b   : > { %10155 = vmatpush2.bf16.msra.mxu1 %v13527_v33  ;;  %v13596_v33 = vld [vmem:[%s17165_s8 + $0x540] ss:$8 sps:$4 sm:$0xff]  }
 0x51c   : > { %10196 = vmatpush2.bf16.msra.mxu0 %v13530_v32  ;;  %10156 = vmatprep.subr.bf16.mxu1 %v13535_v14  ;;  %v13601_v32 = vld [vmem:[%s17165_s8 + $0x434] ss:$8 sps:$4 sm:$0xff]  }
 0x51d   : > { %10197 = vmatprep.subr.bf16.mxu0 %v13538_v6  ;;  %v13604_v14 = vld [vmem:[%s17165_s8 + $0x534] ss:$8 sps:$4 sm:$0xff]   ;;  %v13599_v6 = vld [vmem:[%s17165_s8 + $0x430] ss:$8 sps:$4 sm:$0xff]  }
 0x51f   : > { %10157 = vmatpush2.bf16.msra.mxu1 %v13533_v58  ;;  %v13602_v58 = vld [vmem:[%s17165_s8 + $0x530] ss:$8 sps:$4 sm:$0xff]  }
 0x520   : > { %10198 = vmatpush2.bf16.msra.mxu0 %v13536_v47  ;;  %10158 = vmatprep.subr.bf16.mxu1 %v13541_v49  ;;  %v13607_v47 = vld [vmem:[%s17165_s8 + $0x424] ss:$8 sps:$4 sm:$0xff]  }
 0x521   : > { %10199 = vmatprep.subr.bf16.mxu0 %v13544_v62  ;;  %v13610_v49 = vld [vmem:[%s17165_s8 + $0x524] ss:$8 sps:$4 sm:$0xff]   ;;  %v13605_v62 = vld [vmem:[%s17165_s8 + $0x420] ss:$8 sps:$4 sm:$0xff]  }
 0x523   : > { %10159 = vmatpush2.bf16.msra.mxu1 %v13539_v22  ;;  %v13608_v22 = vld [vmem:[%s17165_s8 + $0x520] ss:$8 sps:$4 sm:$0xff]  }
 0x524   : > { %10200 = vmatpush2.bf16.msra.mxu0 %v13542_v55  ;;  %10160 = vmatprep.subr.bf16.mxu1 %v13547_v13  ;;  %v13613_v55 = vld [vmem:[%s17165_s8 + $0x414] ss:$8 sps:$4 sm:$0xff]  }
 0x525   : > { %10201 = vmatprep.subr.bf16.mxu0 %v13550_v63  ;;  %v13616_v13 = vld [vmem:[%s17165_s8 + $0x514] ss:$8 sps:$4 sm:$0xff]   ;;  %v13611_v63 = vld [vmem:[%s17165_s8 + $0x410] ss:$8 sps:$4 sm:$0xff]  }
 0x527   : > { %10161 = vmatpush2.bf16.msra.mxu1 %v13545_v56  ;;  %v13614_v56 = vld [vmem:[%s17165_s8 + $0x510] ss:$8 sps:$4 sm:$0xff]  }
 0x528   : > { %10202 = vmatpush2.bf16.msra.mxu0 %v13548_v45  ;;  %10162 = vmatprep.subr.bf16.mxu1 %v13553_v50  ;;  %v13619_v45 = vld [vmem:[%s17165_s8 + $0x404] ss:$8 sps:$4 sm:$0xff]  }
 0x529   : > { %10203 = vmatprep.subr.bf16.mxu0 %v13556_v29  ;;  %v13622_v50 = vld [vmem:[%s17165_s8 + $0x504] ss:$8 sps:$4 sm:$0xff]   ;;  %v13617_v29 = vld [vmem:[%s17165_s8 + $0x400] ss:$8 sps:$4 sm:$0xff]  }
 0x52b   : > { %10163 = vmatpush2.bf16.msra.mxu1 %v13551_v3  ;;  %v13620_v3 = vld [vmem:[%s17165_s8 + $0x500] ss:$8 sps:$4 sm:$0xff]  }
 0x52c   : > { %10204 = vmatpush2.bf16.msra.mxu0 %v13554_v43  ;;  %10164 = vmatprep.subr.bf16.mxu1 %v13559_v8  ;;  %v13625_v43 = vld [vmem:[%s17165_s8 + $0x4f4] ss:$8 sps:$4 sm:$0xff]  }
 0x52d   : > { %10205 = vmatprep.subr.bf16.mxu0 %v13562_v1  ;;  %v13628_v8 = vld [vmem:[%s17165_s8 + $0x5f4] ss:$8 sps:$4 sm:$0xff]   ;;  %v13623_v1 = vld [vmem:[%s17165_s8 + $0x4f0] ss:$8 sps:$4 sm:$0xff]  }
 0x52f   : > { %10165 = vmatpush2.bf16.msra.mxu1 %v13557_v20  ;;  %v13626_v20 = vld [vmem:[%s17165_s8 + $0x5f0] ss:$8 sps:$4 sm:$0xff]  }
 0x530   : > { %10206 = vmatpush2.bf16.msra.mxu0 %v13560_v41  ;;  %10166 = vmatprep.subr.bf16.mxu1 %v13565_v2  ;;  %v13631_v41 = vld [vmem:[%s17165_s8 + $0x4e4] ss:$8 sps:$4 sm:$0xff]  }
 0x531   : > { %10207 = vmatprep.subr.bf16.mxu0 %v13568_v35  ;;  %v13634_v2 = vld [vmem:[%s17165_s8 + $0x5e4] ss:$8 sps:$4 sm:$0xff]   ;;  %v13629_v35 = vld [vmem:[%s17165_s8 + $0x4e0] ss:$8 sps:$4 sm:$0xff]  }
 0x533   : > { %10167 = vmatpush2.bf16.msra.mxu1 %v13563_v34  ;;  %v13632_v34 = vld [vmem:[%s17165_s8 + $0x5e0] ss:$8 sps:$4 sm:$0xff]  }
 0x534   : > { %10208 = vmatpush2.bf16.msra.mxu0 %v13566_v28  ;;  %10168 = vmatprep.subr.bf16.mxu1 %v13571_v23  ;;  %v13637_v28 = vld [vmem:[%s17165_s8 + $0x4d4] ss:$8 sps:$4 sm:$0xff]  }
 0x535   : > { %10209 = vmatprep.subr.bf16.mxu0 %v13574_v61  ;;  %v13640_v23 = vld [vmem:[%s17165_s8 + $0x5d4] ss:$8 sps:$4 sm:$0xff]   ;;  %v13643_v61 = vld [vmem:[%s17165_s8 + $0x4c4] ss:$8 sps:$4 sm:$0xff]  }
 0x537   : > { %10169 = vmatpush2.bf16.msra.mxu1 %v13569_v51  ;;  %v13646_v51 = vld [vmem:[%s17165_s8 + $0x5c4] ss:$8 sps:$4 sm:$0xff]  }
 0x538   : > { %10210 = vmatpush2.bf16.msra.mxu0 %v13572_v53  ;;  %10220 = vmatprep.subr.bf16.mxu1 %v13577_v38  ;;  %v13641_v53 = vld [vmem:[%s17165_s8 + $0x4c0] ss:$8 sps:$4 sm:$0xff]   ;;  %v13649_v38 = vld [vmem:[%s17165_s8 + $0x4b4] ss:$8 sps:$4 sm:$0xff]  }
 0x539   : > { %10261 = vmatprep.subr.bf16.mxu0 %v13580_v17  ;;  %v13647_v17 = vld [vmem:[%s17165_s8 + $0x4b0] ss:$8 sps:$4 sm:$0xff]  }
 0x53a   : > { %10171 = vmatmul.mubr.bf16.vlgmr.msra.gmra.mxu1 %v8496_v9  ;;  %v13653_v9 = vld [vmem:[%s17165_s8 + $0x4a0] ss:$8 sps:$4 sm:$0xff]  }
 0x53b   : > { %10212 = vmatmul.mubr.bf16.vlgmr.msra.gmra.mxu0 %v8498_v24  ;;  %10221 = vmatpush1.bf16.msra.mxu1 %v13575_v54  ;;  %v13655_v54 = vld [vmem:[%s17165_s8 + $0x4a4] ss:$8 sps:$4 sm:$0xff]   ;;  %v13661_v24 = vld [vmem:[%s17165_s8 + $0x494] ss:$8 sps:$4 sm:$0xff]  }
 0x53c   : > { %10252 = vmatprep.mubr.bf16.mxu1 %v8501_v21  ;;  %10262 = vmatpush1.bf16.msra.mxu0 %v13578_v59  ;;  %v13656_v59 = vld [vmem:[%s17165_s8 + $0x5a0] ss:$8 sps:$4 sm:$0xff]   ;;  %v13659_v21 = vld [vmem:[%s17165_s8 + $0x490] ss:$8 sps:$4 sm:$0xff]  }
 0x53d   : > { %10293 = vmatprep.mubr.bf16.mxu0 %v8503_v10  ;;  %10222 = vmatprep.subr.bf16.mxu1 %v13583_v60  ;;  %v13664_v60 = vld [vmem:[%s17165_s8 + $0x594] ss:$8 sps:$4 sm:$0xff]   ;;  %v13667_v10 = vld [vmem:[%s17165_s8 + $0x484] ss:$8 sps:$4 sm:$0xff]  }
 0x53e   : > { %10263 = vmatprep.subr.bf16.mxu0 %v13586_v19  ;;  %v13662_v19 = vld [vmem:[%s17165_s8 + $0x590] ss:$8 sps:$4 sm:$0xff]  }
 0x53f   : > { %10223 = vmatpush1.bf16.msra.mxu1 %v13581_v46  ;;  %v13670_v46 = vld [vmem:[%s17165_s8 + $0x584] ss:$8 sps:$4 sm:$0xff]  }
 0x540   : > { %10264 = vmatpush1.bf16.msra.mxu0 %v13584_v4  ;;  %10224 = vmatprep.subr.bf16.mxu1 %v13589_v37  ;;  %v13665_v4 = vld [vmem:[%s17165_s8 + $0x480] ss:$8 sps:$4 sm:$0xff]  }
 0x541   : > { %10265 = vmatprep.subr.bf16.mxu0 %v13592_v7  ;;  %v13668_v37 = vld [vmem:[%s17165_s8 + $0x580] ss:$8 sps:$4 sm:$0xff]   ;;  %v8447_v7 = vrot.slane %v16508_v18, %v16408_v0 }
 0x543   : > { %10225 = vmatpush1.bf16.msra.mxu1 %v13587_v57  ;;  %v13673_v57 = vld [vmem:[%s17165_s8 + $0x674] ss:$8 sps:$4 sm:$0xff]  }
 0x544   : > { %10266 = vmatpush1.bf16.msra.mxu0 %v13590_v25  ;;  %10226 = vmatprep.subr.bf16.mxu1 %v13595_v52  ;;  %v8455_v25 = vrot.slane %v16508_v18, %v8422_v36  ;;  %v13676_v52 = vld [vmem:[%s17165_s8 + $0x774] ss:$8 sps:$4 sm:$0xff]   ;;  %v8505_v36 = vpack.c.bf16 %v16516_v39, %v16516_v39  ;;  %v13682_v18 = vld [vmem:[%s17165_s8 + $0x764] ss:$8 sps:$4 sm:$0xff]  }
 0x545   : > { %10267 = vmatprep.subr.bf16.mxu0 %v13598_v42  ;;  %v13671_v42 = vld [vmem:[%s17165_s8 + $0x670] ss:$8 sps:$4 sm:$0xff]   ;;  %v13685_v39 = vld [vmem:[%s17165_s8 + $0x654] ss:$8 sps:$4 sm:$0xff]  }
 0x547   : > { %10227 = vmatpush1.bf16.msra.mxu1 %v13593_v40  ;;  %v8500_v40 = vpack.c.bf16 %v8447_v7, %v8447_v7  ;;  %v13749_v7 = vld [vmem:[%s17165_s8 + $0x6a0] ss:$8 sps:$4 sm:$0xff]  }
 0x548   : > { %10268 = vmatpush1.bf16.msra.mxu0 %v13596_v33  ;;  %10228 = vmatprep.subr.bf16.mxu1 %v13601_v32  ;;  %v13674_v33 = vld [vmem:[%s17165_s8 + $0x770] ss:$8 sps:$4 sm:$0xff]   ;;  %v8502_v32 = vpack.c.bf16 %v8455_v25, %v8455_v25  ;;  %v13757_v25 = vld [vmem:[%s17165_s8 + $0x694] ss:$8 sps:$4 sm:$0xff]  }
 0x549   : > { %10269 = vmatprep.subr.bf16.mxu0 %v13604_v14  ;;  %v8507_v14 = vpack.c.bf16 %v16521_v48, %v16521_v48  ;;  %v13688_v48 = vld [vmem:[%s17165_s8 + $0x754] ss:$8 sps:$4 sm:$0xff]  }
 0x54b   : > { %10229 = vmatpush1.bf16.msra.mxu1 %v13599_v6  ;;  %v13677_v6 = vld [vmem:[%s17165_s8 + $0x660] ss:$8 sps:$4 sm:$0xff]  }
 0x54c   : > { %10270 = vmatpush1.bf16.msra.mxu0 %v13602_v58  ;;  %10230 = vmatprep.subr.bf16.mxu1 %v13607_v47  ;;  %v13680_v58 = vld [vmem:[%s17165_s8 + $0x760] ss:$8 sps:$4 sm:$0xff]   ;;  %v13683_v47 = vld [vmem:[%s17165_s8 + $0x650] ss:$8 sps:$4 sm:$0xff]  }
 0x54d   : > { %10271 = vmatprep.subr.bf16.mxu0 %v13610_v49  ;;  %v13686_v49 = vld [vmem:[%s17165_s8 + $0x750] ss:$8 sps:$4 sm:$0xff]  }
 0x54f   : > { %10231 = vmatpush1.bf16.msra.mxu1 %v13605_v62  ;;  %v13691_v62 = vld [vmem:[%s17165_s8 + $0x644] ss:$8 sps:$4 sm:$0xff]  }
 0x550   : > { %10272 = vmatpush1.bf16.msra.mxu0 %v13608_v22  ;;  %10232 = vmatprep.subr.bf16.mxu1 %v13613_v55  ;;  %v13694_v22 = vld [vmem:[%s17165_s8 + $0x744] ss:$8 sps:$4 sm:$0xff]   ;;  %v13689_v55 = vld [vmem:[%s17165_s8 + $0x640] ss:$8 sps:$4 sm:$0xff]  }
 0x551   : > { %10273 = vmatprep.subr.bf16.mxu0 %v13616_v13  ;;  %v13692_v13 = vld [vmem:[%s17165_s8 + $0x740] ss:$8 sps:$4 sm:$0xff]  }
 0x553   : > { %10233 = vmatpush1.bf16.msra.mxu1 %v13611_v63  ;;  %v13697_v63 = vld [vmem:[%s17165_s8 + $0x634] ss:$8 sps:$4 sm:$0xff]  }
 0x554   : > { %10274 = vmatpush1.bf16.msra.mxu0 %v13614_v56  ;;  %10234 = vmatprep.subr.bf16.mxu1 %v13619_v45  ;;  %v13700_v56 = vld [vmem:[%s17165_s8 + $0x734] ss:$8 sps:$4 sm:$0xff]   ;;  %v13695_v45 = vld [vmem:[%s17165_s8 + $0x630] ss:$8 sps:$4 sm:$0xff]  }
 0x555   : > { %10275 = vmatprep.subr.bf16.mxu0 %v13622_v50  ;;  %v13698_v50 = vld [vmem:[%s17165_s8 + $0x730] ss:$8 sps:$4 sm:$0xff]  }
 0x557   : > { %10235 = vmatpush1.bf16.msra.mxu1 %v13617_v29  ;;  %v13703_v29 = vld [vmem:[%s17165_s8 + $0x624] ss:$8 sps:$4 sm:$0xff]  }
 0x558   : > { %10276 = vmatpush1.bf16.msra.mxu0 %v13620_v3  ;;  %10236 = vmatprep.subr.bf16.mxu1 %v13625_v43  ;;  %v13706_v3 = vld [vmem:[%s17165_s8 + $0x724] ss:$8 sps:$4 sm:$0xff]   ;;  %v13701_v43 = vld [vmem:[%s17165_s8 + $0x620] ss:$8 sps:$4 sm:$0xff]  }
 0x559   : > { %10277 = vmatprep.subr.bf16.mxu0 %v13628_v8  ;;  %v13704_v8 = vld [vmem:[%s17165_s8 + $0x720] ss:$8 sps:$4 sm:$0xff]  }
 0x55b   : > { %10237 = vmatpush2.bf16.msra.mxu1 %v13623_v1  ;;  %v13709_v1 = vld [vmem:[%s17165_s8 + $0x614] ss:$8 sps:$4 sm:$0xff]  }
 0x55c   : > { %10278 = vmatpush2.bf16.msra.mxu0 %v13626_v20  ;;  %10238 = vmatprep.subr.bf16.mxu1 %v13631_v41  ;;  %v13712_v20 = vld [vmem:[%s17165_s8 + $0x714] ss:$8 sps:$4 sm:$0xff]   ;;  %v13707_v41 = vld [vmem:[%s17165_s8 + $0x610] ss:$8 sps:$4 sm:$0xff]  }
 0x55d   : > { %10279 = vmatprep.subr.bf16.mxu0 %v13634_v2  ;;  %v13710_v2 = vld [vmem:[%s17165_s8 + $0x710] ss:$8 sps:$4 sm:$0xff]  }
 0x55f   : > { %10239 = vmatpush2.bf16.msra.mxu1 %v13629_v35  ;;  %v13715_v35 = vld [vmem:[%s17165_s8 + $0x604] ss:$8 sps:$4 sm:$0xff]  }
 0x560   : > { %10280 = vmatpush2.bf16.msra.mxu0 %v13632_v34  ;;  %10240 = vmatprep.subr.bf16.mxu1 %v13637_v28  ;;  %v13718_v34 = vld [vmem:[%s17165_s8 + $0x704] ss:$8 sps:$4 sm:$0xff]   ;;  %v13713_v28 = vld [vmem:[%s17165_s8 + $0x600] ss:$8 sps:$4 sm:$0xff]  }
 0x561   : > { %10281 = vmatprep.subr.bf16.mxu0 %v13640_v23  ;;  %v13716_v23 = vld [vmem:[%s17165_s8 + $0x700] ss:$8 sps:$4 sm:$0xff]  }
 0x563   : > { %10241 = vmatpush2.bf16.msra.mxu1 %v13635_v27  ;;  %v13721_v27 = vld [vmem:[%s17165_s8 + $0x6f4] ss:$8 sps:$4 sm:$0xff]  }
 0x564   : > { %10282 = vmatpush2.bf16.msra.mxu0 %v13638_v12  ;;  %10242 = vmatprep.subr.bf16.mxu1 %v13643_v61  ;;  %v13724_v12 = vld [vmem:[%s17165_s8 + $0x7f4] ss:$8 sps:$4 sm:$0xff]   ;;  %v13719_v61 = vld [vmem:[%s17165_s8 + $0x6f0] ss:$8 sps:$4 sm:$0xff]  }
 0x565   : > { %10283 = vmatprep.subr.bf16.mxu0 %v13646_v51  ;;  %v13722_v51 = vld [vmem:[%s17165_s8 + $0x7f0] ss:$8 sps:$4 sm:$0xff]  }
 0x567   : > { %10243 = vmatpush2.bf16.msra.mxu1 %v13641_v53  ;;  %v13727_v53 = vld [vmem:[%s17165_s8 + $0x6e4] ss:$8 sps:$4 sm:$0xff]  }
 0x568   : > { %10284 = vmatpush2.bf16.msra.mxu0 %v13644_v11  ;;  %10244 = vmatprep.subr.bf16.mxu1 %v13649_v38  ;;  %v13730_v11 = vld [vmem:[%s17165_s8 + $0x7e4] ss:$8 sps:$4 sm:$0xff]   ;;  %v13725_v38 = vld [vmem:[%s17165_s8 + $0x6e0] ss:$8 sps:$4 sm:$0xff]  }
 0x569   : > { %10285 = vmatprep.subr.bf16.mxu0 %v13652_v31  ;;  %v13728_v31 = vld [vmem:[%s17165_s8 + $0x7e0] ss:$8 sps:$4 sm:$0xff]  }
 0x56b   : > { %10245 = vmatpush2.bf16.msra.mxu1 %v13647_v17  ;;  %v13733_v17 = vld [vmem:[%s17165_s8 + $0x6d4] ss:$8 sps:$4 sm:$0xff]  }
 0x56c   : > { %10286 = vmatpush2.bf16.msra.mxu0 %v13650_v5  ;;  %10246 = vmatprep.subr.bf16.mxu1 %v13655_v54  ;;  %v13736_v5 = vld [vmem:[%s17165_s8 + $0x7d4] ss:$8 sps:$4 sm:$0xff]   ;;  %v13731_v54 = vld [vmem:[%s17165_s8 + $0x6d0] ss:$8 sps:$4 sm:$0xff]  }
 0x56d   : > { %10287 = vmatprep.subr.bf16.mxu0 %v13658_v15  ;;  %v13734_v15 = vld [vmem:[%s17165_s8 + $0x7d0] ss:$8 sps:$4 sm:$0xff]  }
 0x56f   : > { %10247 = vmatpush2.bf16.msra.mxu1 %v13653_v9  ;;  %v13739_v9 = vld [vmem:[%s17165_s8 + $0x6c4] ss:$8 sps:$4 sm:$0xff]  }
 0x570   : > { %10288 = vmatpush2.bf16.msra.mxu0 %v13656_v59  ;;  %10248 = vmatprep.subr.bf16.mxu1 %v13661_v24  ;;  %v13742_v59 = vld [vmem:[%s17165_s8 + $0x7c4] ss:$8 sps:$4 sm:$0xff]   ;;  %v13737_v24 = vld [vmem:[%s17165_s8 + $0x6c0] ss:$8 sps:$4 sm:$0xff]  }
 0x571   : > { %10289 = vmatprep.subr.bf16.mxu0 %v13664_v60  ;;  %v13740_v60 = vld [vmem:[%s17165_s8 + $0x7c0] ss:$8 sps:$4 sm:$0xff]  }
 0x573   : > { %10249 = vmatpush2.bf16.msra.mxu1 %v13659_v21  ;;  %v13745_v21 = vld [vmem:[%s17165_s8 + $0x6b4] ss:$8 sps:$4 sm:$0xff]  }
 0x574   : > { %10290 = vmatpush2.bf16.msra.mxu0 %v13662_v19  ;;  %10250 = vmatprep.subr.bf16.mxu1 %v13667_v10  ;;  %v13748_v19 = vld [vmem:[%s17165_s8 + $0x7b4] ss:$8 sps:$4 sm:$0xff]   ;;  %v13743_v10 = vld [vmem:[%s17165_s8 + $0x6b0] ss:$8 sps:$4 sm:$0xff]  }
 0x575   : > { %10291 = vmatprep.subr.bf16.mxu0 %v13670_v46  ;;  %v13746_v46 = vld [vmem:[%s17165_s8 + $0x7b0] ss:$8 sps:$4 sm:$0xff]  }
 0x577   : > { %10251 = vmatpush2.bf16.msra.mxu1 %v13665_v4  ;;  %v13751_v4 = vld [vmem:[%s17165_s8 + $0x6a4] ss:$8 sps:$4 sm:$0xff]  }
 0x578   : > { %10292 = vmatpush2.bf16.msra.mxu0 %v13668_v37  ;;  %10302 = vmatprep.subr.bf16.mxu1 %v13673_v57  ;;  %v13754_v37 = vld [vmem:[%s17165_s8 + $0x7a4] ss:$8 sps:$4 sm:$0xff]   ;;  %v13752_v57 = vld [vmem:[%s17165_s8 + $0x7a0] ss:$8 sps:$4 sm:$0xff]  }
 0x579   : > { %10343 = vmatprep.subr.bf16.mxu0 %v13676_v52  ;;  %v13760_v52 = vld [vmem:[%s17165_s8 + $0x794] ss:$8 sps:$4 sm:$0xff]  }
 0x57a   : > { %10253 = vmatmul.mubr.bf16.vlgmr.msra.gmra.mxu1 %v8500_v40  ;;  %v13758_v40 = vld [vmem:[%s17165_s8 + $0x790] ss:$8 sps:$4 sm:$0xff]  }
 0x57b   : > { %10294 = vmatmul.mubr.bf16.vlgmr.msra.gmra.mxu0 %v8502_v32  ;;  %10303 = vmatpush1.bf16.msra.mxu1 %v13671_v42  ;;  %v13755_v42 = vld [vmem:[%s17165_s8 + $0x690] ss:$8 sps:$4 sm:$0xff]   ;;  %v13766_v32 = vld [vmem:[%s17165_s8 + $0x784] ss:$8 sps:$4 sm:$0xff]  }
 0x57c   : > { %10334 = vmatprep.mubr.bf16.mxu1 %v8505_v36  ;;  %10344 = vmatpush1.bf16.msra.mxu0 %v13674_v33  ;;  %v13763_v33 = vld [vmem:[%s17165_s8 + $0x684] ss:$8 sps:$4 sm:$0xff]   ;;  %v13764_v36 = vld [vmem:[%s17165_s8 + $0x780] ss:$8 sps:$4 sm:$0xff]  }
 0x57d   : > { %10375 = vmatprep.mubr.bf16.mxu0 %v8507_v14  ;;  %10304 = vmatprep.subr.bf16.mxu1 %v13679_v44  ;;  %v13761_v44 = vld [vmem:[%s17165_s8 + $0x680] ss:$8 sps:$4 sm:$0xff]  }
 0x57e   : > { %10345 = vmatprep.subr.bf16.mxu0 %v13682_v18  ;;  %v8764_v18 = vld [vmem:[%s17166_s9] sm:$0x3] }
 0x57f   : > { %10305 = vmatpush1.bf16.msra.mxu1 %v13677_v6  ;;  %v10049_v14 = vrot.slane %v8764_v18, %v16408_v0  ;;  %v8504_v6 = vpack.c.bf16 %v16646_v30, %v16646_v30  ;;  %v13767_v30 = vld [vmem:[%s17167_s10 + $0x78] sm:$0xff]  }
 0x580   : > { %10346 = vmatpush1.bf16.msra.mxu0 %v13680_v58  ;;  %10306 = vmatprep.subr.bf16.mxu1 %v13685_v39  ;;  %v8506_v58 = vpack.c.bf16 %v16649_v16, %v16649_v16  ;;  %v10053_v39 = vrot.slane %v8764_v18, %v16404_v26  ;;  %v13768_v26 = vld [vmem:[%s17167_s10 + $0x38] sm:$0xff]   ;;  %v13769_v16 = vld [vmem:[%s17167_s10 + $0x70] sm:$0xff]  }
 0x581   : > { %10347 = vmatprep.subr.bf16.mxu0 %v13688_v48 }
 0x583   : > { %10307 = vmatpush1.bf16.msra.mxu1 %v13683_v47 }
 0x584   : > { %10348 = vmatpush1.bf16.msra.mxu0 %v13686_v49  ;;  %10308 = vmatprep.subr.bf16.mxu1 %v13691_v62 }
 0x585   : > { %10349 = vmatprep.subr.bf16.mxu0 %v13694_v22 }
 0x587   : > { %10309 = vmatpush1.bf16.msra.mxu1 %v13689_v55 }
 0x588   : > { %10350 = vmatpush1.bf16.msra.mxu0 %v13692_v13  ;;  %10310 = vmatprep.subr.bf16.mxu1 %v13697_v63 }
 0x589   : > { %10351 = vmatprep.subr.bf16.mxu0 %v13700_v56 }
 0x58b   : > { %10311 = vmatpush1.bf16.msra.mxu1 %v13695_v45 }
 0x58c   : > { %10352 = vmatpush1.bf16.msra.mxu0 %v13698_v50  ;;  %10312 = vmatprep.subr.bf16.mxu1 %v13703_v29  ;;  %v13770_v29 = vld [vmem:[%s17167_s10 + $0x30] sm:$0xff]  }
 0x58d   : > { %10353 = vmatprep.subr.bf16.mxu0 %v13706_v3  ;;  %v13771_v3 = vld [vmem:[%s17167_s10 + $0x68] sm:$0xff]  }
 0x58f   : > { %10313 = vmatpush1.bf16.msra.mxu1 %v13701_v43  ;;  %v13772_v43 = vld [vmem:[%s17167_s10 + $0x28] sm:$0xff]  }
 0x590   : > { %10354 = vmatpush1.bf16.msra.mxu0 %v13704_v8  ;;  %10314 = vmatprep.subr.bf16.mxu1 %v13709_v1  ;;  %v13773_v8 = vld [vmem:[%s17167_s10 + $0x60] sm:$0xff]  }
 0x591   : > { %10355 = vmatprep.subr.bf16.mxu0 %v13712_v20  ;;  %v13774_v1 = vld [vmem:[%s17167_s10 + $0x20] sm:$0xff]   ;;  %v13775_v20 = vld [vmem:[%s17167_s10 + $0x58] sm:$0xff]  }
 0x593   : > { %10315 = vmatpush1.bf16.msra.mxu1 %v13707_v41  ;;  %v13776_v41 = vld [vmem:[%s17167_s10 + $0x18] sm:$0xff]  }
 0x594   : > { %10356 = vmatpush1.bf16.msra.mxu0 %v13710_v2  ;;  %10316 = vmatprep.subr.bf16.mxu1 %v13715_v35 }
 0x595   : > { %10357 = vmatprep.subr.bf16.mxu0 %v13718_v34 }
 0x597   : > { %10317 = vmatpush1.bf16.msra.mxu1 %v13713_v28 }
 0x598   : > { %10358 = vmatpush1.bf16.msra.mxu0 %v13716_v23  ;;  %10318 = vmatprep.subr.bf16.mxu1 %v13721_v27 }
 0x599   : > { %10359 = vmatprep.subr.bf16.mxu0 %v13724_v12 }
 0x59b   : > { %10319 = vmatpush2.bf16.msra.mxu1 %v13719_v61 }
 0x59c   : > { %10360 = vmatpush2.bf16.msra.mxu0 %v13722_v51  ;;  %10320 = vmatprep.subr.bf16.mxu1 %v13727_v53 }
 0x59d   : > { %10361 = vmatprep.subr.bf16.mxu0 %v13730_v11 }
 0x59f   : > { %10321 = vmatpush2.bf16.msra.mxu1 %v13725_v38 }
 0x5a0   : > { %10362 = vmatpush2.bf16.msra.mxu0 %v13728_v31  ;;  %10322 = vmatprep.subr.bf16.mxu1 %v13733_v17  ;;  %v13777_v31 = vld [vmem:[%s17167_s10 + $0x50] sm:$0xff]  }
 0x5a1   : > { %10363 = vmatprep.subr.bf16.mxu0 %v13736_v5  ;;  %v13778_v17 = vld [vmem:[%s17167_s10 + $0x10] sm:$0xff]   ;;  %v13779_v5 = vld [vmem:[%s17167_s10 + $0x48] sm:$0xff]  }
 0x5a3   : > { %10323 = vmatpush2.bf16.msra.mxu1 %v13731_v54  ;;  %v13780_v54 = vld [vmem:[%s17167_s10 + $0x8] sm:$0xff]  }
 0x5a4   : > { %10364 = vmatpush2.bf16.msra.mxu0 %v13734_v15  ;;  %10324 = vmatprep.subr.bf16.mxu1 %v13739_v9  ;;  %v13781_v15 = vld [vmem:[%s17167_s10 + $0x40] sm:$0xff]  }
 0x5a5   : > { %10365 = vmatprep.subr.bf16.mxu0 %v13742_v59  ;;  %v13782_v9 = vld [vmem:[%s17167_s10] sm:$0xff]  }
 0x5a7   : > { %10325 = vmatpush2.bf16.msra.mxu1 %v13737_v24 }
 0x5a8   : > { %10366 = vmatpush2.bf16.msra.mxu0 %v13740_v60  ;;  %10326 = vmatprep.subr.bf16.mxu1 %v13745_v21 }
 0x5a9   : > { %10367 = vmatprep.subr.bf16.mxu0 %v13748_v19 }
 0x5ab   : > { %10327 = vmatpush2.bf16.msra.mxu1 %v13743_v10 }
 0x5ac   : > { %10368 = vmatpush2.bf16.msra.mxu0 %v13746_v46  ;;  %10328 = vmatprep.subr.bf16.mxu1 %v13751_v4 }
 0x5ad   : > { %10369 = vmatprep.subr.bf16.mxu0 %v13754_v37 }
 0x5af   : > { %10329 = vmatpush2.bf16.msra.mxu1 %v13749_v7 }
 0x5b0   : > { %10370 = vmatpush2.bf16.msra.mxu0 %v13752_v57  ;;  %10330 = vmatprep.subr.bf16.mxu1 %v13757_v25 }
 0x5b1   : > { %10371 = vmatprep.subr.bf16.mxu0 %v13760_v52 }
 0x5b3   : > { %10331 = vmatpush2.bf16.msra.mxu1 %v13755_v42 }
 0x5b4   : > { %10372 = vmatpush2.bf16.msra.mxu0 %v13758_v40  ;;  %10332 = vmatprep.subr.bf16.mxu1 %v13763_v33 }
 0x5b5   : > { %10373 = vmatprep.subr.bf16.mxu0 %v13766_v32 }
 0x5b7   : > { %10333 = vmatpush2.bf16.msra.mxu1 %v13761_v44 }
 0x5b8   : > { %10374 = vmatpush2.bf16.msra.mxu0 %v13764_v36  ;;  %12098 = vmatprep.subr.bf16.mxu1 %v13767_v30 }
 0x5ba   : > { %10335 = vmatmul.mubr.bf16.vlgmr.msra.gmra.mxu1 %v8504_v6  ;;  %v10090_v48 = vpop.f32.mrf.mxu1 }
 0x5bb   : > { %10376 = vmatmul.mubr.bf16.vlgmr.msra.gmra.mxu0 %v8506_v58  ;;  %v10091_v47 = vadd.f32 %v10090_v48, %v10049_v14  ;;  %v10131_v49 = vpop.f32.mrf.mxu0  ;;  %12099 = vmatpush3.bf16.msra.mxu1 %v13768_v26 }
 0x5bc   : > { %v10092_v62 = vpop.f32.mrf.mxu1  ;;  %12100 = vmatprep.subr.bf16.mxu1 %v13769_v16 }
 0x5bd   : > { %v10132_v22 = vadd.f32 %v10131_v49, %v10091_v47  ;;  %v10093_v55 = vadd.f32 %v10092_v62, %v10053_v39  ;;  %v10133_v13 = vpop.f32.mrf.mxu0 }
 0x5be   : > { %v10094_v63 = vpop.f32.mrf.mxu1 }
 0x5bf   : > { %v10134_v0 = vadd.f32 %v10133_v13, %v10093_v55  ;;  %v10135_v56 = vpop.f32.mrf.mxu0  ;;  %12101 = vmatpush3.bf16.msra.mxu1 %v13770_v29  ;;  %v10420_v55 = vld [vmem:[%s17168_s11] sm:$0x1] }
 0x5c0   : > { %v10095_v45 = vpop.f32.mrf.mxu1  ;;  %12102 = vmatprep.subr.bf16.mxu1 %v13771_v3 }
 0x5c1   : > { %v10136_v50 = vpop.f32.mrf.mxu0 }
 0x5c3   : > { %12103 = vmatpush3.bf16.msra.mxu1 %v13772_v43 }
 0x5c4   : > { %12104 = vmatprep.subr.bf16.mxu1 %v13773_v8 }
 0x5c7   : > { %12105 = vmatpush3.bf16.msra.mxu1 %v13774_v1 }
 0x5c8   : > { %12106 = vmatprep.subr.bf16.mxu1 %v13775_v20 }
 0x5cb   : > { %12107 = vmatpush3.bf16.msra.mxu1 %v13776_v41 }
 0x5cc   : > { %12108 = vmatprep.subr.bf16.mxu1 %v13777_v31 }
 0x5cf   : > { %12109 = vmatpush3.bf16.msra.mxu1 %v13778_v17 }
 0x5d0   : > { %12110 = vmatprep.subr.bf16.mxu1 %v13779_v5 }
 0x5d3   : > { %12111 = vmatpush3.bf16.msra.mxu1 %v13780_v54 }
 0x5d4   : > { %12112 = vmatprep.subr.bf16.mxu1 %v13781_v15 }
 0x5d7   : > { %12113 = vmatpush3.bf16.msra.mxu1 %v13782_v9 }
 0x5fa   : > { %v10172_v2 = vpop.f32.mrf.mxu1 }
 0x5fb   : > { %v10173_v35 = vadd.f32 %v10172_v2, %v10132_v22  ;;  %v10213_v34 = vpop.f32.mrf.mxu0 }
 0x5fc   : > { %v10174_v28 = vpop.f32.mrf.mxu1 }
 0x5fd   : > { %v10214_v23 = vadd.f32 %v10213_v34, %v10173_v35  ;;  %v10175_v27 = vadd.f32 %v10174_v28, %v10134_v0  ;;  %v10215_v12 = vpop.f32.mrf.mxu0 }
 0x5fe   : > { %v10176_v61 = vpop.f32.mrf.mxu1 }
 0x5ff   : > { %v10216_v51 = vadd.f32 %v10215_v12, %v10175_v27  ;;  %v10217_v53 = vpop.f32.mrf.mxu0 }
 0x600   : > { %v10177_v11 = vpop.f32.mrf.mxu1 }
 0x601   : > { %v10218_v38 = vpop.f32.mrf.mxu0 }
 0x63a   : > { %v10254_v59 = vpop.f32.mrf.mxu1 }
 0x63b   : > { %v10255_v24 = vadd.f32 %v10254_v59, %v10214_v23  ;;  %v10295_v60 = vpop.f32.mrf.mxu0 }
 0x63c   : > { %v10256_v21 = vpop.f32.mrf.mxu1 }
 0x63d   : > { %v10296_v19 = vadd.f32 %v10295_v60, %v10255_v24  ;;  %v10297_v10 = vpop.f32.mrf.mxu0  ;;  %v10257_v57 = vadd.f32 %v10256_v21, %v10216_v51 }
 0x63e   : > { %v10258_v46 = vpop.f32.mrf.mxu1 }
 0x63f   : > { %v10299_v4 = vpop.f32.mrf.mxu0  ;;  %v10298_v52 = vadd.f32 %v10297_v10, %v10257_v57 }
 0x640   : > { %v10259_v37 = vpop.f32.mrf.mxu1 }
 0x641   : > { %v10300_v7 = vpop.f32.mrf.mxu0 }
 0x67a   : > { %v10336_v25 = vpop.f32.mrf.mxu1 }
 0x67b   : > { %v10337_v42 = vadd.f32 %v10336_v25, %v10296_v19  ;;  %v10377_v40 = vpop.f32.mrf.mxu0 }
 0x67c   : > { %v10338_v33 = vpop.f32.mrf.mxu1 }
 0x67d   : > { %v10378_v32 = vadd.f32 %v10377_v40, %v10337_v42  ;;  %v10339_v44 = vadd.f32 %v10338_v33, %v10298_v52  ;;  %v10379_v36 = vpop.f32.mrf.mxu0 }
 0x67e   : > { %v10340_v18 = vpop.f32.mrf.mxu1 }
 0x67f   : > { %v10380_v14 = vadd.f32 %v10379_v36, %v10339_v44  ;;  %v10381_v6 = vpop.f32.mrf.mxu0  ;;  %v10384_v58 = vmax.f32 %v10378_v32, 0.0 }
 0x680   : > { %v10341_v39 = vpop.f32.mrf.mxu1 }
 0x681   : > { %v10385_v48 = vmax.f32 %v10380_v14, 0.0  ;;  %v10382_v47 = vpop.f32.mrf.mxu0  ;;  %v10386_v62 = vpack.c.bf16 %v10384_v58, %v10384_v58 }
 0x683   : > { %v10387_v49 = vpack.c.bf16 %v10385_v48, %v10385_v48 }
 0x685   : > { %10549 = vmatprep.mubr.bf16.mxu1 %v10387_v49 }
 0x686   : > { %10550 = vmatmul.mubr.bf16.vlgmr.msra.gmra.mxu1 %v10386_v62 }
 0x746   : > { %v12114_v22 = vpop.f32.mrf.mxu1 }
 0x748   : > { %v12115_v13 = vpop.f32.mrf.mxu1 }
 0x749   : > { %v12116_v63 = vadd.f32 %v12115_v13, %v12114_v22 }
 0x74a   : > { %v12117_v0 = vpop.f32.mrf.mxu1 }
 0x74b   : > { %v10552_v56 = vadd.f32 %v12116_v63, %v10420_v55 }
 0x74c   : > { %v12118_v45 = vpop.f32.mrf.mxu1 }
 0x74d   : > { %10557 = vst [vmem:[%s405_s18] sm:$0x1] %v10552_v56 }
 0x74e   : > { %13802 = shalt.err (!%p13799_p3)
}
 0x74f   : > { %s13803_s30 = scalar_lea.hbm %s17122_s26, 16  ;;  %s13807_s28 = scalar_lea.hbm %s17169_s12, 32 }
 0x750   : > { %p13804_p4 = scmp.ne.s32.totalorder %s17122_s26, %s13803_s30  ;;  %p13808_p9 = scmp.lt.s32.totalorder %s17122_s26, %s17169_s12 }
 0x751   : > { %p13809_p10 = scmp.lt.s32.totalorder %s13807_s28, %s13803_s30 }
 0x752   : > { %p13805_p7 = pnand %p13804_p4, %p13959_p5 }
 0x753   : > { %p13810_p11 = por %p13809_p10, %p13808_p9 }
 0x754   : > { %p13806_p8 = pneg %p13805_p7 }
 0x756   : > { %p13811_p12 = pnand %p13810_p11, %p13806_p8 }
 0x758   : > { %13814 = shalt.err (!%p13811_p12)
}
 0x759   : > { %13001 = dma.vmem_to_hbm [thread:$0]  (%p13959_p5), %s10572_s19, 16, %s17122_s26, %s10559_s29  }
 0x75a PF: > { %p13007_p13 = scmp.ge.s32.totalorder %s13849_s24, 2  ;;  %s10583_s15 = sand.u32 1, %s13837_s21  }
 0x75b   : > { %s10584_s17 = scalar_lea.sflag [#allocation8], %s10583_s15 }
 0x75c   : > { %p13004_p0 = pnand %p13007_p13, %p13963_p6 }
 0x75e   : > { %p13005_p1 = pneg %p13004_p0 }
 0x760   : > { %13832 = dma.done.wait (%p13005_p1), %s10584_s17, 16  }
 0x761   : > { %13834 = vsyncadd (%p13005_p1), %s10584_s17, 4294967280  ;;  %s17375_s2 = sld [smem:[#allocation10_spill]]  ;;  %p22_p2 = scmp.ge.s32.totalorder %s13946_s27, 4  }
 0x762   : > { %s17376_s21 = smov %s13841_s22  ;;  %s17377_s22 = smov %s13845_s23 }
 0x763   : > { %s17379_s24 = smov %s13946_s27  ;;  %24 = sbr.rel (!%p22_p2) target bundleno = 5 (0x5), region = 165 }
 0x767   : > { %s17378_s23 = smov %s17375_s2 }
 0x768   :  { %10588 = vsyncpa [#allocation8], 1 }
 0x769   :  { %10590 = vsyncpa [#allocation8 + $0x1], 1 }

</bundles_post_ra>
